<compile_context>
chip_gen: v5e
topology: v5e:2x2
jax: 0.10.0
libtpu: 0.0.40
codegen_flags: <defaults>
</compile_context>

<pallas_src>
import functools

import jax
import jax.numpy as jnp
from jax import lax
from jax.experimental import pallas as pl
from jax.experimental.pallas import tpu as pltpu


# ---------------------------------------------------------------------------
# Fused kernel: one full decoder forward per grid step (one batch element).
# ---------------------------------------------------------------------------
def _decoder_kernel(x_ref, w1_ref, b1_ref, w2_ref, b2_ref, w3_ref, b3_ref,
                    o_ref, pad1_ref, pad2_ref, pad3_ref, *, H, W, E, HD, CO):
    H2, W2 = 2 * H, 2 * W
    f32 = jnp.float32
    bf16 = jnp.bfloat16

    # ---- layer 1: 3x3 conv, padding 1, ReLU -------------------------------
    pad1_ref[...] = jnp.zeros((H + 2, W + 2, E), f32)
    pad1_ref[1:H + 1, 1:W + 1, :] = x_ref[0]

    acc1 = jnp.zeros((H * W, HD), f32)
    for a in range(3):
        for b in range(3):
            win = pad1_ref[a:a + H, b:b + W, :].reshape(H * W, E).astype(bf16)
            acc1 = acc1 + jnp.dot(win, w1_ref[a * 3 + b],
                                  preferred_element_type=f32)
    h1 = jnp.maximum(acc1 + b1_ref[...], 0.0)                 # (H*W, HD)

    # ---- layer 2: ConvT 4x4, stride 2, pad 1, ReLU (4 sub-pixel phases) ----
    # out[2y+py, 2x+px] = b2 + sum_{dy,dx} xpad[y+py+dy, x+px+dx] @ W2[py,px,dy,dx]
    pad2_ref[...] = jnp.zeros((H + 2, W + 2, HD), f32)
    pad2_ref[1:H + 1, 1:W + 1, :] = h1.reshape(H, W, HD)

    h2 = [[None, None], [None, None]]
    for py in range(2):
        for px in range(2):
            acc = jnp.zeros((H * W, HD), f32)
            for dy in range(2):
                for dx in range(2):
                    win = pad2_ref[py + dy:py + dy + H,
                                   px + dx:px + dx + W, :]
                    win = win.reshape(H * W, HD).astype(bf16)
                    idx = ((py * 2 + px) * 2 + dy) * 2 + dx
                    acc = acc + jnp.dot(win, w2_ref[idx],
                                        preferred_element_type=f32)
            ph = jnp.maximum(acc + b2_ref[...], 0.0)          # (H*W, HD)
            h2[py][px] = ph.reshape(H, W, HD)

    # interleave the 4 phase maps -> (2H, 2W, HD) without any transposes
    r0 = jnp.concatenate([h2[0][0][:, :, None, :], h2[0][1][:, :, None, :]],
                         axis=2).reshape(H, W2, HD)
    r1 = jnp.concatenate([h2[1][0][:, :, None, :], h2[1][1][:, :, None, :]],
                         axis=2).reshape(H, W2, HD)
    z = jnp.concatenate([r0[:, None], r1[:, None]], axis=1).reshape(H2, W2, HD)

    pad3_ref[...] = jnp.zeros((H2 + 2, W2 + 2, HD), f32)
    pad3_ref[1:H2 + 1, 1:W2 + 1, :] = z

    # ---- layer 3: ConvT 4x4, stride 2, pad 1, Sigmoid ----------------------
    # Phases packed along N (columns = (py, px, co)); the phase->pixel
    # interleave of the final image is a free reshape/transpose on the host.
    acc3 = jnp.zeros((H2 * W2, 4 * CO), f32)
    for a in range(3):
        for b in range(3):
            win = pad3_ref[a:a + H2, b:b + W2, :].reshape(H2 * W2, HD)
            acc3 = acc3 + jnp.dot(win.astype(bf16), w3_ref[a * 3 + b],
                                  preferred_element_type=f32)
    pre = acc3 + b3_ref[...]
    out = 1.0 / (1.0 + jnp.exp(-pre))                         # sigmoid, f32
    o_ref[0] = out.astype(o_ref.dtype)


# ---------------------------------------------------------------------------
# Host-side weight re-arrangement (tiny, done once per call).
# ---------------------------------------------------------------------------
def _prep_decoder_weights(params):
    w1, b1 = params["w1"], params["b1"]       # (HD, E, 3, 3) torch Conv2d (O,I,kh,kw)
    w2, b2 = params["w2"], params["b2"]       # (HD, HD, 4, 4) torch ConvT (I,O,kh,kw)
    w3, b3 = params["w3"], params["b3"]       # (HD, CO, 4, 4) torch ConvT (I,O,kh,kw)
    HD, E = w1.shape[0], w1.shape[1]
    CO = w3.shape[1]

    # conv1: tap (a, b) -> (ci, co):  out[y,x] += xpad[y+a, x+b, :] @ W[a,b]
    w1t = jnp.transpose(w1, (2, 3, 1, 0)).reshape(9, E, HD)

    # convT2: phase (py,px), tap (dy,dx): weight = Wt[:, :, 3-py-2dy, 3-px-2dx]
    taps2 = []
    for py in range(2):
        for px in range(2):
            for dy in range(2):
                for dx in range(2):
                    taps2.append(w2[:, :, 3 - py - 2 * dy, 3 - px - 2 * dx])
    w2t = jnp.stack(taps2, axis=0)            # (16, HD, HD)

    # convT3: window (a,b) -> (ci, 4*co), the 4 phases packed along columns.
    zero = jnp.zeros((HD, CO), w3.dtype)
    wins3 = []
    for a in range(3):
        for b in range(3):
            cols = []
            for py in range(2):
                for px in range(2):
                    ky, kx = 3 + py - 2 * a, 3 + px - 2 * b
                    ok = (0 <= ky <= 3) and (0 <= kx <= 3)
                    cols.append(w3[:, :, ky, kx] if ok else zero)
            wins3.append(jnp.concatenate(cols, axis=1))       # (HD, 4*CO)
    w3t = jnp.stack(wins3, axis=0)            # (9, HD, 4*CO)

    bf16 = jnp.bfloat16
    return (w1t.astype(bf16), b1.reshape(1, HD).astype(jnp.float32),
            w2t.astype(bf16), b2.reshape(1, HD).astype(jnp.float32),
            w3t.astype(bf16),
            jnp.tile(b3, 4).reshape(1, 4 * CO).astype(jnp.float32))


# ---------------------------------------------------------------------------
# Decoder forward (single fused pallas_call).
# ---------------------------------------------------------------------------
def decoder_forward(params, x_nchw):
    B, E, H, W = x_nchw.shape
    HD = params["b1"].shape[0]
    CO = params["b3"].shape[0]
    H2, W2 = 2 * H, 2 * W

    x_nhwc = jnp.transpose(x_nchw, (0, 2, 3, 1)).astype(jnp.float32)
    w1t, b1, w2t, b2, w3t, b3t = _prep_decoder_weights(params)

    kernel = functools.partial(_decoder_kernel, H=H, W=W, E=E, HD=HD, CO=CO)
    out = pl.pallas_call(
        kernel,
        out_shape=jax.ShapeDtypeStruct((B, H2 * W2, 4 * CO), jnp.float32),
        grid_spec=pltpu.PrefetchScalarGridSpec(
            num_scalar_prefetch=0,
            grid=(B,),
            in_specs=[
                pl.BlockSpec((1, H, W, E), lambda n: (n, 0, 0, 0)),
                pl.BlockSpec((9, E, HD), lambda n: (0, 0, 0)),
                pl.BlockSpec((1, HD), lambda n: (0, 0)),
                pl.BlockSpec((16, HD, HD), lambda n: (0, 0, 0)),
                pl.BlockSpec((1, HD), lambda n: (0, 0)),
                pl.BlockSpec((9, HD, 4 * CO), lambda n: (0, 0, 0)),
                pl.BlockSpec((1, 4 * CO), lambda n: (0, 0)),
            ],
            out_specs=pl.BlockSpec((1, H2 * W2, 4 * CO), lambda n: (n, 0, 0)),
            scratch_shapes=[
                pltpu.VMEM((H + 2, W + 2, E), jnp.float32),    # padded input
                pltpu.VMEM((H + 2, W + 2, HD), jnp.float32),   # padded conv1 out
                pltpu.VMEM((H2 + 2, W2 + 2, HD), jnp.float32),  # padded convT2 out
            ],
        ),
        compiler_params=pltpu.CompilerParams(
            dimension_semantics=("parallel",)),   # v7x: one batch item per TC
    )(x_nhwc, w1t, b1, w2t, b2, w3t, b3t)

    # (B, H2*W2, 4*CO) with columns (py, px, co) -> NCHW image (free reshapes).
    o = out.reshape(B, H2, W2, 2, 2, CO)
    o = jnp.transpose(o, (0, 5, 1, 3, 2, 4))      # (B, CO, y, py, x, px)
    return o.reshape(B, CO, 2 * H2, 2 * W2)


# ---------------------------------------------------------------------------
# Parameter init (PyTorch-parity bounds; ConvTranspose fan_in = out_ch*kH*kW).
# ---------------------------------------------------------------------------
def init_decoder_params(key, in_dim, hidden_dim, embedding_dim):
    ks = jax.random.split(key, 6)

    def u(k, shape, fan_in):
        bound = 1.0 / jnp.sqrt(fan_in)
        return jax.random.uniform(k, shape, jnp.float32, -bound, bound)

    return {
        # nn.Conv2d(embedding_dim, hidden_dim, 3, padding=1)
        "w1": u(ks[0], (hidden_dim, embedding_dim, 3, 3), embedding_dim * 9),
        "b1": u(ks[1], (hidden_dim,), embedding_dim * 9),
        # nn.ConvTranspose2d(hidden, hidden, 4, stride=2, padding=1)
        "w2": u(ks[2], (hidden_dim, hidden_dim, 4, 4), hidden_dim * 16),
        "b2": u(ks[3], (hidden_dim,), hidden_dim * 16),
        # nn.ConvTranspose2d(hidden, in_dim, 4, stride=2, padding=1)
        "w3": u(ks[4], (hidden_dim, in_dim, 4, 4), in_dim * 16),
        "b3": u(ks[5], (in_dim,), in_dim * 16),
    }


# ---------------------------------------------------------------------------
# Pure-XLA f32 reference (for an in-script correctness check).
# ---------------------------------------------------------------------------
def _reference_decoder(params, x_nchw):
    def conv(x, w, b, pad):
        y = lax.conv_general_dilated(
            x, w, window_strides=(1, 1), padding=((pad, pad), (pad, pad)),
            dimension_numbers=("NCHW", "OIHW", "NCHW"))
        return y + b.reshape(1, -1, 1, 1)

    def convT(x, w_iohw, b, stride, pad):
        w = jnp.transpose(w_iohw, (1, 0, 2, 3))[:, :, ::-1, ::-1]
        k = w.shape[2]
        y = lax.conv_general_dilated(
            x, w, window_strides=(1, 1),
            padding=((k - 1 - pad, k - 1 - pad),) * 2,
            lhs_dilation=(stride, stride),
            dimension_numbers=("NCHW", "OIHW", "NCHW"))
        return y + b.reshape(1, -1, 1, 1)

    h = jax.nn.relu(conv(x_nchw, params["w1"], params["b1"], 1))
    h = jax.nn.relu(convT(h, params["w2"], params["b2"], 2, 1))
    return jax.nn.sigmoid(convT(h, params["w3"], params["b3"], 2, 1))


if __name__ == "__main__":
    in_dim, hidden_dim, embedding_dim = 3, 16, 8
    batch, spatial = 2, 8   # decoder input is the quantized latent grid

    key = jax.random.PRNGKey(0)
    k_param, k_x = jax.random.split(key)
    params = init_decoder_params(k_param, in_dim, hidden_dim, embedding_dim)
    x = jax.random.normal(k_x, (batch, embedding_dim, spatial, spatial),
                          jnp.float32)

    out = jax.jit(decoder_forward)(params, x)
    out = jax.block_until_ready(out)

    assert out.shape == (batch, in_dim, 4 * spatial, 4 * spatial), out.shape
    assert bool(jnp.all(jnp.isfinite(out)))
    assert bool(jnp.all((out >= 0.0) & (out <= 1.0)))  # sigmoid range

    # numerical check vs XLA reference (bf16 MXU inputs, f32 accumulation)
    ref = jax.jit(_reference_decoder)(params, x)
    err = float(jnp.max(jnp.abs(out - ref)))
    assert err < 5e-2, f"max abs error vs reference: {err}"

    print("KERNEL_OK")
</pallas_src>

<mosaic_0001>
module attributes {stable_mosaic.version = 11 : i64} {
  func.func @_decoder_kernel(%arg0: i32, %arg1: memref<1x8x8x8xf32, #tpu.memory_space<vmem>>, %arg2: memref<9x8x16xbf16, #tpu.memory_space<vmem>>, %arg3: memref<1x16xf32, #tpu.memory_space<vmem>>, %arg4: memref<16x16x16xbf16, #tpu.memory_space<vmem>>, %arg5: memref<1x16xf32, #tpu.memory_space<vmem>>, %arg6: memref<9x16x12xbf16, #tpu.memory_space<vmem>>, %arg7: memref<1x12xf32, #tpu.memory_space<vmem>>, %arg8: memref<1x256x12xf32, #tpu.memory_space<vmem>>, %arg9: memref<10x10x8xf32, #tpu.memory_space<vmem>>, %arg10: memref<10x10x16xf32, #tpu.memory_space<vmem>>, %arg11: memref<18x18x16xf32, #tpu.memory_space<vmem>>) attributes {dimension_semantics = [#tpu.dimension_semantics<parallel>], iteration_bounds = array<i64: 2>, scalar_prefetch = 0 : i64, scratch_operands = 3 : i64, tpu.core_type = #tpu.core_type<tc>, window_params = [{transform_indices = @transform_0, window_bounds = array<i64: 1, 8, 8, 8>}, {pipeline_mode = #tpu.pipeline_mode<synchronous>, transform_indices = @transform_1, window_bounds = array<i64: 9, 8, 16>}, {pipeline_mode = #tpu.pipeline_mode<synchronous>, transform_indices = @transform_2, window_bounds = array<i64: 1, 16>}, {pipeline_mode = #tpu.pipeline_mode<synchronous>, transform_indices = @transform_3, window_bounds = array<i64: 16, 16, 16>}, {pipeline_mode = #tpu.pipeline_mode<synchronous>, transform_indices = @transform_4, window_bounds = array<i64: 1, 16>}, {pipeline_mode = #tpu.pipeline_mode<synchronous>, transform_indices = @transform_5, window_bounds = array<i64: 9, 16, 12>}, {pipeline_mode = #tpu.pipeline_mode<synchronous>, transform_indices = @transform_6, window_bounds = array<i64: 1, 12>}, {transform_indices = @transform_7, window_bounds = array<i64: 1, 256, 12>}]} {
    %cst = arith.constant 0.000000e+00 : f32
    %0 = vector.broadcast %cst : f32 to vector<10x10x8xf32>
    %c0 = arith.constant 0 : index
    %c0_0 = arith.constant 0 : index
    %c0_1 = arith.constant 0 : index
    %1 = vector.load %arg9[%c0, %c0_0, %c0_1] : memref<10x10x8xf32, #tpu.memory_space<vmem>>, vector<10x10x8xf32>
    tpu.vector_store %arg9[%c0, %c0_0, %c0_1], %0 {strides = array<i32>} : memref<10x10x8xf32, #tpu.memory_space<vmem>>, vector<10x10x8xf32>,
    %c0_2 = arith.constant 0 : index
    %c0_3 = arith.constant 0 : index
    %c0_4 = arith.constant 0 : index
    %c0_5 = arith.constant 0 : index
    %2 = vector.load %arg1[%c0_2, %c0_3, %c0_4, %c0_5] : memref<1x8x8x8xf32, #tpu.memory_space<vmem>>, vector<1x8x8x8xf32>
    %3 = vector.shape_cast %2 : vector<1x8x8x8xf32> to vector<8x8x8xf32>
    %c1 = arith.constant 1 : index
    %c1_6 = arith.constant 1 : index
    %c0_7 = arith.constant 0 : index
    %4 = vector.load %arg9[%c1, %c1_6, %c0_7] : memref<10x10x8xf32, #tpu.memory_space<vmem>>, vector<8x8x8xf32>
    tpu.vector_store %arg9[%c1, %c1_6, %c0_7], %3 {strides = array<i32>} : memref<10x10x8xf32, #tpu.memory_space<vmem>>, vector<8x8x8xf32>,
    %cst_8 = arith.constant 0.000000e+00 : f32
    %5 = vector.broadcast %cst_8 : f32 to vector<64x16xf32>
    %c0_9 = arith.constant 0 : index
    %c0_10 = arith.constant 0 : index
    %c0_11 = arith.constant 0 : index
    %6 = vector.load %arg9[%c0_9, %c0_10, %c0_11] : memref<10x10x8xf32, #tpu.memory_space<vmem>>, vector<8x8x8xf32>
    %7 = vector.shape_cast %6 : vector<8x8x8xf32> to vector<64x8xf32>
    %8 = arith.truncf %7 : vector<64x8xf32> to vector<64x8xbf16>
    %c0_12 = arith.constant 0 : index
    %c0_13 = arith.constant 0 : index
    %c0_14 = arith.constant 0 : index
    %9 = vector.load %arg2[%c0_12, %c0_13, %c0_14] : memref<9x8x16xbf16, #tpu.memory_space<vmem>>, vector<1x8x16xbf16>
    %10 = vector.shape_cast %9 : vector<1x8x16xbf16> to vector<8x16xbf16>
    %cst_15 = arith.constant dense<0.000000e+00> : vector<64x16xf32>
    %11 = tpu.matmul %8, %10, %cst_15 {dimension_numbers = #tpu.dot_dimension_numbers<[1], [0], [0], [1], [0, 0, 1, 1], [], []>} : vector<64x8xbf16>, vector<8x16xbf16>, vector<64x16xf32> -> vector<64x16xf32>
    %12 = arith.addf %5, %11 : vector<64x16xf32>
    %c0_16 = arith.constant 0 : index
    %c1_17 = arith.constant 1 : index
    %c0_18 = arith.constant 0 : index
    %13 = vector.load %arg9[%c0_16, %c1_17, %c0_18] : memref<10x10x8xf32, #tpu.memory_space<vmem>>, vector<8x8x8xf32>
    %14 = vector.shape_cast %13 : vector<8x8x8xf32> to vector<64x8xf32>
    %15 = arith.truncf %14 : vector<64x8xf32> to vector<64x8xbf16>
    %c1_19 = arith.constant 1 : index
    %c0_20 = arith.constant 0 : index
    %c0_21 = arith.constant 0 : index
    %16 = vector.load %arg2[%c1_19, %c0_20, %c0_21] : memref<9x8x16xbf16, #tpu.memory_space<vmem>>, vector<1x8x16xbf16>
    %17 = vector.shape_cast %16 : vector<1x8x16xbf16> to vector<8x16xbf16>
    %cst_22 = arith.constant dense<0.000000e+00> : vector<64x16xf32>
    %18 = tpu.matmul %15, %17, %cst_22 {dimension_numbers = #tpu.dot_dimension_numbers<[1], [0], [0], [1], [0, 0, 1, 1], [], []>} : vector<64x8xbf16>, vector<8x16xbf16>, vector<64x16xf32> -> vector<64x16xf32>
    %19 = arith.addf %12, %18 : vector<64x16xf32>
    %c0_23 = arith.constant 0 : index
    %c2 = arith.constant 2 : index
    %c0_24 = arith.constant 0 : index
    %20 = vector.load %arg9[%c0_23, %c2, %c0_24] : memref<10x10x8xf32, #tpu.memory_space<vmem>>, vector<8x8x8xf32>
    %21 = vector.shape_cast %20 : vector<8x8x8xf32> to vector<64x8xf32>
    %22 = arith.truncf %21 : vector<64x8xf32> to vector<64x8xbf16>
    %c2_25 = arith.constant 2 : index
    %c0_26 = arith.constant 0 : index
    %c0_27 = arith.constant 0 : index
    %23 = vector.load %arg2[%c2_25, %c0_26, %c0_27] : memref<9x8x16xbf16, #tpu.memory_space<vmem>>, vector<1x8x16xbf16>
    %24 = vector.shape_cast %23 : vector<1x8x16xbf16> to vector<8x16xbf16>
    %cst_28 = arith.constant dense<0.000000e+00> : vector<64x16xf32>
    %25 = tpu.matmul %22, %24, %cst_28 {dimension_numbers = #tpu.dot_dimension_numbers<[1], [0], [0], [1], [0, 0, 1, 1], [], []>} : vector<64x8xbf16>, vector<8x16xbf16>, vector<64x16xf32> -> vector<64x16xf32>
    %26 = arith.addf %19, %25 : vector<64x16xf32>
    %c1_29 = arith.constant 1 : index
    %c0_30 = arith.constant 0 : index
    %c0_31 = arith.constant 0 : index
    %27 = vector.load %arg9[%c1_29, %c0_30, %c0_31] : memref<10x10x8xf32, #tpu.memory_space<vmem>>, vector<8x8x8xf32>
    %28 = vector.shape_cast %27 : vector<8x8x8xf32> to vector<64x8xf32>
    %29 = arith.truncf %28 : vector<64x8xf32> to vector<64x8xbf16>
    %c3 = arith.constant 3 : index
    %c0_32 = arith.constant 0 : index
    %c0_33 = arith.constant 0 : index
    %30 = vector.load %arg2[%c3, %c0_32, %c0_33] : memref<9x8x16xbf16, #tpu.memory_space<vmem>>, vector<1x8x16xbf16>
    %31 = vector.shape_cast %30 : vector<1x8x16xbf16> to vector<8x16xbf16>
    %cst_34 = arith.constant dense<0.000000e+00> : vector<64x16xf32>
    %32 = tpu.matmul %29, %31, %cst_34 {dimension_numbers = #tpu.dot_dimension_numbers<[1], [0], [0], [1], [0, 0, 1, 1], [], []>} : vector<64x8xbf16>, vector<8x16xbf16>, vector<64x16xf32> -> vector<64x16xf32>
    %33 = arith.addf %26, %32 : vector<64x16xf32>
    %c1_35 = arith.constant 1 : index
    %c1_36 = arith.constant 1 : index
    %c0_37 = arith.constant 0 : index
    %34 = vector.load %arg9[%c1_35, %c1_36, %c0_37] : memref<10x10x8xf32, #tpu.memory_space<vmem>>, vector<8x8x8xf32>
    %35 = vector.shape_cast %34 : vector<8x8x8xf32> to vector<64x8xf32>
    %36 = arith.truncf %35 : vector<64x8xf32> to vector<64x8xbf16>
    %c4 = arith.constant 4 : index
    %c0_38 = arith.constant 0 : index
    %c0_39 = arith.constant 0 : index
    %37 = vector.load %arg2[%c4, %c0_38, %c0_39] : memref<9x8x16xbf16, #tpu.memory_space<vmem>>, vector<1x8x16xbf16>
    %38 = vector.shape_cast %37 : vector<1x8x16xbf16> to vector<8x16xbf16>
    %cst_40 = arith.constant dense<0.000000e+00> : vector<64x16xf32>
    %39 = tpu.matmul %36, %38, %cst_40 {dimension_numbers = #tpu.dot_dimension_numbers<[1], [0], [0], [1], [0, 0, 1, 1], [], []>} : vector<64x8xbf16>, vector<8x16xbf16>, vector<64x16xf32> -> vector<64x16xf32>
    %40 = arith.addf %33, %39 : vector<64x16xf32>
    %c1_41 = arith.constant 1 : index
    %c2_42 = arith.constant 2 : index
    %c0_43 = arith.constant 0 : index
    %41 = vector.load %arg9[%c1_41, %c2_42, %c0_43] : memref<10x10x8xf32, #tpu.memory_space<vmem>>, vector<8x8x8xf32>
    %42 = vector.shape_cast %41 : vector<8x8x8xf32> to vector<64x8xf32>
    %43 = arith.truncf %42 : vector<64x8xf32> to vector<64x8xbf16>
    %c5 = arith.constant 5 : index
    %c0_44 = arith.constant 0 : index
    %c0_45 = arith.constant 0 : index
    %44 = vector.load %arg2[%c5, %c0_44, %c0_45] : memref<9x8x16xbf16, #tpu.memory_space<vmem>>, vector<1x8x16xbf16>
    %45 = vector.shape_cast %44 : vector<1x8x16xbf16> to vector<8x16xbf16>
    %cst_46 = arith.constant dense<0.000000e+00> : vector<64x16xf32>
    %46 = tpu.matmul %43, %45, %cst_46 {dimension_numbers = #tpu.dot_dimension_numbers<[1], [0], [0], [1], [0, 0, 1, 1], [], []>} : vector<64x8xbf16>, vector<8x16xbf16>, vector<64x16xf32> -> vector<64x16xf32>
    %47 = arith.addf %40, %46 : vector<64x16xf32>
    %c2_47 = arith.constant 2 : index
    %c0_48 = arith.constant 0 : index
    %c0_49 = arith.constant 0 : index
    %48 = vector.load %arg9[%c2_47, %c0_48, %c0_49] : memref<10x10x8xf32, #tpu.memory_space<vmem>>, vector<8x8x8xf32>
    %49 = vector.shape_cast %48 : vector<8x8x8xf32> to vector<64x8xf32>
    %50 = arith.truncf %49 : vector<64x8xf32> to vector<64x8xbf16>
    %c6 = arith.constant 6 : index
    %c0_50 = arith.constant 0 : index
    %c0_51 = arith.constant 0 : index
    %51 = vector.load %arg2[%c6, %c0_50, %c0_51] : memref<9x8x16xbf16, #tpu.memory_space<vmem>>, vector<1x8x16xbf16>
    %52 = vector.shape_cast %51 : vector<1x8x16xbf16> to vector<8x16xbf16>
    %cst_52 = arith.constant dense<0.000000e+00> : vector<64x16xf32>
    %53 = tpu.matmul %50, %52, %cst_52 {dimension_numbers = #tpu.dot_dimension_numbers<[1], [0], [0], [1], [0, 0, 1, 1], [], []>} : vector<64x8xbf16>, vector<8x16xbf16>, vector<64x16xf32> -> vector<64x16xf32>
    %54 = arith.addf %47, %53 : vector<64x16xf32>
    %c2_53 = arith.constant 2 : index
    %c1_54 = arith.constant 1 : index
    %c0_55 = arith.constant 0 : index
    %55 = vector.load %arg9[%c2_53, %c1_54, %c0_55] : memref<10x10x8xf32, #tpu.memory_space<vmem>>, vector<8x8x8xf32>
    %56 = vector.shape_cast %55 : vector<8x8x8xf32> to vector<64x8xf32>
    %57 = arith.truncf %56 : vector<64x8xf32> to vector<64x8xbf16>
    %c7 = arith.constant 7 : index
    %c0_56 = arith.constant 0 : index
    %c0_57 = arith.constant 0 : index
    %58 = vector.load %arg2[%c7, %c0_56, %c0_57] : memref<9x8x16xbf16, #tpu.memory_space<vmem>>, vector<1x8x16xbf16>
    %59 = vector.shape_cast %58 : vector<1x8x16xbf16> to vector<8x16xbf16>
    %cst_58 = arith.constant dense<0.000000e+00> : vector<64x16xf32>
    %60 = tpu.matmul %57, %59, %cst_58 {dimension_numbers = #tpu.dot_dimension_numbers<[1], [0], [0], [1], [0, 0, 1, 1], [], []>} : vector<64x8xbf16>, vector<8x16xbf16>, vector<64x16xf32> -> vector<64x16xf32>
    %61 = arith.addf %54, %60 : vector<64x16xf32>
    %c2_59 = arith.constant 2 : index
    %c2_60 = arith.constant 2 : index
    %c0_61 = arith.constant 0 : index
    %62 = vector.load %arg9[%c2_59, %c2_60, %c0_61] : memref<10x10x8xf32, #tpu.memory_space<vmem>>, vector<8x8x8xf32>
    %63 = vector.shape_cast %62 : vector<8x8x8xf32> to vector<64x8xf32>
    %64 = arith.truncf %63 : vector<64x8xf32> to vector<64x8xbf16>
    %c8 = arith.constant 8 : index
    %c0_62 = arith.constant 0 : index
    %c0_63 = arith.constant 0 : index
    %65 = vector.load %arg2[%c8, %c0_62, %c0_63] : memref<9x8x16xbf16, #tpu.memory_space<vmem>>, vector<1x8x16xbf16>
    %66 = vector.shape_cast %65 : vector<1x8x16xbf16> to vector<8x16xbf16>
    %cst_64 = arith.constant dense<0.000000e+00> : vector<64x16xf32>
    %67 = tpu.matmul %64, %66, %cst_64 {dimension_numbers = #tpu.dot_dimension_numbers<[1], [0], [0], [1], [0, 0, 1, 1], [], []>} : vector<64x8xbf16>, vector<8x16xbf16>, vector<64x16xf32> -> vector<64x16xf32>
    %68 = arith.addf %61, %67 : vector<64x16xf32>
    %c0_65 = arith.constant 0 : index
    %c0_66 = arith.constant 0 : index
    %69 = vector.load %arg3[%c0_65, %c0_66] : memref<1x16xf32, #tpu.memory_space<vmem>>, vector<1x16xf32>
    %70 = vector.broadcast %69 : vector<1x16xf32> to vector<64x16xf32>
    %71 = arith.addf %68, %70 : vector<64x16xf32>
    %cst_67 = arith.constant 0.000000e+00 : f32
    %72 = vector.broadcast %cst_67 : f32 to vector<64x16xf32>
    %73 = arith.maximumf %71, %72 : vector<64x16xf32>
    %cst_68 = arith.constant 0.000000e+00 : f32
    %74 = vector.broadcast %cst_68 : f32 to vector<10x10x16xf32>
    %c0_69 = arith.constant 0 : index
    %c0_70 = arith.constant 0 : index
    %c0_71 = arith.constant 0 : index
    %75 = vector.load %arg10[%c0_69, %c0_70, %c0_71] : memref<10x10x16xf32, #tpu.memory_space<vmem>>, vector<10x10x16xf32>
    tpu.vector_store %arg10[%c0_69, %c0_70, %c0_71], %74 {strides = array<i32>} : memref<10x10x16xf32, #tpu.memory_space<vmem>>, vector<10x10x16xf32>,
    %76 = vector.shape_cast %73 : vector<64x16xf32> to vector<8x8x16xf32>
    %c1_72 = arith.constant 1 : index
    %c1_73 = arith.constant 1 : index
    %c0_74 = arith.constant 0 : index
    %77 = vector.load %arg10[%c1_72, %c1_73, %c0_74] : memref<10x10x16xf32, #tpu.memory_space<vmem>>, vector<8x8x16xf32>
    tpu.vector_store %arg10[%c1_72, %c1_73, %c0_74], %76 {strides = array<i32>} : memref<10x10x16xf32, #tpu.memory_space<vmem>>, vector<8x8x16xf32>,
    %cst_75 = arith.constant 0.000000e+00 : f32
    %78 = vector.broadcast %cst_75 : f32 to vector<64x16xf32>
    %c0_76 = arith.constant 0 : index
    %c0_77 = arith.constant 0 : index
    %c0_78 = arith.constant 0 : index
    %79 = vector.load %arg10[%c0_76, %c0_77, %c0_78] : memref<10x10x16xf32, #tpu.memory_space<vmem>>, vector<8x8x16xf32>
    %80 = vector.shape_cast %79 : vector<8x8x16xf32> to vector<64x16xf32>
    %81 = arith.truncf %80 : vector<64x16xf32> to vector<64x16xbf16>
    %c0_79 = arith.constant 0 : index
    %c0_80 = arith.constant 0 : index
    %c0_81 = arith.constant 0 : index
    %82 = vector.load %arg4[%c0_79, %c0_80, %c0_81] : memref<16x16x16xbf16, #tpu.memory_space<vmem>>, vector<1x16x16xbf16>
    %83 = vector.shape_cast %82 : vector<1x16x16xbf16> to vector<16x16xbf16>
    %cst_82 = arith.constant dense<0.000000e+00> : vector<64x16xf32>
    %84 = tpu.matmul %81, %83, %cst_82 {dimension_numbers = #tpu.dot_dimension_numbers<[1], [0], [0], [1], [0, 0, 1, 1], [], []>} : vector<64x16xbf16>, vector<16x16xbf16>, vector<64x16xf32> -> vector<64x16xf32>
    %85 = arith.addf %78, %84 : vector<64x16xf32>
    %c0_83 = arith.constant 0 : index
    %c1_84 = arith.constant 1 : index
    %c0_85 = arith.constant 0 : index
    %86 = vector.load %arg10[%c0_83, %c1_84, %c0_85] : memref<10x10x16xf32, #tpu.memory_space<vmem>>, vector<8x8x16xf32>
    %87 = vector.shape_cast %86 : vector<8x8x16xf32> to vector<64x16xf32>
    %88 = arith.truncf %87 : vector<64x16xf32> to vector<64x16xbf16>
    %c1_86 = arith.constant 1 : index
    %c0_87 = arith.constant 0 : index
    %c0_88 = arith.constant 0 : index
    %89 = vector.load %arg4[%c1_86, %c0_87, %c0_88] : memref<16x16x16xbf16, #tpu.memory_space<vmem>>, vector<1x16x16xbf16>
    %90 = vector.shape_cast %89 : vector<1x16x16xbf16> to vector<16x16xbf16>
    %cst_89 = arith.constant dense<0.000000e+00> : vector<64x16xf32>
    %91 = tpu.matmul %88, %90, %cst_89 {dimension_numbers = #tpu.dot_dimension_numbers<[1], [0], [0], [1], [0, 0, 1, 1], [], []>} : vector<64x16xbf16>, vector<16x16xbf16>, vector<64x16xf32> -> vector<64x16xf32>
    %92 = arith.addf %85, %91 : vector<64x16xf32>
    %c1_90 = arith.constant 1 : index
    %c0_91 = arith.constant 0 : index
    %c0_92 = arith.constant 0 : index
    %93 = vector.load %arg10[%c1_90, %c0_91, %c0_92] : memref<10x10x16xf32, #tpu.memory_space<vmem>>, vector<8x8x16xf32>
    %94 = vector.shape_cast %93 : vector<8x8x16xf32> to vector<64x16xf32>
    %95 = arith.truncf %94 : vector<64x16xf32> to vector<64x16xbf16>
    %c2_93 = arith.constant 2 : index
    %c0_94 = arith.constant 0 : index
    %c0_95 = arith.constant 0 : index
    %96 = vector.load %arg4[%c2_93, %c0_94, %c0_95] : memref<16x16x16xbf16, #tpu.memory_space<vmem>>, vector<1x16x16xbf16>
    %97 = vector.shape_cast %96 : vector<1x16x16xbf16> to vector<16x16xbf16>
    %cst_96 = arith.constant dense<0.000000e+00> : vector<64x16xf32>
    %98 = tpu.matmul %95, %97, %cst_96 {dimension_numbers = #tpu.dot_dimension_numbers<[1], [0], [0], [1], [0, 0, 1, 1], [], []>} : vector<64x16xbf16>, vector<16x16xbf16>, vector<64x16xf32> -> vector<64x16xf32>
    %99 = arith.addf %92, %98 : vector<64x16xf32>
    %c1_97 = arith.constant 1 : index
    %c1_98 = arith.constant 1 : index
    %c0_99 = arith.constant 0 : index
    %100 = vector.load %arg10[%c1_97, %c1_98, %c0_99] : memref<10x10x16xf32, #tpu.memory_space<vmem>>, vector<8x8x16xf32>
    %101 = vector.shape_cast %100 : vector<8x8x16xf32> to vector<64x16xf32>
    %102 = arith.truncf %101 : vector<64x16xf32> to vector<64x16xbf16>
    %c3_100 = arith.constant 3 : index
    %c0_101 = arith.constant 0 : index
    %c0_102 = arith.constant 0 : index
    %103 = vector.load %arg4[%c3_100, %c0_101, %c0_102] : memref<16x16x16xbf16, #tpu.memory_space<vmem>>, vector<1x16x16xbf16>
    %104 = vector.shape_cast %103 : vector<1x16x16xbf16> to vector<16x16xbf16>
    %cst_103 = arith.constant dense<0.000000e+00> : vector<64x16xf32>
    %105 = tpu.matmul %102, %104, %cst_103 {dimension_numbers = #tpu.dot_dimension_numbers<[1], [0], [0], [1], [0, 0, 1, 1], [], []>} : vector<64x16xbf16>, vector<16x16xbf16>, vector<64x16xf32> -> vector<64x16xf32>
    %106 = arith.addf %99, %105 : vector<64x16xf32>
    %c0_104 = arith.constant 0 : index
    %c0_105 = arith.constant 0 : index
    %107 = vector.load %arg5[%c0_104, %c0_105] : memref<1x16xf32, #tpu.memory_space<vmem>>, vector<1x16xf32>
    %108 = vector.broadcast %107 : vector<1x16xf32> to vector<64x16xf32>
    %109 = arith.addf %106, %108 : vector<64x16xf32>
    %cst_106 = arith.constant 0.000000e+00 : f32
    %110 = vector.broadcast %cst_106 : f32 to vector<64x16xf32>
    %111 = arith.maximumf %109, %110 : vector<64x16xf32>
    %112 = vector.shape_cast %111 : vector<64x16xf32> to vector<8x8x16xf32>
    %cst_107 = arith.constant 0.000000e+00 : f32
    %113 = vector.broadcast %cst_107 : f32 to vector<64x16xf32>
    %c0_108 = arith.constant 0 : index
    %c1_109 = arith.constant 1 : index
    %c0_110 = arith.constant 0 : index
    %114 = vector.load %arg10[%c0_108, %c1_109, %c0_110] : memref<10x10x16xf32, #tpu.memory_space<vmem>>, vector<8x8x16xf32>
    %115 = vector.shape_cast %114 : vector<8x8x16xf32> to vector<64x16xf32>
    %116 = arith.truncf %115 : vector<64x16xf32> to vector<64x16xbf16>
    %c4_111 = arith.constant 4 : index
    %c0_112 = arith.constant 0 : index
    %c0_113 = arith.constant 0 : index
    %117 = vector.load %arg4[%c4_111, %c0_112, %c0_113] : memref<16x16x16xbf16, #tpu.memory_space<vmem>>, vector<1x16x16xbf16>
    %118 = vector.shape_cast %117 : vector<1x16x16xbf16> to vector<16x16xbf16>
    %cst_114 = arith.constant dense<0.000000e+00> : vector<64x16xf32>
    %119 = tpu.matmul %116, %118, %cst_114 {dimension_numbers = #tpu.dot_dimension_numbers<[1], [0], [0], [1], [0, 0, 1, 1], [], []>} : vector<64x16xbf16>, vector<16x16xbf16>, vector<64x16xf32> -> vector<64x16xf32>
    %120 = arith.addf %113, %119 : vector<64x16xf32>
    %c0_115 = arith.constant 0 : index
    %c2_116 = arith.constant 2 : index
    %c0_117 = arith.constant 0 : index
    %121 = vector.load %arg10[%c0_115, %c2_116, %c0_117] : memref<10x10x16xf32, #tpu.memory_space<vmem>>, vector<8x8x16xf32>
    %122 = vector.shape_cast %121 : vector<8x8x16xf32> to vector<64x16xf32>
    %123 = arith.truncf %122 : vector<64x16xf32> to vector<64x16xbf16>
    %c5_118 = arith.constant 5 : index
    %c0_119 = arith.constant 0 : index
    %c0_120 = arith.constant 0 : index
    %124 = vector.load %arg4[%c5_118, %c0_119, %c0_120] : memref<16x16x16xbf16, #tpu.memory_space<vmem>>, vector<1x16x16xbf16>
    %125 = vector.shape_cast %124 : vector<1x16x16xbf16> to vector<16x16xbf16>
    %cst_121 = arith.constant dense<0.000000e+00> : vector<64x16xf32>
    %126 = tpu.matmul %123, %125, %cst_121 {dimension_numbers = #tpu.dot_dimension_numbers<[1], [0], [0], [1], [0, 0, 1, 1], [], []>} : vector<64x16xbf16>, vector<16x16xbf16>, vector<64x16xf32> -> vector<64x16xf32>
    %127 = arith.addf %120, %126 : vector<64x16xf32>
    %c1_122 = arith.constant 1 : index
    %c1_123 = arith.constant 1 : index
    %c0_124 = arith.constant 0 : index
    %128 = vector.load %arg10[%c1_122, %c1_123, %c0_124] : memref<10x10x16xf32, #tpu.memory_space<vmem>>, vector<8x8x16xf32>
    %129 = vector.shape_cast %128 : vector<8x8x16xf32> to vector<64x16xf32>
    %130 = arith.truncf %129 : vector<64x16xf32> to vector<64x16xbf16>
    %c6_125 = arith.constant 6 : index
    %c0_126 = arith.constant 0 : index
    %c0_127 = arith.constant 0 : index
    %131 = vector.load %arg4[%c6_125, %c0_126, %c0_127] : memref<16x16x16xbf16, #tpu.memory_space<vmem>>, vector<1x16x16xbf16>
    %132 = vector.shape_cast %131 : vector<1x16x16xbf16> to vector<16x16xbf16>
    %cst_128 = arith.constant dense<0.000000e+00> : vector<64x16xf32>
    %133 = tpu.matmul %130, %132, %cst_128 {dimension_numbers = #tpu.dot_dimension_numbers<[1], [0], [0], [1], [0, 0, 1, 1], [], []>} : vector<64x16xbf16>, vector<16x16xbf16>, vector<64x16xf32> -> vector<64x16xf32>
    %134 = arith.addf %127, %133 : vector<64x16xf32>
    %c1_129 = arith.constant 1 : index
    %c2_130 = arith.constant 2 : index
    %c0_131 = arith.constant 0 : index
    %135 = vector.load %arg10[%c1_129, %c2_130, %c0_131] : memref<10x10x16xf32, #tpu.memory_space<vmem>>, vector<8x8x16xf32>
    %136 = vector.shape_cast %135 : vector<8x8x16xf32> to vector<64x16xf32>
    %137 = arith.truncf %136 : vector<64x16xf32> to vector<64x16xbf16>
    %c7_132 = arith.constant 7 : index
    %c0_133 = arith.constant 0 : index
    %c0_134 = arith.constant 0 : index
    %138 = vector.load %arg4[%c7_132, %c0_133, %c0_134] : memref<16x16x16xbf16, #tpu.memory_space<vmem>>, vector<1x16x16xbf16>
    %139 = vector.shape_cast %138 : vector<1x16x16xbf16> to vector<16x16xbf16>
    %cst_135 = arith.constant dense<0.000000e+00> : vector<64x16xf32>
    %140 = tpu.matmul %137, %139, %cst_135 {dimension_numbers = #tpu.dot_dimension_numbers<[1], [0], [0], [1], [0, 0, 1, 1], [], []>} : vector<64x16xbf16>, vector<16x16xbf16>, vector<64x16xf32> -> vector<64x16xf32>
    %141 = arith.addf %134, %140 : vector<64x16xf32>
    %c0_136 = arith.constant 0 : index
    %c0_137 = arith.constant 0 : index
    %142 = vector.load %arg5[%c0_136, %c0_137] : memref<1x16xf32, #tpu.memory_space<vmem>>, vector<1x16xf32>
    %143 = vector.broadcast %142 : vector<1x16xf32> to vector<64x16xf32>
    %144 = arith.addf %141, %143 : vector<64x16xf32>
    %cst_138 = arith.constant 0.000000e+00 : f32
    %145 = vector.broadcast %cst_138 : f32 to vector<64x16xf32>
    %146 = arith.maximumf %144, %145 : vector<64x16xf32>
    %147 = vector.shape_cast %146 : vector<64x16xf32> to vector<8x8x16xf32>
    %cst_139 = arith.constant 0.000000e+00 : f32
    %148 = vector.broadcast %cst_139 : f32 to vector<64x16xf32>
    %c1_140 = arith.constant 1 : index
    %c0_141 = arith.constant 0 : index
    %c0_142 = arith.constant 0 : index
    %149 = vector.load %arg10[%c1_140, %c0_141, %c0_142] : memref<10x10x16xf32, #tpu.memory_space<vmem>>, vector<8x8x16xf32>
    %150 = vector.shape_cast %149 : vector<8x8x16xf32> to vector<64x16xf32>
    %151 = arith.truncf %150 : vector<64x16xf32> to vector<64x16xbf16>
    %c8_143 = arith.constant 8 : index
    %c0_144 = arith.constant 0 : index
    %c0_145 = arith.constant 0 : index
    %152 = vector.load %arg4[%c8_143, %c0_144, %c0_145] : memref<16x16x16xbf16, #tpu.memory_space<vmem>>, vector<1x16x16xbf16>
    %153 = vector.shape_cast %152 : vector<1x16x16xbf16> to vector<16x16xbf16>
    %cst_146 = arith.constant dense<0.000000e+00> : vector<64x16xf32>
    %154 = tpu.matmul %151, %153, %cst_146 {dimension_numbers = #tpu.dot_dimension_numbers<[1], [0], [0], [1], [0, 0, 1, 1], [], []>} : vector<64x16xbf16>, vector<16x16xbf16>, vector<64x16xf32> -> vector<64x16xf32>
    %155 = arith.addf %148, %154 : vector<64x16xf32>
    %c1_147 = arith.constant 1 : index
    %c1_148 = arith.constant 1 : index
    %c0_149 = arith.constant 0 : index
    %156 = vector.load %arg10[%c1_147, %c1_148, %c0_149] : memref<10x10x16xf32, #tpu.memory_space<vmem>>, vector<8x8x16xf32>
    %157 = vector.shape_cast %156 : vector<8x8x16xf32> to vector<64x16xf32>
    %158 = arith.truncf %157 : vector<64x16xf32> to vector<64x16xbf16>
    %c9 = arith.constant 9 : index
    %c0_150 = arith.constant 0 : index
    %c0_151 = arith.constant 0 : index
    %159 = vector.load %arg4[%c9, %c0_150, %c0_151] : memref<16x16x16xbf16, #tpu.memory_space<vmem>>, vector<1x16x16xbf16>
    %160 = vector.shape_cast %159 : vector<1x16x16xbf16> to vector<16x16xbf16>
    %cst_152 = arith.constant dense<0.000000e+00> : vector<64x16xf32>
    %161 = tpu.matmul %158, %160, %cst_152 {dimension_numbers = #tpu.dot_dimension_numbers<[1], [0], [0], [1], [0, 0, 1, 1], [], []>} : vector<64x16xbf16>, vector<16x16xbf16>, vector<64x16xf32> -> vector<64x16xf32>
    %162 = arith.addf %155, %161 : vector<64x16xf32>
    %c2_153 = arith.constant 2 : index
    %c0_154 = arith.constant 0 : index
    %c0_155 = arith.constant 0 : index
    %163 = vector.load %arg10[%c2_153, %c0_154, %c0_155] : memref<10x10x16xf32, #tpu.memory_space<vmem>>, vector<8x8x16xf32>
    %164 = vector.shape_cast %163 : vector<8x8x16xf32> to vector<64x16xf32>
    %165 = arith.truncf %164 : vector<64x16xf32> to vector<64x16xbf16>
    %c10 = arith.constant 10 : index
    %c0_156 = arith.constant 0 : index
    %c0_157 = arith.constant 0 : index
    %166 = vector.load %arg4[%c10, %c0_156, %c0_157] : memref<16x16x16xbf16, #tpu.memory_space<vmem>>, vector<1x16x16xbf16>
    %167 = vector.shape_cast %166 : vector<1x16x16xbf16> to vector<16x16xbf16>
    %cst_158 = arith.constant dense<0.000000e+00> : vector<64x16xf32>
    %168 = tpu.matmul %165, %167, %cst_158 {dimension_numbers = #tpu.dot_dimension_numbers<[1], [0], [0], [1], [0, 0, 1, 1], [], []>} : vector<64x16xbf16>, vector<16x16xbf16>, vector<64x16xf32> -> vector<64x16xf32>
    %169 = arith.addf %162, %168 : vector<64x16xf32>
    %c2_159 = arith.constant 2 : index
    %c1_160 = arith.constant 1 : index
    %c0_161 = arith.constant 0 : index
    %170 = vector.load %arg10[%c2_159, %c1_160, %c0_161] : memref<10x10x16xf32, #tpu.memory_space<vmem>>, vector<8x8x16xf32>
    %171 = vector.shape_cast %170 : vector<8x8x16xf32> to vector<64x16xf32>
    %172 = arith.truncf %171 : vector<64x16xf32> to vector<64x16xbf16>
    %c11 = arith.constant 11 : index
    %c0_162 = arith.constant 0 : index
    %c0_163 = arith.constant 0 : index
    %173 = vector.load %arg4[%c11, %c0_162, %c0_163] : memref<16x16x16xbf16, #tpu.memory_space<vmem>>, vector<1x16x16xbf16>
    %174 = vector.shape_cast %173 : vector<1x16x16xbf16> to vector<16x16xbf16>
    %cst_164 = arith.constant dense<0.000000e+00> : vector<64x16xf32>
    %175 = tpu.matmul %172, %174, %cst_164 {dimension_numbers = #tpu.dot_dimension_numbers<[1], [0], [0], [1], [0, 0, 1, 1], [], []>} : vector<64x16xbf16>, vector<16x16xbf16>, vector<64x16xf32> -> vector<64x16xf32>
    %176 = arith.addf %169, %175 : vector<64x16xf32>
    %c0_165 = arith.constant 0 : index
    %c0_166 = arith.constant 0 : index
    %177 = vector.load %arg5[%c0_165, %c0_166] : memref<1x16xf32, #tpu.memory_space<vmem>>, vector<1x16xf32>
    %178 = vector.broadcast %177 : vector<1x16xf32> to vector<64x16xf32>
    %179 = arith.addf %176, %178 : vector<64x16xf32>
    %cst_167 = arith.constant 0.000000e+00 : f32
    %180 = vector.broadcast %cst_167 : f32 to vector<64x16xf32>
    %181 = arith.maximumf %179, %180 : vector<64x16xf32>
    %182 = vector.shape_cast %181 : vector<64x16xf32> to vector<8x8x16xf32>
    %cst_168 = arith.constant 0.000000e+00 : f32
    %183 = vector.broadcast %cst_168 : f32 to vector<64x16xf32>
    %c1_169 = arith.constant 1 : index
    %c1_170 = arith.constant 1 : index
    %c0_171 = arith.constant 0 : index
    %184 = vector.load %arg10[%c1_169, %c1_170, %c0_171] : memref<10x10x16xf32, #tpu.memory_space<vmem>>, vector<8x8x16xf32>
    %185 = vector.shape_cast %184 : vector<8x8x16xf32> to vector<64x16xf32>
    %186 = arith.truncf %185 : vector<64x16xf32> to vector<64x16xbf16>
    %c12 = arith.constant 12 : index
    %c0_172 = arith.constant 0 : index
    %c0_173 = arith.constant 0 : index
    %187 = vector.load %arg4[%c12, %c0_172, %c0_173] : memref<16x16x16xbf16, #tpu.memory_space<vmem>>, vector<1x16x16xbf16>
    %188 = vector.shape_cast %187 : vector<1x16x16xbf16> to vector<16x16xbf16>
    %cst_174 = arith.constant dense<0.000000e+00> : vector<64x16xf32>
    %189 = tpu.matmul %186, %188, %cst_174 {dimension_numbers = #tpu.dot_dimension_numbers<[1], [0], [0], [1], [0, 0, 1, 1], [], []>} : vector<64x16xbf16>, vector<16x16xbf16>, vector<64x16xf32> -> vector<64x16xf32>
    %190 = arith.addf %183, %189 : vector<64x16xf32>
    %c1_175 = arith.constant 1 : index
    %c2_176 = arith.constant 2 : index
    %c0_177 = arith.constant 0 : index
    %191 = vector.load %arg10[%c1_175, %c2_176, %c0_177] : memref<10x10x16xf32, #tpu.memory_space<vmem>>, vector<8x8x16xf32>
    %192 = vector.shape_cast %191 : vector<8x8x16xf32> to vector<64x16xf32>
    %193 = arith.truncf %192 : vector<64x16xf32> to vector<64x16xbf16>
    %c13 = arith.constant 13 : index
    %c0_178 = arith.constant 0 : index
    %c0_179 = arith.constant 0 : index
    %194 = vector.load %arg4[%c13, %c0_178, %c0_179] : memref<16x16x16xbf16, #tpu.memory_space<vmem>>, vector<1x16x16xbf16>
    %195 = vector.shape_cast %194 : vector<1x16x16xbf16> to vector<16x16xbf16>
    %cst_180 = arith.constant dense<0.000000e+00> : vector<64x16xf32>
    %196 = tpu.matmul %193, %195, %cst_180 {dimension_numbers = #tpu.dot_dimension_numbers<[1], [0], [0], [1], [0, 0, 1, 1], [], []>} : vector<64x16xbf16>, vector<16x16xbf16>, vector<64x16xf32> -> vector<64x16xf32>
    %197 = arith.addf %190, %196 : vector<64x16xf32>
    %c2_181 = arith.constant 2 : index
    %c1_182 = arith.constant 1 : index
    %c0_183 = arith.constant 0 : index
    %198 = vector.load %arg10[%c2_181, %c1_182, %c0_183] : memref<10x10x16xf32, #tpu.memory_space<vmem>>, vector<8x8x16xf32>
    %199 = vector.shape_cast %198 : vector<8x8x16xf32> to vector<64x16xf32>
    %200 = arith.truncf %199 : vector<64x16xf32> to vector<64x16xbf16>
    %c14 = arith.constant 14 : index
    %c0_184 = arith.constant 0 : index
    %c0_185 = arith.constant 0 : index
    %201 = vector.load %arg4[%c14, %c0_184, %c0_185] : memref<16x16x16xbf16, #tpu.memory_space<vmem>>, vector<1x16x16xbf16>
    %202 = vector.shape_cast %201 : vector<1x16x16xbf16> to vector<16x16xbf16>
    %cst_186 = arith.constant dense<0.000000e+00> : vector<64x16xf32>
    %203 = tpu.matmul %200, %202, %cst_186 {dimension_numbers = #tpu.dot_dimension_numbers<[1], [0], [0], [1], [0, 0, 1, 1], [], []>} : vector<64x16xbf16>, vector<16x16xbf16>, vector<64x16xf32> -> vector<64x16xf32>
    %204 = arith.addf %197, %203 : vector<64x16xf32>
    %c2_187 = arith.constant 2 : index
    %c2_188 = arith.constant 2 : index
    %c0_189 = arith.constant 0 : index
    %205 = vector.load %arg10[%c2_187, %c2_188, %c0_189] : memref<10x10x16xf32, #tpu.memory_space<vmem>>, vector<8x8x16xf32>
    %206 = vector.shape_cast %205 : vector<8x8x16xf32> to vector<64x16xf32>
    %207 = arith.truncf %206 : vector<64x16xf32> to vector<64x16xbf16>
    %c15 = arith.constant 15 : index
    %c0_190 = arith.constant 0 : index
    %c0_191 = arith.constant 0 : index
    %208 = vector.load %arg4[%c15, %c0_190, %c0_191] : memref<16x16x16xbf16, #tpu.memory_space<vmem>>, vector<1x16x16xbf16>
    %209 = vector.shape_cast %208 : vector<1x16x16xbf16> to vector<16x16xbf16>
    %cst_192 = arith.constant dense<0.000000e+00> : vector<64x16xf32>
    %210 = tpu.matmul %207, %209, %cst_192 {dimension_numbers = #tpu.dot_dimension_numbers<[1], [0], [0], [1], [0, 0, 1, 1], [], []>} : vector<64x16xbf16>, vector<16x16xbf16>, vector<64x16xf32> -> vector<64x16xf32>
    %211 = arith.addf %204, %210 : vector<64x16xf32>
    %c0_193 = arith.constant 0 : index
    %c0_194 = arith.constant 0 : index
    %212 = vector.load %arg5[%c0_193, %c0_194] : memref<1x16xf32, #tpu.memory_space<vmem>>, vector<1x16xf32>
    %213 = vector.broadcast %212 : vector<1x16xf32> to vector<64x16xf32>
    %214 = arith.addf %211, %213 : vector<64x16xf32>
    %cst_195 = arith.constant 0.000000e+00 : f32
    %215 = vector.broadcast %cst_195 : f32 to vector<64x16xf32>
    %216 = arith.maximumf %214, %215 : vector<64x16xf32>
    %217 = vector.shape_cast %216 : vector<64x16xf32> to vector<8x8x16xf32>
    %218 = vector.shape_cast %112 : vector<8x8x16xf32> to vector<8x8x1x16xf32>
    %219 = vector.shape_cast %147 : vector<8x8x16xf32> to vector<8x8x1x16xf32>
    %220 = tpu.concatenate %218, %219 in 2 : vector<8x8x1x16xf32>, vector<8x8x1x16xf32> -> vector<8x8x2x16xf32>
    %221 = vector.shape_cast %220 : vector<8x8x2x16xf32> to vector<8x16x16xf32>
    %222 = vector.shape_cast %182 : vector<8x8x16xf32> to vector<8x8x1x16xf32>
    %223 = vector.shape_cast %217 : vector<8x8x16xf32> to vector<8x8x1x16xf32>
    %224 = tpu.concatenate %222, %223 in 2 : vector<8x8x1x16xf32>, vector<8x8x1x16xf32> -> vector<8x8x2x16xf32>
    %225 = vector.shape_cast %224 : vector<8x8x2x16xf32> to vector<8x16x16xf32>
    %226 = vector.shape_cast %221 : vector<8x16x16xf32> to vector<8x1x16x16xf32>
    %227 = vector.shape_cast %225 : vector<8x16x16xf32> to vector<8x1x16x16xf32>
    %228 = tpu.concatenate %226, %227 in 1 : vector<8x1x16x16xf32>, vector<8x1x16x16xf32> -> vector<8x2x16x16xf32>
    %229 = vector.shape_cast %228 : vector<8x2x16x16xf32> to vector<16x16x16xf32>
    %cst_196 = arith.constant 0.000000e+00 : f32
    %230 = vector.broadcast %cst_196 : f32 to vector<18x18x16xf32>
    %c0_197 = arith.constant 0 : index
    %c0_198 = arith.constant 0 : index
    %c0_199 = arith.constant 0 : index
    %231 = vector.load %arg11[%c0_197, %c0_198, %c0_199] : memref<18x18x16xf32, #tpu.memory_space<vmem>>, vector<18x18x16xf32>
    tpu.vector_store %arg11[%c0_197, %c0_198, %c0_199], %230 {strides = array<i32>} : memref<18x18x16xf32, #tpu.memory_space<vmem>>, vector<18x18x16xf32>,
    %c1_200 = arith.constant 1 : index
    %c1_201 = arith.constant 1 : index
    %c0_202 = arith.constant 0 : index
    %232 = vector.load %arg11[%c1_200, %c1_201, %c0_202] : memref<18x18x16xf32, #tpu.memory_space<vmem>>, vector<16x16x16xf32>
    tpu.vector_store %arg11[%c1_200, %c1_201, %c0_202], %229 {strides = array<i32>} : memref<18x18x16xf32, #tpu.memory_space<vmem>>, vector<16x16x16xf32>,
    %cst_203 = arith.constant 0.000000e+00 : f32
    %233 = vector.broadcast %cst_203 : f32 to vector<256x12xf32>
    %c0_204 = arith.constant 0 : index
    %c0_205 = arith.constant 0 : index
    %c0_206 = arith.constant 0 : index
    %234 = vector.load %arg11[%c0_204, %c0_205, %c0_206] : memref<18x18x16xf32, #tpu.memory_space<vmem>>, vector<16x16x16xf32>
    %235 = vector.shape_cast %234 : vector<16x16x16xf32> to vector<256x16xf32>
    %236 = arith.truncf %235 : vector<256x16xf32> to vector<256x16xbf16>
    %c0_207 = arith.constant 0 : index
    %c0_208 = arith.constant 0 : index
    %c0_209 = arith.constant 0 : index
    %237 = vector.load %arg6[%c0_207, %c0_208, %c0_209] : memref<9x16x12xbf16, #tpu.memory_space<vmem>>, vector<1x16x12xbf16>
    %238 = vector.shape_cast %237 : vector<1x16x12xbf16> to vector<16x12xbf16>
    %cst_210 = arith.constant dense<0.000000e+00> : vector<256x12xf32>
    %239 = tpu.matmul %236, %238, %cst_210 {dimension_numbers = #tpu.dot_dimension_numbers<[1], [0], [0], [1], [0, 0, 1, 1], [], []>} : vector<256x16xbf16>, vector<16x12xbf16>, vector<256x12xf32> -> vector<256x12xf32>
    %240 = arith.addf %233, %239 : vector<256x12xf32>
    %c0_211 = arith.constant 0 : index
    %c1_212 = arith.constant 1 : index
    %c0_213 = arith.constant 0 : index
    %241 = vector.load %arg11[%c0_211, %c1_212, %c0_213] : memref<18x18x16xf32, #tpu.memory_space<vmem>>, vector<16x16x16xf32>
    %242 = vector.shape_cast %241 : vector<16x16x16xf32> to vector<256x16xf32>
    %243 = arith.truncf %242 : vector<256x16xf32> to vector<256x16xbf16>
    %c1_214 = arith.constant 1 : index
    %c0_215 = arith.constant 0 : index
    %c0_216 = arith.constant 0 : index
    %244 = vector.load %arg6[%c1_214, %c0_215, %c0_216] : memref<9x16x12xbf16, #tpu.memory_space<vmem>>, vector<1x16x12xbf16>
    %245 = vector.shape_cast %244 : vector<1x16x12xbf16> to vector<16x12xbf16>
    %cst_217 = arith.constant dense<0.000000e+00> : vector<256x12xf32>
    %246 = tpu.matmul %243, %245, %cst_217 {dimension_numbers = #tpu.dot_dimension_numbers<[1], [0], [0], [1], [0, 0, 1, 1], [], []>} : vector<256x16xbf16>, vector<16x12xbf16>, vector<256x12xf32> -> vector<256x12xf32>
    %247 = arith.addf %240, %246 : vector<256x12xf32>
    %c0_218 = arith.constant 0 : index
    %c2_219 = arith.constant 2 : index
    %c0_220 = arith.constant 0 : index
    %248 = vector.load %arg11[%c0_218, %c2_219, %c0_220] : memref<18x18x16xf32, #tpu.memory_space<vmem>>, vector<16x16x16xf32>
    %249 = vector.shape_cast %248 : vector<16x16x16xf32> to vector<256x16xf32>
    %250 = arith.truncf %249 : vector<256x16xf32> to vector<256x16xbf16>
    %c2_221 = arith.constant 2 : index
    %c0_222 = arith.constant 0 : index
    %c0_223 = arith.constant 0 : index
    %251 = vector.load %arg6[%c2_221, %c0_222, %c0_223] : memref<9x16x12xbf16, #tpu.memory_space<vmem>>, vector<1x16x12xbf16>
    %252 = vector.shape_cast %251 : vector<1x16x12xbf16> to vector<16x12xbf16>
    %cst_224 = arith.constant dense<0.000000e+00> : vector<256x12xf32>
    %253 = tpu.matmul %250, %252, %cst_224 {dimension_numbers = #tpu.dot_dimension_numbers<[1], [0], [0], [1], [0, 0, 1, 1], [], []>} : vector<256x16xbf16>, vector<16x12xbf16>, vector<256x12xf32> -> vector<256x12xf32>
    %254 = arith.addf %247, %253 : vector<256x12xf32>
    %c1_225 = arith.constant 1 : index
    %c0_226 = arith.constant 0 : index
    %c0_227 = arith.constant 0 : index
    %255 = vector.load %arg11[%c1_225, %c0_226, %c0_227] : memref<18x18x16xf32, #tpu.memory_space<vmem>>, vector<16x16x16xf32>
    %256 = vector.shape_cast %255 : vector<16x16x16xf32> to vector<256x16xf32>
    %257 = arith.truncf %256 : vector<256x16xf32> to vector<256x16xbf16>
    %c3_228 = arith.constant 3 : index
    %c0_229 = arith.constant 0 : index
    %c0_230 = arith.constant 0 : index
    %258 = vector.load %arg6[%c3_228, %c0_229, %c0_230] : memref<9x16x12xbf16, #tpu.memory_space<vmem>>, vector<1x16x12xbf16>
    %259 = vector.shape_cast %258 : vector<1x16x12xbf16> to vector<16x12xbf16>
    %cst_231 = arith.constant dense<0.000000e+00> : vector<256x12xf32>
    %260 = tpu.matmul %257, %259, %cst_231 {dimension_numbers = #tpu.dot_dimension_numbers<[1], [0], [0], [1], [0, 0, 1, 1], [], []>} : vector<256x16xbf16>, vector<16x12xbf16>, vector<256x12xf32> -> vector<256x12xf32>
    %261 = arith.addf %254, %260 : vector<256x12xf32>
    %c1_232 = arith.constant 1 : index
    %c1_233 = arith.constant 1 : index
    %c0_234 = arith.constant 0 : index
    %262 = vector.load %arg11[%c1_232, %c1_233, %c0_234] : memref<18x18x16xf32, #tpu.memory_space<vmem>>, vector<16x16x16xf32>
    %263 = vector.shape_cast %262 : vector<16x16x16xf32> to vector<256x16xf32>
    %264 = arith.truncf %263 : vector<256x16xf32> to vector<256x16xbf16>
    %c4_235 = arith.constant 4 : index
    %c0_236 = arith.constant 0 : index
    %c0_237 = arith.constant 0 : index
    %265 = vector.load %arg6[%c4_235, %c0_236, %c0_237] : memref<9x16x12xbf16, #tpu.memory_space<vmem>>, vector<1x16x12xbf16>
    %266 = vector.shape_cast %265 : vector<1x16x12xbf16> to vector<16x12xbf16>
    %cst_238 = arith.constant dense<0.000000e+00> : vector<256x12xf32>
    %267 = tpu.matmul %264, %266, %cst_238 {dimension_numbers = #tpu.dot_dimension_numbers<[1], [0], [0], [1], [0, 0, 1, 1], [], []>} : vector<256x16xbf16>, vector<16x12xbf16>, vector<256x12xf32> -> vector<256x12xf32>
    %268 = arith.addf %261, %267 : vector<256x12xf32>
    %c1_239 = arith.constant 1 : index
    %c2_240 = arith.constant 2 : index
    %c0_241 = arith.constant 0 : index
    %269 = vector.load %arg11[%c1_239, %c2_240, %c0_241] : memref<18x18x16xf32, #tpu.memory_space<vmem>>, vector<16x16x16xf32>
    %270 = vector.shape_cast %269 : vector<16x16x16xf32> to vector<256x16xf32>
    %271 = arith.truncf %270 : vector<256x16xf32> to vector<256x16xbf16>
    %c5_242 = arith.constant 5 : index
    %c0_243 = arith.constant 0 : index
    %c0_244 = arith.constant 0 : index
    %272 = vector.load %arg6[%c5_242, %c0_243, %c0_244] : memref<9x16x12xbf16, #tpu.memory_space<vmem>>, vector<1x16x12xbf16>
    %273 = vector.shape_cast %272 : vector<1x16x12xbf16> to vector<16x12xbf16>
    %cst_245 = arith.constant dense<0.000000e+00> : vector<256x12xf32>
    %274 = tpu.matmul %271, %273, %cst_245 {dimension_numbers = #tpu.dot_dimension_numbers<[1], [0], [0], [1], [0, 0, 1, 1], [], []>} : vector<256x16xbf16>, vector<16x12xbf16>, vector<256x12xf32> -> vector<256x12xf32>
    %275 = arith.addf %268, %274 : vector<256x12xf32>
    %c2_246 = arith.constant 2 : index
    %c0_247 = arith.constant 0 : index
    %c0_248 = arith.constant 0 : index
    %276 = vector.load %arg11[%c2_246, %c0_247, %c0_248] : memref<18x18x16xf32, #tpu.memory_space<vmem>>, vector<16x16x16xf32>
    %277 = vector.shape_cast %276 : vector<16x16x16xf32> to vector<256x16xf32>
    %278 = arith.truncf %277 : vector<256x16xf32> to vector<256x16xbf16>
    %c6_249 = arith.constant 6 : index
    %c0_250 = arith.constant 0 : index
    %c0_251 = arith.constant 0 : index
    %279 = vector.load %arg6[%c6_249, %c0_250, %c0_251] : memref<9x16x12xbf16, #tpu.memory_space<vmem>>, vector<1x16x12xbf16>
    %280 = vector.shape_cast %279 : vector<1x16x12xbf16> to vector<16x12xbf16>
    %cst_252 = arith.constant dense<0.000000e+00> : vector<256x12xf32>
    %281 = tpu.matmul %278, %280, %cst_252 {dimension_numbers = #tpu.dot_dimension_numbers<[1], [0], [0], [1], [0, 0, 1, 1], [], []>} : vector<256x16xbf16>, vector<16x12xbf16>, vector<256x12xf32> -> vector<256x12xf32>
    %282 = arith.addf %275, %281 : vector<256x12xf32>
    %c2_253 = arith.constant 2 : index
    %c1_254 = arith.constant 1 : index
    %c0_255 = arith.constant 0 : index
    %283 = vector.load %arg11[%c2_253, %c1_254, %c0_255] : memref<18x18x16xf32, #tpu.memory_space<vmem>>, vector<16x16x16xf32>
    %284 = vector.shape_cast %283 : vector<16x16x16xf32> to vector<256x16xf32>
    %285 = arith.truncf %284 : vector<256x16xf32> to vector<256x16xbf16>
    %c7_256 = arith.constant 7 : index
    %c0_257 = arith.constant 0 : index
    %c0_258 = arith.constant 0 : index
    %286 = vector.load %arg6[%c7_256, %c0_257, %c0_258] : memref<9x16x12xbf16, #tpu.memory_space<vmem>>, vector<1x16x12xbf16>
    %287 = vector.shape_cast %286 : vector<1x16x12xbf16> to vector<16x12xbf16>
    %cst_259 = arith.constant dense<0.000000e+00> : vector<256x12xf32>
    %288 = tpu.matmul %285, %287, %cst_259 {dimension_numbers = #tpu.dot_dimension_numbers<[1], [0], [0], [1], [0, 0, 1, 1], [], []>} : vector<256x16xbf16>, vector<16x12xbf16>, vector<256x12xf32> -> vector<256x12xf32>
    %289 = arith.addf %282, %288 : vector<256x12xf32>
    %c2_260 = arith.constant 2 : index
    %c2_261 = arith.constant 2 : index
    %c0_262 = arith.constant 0 : index
    %290 = vector.load %arg11[%c2_260, %c2_261, %c0_262] : memref<18x18x16xf32, #tpu.memory_space<vmem>>, vector<16x16x16xf32>
    %291 = vector.shape_cast %290 : vector<16x16x16xf32> to vector<256x16xf32>
    %292 = arith.truncf %291 : vector<256x16xf32> to vector<256x16xbf16>
    %c8_263 = arith.constant 8 : index
    %c0_264 = arith.constant 0 : index
    %c0_265 = arith.constant 0 : index
    %293 = vector.load %arg6[%c8_263, %c0_264, %c0_265] : memref<9x16x12xbf16, #tpu.memory_space<vmem>>, vector<1x16x12xbf16>
    %294 = vector.shape_cast %293 : vector<1x16x12xbf16> to vector<16x12xbf16>
    %cst_266 = arith.constant dense<0.000000e+00> : vector<256x12xf32>
    %295 = tpu.matmul %292, %294, %cst_266 {dimension_numbers = #tpu.dot_dimension_numbers<[1], [0], [0], [1], [0, 0, 1, 1], [], []>} : vector<256x16xbf16>, vector<16x12xbf16>, vector<256x12xf32> -> vector<256x12xf32>
    %296 = arith.addf %289, %295 : vector<256x12xf32>
    %c0_267 = arith.constant 0 : index
    %c0_268 = arith.constant 0 : index
    %297 = vector.load %arg7[%c0_267, %c0_268] : memref<1x12xf32, #tpu.memory_space<vmem>>, vector<1x12xf32>
    %298 = vector.broadcast %297 : vector<1x12xf32> to vector<256x12xf32>
    %299 = arith.addf %296, %298 : vector<256x12xf32>
    %cst_269 = arith.constant 0.000000e+00 : f32
    %300 = vector.broadcast %cst_269 : f32 to vector<256x12xf32>
    %301 = arith.subf %300, %299 : vector<256x12xf32>
    %302 = math.exp %301 : vector<256x12xf32>
    %cst_270 = arith.constant 1.000000e+00 : f32
    %303 = vector.broadcast %cst_270 : f32 to vector<256x12xf32>
    %304 = arith.addf %303, %302 : vector<256x12xf32>
    %cst_271 = arith.constant 1.000000e+00 : f32
    %305 = vector.broadcast %cst_271 : f32 to vector<256x12xf32>
    %306 = arith.divf %305, %304 : vector<256x12xf32>
    %c0_272 = arith.constant 0 : index
    %c0_273 = arith.constant 0 : index
    %c0_274 = arith.constant 0 : index
    %307 = vector.load %arg8[%c0_272, %c0_273, %c0_274] : memref<1x256x12xf32, #tpu.memory_space<vmem>>, vector<1x256x12xf32>
    %308 = vector.shape_cast %307 : vector<1x256x12xf32> to vector<256x12xf32>
    %309 = vector.shape_cast %306 : vector<256x12xf32> to vector<1x256x12xf32>
    tpu.vector_store %arg8[%c0_272, %c0_273, %c0_274], %309 {strides = array<i32>} : memref<1x256x12xf32, #tpu.memory_space<vmem>>, vector<1x256x12xf32>,
    return
  }
  func.func @transform_0(%arg0: i32) -> (i32, i32, i32, i32) {
    %c0_i32 = arith.constant 0 : i32
    %c0_i32_0 = arith.constant 0 : i32
    %c0_i32_1 = arith.constant 0 : i32
    %c0_i32_2 = arith.constant 0 : i32
    return %arg0, %c0_i32, %c0_i32_0, %c0_i32_1 : i32, i32, i32, i32
  }
  func.func @transform_1(%arg0: i32) -> (i32, i32, i32) {
    %c0_i32 = arith.constant 0 : i32
    %c0_i32_0 = arith.constant 0 : i32
    %c0_i32_1 = arith.constant 0 : i32
    %c0_i32_2 = arith.constant 0 : i32
    return %c0_i32, %c0_i32_0, %c0_i32_1 : i32, i32, i32
  }
  func.func @transform_2(%arg0: i32) -> (i32, i32) {
    %c0_i32 = arith.constant 0 : i32
    %c0_i32_0 = arith.constant 0 : i32
    %c0_i32_1 = arith.constant 0 : i32
    return %c0_i32, %c0_i32_0 : i32, i32
  }
  func.func @transform_3(%arg0: i32) -> (i32, i32, i32) {
    %c0_i32 = arith.constant 0 : i32
    %c0_i32_0 = arith.constant 0 : i32
    %c0_i32_1 = arith.constant 0 : i32
    %c0_i32_2 = arith.constant 0 : i32
    return %c0_i32, %c0_i32_0, %c0_i32_1 : i32, i32, i32
  }
  func.func @transform_4(%arg0: i32) -> (i32, i32) {
    %c0_i32 = arith.constant 0 : i32
    %c0_i32_0 = arith.constant 0 : i32
    %c0_i32_1 = arith.constant 0 : i32
    return %c0_i32, %c0_i32_0 : i32, i32
  }
  func.func @transform_5(%arg0: i32) -> (i32, i32, i32) {
    %c0_i32 = arith.constant 0 : i32
    %c0_i32_0 = arith.constant 0 : i32
    %c0_i32_1 = arith.constant 0 : i32
    %c0_i32_2 = arith.constant 0 : i32
    return %c0_i32, %c0_i32_0, %c0_i32_1 : i32, i32, i32
  }
  func.func @transform_6(%arg0: i32) -> (i32, i32) {
    %c0_i32 = arith.constant 0 : i32
    %c0_i32_0 = arith.constant 0 : i32
    %c0_i32_1 = arith.constant 0 : i32
    return %c0_i32, %c0_i32_0 : i32, i32
  }
  func.func @transform_7(%arg0: i32) -> (i32, i32, i32) {
    %c0_i32 = arith.constant 0 : i32
    %c0_i32_0 = arith.constant 0 : i32
    %c0_i32_1 = arith.constant 0 : i32
    return %arg0, %c0_i32, %c0_i32_0 : i32, i32, i32
  }
}

</mosaic_0001>

<bundles_post_ra>
// kernel: tile.9
= control target key start
LH: loop header
LB: loop body
LE: loop exit
PB: predicated region body
PF: predicated region fallthrough
CT: control target
= control target key end

     0   :  { %s37_s8 = smov 3   ;;  %s38_s9 = smov 6   ;;  %vm7_vm0 = vcmask 23552   ;;  %vm13_vm1 = vcmask 97352   ;;  %vm19_vm2 = vcmask 72752   ;;  %vm25_vm3 = vcmask 48152   ;;  %s55_s0 = inlined_call_operand.vmem [shape: f32[4,3], index: 0, kind: input, shape index: {}]   ;;  %s56_s1 = inlined_call_operand.vmem [shape: f32[1,12], index: 1, kind: output, shape index: {}]  }
   0x1   :  { %v4_v0 = vld [vmem:[%s55_s0] sm:$0xf]  ;;  %s36_s0 = smov 9  }
   0x2   :  { %5 = vst [vmem:[#allocation1] sm:$0xf] %v4_v0 }
   0x9   :  { %v10_v1 = vld [vmem:[#allocation1 + $0x3] sm:$0x1]   ;;  %v22_v2 = vld [vmem:[#allocation1 + $0x1] sm:$0x1]   ;;  %v16_v3 = vld [vmem:[#allocation1 + $0x2] sm:$0x1]  }
   0xa   :  { %11 = vrot.lane.b32.xlu0 %v10_v1, %s36_s0  ;;  %23 = vrot.lane.b32.xlu1 %v22_v2, %s37_s8  ;;  %v6_v4 = vld [vmem:[#allocation1] sm:$0x1]  }
   0xb   :  { %8 = vst.msk [vmem:[#allocation0] sm:$0x1] %vm7_vm0, %v6_v4  }
  0x12   :  { %17 = vrot.lane.b32.xlu0 %v16_v3, %s38_s9 }
  0x7c   :  { %v12_v5 = vpop.permute.xlu0 %11   ;;  %v24_v6 = vpop.permute.xlu1 %23  }
  0x7d   :  { %14 = vst.msk [vmem:[#allocation0] sm:$0x1] %vm13_vm1, %v12_v5  }
  0x84   :  { %v18_v7 = vpop.permute.xlu0 %17  }
  0x85   :  { %20 = vst.msk [vmem:[#allocation0] sm:$0x1] %vm19_vm2, %v18_v7  }
  0x86   :  { %26 = vst.msk [vmem:[#allocation0] sm:$0x1] %vm25_vm3, %v24_v6  }
  0x8d   :  { %v29_v8 = vld [vmem:[#allocation0] sm:$0x1] }
  0x8e   :  { %32 = vst [vmem:[%s56_s1] sm:$0x1] %v29_v8 }

// kernel: tile.8
= control target key start
LH: loop header
LB: loop body
LE: loop exit
PB: predicated region body
PF: predicated region fallthrough
CT: control target
= control target key end

     0   :  { %2 = vsyncpa [#allocation1], 0  ;;  %s48_s8 = smov [#allocation0]   ;;  %s65_s0 = inlined_call_operand.hbm [shape: f32[3], index: 0, kind: input, shape index: {}]   ;;  %s66_s1 = inlined_call_operand.vmem [shape: f32[4,3], index: 1, kind: output, shape index: {}]  }
   0x1   :  { %s8_s0 = sshll.u32 %s65_s0, 4  ;;  %s10_s9 = sshll.u32 %s48_s8, 4  ;;  %s9_s0 = int_to_ptr.hbm [resolvable:$true] %s8_s0  ;;  %s11_s9 = int_to_ptr.vmem [resolvable:$true] %s10_s9 }
   0x2   :  { %13 = dma.hbm_to_vmem [thread:$0]  %s9_s0, 16, %s11_s9, [#allocation1]  }
   0x3   :  { %46 = dma.done.wait [#allocation1], 16  }
   0x4   :  { %47 = vsyncadd [#allocation1], 4294967280  ;;  %v18_v0 = vld [vmem:[#allocation0] ss:$0 sm:$0xff] }
   0x5   :  { %19 = vst [vmem:[%s66_s1] sm:$0xf] %v18_v0 }
   0x6   :  { %20 = vsyncpa [#allocation1], 1 }

// kernel: decoder_forward.1
= control target key start
LH: loop header
LB: loop body
LE: loop exit
PB: predicated region body
PF: predicated region fallthrough
CT: control target
= control target key end

     0   :  { %12 = vsyncpa [#allocation6], 0  ;;  %s9206_s0 = inlined_call_operand.vmem [shape: f32[2,8,8,8], index: 0, kind: input, shape index: {}]   ;;  %s9207_s1 = inlined_call_operand.vmem [shape: bf16[9,8,16], index: 1, kind: input, shape index: {}]   ;;  %s9208_s2 = inlined_call_operand.hbm [shape: f32[1,16], index: 2, kind: input, shape index: {}]   ;;  %s9209_s3 = inlined_call_operand.vmem [shape: bf16[16,16,16], index: 3, kind: input, shape index: {}]   ;;  %s9210_s4 = inlined_call_operand.hbm [shape: f32[1,16], index: 4, kind: input, shape index: {}]   ;;  %s9211_s5 = inlined_call_operand.vmem [shape: bf16[9,16,12], index: 5, kind: input, shape index: {}]   ;;  %s9212_s6 = inlined_call_operand.vmem [shape: f32[1,12], index: 6, kind: input, shape index: {}]   ;;  %s9213_s7 = inlined_call_operand.vmem [shape: f32[2,256,12], index: 7, kind: output, shape index: {}]  }
   0x1   :  { %13 = vsyncpa [#allocation8], 0  ;;  %s6551_s24 = smov 0  }
   0x2 LB: > { %s217_s27 = sshll.u32 %s9208_s2, 4  ;;  %s5826_s28 = sadd.s32 4294967295, %s6506_s24   ;;  %s6506_s24 = sphi %s6551_s24, %s19_s24   ;;  %s218_s27 = int_to_ptr.hbm [resolvable:$true] %s217_s27 }
   0x3   : > { %p5828_p0 = scmp.ge.s32.totalorder %s6506_s24, 1  ;;  %p202_p1 = scmp.lt.s32.totalorder %s6506_s24, 3 }
   0x4   : > { %p6284_p2 = scmp.eq.s32.totalorder %s5826_s28, 0  ;;  %s6508_s30 = smov [#allocation5]  }
   0x5   : > { %p6562_p3 = pnand %p5828_p0, %p202_p1  ;;  %s219_s8 = sshll.u32 %s6508_s30, 4  ;;  %s220_s8 = int_to_ptr.vmem [resolvable:$true] %s219_s8 }
   0x6   : > { %s232_s11 = sshll.u32 %s9210_s4, 4  ;;  %s6509_s12 = smov [#allocation7]   ;;  %s233_s11 = int_to_ptr.hbm [resolvable:$true] %s232_s11 }
   0x7   : > { %p6277_p4 = pneg %p6562_p3  ;;  %s234_s13 = sshll.u32 %s6509_s12, 4  ;;  %s235_s13 = int_to_ptr.vmem [resolvable:$true] %s234_s13 }
   0x8   : > { %261 = sbr.rel (%p6562_p3) target bundleno = 1561 (0x619), region = 48 }
   0x9   : > { %p6278_p5 = pnand %p6284_p2, %p6277_p4 }
   0xb   : > { %6280 = dma.hbm_to_vmem [thread:$0]  (!%p6278_p5), %s218_s27, 16, %s220_s8, [#allocation6]  }
   0xc   : > { %6283 = dma.hbm_to_vmem [thread:$0]  (!%p6278_p5), %s233_s11, 16, %s235_s13, [#allocation8]  }
   0xd   : > { %6497 = dma.done.wait (%p6284_p2), [#allocation6], 16  }
   0xe   : > { %6499 = vsyncadd (%p6284_p2), [#allocation6], 4294967280 }
   0xf   : > { %6501 = dma.done.wait (%p6284_p2), [#allocation8], 16  }
  0x10   : > { %6503 = vsyncadd (%p6284_p2), [#allocation8], 4294967280  ;;  %p299_p6 = scmp.lt.s32.totalorder %s5826_s28, 1  ;;  %vm310_vm0 = vcmask 64512   ;;  %v6510_v0 = vmov 0.0   ;;  %vm312_vm1 = vcmask 58368  }
  0x11   : > { %311 = vst.msk [vmem:[#allocation2] sm:$0xff] %vm310_vm0, %v6510_v0  ;;  %vm388_vm2 = vcmask 1043456   ;;  %v5839_v1 = vld [vmem:[%s9207_s1 + $0x4] sm:$0xf]  ;;  %v361_v2 = vld [vmem:[%s9207_s1] sm:$0xf] }
  0x12   : > { %s9436_s28 = smov (!%p299_p6, %s5826_s28), 1  ;;  %313 = vst.msk [vmem:[#allocation2 + $0x8] sm:$0x3] %vm312_vm1, %v6510_v0  ;;  %v5848_v3 = vld [vmem:[%s9207_s1 + $0x8] sm:$0xf]  ;;  %v390_v4 = vsel %vm388_vm2, %v5839_v1, 0 }
  0x13   : > { %314 = vst.msk [vmem:[#allocation2 + $0x10] sm:$0xff] %vm310_vm0, %v6510_v0  ;;  %s6239_s14 = sshll.u32 %s9436_s28, 6  ;;  %v434_v5 = vsel %vm388_vm2, %v361_v2, 0  ;;  %v492_v6 = vsel %vm388_vm2, %v5848_v3, 0  ;;  %399 = vmatpush.bf16.msra.mxu0 %v390_v4  ;;  %v5853_v8 = vld [vmem:[%s9207_s1 + $0xc] sm:$0xf] }
  0x14   : > { %315 = vst.msk [vmem:[#allocation2 + $0x18] sm:$0x3] %vm312_vm1, %v6510_v0  ;;  %s6592_s17 = scalar_lea.vmem %s9206_s0, %s6239_s14  ;;  %443 = vmatpush.bf16.msra.mxu1 %v434_v5  ;;  %501 = vmatpush.bf16.msra.mxu2 %v492_v6  ;;  %v558_v9 = vsel %vm388_vm2, %v5853_v8, 0  ;;  %v5858_v47 = vld [vmem:[%s9207_s1 + $0x10] sm:$0xf]  ;;  %vm948_vm3 = vcmask 130048  }
  0x15   : > { %316 = vst.msk [vmem:[#allocation2 + $0x20] sm:$0xff] %vm310_vm0, %v6510_v0  ;;  %v332_v7 = vld [vmem:[%s6592_s17] sm:$0xff]  ;;  %6266 = vmatpush.bf16.msra.mxu3 %v558_v9  ;;  %v333_v19 = vld [vmem:[%s6592_s17 + $0x8] sm:$0xff]  ;;  %v334_v20 = vld [vmem:[%s6592_s17 + $0x10] sm:$0xff]  ;;  %v624_v50 = vsel %vm388_vm2, %v5858_v47, 0  ;;  %vm950_vm4 = vcmask 123904  }
  0x16   : > { %317 = vst.msk [vmem:[#allocation2 + $0x28] sm:$0x3] %vm312_vm1, %v6510_v0  ;;  %v335_v21 = vld [vmem:[%s6592_s17 + $0x18] sm:$0xff]  ;;  %v336_v22 = vld [vmem:[%s6592_s17 + $0x20] sm:$0xff]  ;;  %v337_v23 = vld [vmem:[%s6592_s17 + $0x28] sm:$0xff]  ;;  %vm2247_vm5 = vcmask 1040384  }
  0x17   : > { %318 = vst.msk [vmem:[#allocation2 + $0x30] sm:$0xff] %vm310_vm0, %v6510_v0  ;;  %567 = vmatpush.bf16.msrb.mxu0 %v558_v9  ;;  %v338_v24 = vld [vmem:[%s6592_s17 + $0x30] sm:$0xff]  ;;  %v339_v25 = vld [vmem:[%s6592_s17 + $0x38] sm:$0xff]  ;;  %v5878_v5 = vld [vmem:[%s9207_s1 + $0x20] sm:$0xf]  ;;  %s6240_s26 = sshll.u32 %s9436_s28, 8 }
  0x18   : > { %341 = vst.msk [vmem:[#allocation2 + $0x11] sm:$0xff] %vm310_vm0, %v332_v7  ;;  %v349_v11 = vld [vmem:[#allocation2] sm:$0xff]  ;;  %v5868_v48 = vld [vmem:[%s9207_s1 + $0x18] sm:$0xf]  ;;  %v5863_v49 = vld [vmem:[%s9207_s1 + $0x14] sm:$0xf]  ;;  %s8693_s30 = scalar_lea.vmem %s9213_s7, %s6240_s26 }
  0x19   : > { %319 = vst.msk [vmem:[#allocation2 + $0x38] sm:$0x3] %vm312_vm1, %v6510_v0  ;;  %v362_v10 = vld [vmem:[#allocation2 + $0x1] sm:$0xff]  ;;  %v757_v51 = vsel %vm388_vm2, %v5868_v48, 0  ;;  %v690_v52 = vsel %vm388_vm2, %v5863_v49, 0  ;;  %v889_v7 = vsel %vm388_vm2, %v5878_v5, 0 }
  0x1a   : > { %320 = vst.msk [vmem:[#allocation2 + $0x40] sm:$0xff] %vm310_vm0, %v6510_v0  ;;  %v465_v12 = vld [vmem:[#allocation2 + $0x2] sm:$0xff]  ;;  %v5873_v53 = vld [vmem:[%s9207_s1 + $0x1c] sm:$0xf]  ;;  %766 = vmatpush.bf16.msrb.mxu2 %v757_v51  ;;  %699 = vmatpush.bf16.msrb.mxu1 %v690_v52  ;;  %vm5716_vm9 = vcmask 97280  }
  0x1b   : > { %321 = vst.msk [vmem:[#allocation2 + $0x48] sm:$0x3] %vm312_vm1, %v6510_v0  ;;  %v823_v55 = vsel %vm388_vm2, %v5873_v53, 0 }
  0x1c   : > { %322 = vst.msk [vmem:[#allocation2 + $0x50] sm:$0xff] %vm310_vm0, %v6510_v0  ;;  %832 = vmatpush.bf16.msrb.mxu3 %v823_v55  ;;  %v6242_v55 = vld [vmem:[%s9209_s3 + $0x8] sm:$0xff] }
  0x1d   : > { %323 = vst.msk [vmem:[#allocation2 + $0x58] sm:$0x3] %vm312_vm1, %v6510_v0 }
  0x1e   : > { %324 = vst.msk [vmem:[#allocation2 + $0x60] sm:$0xff] %vm310_vm0, %v6510_v0 }
  0x1f   : > { %v6630_v13 = vld [vmem:[#allocation2 + $0x11] sm:$0xff]  ;;  %325 = vst.msk [vmem:[#allocation2 + $0x68] sm:$0x3] %vm312_vm1, %v6510_v0 }
  0x20   : > { %v6634_v14 = vld [vmem:[#allocation2 + $0x10] sm:$0xff]  ;;  %v370_v16 = vpack.c.bf16 %v6630_v13, %v362_v10  ;;  %326 = vst.msk [vmem:[#allocation2 + $0x70] sm:$0xff] %vm310_vm0, %v6510_v0 }
  0x21   : > { %v6636_v15 = vld [vmem:[#allocation2 + $0x12] sm:$0xff]  ;;  %v357_v17 = vpack.c.bf16 %v6634_v14, %v349_v11  ;;  %327 = vst.msk [vmem:[#allocation2 + $0x78] sm:$0x3] %vm312_vm1, %v6510_v0 }
  0x22   : > { %v473_v18 = vpack.c.bf16 %v6636_v15, %v465_v12  ;;  %5840 = vmatmul.msk.bf16.vlgmr.msra.gmra.mxu0 %vm310_vm0, %v370_v16  ;;  %328 = vst.msk [vmem:[#allocation2 + $0x80] sm:$0xff] %vm310_vm0, %v6510_v0 }
  0x23   : > { %5844 = vmatmul.msk.bf16.vlgmr.msra.gmra.mxu1 %vm310_vm0, %v357_v17  ;;  %329 = vst.msk [vmem:[#allocation2 + $0x88] sm:$0x3] %vm312_vm1, %v6510_v0  ;;  %633 = vmatpush.bf16.msra.mxu0 %v624_v50 }
  0x24   : > { %5849 = vmatmul.msk.bf16.vlgmr.msra.gmra.mxu2 %vm310_vm0, %v473_v18  ;;  %330 = vst.msk [vmem:[#allocation2 + $0x90] sm:$0xff] %vm310_vm0, %v6510_v0  ;;  %1033 = vmatpush.bf16.msra.mxu1 %v6242_v55 }
  0x25   : > { %331 = vst.msk [vmem:[#allocation2 + $0x98] sm:$0x3] %vm312_vm1, %v6510_v0 }
  0x26   : > { %342 = vst.msk [vmem:[#allocation2 + $0x21] sm:$0xff] %vm310_vm0, %v333_v19 }
  0x27   : > { %343 = vst.msk [vmem:[#allocation2 + $0x31] sm:$0xff] %vm310_vm0, %v334_v20 }
  0x28   : > { %344 = vst.msk [vmem:[#allocation2 + $0x41] sm:$0xff] %vm310_vm0, %v335_v21 }
  0x29   : > { %345 = vst.msk [vmem:[#allocation2 + $0x51] sm:$0xff] %vm310_vm0, %v336_v22 }
  0x2a   : > { %346 = vst.msk [vmem:[#allocation2 + $0x61] sm:$0xff] %vm310_vm0, %v337_v23 }
  0x2b   : > { %347 = vst.msk [vmem:[#allocation2 + $0x71] sm:$0xff] %vm310_vm0, %v338_v24  ;;  %v737_v12 = vld [vmem:[#allocation2 + $0x90] sm:$0xff] }
  0x2c   : > { %348 = vst.msk [vmem:[#allocation2 + $0x81] sm:$0xff] %vm310_vm0, %v339_v25  ;;  %v869_v47 = vld [vmem:[#allocation2 + $0x92] sm:$0xff] }
  0x2d   : > { %v6670_v26 = vld [vmem:[#allocation2 + $0x21] sm:$0xff]  ;;  %952 = vst.msk [vmem:[#allocation3 + $0x10] sm:$0xff] %vm948_vm3, %v6510_v0 }
  0x2e   : > { %v351_v27 = vld [vmem:[#allocation2 + $0x20] sm:$0xff]  ;;  %v6672_v29 = vld [vmem:[#allocation2 + $0x31] sm:$0xff]  ;;  %v605_v54 = vpack.c.bf16 %v6670_v26, %v6630_v13  ;;  %953 = vst.msk [vmem:[#allocation3 + $0x18] sm:$0x3] %vm950_vm4, %v6510_v0 }
  0x2f   : > { %v467_v28 = vld [vmem:[#allocation2 + $0x22] sm:$0xff]  ;;  %v352_v30 = vld [vmem:[#allocation2 + $0x30] sm:$0xff]  ;;  %v371_v32 = vpack.c.bf16 %v6672_v29, %v6670_v26  ;;  %v539_v4 = vpack.c.bf16 %v351_v27, %v6634_v14  ;;  %949 = vst.msk [vmem:[#allocation3] sm:$0xff] %vm948_vm3, %v6510_v0 }
  0x30   : > { %v6674_v31 = vld [vmem:[#allocation2 + $0x32] sm:$0xff]  ;;  %v358_v33 = vpack.c.bf16 %v352_v30, %v351_v27  ;;  %v534_v35 = vld [vmem:[#allocation2 + $0x40] sm:$0xff]  ;;  %v671_v6 = vpack.c.bf16 %v467_v28, %v6636_v15  ;;  %951 = vst.msk [vmem:[#allocation3 + $0x8] sm:$0x3] %vm950_vm4, %v6510_v0 }
  0x31   : > { %v6679_v34 = vpack.c.bf16 %v6674_v31, %v467_v28  ;;  %v540_v36 = vpack.c.bf16 %v534_v35, %v352_v30  ;;  %v366_v37 = vld [vmem:[#allocation2 + $0x41] sm:$0xff]  ;;  %v6686_v38 = vld [vmem:[#allocation2 + $0x51] sm:$0xff]  ;;  %954 = vst.msk [vmem:[#allocation3 + $0x20] sm:$0xff] %vm948_vm3, %v6510_v0 }
  0x32   : > { %5841 = vmatmul.msk.bf16.gmra.mxu0 %vm310_vm0, %v371_v32  ;;  %v354_v39 = vld [vmem:[#allocation2 + $0x50] sm:$0xff]  ;;  %v469_v40 = vld [vmem:[#allocation2 + $0x42] sm:$0xff]  ;;  %v372_v43 = vpack.c.bf16 %v6686_v38, %v366_v37  ;;  %v606_v3 = vpack.c.bf16 %v366_v37, %v6672_v29  ;;  %955 = vst.msk [vmem:[#allocation3 + $0x28] sm:$0x3] %vm950_vm4, %v6510_v0 }
  0x33   : > { %5845 = vmatmul.msk.bf16.gmra.mxu1 %vm310_vm0, %v358_v33  ;;  %5855 = vmatmul.msk.bf16.vlgmr.msra.gmra.mxu3 %vm310_vm0, %v540_v36  ;;  %v470_v41 = vld [vmem:[#allocation2 + $0x52] sm:$0xff]  ;;  %v536_v42 = vld [vmem:[#allocation2 + $0x60] sm:$0xff]  ;;  %v359_v44 = vpack.c.bf16 %v354_v39, %v534_v35  ;;  %v672_v9 = vpack.c.bf16 %v469_v40, %v6674_v31  ;;  %956 = vst.msk [vmem:[#allocation3 + $0x30] sm:$0xff] %vm948_vm3, %v6510_v0 }
  0x34   : > { %5850 = vmatmul.msk.bf16.gmra.mxu2 %vm310_vm0, %v6679_v34  ;;  %v6689_v45 = vpack.c.bf16 %v470_v41, %v469_v40  ;;  %v541_v46 = vpack.c.bf16 %v536_v42, %v354_v39  ;;  %v368_v56 = vld [vmem:[#allocation2 + $0x61] sm:$0xff]  ;;  %v369_v57 = vld [vmem:[#allocation2 + $0x71] sm:$0xff]  ;;  %957 = vst.msk [vmem:[#allocation3 + $0x38] sm:$0x3] %vm950_vm4, %v6510_v0 }
  0x35   : > { %v356_v58 = vld [vmem:[#allocation2 + $0x70] sm:$0xff]  ;;  %v471_v59 = vld [vmem:[#allocation2 + $0x62] sm:$0xff]  ;;  %v373_v62 = vpack.c.bf16 %v369_v57, %v368_v56  ;;  %v607_v8 = vpack.c.bf16 %v368_v56, %v6686_v38  ;;  %958 = vst.msk [vmem:[#allocation3 + $0x40] sm:$0xff] %vm948_vm3, %v6510_v0 }
  0x36   : > { %v472_v60 = vld [vmem:[#allocation2 + $0x72] sm:$0xff]  ;;  %v538_v61 = vld [vmem:[#allocation2 + $0x80] sm:$0xff]  ;;  %v360_v63 = vpack.c.bf16 %v356_v58, %v536_v42  ;;  %v673_v10 = vpack.c.bf16 %v471_v59, %v470_v41  ;;  %959 = vst.msk [vmem:[#allocation3 + $0x48] sm:$0x3] %vm950_vm4, %v6510_v0 }
  0x37   : > { %v6714_v1 = vpack.c.bf16 %v472_v60, %v471_v59  ;;  %v542_v2 = vpack.c.bf16 %v538_v61, %v356_v58  ;;  %v670_v11 = vld [vmem:[#allocation2 + $0x82] sm:$0xff]  ;;  %v803_v14 = vld [vmem:[#allocation2 + $0x91] sm:$0xff]  ;;  %v741_v16 = vpack.c.bf16 %v737_v12, %v538_v61  ;;  %960 = vst.msk [vmem:[#allocation3 + $0x50] sm:$0xff] %vm948_vm3, %v6510_v0 }
  0x38   : > { %v604_v13 = vld [vmem:[#allocation2 + $0x81] sm:$0xff]  ;;  %v674_v15 = vpack.c.bf16 %v670_v11, %v472_v60  ;;  %v873_v50 = vpack.c.bf16 %v869_v47, %v670_v11  ;;  %961 = vst.msk [vmem:[#allocation3 + $0x58] sm:$0x3] %vm950_vm4, %v6510_v0 }
  0x39   : > { %v807_v17 = vpack.c.bf16 %v803_v14, %v604_v13  ;;  %v608_v18 = vpack.c.bf16 %v604_v13, %v369_v57  ;;  %v6244_v57 = vld [vmem:[%s9209_s3 + $0x18] sm:$0xff]  ;;  %962 = vst.msk [vmem:[#allocation3 + $0x60] sm:$0xff] %vm948_vm3, %v6510_v0  ;;  %v993_v47 = vld [vmem:[#allocation3 + $0x1] sm:$0xff] }
  0x3a   : > { %963 = vst.msk [vmem:[#allocation3 + $0x68] sm:$0x3] %vm950_vm4, %v6510_v0 }
  0x3b   : > { %964 = vst.msk [vmem:[#allocation3 + $0x70] sm:$0xff] %vm948_vm3, %v6510_v0 }
  0x3c   : > { %965 = vst.msk [vmem:[#allocation3 + $0x78] sm:$0x3] %vm950_vm4, %v6510_v0 }
  0x3d   : > { %966 = vst.msk [vmem:[#allocation3 + $0x80] sm:$0xff] %vm948_vm3, %v6510_v0 }
  0x3e   : > { %967 = vst.msk [vmem:[#allocation3 + $0x88] sm:$0x3] %vm950_vm4, %v6510_v0 }
  0x3f   : > { %968 = vst.msk [vmem:[#allocation3 + $0x90] sm:$0xff] %vm948_vm3, %v6510_v0 }
  0x40   : > { %969 = vst.msk [vmem:[#allocation3 + $0x98] sm:$0x3] %vm950_vm4, %v6510_v0 }
  0x41   : > { %2688 = vst.msk [vmem:[#allocation4] sm:$0xff] %vm948_vm3, %v6510_v0 }
  0x42   : > { %5842 = vmatmul.msk.bf16.gmra.mxu0 %vm310_vm0, %v372_v43  ;;  %2689 = vst.msk [vmem:[#allocation4 + $0x8] sm:$0xff] %vm948_vm3, %v6510_v0 }
  0x43   : > { %5846 = vmatmul.msk.bf16.gmra.mxu1 %vm310_vm0, %v359_v44  ;;  %5856 = vmatmul.msk.bf16.gmra.mxu3 %vm310_vm0, %v541_v46  ;;  %2690 = vst.msk [vmem:[#allocation4 + $0x10] sm:$0x3] %vm950_vm4, %v6510_v0 }
  0x44   : > { %5851 = vmatmul.msk.bf16.gmra.mxu2 %vm310_vm0, %v6689_v45  ;;  %2691 = vst.msk [vmem:[#allocation4 + $0x18] sm:$0xff] %vm948_vm3, %v6510_v0 }
  0x45   : > { %2692 = vst.msk [vmem:[#allocation4 + $0x20] sm:$0xff] %vm948_vm3, %v6510_v0 }
  0x46   : > { %2693 = vst.msk [vmem:[#allocation4 + $0x28] sm:$0x3] %vm950_vm4, %v6510_v0 }
  0x47   : > { %2694 = vst.msk [vmem:[#allocation4 + $0x30] sm:$0xff] %vm948_vm3, %v6510_v0 }
  0x48   : > { %2695 = vst.msk [vmem:[#allocation4 + $0x38] sm:$0xff] %vm948_vm3, %v6510_v0 }
  0x49   : > { %2696 = vst.msk [vmem:[#allocation4 + $0x40] sm:$0x3] %vm950_vm4, %v6510_v0 }
  0x4a   : > { %2697 = vst.msk [vmem:[#allocation4 + $0x48] sm:$0xff] %vm948_vm3, %v6510_v0 }
  0x4b   : > { %2698 = vst.msk [vmem:[#allocation4 + $0x50] sm:$0xff] %vm948_vm3, %v6510_v0 }
  0x4c   : > { %2699 = vst.msk [vmem:[#allocation4 + $0x58] sm:$0x3] %vm950_vm4, %v6510_v0 }
  0x4d   : > { %2700 = vst.msk [vmem:[#allocation4 + $0x60] sm:$0xff] %vm948_vm3, %v6510_v0 }
  0x4e   : > { %2701 = vst.msk [vmem:[#allocation4 + $0x68] sm:$0xff] %vm948_vm3, %v6510_v0 }
  0x4f   : > { %2702 = vst.msk [vmem:[#allocation4 + $0x70] sm:$0x3] %vm950_vm4, %v6510_v0 }
  0x50   : > { %2703 = vst.msk [vmem:[#allocation4 + $0x78] sm:$0xff] %vm948_vm3, %v6510_v0 }
  0x51   : > { %2704 = vst.msk [vmem:[#allocation4 + $0x80] sm:$0xff] %vm948_vm3, %v6510_v0 }
  0x52   : > { %5843 = vmatmul.msk.bf16.gmra.mxu0 %vm310_vm0, %v373_v62  ;;  %2705 = vst.msk [vmem:[#allocation4 + $0x88] sm:$0x3] %vm950_vm4, %v6510_v0 }
  0x53   : > { %5847 = vmatmul.msk.bf16.gmra.mxu1 %vm310_vm0, %v360_v63  ;;  %5857 = vmatmul.msk.bf16.gmra.mxu3 %vm310_vm0, %v542_v2  ;;  %2706 = vst.msk [vmem:[#allocation4 + $0x90] sm:$0xff] %vm948_vm3, %v6510_v0 }
  0x54   : > { %5852 = vmatmul.msk.bf16.gmra.mxu2 %vm310_vm0, %v6714_v1  ;;  %2707 = vst.msk [vmem:[#allocation4 + $0x98] sm:$0xff] %vm948_vm3, %v6510_v0 }
  0x55   : > { %2708 = vst.msk [vmem:[#allocation4 + $0xa0] sm:$0x3] %vm950_vm4, %v6510_v0 }
  0x56   : > { %2709 = vst.msk [vmem:[#allocation4 + $0xa8] sm:$0xff] %vm948_vm3, %v6510_v0 }
  0x57   : > { %2710 = vst.msk [vmem:[#allocation4 + $0xb0] sm:$0xff] %vm948_vm3, %v6510_v0 }
  0x58   : > { %2711 = vst.msk [vmem:[#allocation4 + $0xb8] sm:$0x3] %vm950_vm4, %v6510_v0 }
  0x59   : > { %2712 = vst.msk [vmem:[#allocation4 + $0xc0] sm:$0xff] %vm948_vm3, %v6510_v0 }
  0x5a   : > { %2713 = vst.msk [vmem:[#allocation4 + $0xc8] sm:$0xff] %vm948_vm3, %v6510_v0 }
  0x5b   : > { %2714 = vst.msk [vmem:[#allocation4 + $0xd0] sm:$0x3] %vm950_vm4, %v6510_v0 }
  0x5c   : > { %2715 = vst.msk [vmem:[#allocation4 + $0xd8] sm:$0xff] %vm948_vm3, %v6510_v0 }
  0x5d   : > { %2716 = vst.msk [vmem:[#allocation4 + $0xe0] sm:$0xff] %vm948_vm3, %v6510_v0 }
  0x5e   : > { %2717 = vst.msk [vmem:[#allocation4 + $0xe8] sm:$0x3] %vm950_vm4, %v6510_v0 }
  0x5f   : > { %2718 = vst.msk [vmem:[#allocation4 + $0xf0] sm:$0xff] %vm948_vm3, %v6510_v0 }
  0x60   : > { %2719 = vst.msk [vmem:[#allocation4 + $0xf8] sm:$0xff] %vm948_vm3, %v6510_v0 }
  0x61   : > { %2720 = vst.msk [vmem:[#allocation4 + $0x100] sm:$0x3] %vm950_vm4, %v6510_v0 }
  0x62   : > { %5854 = vmatmul.msk.bf16.vlgmr.msrb.gmra.mxu0 %vm310_vm0, %v539_v4  ;;  %2721 = vst.msk [vmem:[#allocation4 + $0x108] sm:$0xff] %vm948_vm3, %v6510_v0 }
  0x63   : > { %5864 = vmatmul.msk.bf16.vlgmr.msrb.gmra.mxu1 %vm310_vm0, %v671_v6  ;;  %5874 = vmatmul.msk.bf16.vlgmr.msrb.gmra.mxu3 %vm310_vm0, %v371_v32  ;;  %2722 = vst.msk [vmem:[#allocation4 + $0x110] sm:$0xff] %vm948_vm3, %v6510_v0 }
  0x64   : > { %5869 = vmatmul.msk.bf16.vlgmr.msrb.gmra.mxu2 %vm310_vm0, %v358_v33  ;;  %898 = vmatpush.bf16.msrb.mxu0 %v889_v7  ;;  %2723 = vst.msk [vmem:[#allocation4 + $0x118] sm:$0x3] %vm950_vm4, %v6510_v0 }
  0x65   : > { %2724 = vst.msk [vmem:[#allocation4 + $0x120] sm:$0xff] %vm948_vm3, %v6510_v0 }
  0x66   : > { %2725 = vst.msk [vmem:[#allocation4 + $0x128] sm:$0xff] %vm948_vm3, %v6510_v0 }
  0x67   : > { %2726 = vst.msk [vmem:[#allocation4 + $0x130] sm:$0x3] %vm950_vm4, %v6510_v0 }
  0x68   : > { %2727 = vst.msk [vmem:[#allocation4 + $0x138] sm:$0xff] %vm948_vm3, %v6510_v0 }
  0x69   : > { %2728 = vst.msk [vmem:[#allocation4 + $0x140] sm:$0xff] %vm948_vm3, %v6510_v0 }
  0x6a   : > { %2729 = vst.msk [vmem:[#allocation4 + $0x148] sm:$0x3] %vm950_vm4, %v6510_v0 }
  0x6b   : > { %2730 = vst.msk [vmem:[#allocation4 + $0x150] sm:$0xff] %vm948_vm3, %v6510_v0 }
  0x6c   : > { %2731 = vst.msk [vmem:[#allocation4 + $0x158] sm:$0xff] %vm948_vm3, %v6510_v0 }
  0x6d   : > { %2732 = vst.msk [vmem:[#allocation4 + $0x160] sm:$0x3] %vm950_vm4, %v6510_v0 }
  0x6e   : > { %2733 = vst.msk [vmem:[#allocation4 + $0x168] sm:$0xff] %vm948_vm3, %v6510_v0 }
  0x6f   : > { %2734 = vst.msk [vmem:[#allocation4 + $0x170] sm:$0xff] %vm948_vm3, %v6510_v0 }
  0x70   : > { %2735 = vst.msk [vmem:[#allocation4 + $0x178] sm:$0x3] %vm950_vm4, %v6510_v0 }
  0x71   : > { %2736 = vst.msk [vmem:[#allocation4 + $0x180] sm:$0xff] %vm948_vm3, %v6510_v0 }
  0x72   : > { %5859 = vmatmul.msk.bf16.vlgmr.msra.gmra.mxu0 %vm310_vm0, %v605_v54  ;;  %v6243_v54 = vld [vmem:[%s9209_s3 + $0x10] sm:$0xff]  ;;  %2737 = vst.msk [vmem:[#allocation4 + $0x188] sm:$0xff] %vm948_vm3, %v6510_v0 }
  0x73   : > { %5865 = vmatmul.msk.bf16.gmra.mxu1 %vm310_vm0, %v672_v9  ;;  %5875 = vmatmul.msk.bf16.gmra.mxu3 %vm310_vm0, %v372_v43  ;;  %2738 = vst.msk [vmem:[#allocation4 + $0x190] sm:$0x3] %vm950_vm4, %v6510_v0 }
  0x74   : > { %5870 = vmatmul.msk.bf16.gmra.mxu2 %vm310_vm0, %v359_v44  ;;  %1142 = vmatpush.bf16.msra.mxu3 %v6243_v54  ;;  %2739 = vst.msk [vmem:[#allocation4 + $0x198] sm:$0xff] %vm948_vm3, %v6510_v0 }
  0x75   : > { %1212 = vmatpush.bf16.msra.mxu0 %v6244_v57  ;;  %2740 = vst.msk [vmem:[#allocation4 + $0x1a0] sm:$0xff] %vm948_vm3, %v6510_v0 }
  0x76   : > { %2741 = vst.msk [vmem:[#allocation4 + $0x1a8] sm:$0x3] %vm950_vm4, %v6510_v0 }
  0x82   : > { %5860 = vmatmul.msk.bf16.gmra.mxu0 %vm310_vm0, %v606_v3 }
  0x83   : > { %5866 = vmatmul.msk.bf16.gmra.mxu1 %vm310_vm0, %v673_v10  ;;  %5876 = vmatmul.msk.bf16.gmra.mxu3 %vm310_vm0, %v373_v62 }
  0x84   : > { %5871 = vmatmul.msk.bf16.gmra.mxu2 %vm310_vm0, %v360_v63 }
  0x92   : > { %5861 = vmatmul.msk.bf16.gmra.mxu0 %vm310_vm0, %v607_v8 }
  0x93   : > { %5867 = vmatmul.msk.bf16.gmra.mxu1 %vm310_vm0, %v674_v15  ;;  %5877 = vmatmul.msk.bf16.gmra.mxu3 %vm310_vm0, %v807_v17 }
  0x94   : > { %5872 = vmatmul.msk.bf16.gmra.mxu2 %vm310_vm0, %v741_v16 }
  0x9f   : > { %v401_v19 = vpop.f32.mrf.mxu0 }
  0xa0   : > { %v445_v20 = vpop.f32.mrf.mxu1 }
  0xa1   : > { %v446_v48 = vadd.f32 %v445_v20, %v401_v19 }
  0xa2   : > { %5862 = vmatmul.msk.bf16.gmra.mxu0 %vm310_vm0, %v608_v18 }
  0xa7   : > { %v503_v21 = vpop.f32.mrf.mxu2  ;;  %v6747_v22 = vpop.f32.mrf.mxu0 }
  0xa8   : > { %v6749_v23 = vpop.f32.mrf.mxu1  ;;  %v523_v49 = vadd.f32 %v503_v21, %v446_v48 }
  0xaf   : > { %v6751_v24 = vpop.f32.mrf.mxu2  ;;  %v406_v25 = vpop.f32.mrf.mxu0 }
  0xb0   : > { %v450_v26 = vpop.f32.mrf.mxu1 }
  0xb1   : > { %v451_v27 = vadd.f32 %v450_v26, %v406_v25 }
  0xb2   : > { %5879 = vmatmul.msk.bf16.vlgmr.msrb.gmra.mxu0 %vm310_vm0, %v6679_v34 }
  0xb6   : > { %v574_v29 = vpop.f32.mrf.mxu3 }
  0xb7   : > { %v508_v28 = vpop.f32.mrf.mxu2  ;;  %v6755_v31 = vpop.f32.mrf.mxu0 }
  0xb8   : > { %v525_v30 = vadd.f32 %v508_v28, %v451_v27  ;;  %v6757_v32 = vpop.f32.mrf.mxu1  ;;  %v6880_v28 = vld [vmem:[#allocation5] ss:$0 sm:$0xff] }
  0xba   : > { %v591_v33 = vadd.f32 %v574_v29, %v525_v30 }
  0xbe   : > { %v6761_v36 = vpop.f32.mrf.mxu3 }
  0xbf   : > { %v6759_v35 = vpop.f32.mrf.mxu2  ;;  %v411_v37 = vpop.f32.mrf.mxu0 }
  0xc0   : > { %v455_v38 = vpop.f32.mrf.mxu1 }
  0xc1   : > { %v456_v39 = vadd.f32 %v455_v38, %v411_v37 }
  0xc2   : > { %5880 = vmatmul.msk.bf16.gmra.mxu0 %vm310_vm0, %v6689_v45  ;;  %v6241_v45 = vld [vmem:[%s9209_s3] sm:$0xff] }
  0xc3   : > { %1080 = vmatpush.bf16.msra.mxu2 %v6241_v45 }
  0xc6   : > { %v579_v34 = vpop.f32.mrf.mxu3 }
  0xc7   : > { %v513_v40 = vpop.f32.mrf.mxu2  ;;  %v6765_v42 = vpop.f32.mrf.mxu0 }
  0xc8   : > { %v527_v41 = vadd.f32 %v513_v40, %v456_v39  ;;  %v6790_v59 = vpop.f32.mrf.mxu1 }
  0xca   : > { %v593_v43 = vadd.f32 %v579_v34, %v527_v41 }
  0xce   : > { %v6796_v63 = vpop.f32.mrf.mxu3 }
  0xcf   : > { %v6767_v44 = vpop.f32.mrf.mxu0  ;;  %v6792_v60 = vpop.f32.mrf.mxu2 }
  0xd2   : > { %5881 = vmatmul.msk.bf16.gmra.mxu0 %vm310_vm0, %v6714_v1  ;;  %v6798_v1 = vpop.f32.mrf.mxu1 }
  0xd6   : > { %v6804_v4 = vpop.f32.mrf.mxu3 }
  0xd7   : > { %v6771_v46 = vpop.f32.mrf.mxu0  ;;  %v6802_v3 = vpop.f32.mrf.mxu2 }
  0xda   : > { %v6806_v5 = vpop.f32.mrf.mxu1 }
  0xde   : > { %v6814_v9 = vpop.f32.mrf.mxu3 }
  0xdf   : > { %v569_v51 = vpop.f32.mrf.mxu0  ;;  %v6810_v8 = vpop.f32.mrf.mxu2 }
  0xe0   : > { %v589_v52 = vadd.f32 %v569_v51, %v523_v49  ;;  %v979_v49 = vld [vmem:[#allocation3] sm:$0xff]  ;;  %v453_v51 = vadd.f32 %v6757_v32, %v6755_v31 }
  0xe2   : > { %5882 = vmatmul.msk.bf16.gmra.mxu0 %vm310_vm0, %v873_v50  ;;  %v701_v10 = vpop.f32.mrf.mxu1  ;;  %v448_v50 = vadd.f32 %v6749_v23, %v6747_v22  ;;  %v6245_v22 = vld [vmem:[%s9209_s3 + $0x20] sm:$0xff]  ;;  %v526_v31 = vadd.f32 %v6759_v35, %v453_v51 }
  0xe3   : > { %1340 = vmatpush.bf16.msrb.mxu2 %v6245_v22 }
  0xe4   : > { %v524_v23 = vadd.f32 %v6751_v24, %v448_v50  ;;  %v592_v35 = vadd.f32 %v6761_v36, %v526_v31 }
  0xe6   : > { %v834_v13 = vpop.f32.mrf.mxu3 }
  0xe7   : > { %v6777_v53 = vpop.f32.mrf.mxu0  ;;  %v768_v12 = vpop.f32.mrf.mxu2 }
  0xe8   : > { %v590_v57 = vadd.f32 %v6777_v53, %v524_v23 }
  0xea   : > { %v6840_v15 = vpop.f32.mrf.mxu1 }
  0xee   : > { %v6862_v20 = vpop.f32.mrf.mxu3 }
  0xef   : > { %v635_v56 = vpop.f32.mrf.mxu0  ;;  %v6850_v17 = vpop.f32.mrf.mxu2 }
  0xf0   : > { %v655_v16 = vadd.f32 %v635_v56, %v589_v52  ;;  %v458_v56 = vadd.f32 %v6790_v59, %v6765_v42 }
  0xf2   : > { %v721_v18 = vadd.f32 %v701_v10, %v655_v16  ;;  %v6868_v25 = vpop.f32.mrf.mxu1  ;;  %v528_v24 = vadd.f32 %v6792_v60, %v458_v56  ;;  %v461_v10 = vadd.f32 %v6798_v1, %v6767_v44 }
  0xf4   : > { %v788_v21 = vadd.f32 %v768_v12, %v721_v18  ;;  %v529_v44 = vadd.f32 %v6802_v3, %v461_v10 }
  0xf6   : > { %v854_v26 = vadd.f32 %v834_v13, %v788_v21  ;;  %v6248_v13 = vld [vmem:[%s9209_s3 + $0x38] sm:$0xff] }
  0xf7   : > { %v6788_v58 = vpop.f32.mrf.mxu0  ;;  %v6878_v27 = vpop.f32.mrf.mxu2  ;;  %1448 = vmatpush.bf16.msrb.mxu0 %v6248_v13 }
  0xf8   : > { %v656_v42 = vadd.f32 %v6788_v58, %v590_v57  ;;  %v6247_v58 = vld [vmem:[%s9209_s3 + $0x30] sm:$0xff] }
  0xf9   : > { %1378 = vmatpush.bf16.msrb.mxu3 %v6247_v58 }
  0xfa   : > { %v6897_v38 = vpop.f32.mrf.mxu1  ;;  %v722_v36 = vadd.f32 %v6840_v15, %v656_v42 }
  0xfc   : > { %v789_v1 = vadd.f32 %v6850_v17, %v722_v36 }
  0xfe   : > { %v855_v17 = vadd.f32 %v6862_v20, %v789_v1 }
  0xff   : > { %v640_v61 = vpop.f32.mrf.mxu0  ;;  %v6908_v34 = vpop.f32.mrf.mxu2 }
 0x100   : > { %v6794_v62 = vadd.f32 %v640_v61, %v591_v33  ;;  %v6890_v33 = vpop.f32.mrf.mxu3 }
 0x107   : > { %v6800_v2 = vpop.f32.mrf.mxu0  ;;  %v778_v32 = vpop.f32.mrf.mxu2 }
 0x108   : > { %v6918_v41 = vpop.f32.mrf.mxu3  ;;  %v658_v53 = vadd.f32 %v6800_v2, %v592_v35  ;;  %v6246_v2 = vld [vmem:[%s9209_s3 + $0x28] sm:$0xff] }
 0x109   : > { %1305 = vmatpush.bf16.msrb.mxu1 %v6246_v2 }
 0x10a   : > { %v724_v15 = vadd.f32 %v6897_v38, %v658_v53 }
 0x10c   : > { %v791_v21 = vadd.f32 %v6908_v34, %v724_v15 }
 0x10f   : > { %v645_v6 = vpop.f32.mrf.mxu0  ;;  %v780_v16 = vpop.f32.mrf.mxu2 }
 0x110   : > { %v6808_v7 = vadd.f32 %v645_v6, %v593_v43  ;;  %v711_v43 = vpop.f32.mrf.mxu1  ;;  %v844_v59 = vpop.f32.mrf.mxu3  ;;  %v594_v6 = vadd.f32 %v6796_v63, %v528_v24  ;;  %v723_v63 = vadd.f32 %v6868_v25, %v6794_v62  ;;  %v595_v25 = vadd.f32 %v6804_v4, %v529_v44 }
 0x111   : > { %v857_v4 = vadd.f32 %v6918_v41, %v791_v21 }
 0x112   : > { %v725_v62 = vadd.f32 %v711_v43, %v6808_v7 }
 0x117   : > { %v6818_v11 = vpop.f32.mrf.mxu0 }
 0x118   : > { %v713_v61 = vpop.f32.mrf.mxu1  ;;  %v660_v12 = vadd.f32 %v6818_v11, %v594_v6  ;;  %v790_v11 = vadd.f32 %v6878_v27, %v723_v63  ;;  %v846_v3 = vpop.f32.mrf.mxu3 }
 0x11a   : > { %v726_v18 = vadd.f32 %v713_v61, %v660_v12 }
 0x11f   : > { %v6836_v14 = vpop.f32.mrf.mxu0 }
 0x120   : > { %v716_v27 = vpop.f32.mrf.mxu1  ;;  %v661_v38 = vadd.f32 %v6836_v14, %v595_v25  ;;  %v849_v51 = vpop.f32.mrf.mxu3 }
 0x122   : > { %v727_v41 = vadd.f32 %v716_v27, %v661_v38 }
 0x127   : > { %v6858_v19 = vpop.f32.mrf.mxu0 }
 0x128   : > { %v718_v23 = vpop.f32.mrf.mxu1  ;;  %v851_v36 = vpop.f32.mrf.mxu3 }
 0x12f   : > { %v900_v29 = vpop.f32.mrf.mxu0 }
 0x130   : > { %v920_v30 = vadd.f32 %v900_v29, %v854_v26  ;;  %v792_v26 = vadd.f32 %v778_v32, %v725_v62  ;;  %v463_v29 = vadd.f32 %v6806_v5, %v6771_v46  ;;  %v783_v5 = vpop.f32.mrf.mxu2 }
 0x132   : > { %v932_v37 = vadd.f32 %v6880_v28, %v920_v30  ;;  %v856_v30 = vadd.f32 %v6890_v33, %v790_v11  ;;  %v858_v34 = vadd.f32 %v844_v59, %v792_v26 }
 0x134   : > { %v940_v39 = vmax.f32 %v932_v37, 0.0  ;;  %v793_v37 = vadd.f32 %v780_v16, %v726_v18 }
 0x136   : > { %971 = vst.msk [vmem:[#allocation3 + $0x11] sm:$0xff] %vm948_vm3, %v940_v39  ;;  %v530_v39 = vadd.f32 %v6810_v8, %v463_v29  ;;  %v859_v33 = vadd.f32 %v846_v3, %v793_v37 }
 0x137   : > { %v6906_v40 = vpop.f32.mrf.mxu0 }
 0x138   : > { %v921_v20 = vadd.f32 %v6906_v40, %v855_v17  ;;  %v785_v42 = vpop.f32.mrf.mxu2 }
 0x13a   : > { %v933_v8 = vadd.f32 %v6880_v28, %v921_v20 }
 0x13c   : > { %v941_v31 = vmax.f32 %v933_v8, 0.0  ;;  %v1265_v8 = vld [vmem:[#allocation3 + $0x2] sm:$0xff] }
 0x13d   : > { %v6928_v48 = vld [vmem:[#allocation3 + $0x11] sm:$0xff] }
 0x13e   : > { %v6939_v45 = vpack.c.bf16 %v6928_v48, %v993_v47  ;;  %v6941_v54 = vld [vmem:[#allocation3 + $0x10] sm:$0xff]  ;;  %v596_v47 = vadd.f32 %v6814_v9, %v530_v39  ;;  %972 = vst.msk [vmem:[#allocation3 + $0x21] sm:$0xff] %vm948_vm3, %v941_v31 }
 0x13f   : > { %v6936_v52 = vpop.f32.mrf.mxu0  ;;  %v987_v55 = vpack.c.bf16 %v6941_v54, %v979_v49 }
 0x140   : > { %5889 = vmatmul.msk.bf16.vlgmr.msra.gmra.mxu1 %vm948_vm3, %v6939_v45  ;;  %v922_v46 = vadd.f32 %v6936_v52, %v856_v30  ;;  %v662_v22 = vadd.f32 %v6858_v19, %v596_v47 }
 0x141   : > { %5897 = vmatmul.msk.bf16.vlgmr.msra.gmra.mxu2 %vm948_vm3, %v987_v55  ;;  %v794_v55 = vadd.f32 %v783_v5, %v727_v41  ;;  %v6252_v5 = vld [vmem:[%s9209_s3 + $0x58] sm:$0xff] }
 0x142   : > { %v934_v49 = vadd.f32 %v6880_v28, %v922_v46  ;;  %v728_v24 = vadd.f32 %v718_v23, %v662_v22  ;;  %v6250_v46 = vld [vmem:[%s9209_s3 + $0x48] sm:$0xff] }
 0x143   : > { %v860_v57 = vadd.f32 %v849_v51, %v794_v55  ;;  %1513 = vmatpush.bf16.msra.mxu1 %v6250_v46 }
 0x144   : > { %v942_v56 = vmax.f32 %v934_v49, 0.0 }
 0x145   : > { %v1103_v2 = vld [vmem:[#allocation3 + $0x20] sm:$0xff] }
 0x146   : > { %973 = vst.msk [vmem:[#allocation3 + $0x31] sm:$0xff] %vm948_vm3, %v942_v56  ;;  %v1173_v10 = vld [vmem:[#allocation3 + $0x21] sm:$0xff]  ;;  %v7068_v63 = vpack.c.bf16 %v1103_v2, %v6941_v54 }
 0x147   : > { %v907_v60 = vpop.f32.mrf.mxu0  ;;  %v7071_v12 = vpack.c.bf16 %v1173_v10, %v6928_v48  ;;  %v1409_v49 = vld [vmem:[#allocation3 + $0x22] sm:$0xff] }
 0x148   : > { %v923_v14 = vadd.f32 %v907_v60, %v857_v4  ;;  %v795_v60 = vadd.f32 %v785_v42, %v728_v24  ;;  %5907 = vmatmul.msk.bf16.vlgmr.msra.gmra.mxu3 %vm948_vm3, %v7068_v63  ;;  %v6255_v42 = vld [vmem:[%s9209_s3 + $0x70] sm:$0xff] }
 0x149   : > { %5917 = vmatmul.msk.bf16.vlgmr.msra.gmra.mxu0 %vm948_vm3, %v7071_v12 }
 0x14a   : > { %v935_v52 = vadd.f32 %v6880_v28, %v923_v14  ;;  %v861_v58 = vadd.f32 %v851_v36, %v795_v60  ;;  %1681 = vmatpush.bf16.msra.mxu0 %v6252_v5 }
 0x14c   : > { %v943_v19 = vmax.f32 %v935_v52, 0.0 }
 0x14d   : > { %v996_v13 = vld [vmem:[#allocation3 + $0x31] sm:$0xff] }
 0x14e   : > { %974 = vst.msk [vmem:[#allocation3 + $0x41] sm:$0xff] %vm948_vm3, %v943_v19  ;;  %v982_v15 = vld [vmem:[#allocation3 + $0x30] sm:$0xff]  ;;  %v7073_v44 = vpack.c.bf16 %v996_v13, %v1173_v10 }
 0x14f   : > { %v910_v7 = vpop.f32.mrf.mxu0  ;;  %v7075_v62 = vpack.c.bf16 %v982_v15, %v1103_v2 }
 0x150   : > { %v924_v43 = vadd.f32 %v910_v7, %v858_v34  ;;  %5890 = vmatmul.msk.bf16.gmra.mxu1 %vm948_vm3, %v7073_v44  ;;  %v6251_v34 = vld [vmem:[%s9209_s3 + $0x50] sm:$0xff] }
 0x151   : > { %5898 = vmatmul.msk.bf16.gmra.mxu2 %vm948_vm3, %v7075_v62  ;;  %1611 = vmatpush.bf16.msra.mxu3 %v6251_v34 }
 0x152   : > { %v936_v9 = vadd.f32 %v6880_v28, %v924_v43 }
 0x154   : > { %v944_v35 = vmax.f32 %v936_v9, 0.0 }
 0x155   : > { %v1105_v11 = vld [vmem:[#allocation3 + $0x40] sm:$0xff] }
 0x156   : > { %975 = vst.msk [vmem:[#allocation3 + $0x51] sm:$0xff] %vm948_vm3, %v944_v35  ;;  %v1175_v18 = vld [vmem:[#allocation3 + $0x41] sm:$0xff]  ;;  %v7087_v7 = vpack.c.bf16 %v1105_v11, %v982_v15 }
 0x157   : > { %v912_v40 = vpop.f32.mrf.mxu0  ;;  %v7089_v25 = vpack.c.bf16 %v1175_v18, %v996_v13  ;;  %v1411_v55 = vld [vmem:[#allocation3 + $0x42] sm:$0xff] }
 0x158   : > { %v925_v50 = vadd.f32 %v912_v40, %v859_v33  ;;  %5908 = vmatmul.msk.bf16.gmra.mxu3 %vm948_vm3, %v7087_v7  ;;  %v1266_v40 = vld [vmem:[#allocation3 + $0x12] sm:$0xff] }
 0x159   : > { %5918 = vmatmul.msk.bf16.gmra.mxu0 %vm948_vm3, %v7089_v25  ;;  %v1273_v47 = vpack.c.bf16 %v1266_v40, %v1265_v8  ;;  %v7148_v51 = vpack.c.bf16 %v1409_v49, %v1266_v40 }
 0x15a   : > { %v937_v32 = vadd.f32 %v6880_v28, %v925_v50  ;;  %v1268_v50 = vld [vmem:[#allocation3 + $0x32] sm:$0xff] }
 0x15b   : > { %v7150_v52 = vpack.c.bf16 %v1268_v50, %v1409_v49  ;;  %v7160_v22 = vpack.c.bf16 %v1411_v55, %v1268_v50 }
 0x15c   : > { %v945_v59 = vmax.f32 %v937_v32, 0.0 }
 0x15d   : > { %v998_v21 = vld [vmem:[#allocation3 + $0x51] sm:$0xff] }
 0x15e   : > { %976 = vst.msk [vmem:[#allocation3 + $0x61] sm:$0xff] %vm948_vm3, %v945_v59  ;;  %v984_v3 = vld [vmem:[#allocation3 + $0x50] sm:$0xff]  ;;  %v7091_v26 = vpack.c.bf16 %v998_v21, %v1175_v18 }
 0x15f   : > { %v915_v53 = vpop.f32.mrf.mxu0  ;;  %v7093_v17 = vpack.c.bf16 %v984_v3, %v1105_v11 }
 0x160   : > { %v926_v61 = vadd.f32 %v915_v53, %v860_v57  ;;  %5891 = vmatmul.msk.bf16.gmra.mxu1 %vm948_vm3, %v7091_v26  ;;  %v6253_v57 = vld [vmem:[%s9209_s3 + $0x60] sm:$0xff]  ;;  %v6254_v53 = vld [vmem:[%s9209_s3 + $0x68] sm:$0xff] }
 0x161   : > { %5899 = vmatmul.msk.bf16.gmra.mxu2 %vm948_vm3, %v7093_v17 }
 0x162   : > { %v938_v6 = vadd.f32 %v6880_v28, %v926_v61  ;;  %v6256_v61 = vld [vmem:[%s9209_s3 + $0x78] sm:$0xff] }
 0x164   : > { %v946_v0 = vmax.f32 %v938_v6, 0.0 }
 0x165   : > { %v1107_v27 = vld [vmem:[#allocation3 + $0x60] sm:$0xff] }
 0x166   : > { %977 = vst.msk [vmem:[#allocation3 + $0x71] sm:$0xff] %vm948_vm3, %v946_v0  ;;  %v1177_v29 = vld [vmem:[#allocation3 + $0x61] sm:$0xff]  ;;  %v7106_v38 = vpack.c.bf16 %v1107_v27, %v984_v3 }
 0x167   : > { %v917_v16 = vpop.f32.mrf.mxu0  ;;  %v7108_v4 = vpack.c.bf16 %v1177_v29, %v998_v21  ;;  %v1413_v23 = vld [vmem:[#allocation3 + $0x62] sm:$0xff] }
 0x168   : > { %v927_v1 = vadd.f32 %v917_v16, %v861_v58  ;;  %5909 = vmatmul.msk.bf16.gmra.mxu3 %vm948_vm3, %v7106_v38 }
 0x169   : > { %5919 = vmatmul.msk.bf16.gmra.mxu0 %vm948_vm3, %v7108_v4 }
 0x16a   : > { %v939_v48 = vadd.f32 %v6880_v28, %v927_v1  ;;  %v6249_v28 = vld [vmem:[%s9209_s3 + $0x40] sm:$0xff] }
 0x16b   : > { %1548 = vmatpush.bf16.msra.mxu2 %v6249_v28 }
 0x16c   : > { %v947_v54 = vmax.f32 %v939_v48, 0.0 }
 0x16d   : > { %v1000_v30 = vld [vmem:[#allocation3 + $0x71] sm:$0xff] }
 0x16e   : > { %978 = vst.msk [vmem:[#allocation3 + $0x81] sm:$0xff] %vm948_vm3, %v947_v54  ;;  %v986_v37 = vld [vmem:[#allocation3 + $0x70] sm:$0xff]  ;;  %v7110_v20 = vpack.c.bf16 %v1000_v30, %v1177_v29 }
 0x16f   : > { %v7112_v39 = vpack.c.bf16 %v986_v37, %v1107_v27  ;;  %v1272_v31 = vld [vmem:[#allocation3 + $0x72] sm:$0xff] }
 0x170   : > { %5892 = vmatmul.msk.bf16.gmra.mxu1 %vm948_vm3, %v7110_v20  ;;  %v7177_v35 = vpack.c.bf16 %v1272_v31, %v1413_v23 }
 0x171   : > { %5900 = vmatmul.msk.bf16.gmra.mxu2 %vm948_vm3, %v7112_v39 }
 0x175   : > { %v7131_v14 = vld [vmem:[#allocation3 + $0x80] sm:$0xff] }
 0x176   : > { %v7133_v33 = vld [vmem:[#allocation3 + $0x81] sm:$0xff]  ;;  %v7136_v41 = vpack.c.bf16 %v7131_v14, %v986_v37 }
 0x177   : > { %v7139_v43 = vpack.c.bf16 %v7133_v33, %v1000_v30  ;;  %v7190_v59 = vld [vmem:[#allocation3 + $0x82] sm:$0xff] }
 0x178   : > { %5910 = vmatmul.msk.bf16.gmra.mxu3 %vm948_vm3, %v7136_v41  ;;  %v7199_v60 = vpack.c.bf16 %v7190_v59, %v1272_v31 }
 0x179   : > { %5920 = vmatmul.msk.bf16.gmra.mxu0 %vm948_vm3, %v7139_v43 }
 0x180   : > { %5929 = vmatmul.msk.bf16.vlgmr.msrb.gmra.mxu1 %vm948_vm3, %v1273_v47 }
 0x181   : > { %5937 = vmatmul.msk.bf16.vlgmr.msrb.gmra.mxu2 %vm948_vm3, %v6939_v45  ;;  %v1270_v45 = vld [vmem:[#allocation3 + $0x52] sm:$0xff]  ;;  %1746 = vmatpush.bf16.msrb.mxu1 %v6254_v53 }
 0x182   : > { %v7162_v9 = vpack.c.bf16 %v1270_v45, %v1411_v55  ;;  %v7175_v24 = vpack.c.bf16 %v1413_v23, %v1270_v45  ;;  %1781 = vmatpush.bf16.msrb.mxu2 %v6253_v57  ;;  %v1578_v57 = vld [vmem:[#allocation3 + $0x90] sm:$0xff] }
 0x188   : > { %5947 = vmatmul.msk.bf16.vlgmr.msrb.gmra.mxu3 %vm948_vm3, %v7071_v12 }
 0x189   : > { %5957 = vmatmul.msk.bf16.vlgmr.msrb.gmra.mxu0 %vm948_vm3, %v7148_v51  ;;  %1819 = vmatpush.bf16.msrb.mxu3 %v6255_v42 }
 0x18a   : > { %1889 = vmatpush.bf16.msrb.mxu0 %v6256_v61 }
 0x190   : > { %5930 = vmatmul.msk.bf16.gmra.mxu1 %vm948_vm3, %v7150_v52 }
 0x191   : > { %5938 = vmatmul.msk.bf16.gmra.mxu2 %vm948_vm3, %v7073_v44 }
 0x198   : > { %5948 = vmatmul.msk.bf16.gmra.mxu3 %vm948_vm3, %v7089_v25 }
 0x199   : > { %5958 = vmatmul.msk.bf16.gmra.mxu0 %vm948_vm3, %v7160_v22 }
 0x1a0   : > { %5931 = vmatmul.msk.bf16.gmra.mxu1 %vm948_vm3, %v7162_v9 }
 0x1a1   : > { %5939 = vmatmul.msk.bf16.gmra.mxu2 %vm948_vm3, %v7091_v26 }
 0x1a8   : > { %5949 = vmatmul.msk.bf16.gmra.mxu3 %vm948_vm3, %v7108_v4 }
 0x1a9   : > { %5959 = vmatmul.msk.bf16.gmra.mxu0 %vm948_vm3, %v7175_v24 }
 0x1b0   : > { %5932 = vmatmul.msk.bf16.gmra.mxu1 %vm948_vm3, %v7177_v35 }
 0x1b1   : > { %5940 = vmatmul.msk.bf16.gmra.mxu2 %vm948_vm3, %v7110_v20 }
 0x1b8   : > { %5950 = vmatmul.msk.bf16.gmra.mxu3 %vm948_vm3, %v7139_v43 }
 0x1b9   : > { %5960 = vmatmul.msk.bf16.gmra.mxu0 %vm948_vm3, %v7199_v60 }
 0x1bd   : > { %v1035_v32 = vpop.f32.mrf.mxu1 }
 0x1c0   : > { %5969 = vmatmul.msk.bf16.vlgmr.msra.gmra.mxu1 %vm948_vm3, %v7071_v12 }
 0x1c1   : > { %5977 = vmatmul.msk.bf16.vlgmr.msra.gmra.mxu2 %vm948_vm3, %v7068_v63 }
 0x1c4   : > { %v1082_v56 = vpop.f32.mrf.mxu2 }
 0x1c5   : > { %v1083_v19 = vadd.f32 %v1082_v56, %v1035_v32  ;;  %v1037_v6 = vpop.f32.mrf.mxu1 }
 0x1c6   : > { %v1214_v0 = vpop.f32.mrf.mxu0 }
 0x1c8   : > { %5987 = vmatmul.msk.bf16.vlgmr.msra.gmra.mxu3 %vm948_vm3, %v7075_v62 }
 0x1c9   : > { %5997 = vmatmul.msk.bf16.vlgmr.msra.gmra.mxu0 %vm948_vm3, %v7073_v44 }
 0x1cb   : > { %v1144_v2 = vpop.f32.mrf.mxu3 }
 0x1cc   : > { %v1084_v36 = vpop.f32.mrf.mxu2  ;;  %v1164_v10 = vadd.f32 %v1144_v2, %v1083_v19 }
 0x1cd   : > { %v1040_v58 = vpop.f32.mrf.mxu1  ;;  %v1085_v48 = vadd.f32 %v1084_v36, %v1037_v6  ;;  %v1582_v6 = vpack.c.bf16 %v1578_v57, %v7131_v14 }
 0x1ce   : > { %v1216_v63 = vpop.f32.mrf.mxu0  ;;  %v7217_v16 = vadd.f32 %v1214_v0, %v1164_v10 }
 0x1d0   : > { %5970 = vmatmul.msk.bf16.gmra.mxu1 %vm948_vm3, %v7089_v25 }
 0x1d1   : > { %5978 = vmatmul.msk.bf16.gmra.mxu2 %vm948_vm3, %v7087_v7 }
 0x1d3   : > { %v1146_v54 = vpop.f32.mrf.mxu3 }
 0x1d4   : > { %v1087_v13 = vpop.f32.mrf.mxu2  ;;  %v1165_v11 = vadd.f32 %v1146_v54, %v1085_v48  ;;  %v7258_v48 = vld [vmem:[#allocation7] ss:$0 sm:$0xff] }
 0x1d5   : > { %v1088_v15 = vadd.f32 %v1087_v13, %v1040_v58  ;;  %v1042_v1 = vpop.f32.mrf.mxu1 }
 0x1d6   : > { %v1219_v18 = vpop.f32.mrf.mxu0  ;;  %v7219_v28 = vadd.f32 %v1216_v63, %v1165_v11 }
 0x1d8   : > { %5988 = vmatmul.msk.bf16.gmra.mxu3 %vm948_vm3, %v7093_v17 }
 0x1d9   : > { %5998 = vmatmul.msk.bf16.gmra.mxu0 %vm948_vm3, %v7091_v26 }
 0x1db   : > { %v1149_v7 = vpop.f32.mrf.mxu3 }
 0x1dc   : > { %v1089_v62 = vpop.f32.mrf.mxu2  ;;  %v1166_v27 = vadd.f32 %v1149_v7, %v1088_v15 }
 0x1dd   : > { %v1090_v21 = vadd.f32 %v1089_v62, %v1042_v1  ;;  %v1045_v3 = vpop.f32.mrf.mxu1 }
 0x1de   : > { %v1221_v30 = vpop.f32.mrf.mxu0  ;;  %v7229_v37 = vadd.f32 %v1219_v18, %v1166_v27 }
 0x1e0   : > { %5971 = vmatmul.msk.bf16.gmra.mxu1 %vm948_vm3, %v7108_v4 }
 0x1e1   : > { %5979 = vmatmul.msk.bf16.gmra.mxu2 %vm948_vm3, %v7106_v38 }
 0x1e3   : > { %v1151_v5 = vpop.f32.mrf.mxu3 }
 0x1e4   : > { %v1092_v29 = vpop.f32.mrf.mxu2  ;;  %v1167_v17 = vadd.f32 %v1151_v5, %v1090_v21 }
 0x1e5   : > { %v1047_v34 = vpop.f32.mrf.mxu1  ;;  %v1093_v46 = vadd.f32 %v1092_v29, %v1045_v3 }
 0x1e6   : > { %v1224_v40 = vpop.f32.mrf.mxu0  ;;  %v7231_v50 = vadd.f32 %v1221_v30, %v1167_v17 }
 0x1e8   : > { %5989 = vmatmul.msk.bf16.gmra.mxu3 %vm948_vm3, %v7112_v39  ;;  %v1648_v39 = vld [vmem:[#allocation3 + $0x91] sm:$0xff] }
 0x1e9   : > { %5999 = vmatmul.msk.bf16.gmra.mxu0 %vm948_vm3, %v7110_v20  ;;  %v7245_v36 = vpack.c.bf16 %v1648_v39, %v7133_v33 }
 0x1eb   : > { %v1154_v38 = vpop.f32.mrf.mxu3 }
 0x1ec   : > { %v1094_v8 = vpop.f32.mrf.mxu2  ;;  %v1168_v55 = vadd.f32 %v1154_v38, %v1093_v46 }
 0x1ed   : > { %v1095_v47 = vadd.f32 %v1094_v8, %v1047_v34  ;;  %v1050_v49 = vpop.f32.mrf.mxu1 }
 0x1ee   : > { %v1226_v23 = vpop.f32.mrf.mxu0  ;;  %v7241_v31 = vadd.f32 %v1224_v40, %v1168_v55 }
 0x1f0   : > { %5972 = vmatmul.msk.bf16.gmra.mxu1 %vm948_vm3, %v7139_v43 }
 0x1f1   : > { %5980 = vmatmul.msk.bf16.gmra.mxu2 %vm948_vm3, %v7136_v41 }
 0x1f3   : > { %v1156_v19 = vpop.f32.mrf.mxu3 }
 0x1f4   : > { %v1097_v45 = vpop.f32.mrf.mxu2  ;;  %v1169_v53 = vadd.f32 %v1156_v19, %v1095_v47  ;;  %v1248_v47 = vadd.f32 %v7258_v48, %v7229_v37 }
 0x1f5   : > { %v1052_v32 = vpop.f32.mrf.mxu1  ;;  %v1098_v56 = vadd.f32 %v1097_v45, %v1050_v49 }
 0x1f6   : > { %v1229_v61 = vpop.f32.mrf.mxu0  ;;  %v7247_v58 = vadd.f32 %v1226_v23, %v1169_v53 }
 0x1f8   : > { %9215 = vst [vmem:[#allocation11_spill] sm:$0xff] %v7247_v58  ;;  %5990 = vmatmul.msk.bf16.gmra.mxu3 %vm948_vm3, %v1582_v6 }
 0x1f9   : > { %6000 = vmatmul.msk.bf16.gmra.mxu0 %vm948_vm3, %v7245_v36 }
 0x1fb   : > { %v1159_v2 = vpop.f32.mrf.mxu3 }
 0x1fc   : > { %v1099_v42 = vpop.f32.mrf.mxu2  ;;  %v1170_v14 = vadd.f32 %v1159_v2, %v1098_v56 }
 0x1fd   : > { %v1100_v41 = vadd.f32 %v1099_v42, %v1052_v32  ;;  %v1307_v0 = vpop.f32.mrf.mxu1 }
 0x1fe   : > { %v1231_v33 = vpop.f32.mrf.mxu0  ;;  %v7256_v13 = vadd.f32 %v1229_v61, %v1170_v14 }
 0x200   : > { %6009 = vmatmul.msk.bf16.vlgmr.msrb.gmra.mxu1 %vm948_vm3, %v7148_v51 }
 0x201   : > { %6017 = vmatmul.msk.bf16.vlgmr.msrb.gmra.mxu2 %vm948_vm3, %v7071_v12  ;;  %v1246_v12 = vadd.f32 %v7258_v48, %v7217_v16 }
 0x203   : > { %v1161_v15 = vpop.f32.mrf.mxu3  ;;  %v1254_v27 = vmax.f32 %v1246_v12, 0.0 }
 0x204   : > { %v1342_v10 = vpop.f32.mrf.mxu2  ;;  %v1171_v54 = vadd.f32 %v1161_v15, %v1100_v41 }
 0x205   : > { %v1309_v63 = vpop.f32.mrf.mxu1  ;;  %v1343_v51 = vadd.f32 %v1342_v10, %v1307_v0  ;;  %v1943_v46 = vrot.slane %v1254_v27, 1  ;;  %v1945_v5 = vrot.slane %v1254_v27, 3  ;;  %v1946_v8 = vrot.slane %v1254_v27, 4 }
 0x206   : > { %v1450_v62 = vpop.f32.mrf.mxu0  ;;  %v7260_v18 = vadd.f32 %v1231_v33, %v1171_v54  ;;  %v1947_v17 = vrot.slane %v1254_v27, 5 }
 0x208   : > { %9216 = vst [vmem:[#allocation12_spill] sm:$0xff] %v7260_v18  ;;  %6027 = vmatmul.msk.bf16.vlgmr.msrb.gmra.mxu3 %vm948_vm3, %v7073_v44 }
 0x209   : > { %6037 = vmatmul.msk.bf16.vlgmr.msrb.gmra.mxu0 %vm948_vm3, %v7150_v52  ;;  %v1247_v52 = vadd.f32 %v7258_v48, %v7219_v28 }
 0x20b   : > { %v1380_v21 = vpop.f32.mrf.mxu3  ;;  %v7277_v40 = vmax.f32 %v1247_v52, 0.0 }
 0x20c   : > { %v1344_v1 = vpop.f32.mrf.mxu2  ;;  %v1400_v3 = vadd.f32 %v1380_v21, %v1343_v51  ;;  %v1949_v51 = vrot.slane %v1254_v27, 7 }
 0x20d   : > { %v1312_v11 = vpop.f32.mrf.mxu1  ;;  %v1345_v0 = vadd.f32 %v1344_v1, %v1309_v63  ;;  %v7291_v1 = vmax.f32 %v1248_v47, 0.0  ;;  %v1951_v52 = vrot.slane %v7277_v40, 2 }
 0x20e   : > { %v1452_v29 = vpop.f32.mrf.mxu0  ;;  %v1470_v30 = vadd.f32 %v1450_v62, %v1400_v3  ;;  %v1948_v62 = vrot.slane %v1254_v27, 6 }
 0x20f   : > { %v1958_v47 = vrot.slane %v7291_v1, 2 }
 0x210   : > { %6010 = vmatmul.msk.bf16.gmra.mxu1 %vm948_vm3, %v7160_v22  ;;  %v1478_v16 = vadd.f32 %v7258_v48, %v1470_v30  ;;  %v1944_v22 = vrot.slane %v1254_v27, 2 }
 0x211   : > { %6018 = vmatmul.msk.bf16.gmra.mxu2 %vm948_vm3, %v7089_v25 }
 0x212   : > { %v1486_v25 = vmax.f32 %v1478_v16, 0.0  ;;  %v1952_v16 = vrot.slane %v7277_v40, 3 }
 0x213   : > { %v1382_v49 = vpop.f32.mrf.mxu3 }
 0x214   : > { %v1347_v7 = vpop.f32.mrf.mxu2  ;;  %v2063_v38 = vrot.slane %v1486_v25, 1  ;;  %v2064_v55 = vrot.slane %v1486_v25, 2  ;;  %v2065_v45 = vrot.slane %v1486_v25, 3  ;;  %v2066_v28 = vrot.slane %v1486_v25, 4 }
 0x215   : > { %v7272_v44 = vpop.f32.mrf.mxu1  ;;  %v1348_v34 = vadd.f32 %v1347_v7, %v1312_v11  ;;  %v2067_v32 = vrot.slane %v1486_v25, 5  ;;  %v2068_v56 = vrot.slane %v1486_v25, 6  ;;  %v2069_v19 = vrot.slane %v1486_v25, 7 }
 0x216   : > { %v2119_v57 = vperm.slane %v1486_v25, 0  ;;  %v1455_v39 = vpop.f32.mrf.mxu0  ;;  %v2120_v42 = vperm.slane %v2063_v38, 0  ;;  %v2121_v53 = vperm.slane %v2064_v55, 0  ;;  %v2122_v61 = vperm.slane %v2065_v45, 0 }
 0x217   : > { %v2123_v6 = vperm.slane %v2066_v28, 0  ;;  %v2124_v2 = vperm.slane %v2067_v32, 0  ;;  %v2125_v37 = vperm.slane %v2068_v56, 0  ;;  %v2126_v10 = vperm.slane %v2069_v19, 0 }
 0x218   : > { %v2248_v14 = vsel %vm2247_vm5, %v1254_v27, %v2119_v57  ;;  %v2249_v33 = vsel %vm2247_vm5, %v1943_v46, %v2120_v42  ;;  %v2250_v15 = vsel %vm2247_vm5, %v1944_v22, %v2121_v53  ;;  %v2251_v54 = vsel %vm2247_vm5, %v1945_v5, %v2122_v61  ;;  %6028 = vmatmul.msk.bf16.gmra.mxu3 %vm948_vm3, %v7091_v26 }
 0x219   : > { %2870 = vst [vmem:[#allocation1] ss:$4 sm:$0xff] %v2248_v14  ;;  %v2252_v11 = vsel %vm2247_vm5, %v1946_v8, %v2123_v6  ;;  %v1401_v12 = vadd.f32 %v1382_v49, %v1345_v0  ;;  %v2253_v63 = vsel %vm2247_vm5, %v1947_v17, %v2124_v2  ;;  %6038 = vmatmul.msk.bf16.gmra.mxu0 %vm948_vm3, %v7162_v9  ;;  %v1950_v27 = vrot.slane %v7277_v40, 1 }
 0x21a   : > { %2872 = vst [vmem:[#allocation1 + $0x1] ss:$4 sm:$0xff] %v2249_v33  ;;  %v2254_v21 = vsel %vm2247_vm5, %v1948_v62, %v2125_v37  ;;  %v2255_v26 = vsel %vm2247_vm5, %v1949_v51, %v2126_v10  ;;  %v1954_v22 = vrot.slane %v7277_v40, 5  ;;  %v1955_v5 = vrot.slane %v7277_v40, 6 }
 0x21b   : > { %2874 = vst [vmem:[#allocation1 + $0x2] ss:$4 sm:$0xff] %v2250_v15  ;;  %v1471_v3 = vadd.f32 %v1452_v29, %v1401_v12  ;;  %v1385_v7 = vpop.f32.mrf.mxu3  ;;  %v1956_v25 = vrot.slane %v7277_v40, 7  ;;  %v1957_v17 = vrot.slane %v7291_v1, 1  ;;  %v1959_v38 = vrot.slane %v7291_v1, 3 }
 0x21c   : > { %v1349_v23 = vpop.f32.mrf.mxu2  ;;  %2876 = vst [vmem:[#allocation1 + $0x3] ss:$4 sm:$0xff] %v2251_v54  ;;  %v1402_v30 = vadd.f32 %v1385_v7, %v1348_v34  ;;  %v1249_v55 = vadd.f32 %v7258_v48, %v7231_v50  ;;  %v1250_v45 = vadd.f32 %v7258_v48, %v7241_v31  ;;  %v6258_v7 = vld [vmem:[%s9211_s5 + $0x8] sm:$0xff] }
 0x21d   : > { %v1317_v41 = vpop.f32.mrf.mxu1  ;;  %2878 = vst [vmem:[#allocation1 + $0x20] ss:$4 sm:$0xff] %v2252_v11  ;;  %v1479_v29 = vadd.f32 %v7258_v48, %v1471_v3  ;;  %v1350_v28 = vadd.f32 %v1349_v23, %v7272_v44  ;;  %3264 = vmatpush.bf16.msra.mxu1 %v6258_v7  ;;  %6268 = vmatpush.bf16.msra.mxu3 %v6258_v7 }
 0x21e   : > { %2880 = vst [vmem:[#allocation1 + $0x21] ss:$4 sm:$0xff] %v2253_v63  ;;  %v7303_v46 = vpop.f32.mrf.mxu0  ;;  %v1472_v34 = vadd.f32 %v1455_v39, %v1402_v30  ;;  %v1962_v30 = vrot.slane %v7291_v1, 6  ;;  %6267 = vmatpush.bf16.msra.mxu2 %v6258_v7 }
 0x21f   : > { %2882 = vst [vmem:[#allocation1 + $0x22] ss:$4 sm:$0xff] %v2254_v21  ;;  %v1487_v49 = vmax.f32 %v1479_v29, 0.0  ;;  %v7362_v29 = vmax.f32 %v1250_v45, 0.0 }
 0x220   : > { %6011 = vmatmul.msk.bf16.gmra.mxu1 %vm948_vm3, %v7175_v24  ;;  %2884 = vst [vmem:[#allocation1 + $0x23] ss:$4 sm:$0xff] %v2255_v26  ;;  %v1480_v6 = vadd.f32 %v7258_v48, %v1472_v34  ;;  %v1961_v26 = vrot.slane %v7291_v1, 5 }
 0x221   : > { %6019 = vmatmul.msk.bf16.gmra.mxu2 %vm948_vm3, %v7108_v4  ;;  %v1953_v4 = vrot.slane %v7277_v40, 4  ;;  %v2070_v32 = vrot.slane %v1487_v49, 1  ;;  %v2071_v56 = vrot.slane %v1487_v49, 2  ;;  %v2072_v19 = vrot.slane %v1487_v49, 3 }
 0x222   : > { %v2073_v57 = vrot.slane %v1487_v49, 4  ;;  %v2074_v42 = vrot.slane %v1487_v49, 5  ;;  %v2075_v53 = vrot.slane %v1487_v49, 6  ;;  %v2076_v61 = vrot.slane %v1487_v49, 7 }
 0x223   : > { %v2885_v39 = vld.sshfl [vmem:[#allocation1] sm:$0xff pattern:$0x73625140]  ;;  %v2128_v0 = vperm.slane %v2070_v32, 0  ;;  %v2129_v50 = vperm.slane %v2071_v56, 0  ;;  %v2130_v2 = vperm.slane %v2072_v19, 0  ;;  %v1387_v37 = vpop.f32.mrf.mxu3 }
 0x224   : > { %v1352_v9 = vpop.f32.mrf.mxu2  ;;  %3070 = vst.msk [vmem:[#allocation4 + $0x19] sm:$0xff] %vm948_vm3, %v2885_v39  ;;  %v2131_v31 = vperm.slane %v2073_v57, 0  ;;  %v2132_v14 = vperm.slane %v2074_v42, 0  ;;  %v2133_v44 = vperm.slane %v2075_v53, 0  ;;  %v2134_v23 = vperm.slane %v2076_v61, 0 }
 0x225   : > { %v7305_v24 = vadd.f32 %v1352_v9, %v1317_v41  ;;  %v7310_v8 = vpop.f32.mrf.mxu1  ;;  %v2127_v41 = vperm.slane %v1487_v49, 0  ;;  %v7330_v15 = vsel %vm2247_vm5, %v1950_v27, %v2128_v0  ;;  %v7333_v54 = vsel %vm2247_vm5, %v1951_v52, %v2129_v50  ;;  %v1856_v50 = vld [vmem:[#allocation3 + $0x92] sm:$0xff] }
 0x226   : > { %9217 = vst [vmem:[#allocation13_spill] sm:$0xff] %v7310_v8  ;;  %v7336_v62 = vsel %vm2247_vm5, %v1952_v16, %v2130_v2  ;;  %v7338_v11 = vpop.f32.mrf.mxu0  ;;  %v7341_v51 = vsel %vm2247_vm5, %v1953_v4, %v2131_v31  ;;  %v7344_v63 = vsel %vm2247_vm5, %v1954_v22, %v2132_v14  ;;  %v7350_v21 = vsel %vm2247_vm5, %v1956_v25, %v2134_v23 }
 0x227   : > { %v7327_v33 = vsel %vm2247_vm5, %v7277_v40, %v2127_v41  ;;  %v2886_v12 = vld.sshfl [vmem:[#allocation1 + $0x20] sm:$0xff pattern:$0x73625140]  ;;  %v7347_v40 = vsel %vm2247_vm5, %v1955_v5, %v2133_v44  ;;  %v1960_v27 = vrot.slane %v7291_v1, 4  ;;  %v1488_v9 = vmax.f32 %v1480_v6, 0.0 }
 0x228   : > { %3071 = vst.msk [vmem:[#allocation4 + $0x21] sm:$0xff] %vm948_vm3, %v2886_v12  ;;  %v1963_v52 = vrot.slane %v7291_v1, 7  ;;  %v7360_v16 = vmax.f32 %v1249_v55, 0.0  ;;  %v1403_v4 = vadd.f32 %v1387_v37, %v1350_v28  ;;  %6029 = vmatmul.msk.bf16.gmra.mxu3 %vm948_vm3, %v7110_v20  ;;  %v1860_v7 = vpack.c.bf16 %v1856_v50, %v7190_v59 }
 0x229   : > { %v2077_v22 = vrot.slane %v1488_v9, 1  ;;  %v2078_v5 = vrot.slane %v1488_v9, 2  ;;  %v2079_v34 = vrot.slane %v1488_v9, 3  ;;  %v2080_v25 = vrot.slane %v1488_v9, 4  ;;  %6039 = vmatmul.msk.bf16.gmra.mxu0 %vm948_vm3, %v7177_v35 }
 0x22a   : > { %v2081_v49 = vrot.slane %v1488_v9, 5  ;;  %v2082_v32 = vrot.slane %v1488_v9, 6  ;;  %v2083_v56 = vrot.slane %v1488_v9, 7  ;;  %v2135_v19 = vperm.slane %v1488_v9, 0 }
 0x22b   : > { %v2136_v55 = vperm.slane %v2077_v22, 0  ;;  %v2137_v45 = vperm.slane %v2078_v5, 0  ;;  %v2138_v28 = vperm.slane %v2079_v34, 0  ;;  %v2139_v57 = vperm.slane %v2080_v25, 0  ;;  %v1390_v39 = vpop.f32.mrf.mxu3 }
 0x22c   : > { %v7323_v10 = vpop.f32.mrf.mxu2  ;;  %v2140_v42 = vperm.slane %v2081_v49, 0  ;;  %v2141_v53 = vperm.slane %v2082_v32, 0  ;;  %v2142_v61 = vperm.slane %v2083_v56, 0  ;;  %v7374_v20 = vsel %vm2247_vm5, %v7291_v1, %v2135_v19 }
 0x22d   : > { %9218 = vst [vmem:[#allocation14_spill] sm:$0xff] %v7323_v10  ;;  %v1322_v3 = vpop.f32.mrf.mxu1  ;;  %v7379_v35 = vsel %vm2247_vm5, %v1957_v17, %v2136_v55  ;;  %v7392_v41 = vsel %vm2247_vm5, %v1960_v27, %v2139_v57  ;;  %v1473_v1 = vadd.f32 %v7303_v46, %v1403_v4  ;;  %v1404_v31 = vadd.f32 %v1390_v39, %v7305_v24  ;;  %v3152_v27 = vld [vmem:[#allocation4 + $0x1] sm:$0xff]  ;;  %v3153_v46 = vld [vmem:[#allocation4 + $0x9] sm:$0xff] }
 0x22e   : > { %v7394_v0 = vpop.f32.mrf.mxu0  ;;  %v7397_v2 = vsel %vm2247_vm5, %v1961_v26, %v2140_v42  ;;  %v7400_v17 = vsel %vm2247_vm5, %v1962_v30, %v2141_v53  ;;  %v1964_v44 = vrot.slane %v7360_v16, 1  ;;  %v1965_v23 = vrot.slane %v7360_v16, 2 }
 0x22f   : > { %9219 = vst [vmem:[#allocation15_spill] sm:$0xff] %v7394_v0  ;;  %v1481_v12 = vadd.f32 %v7258_v48, %v1473_v1  ;;  %v1966_v26 = vrot.slane %v7360_v16, 3  ;;  %v1967_v30 = vrot.slane %v7360_v16, 4  ;;  %v1968_v9 = vrot.slane %v7360_v16, 5 }
 0x230   : > { %6012 = vmatmul.msk.bf16.gmra.mxu1 %vm948_vm3, %v7199_v60  ;;  %v7384_v60 = vsel %vm2247_vm5, %v1958_v47, %v2137_v45  ;;  %v7403_v47 = vsel %vm2247_vm5, %v1963_v52, %v2142_v61  ;;  %v1474_v24 = vadd.f32 %v7338_v11, %v1404_v31  ;;  %v1970_v52 = vrot.slane %v7360_v16, 7 }
 0x231   : > { %6020 = vmatmul.msk.bf16.gmra.mxu2 %vm948_vm3, %v7139_v43  ;;  %v7389_v43 = vsel %vm2247_vm5, %v1959_v38, %v2138_v28  ;;  %v6260_v38 = vld [vmem:[%s9211_s5 + $0x18] sm:$0xff]  ;;  %v1971_v4 = vrot.slane %v7362_v29, 1  ;;  %v1489_v22 = vmax.f32 %v1481_v12, 0.0  ;;  %v1972_v59 = vrot.slane %v7362_v29, 2 }
 0x232   : > { %3827 = vmatpush.bf16.msra.mxu0 %v6260_v38  ;;  %v1973_v5 = vrot.slane %v7362_v29, 3  ;;  %v1482_v34 = vadd.f32 %v7258_v48, %v1474_v24  ;;  %v3184_v49 = vpack.c.bf16 %v3153_v46, %v3152_v27 }
 0x233   : > { %v7428_v25 = vpop.f32.mrf.mxu3  ;;  %v2084_v32 = vrot.slane %v1489_v22, 1  ;;  %v2085_v56 = vrot.slane %v1489_v22, 2  ;;  %v2086_v19 = vrot.slane %v1489_v22, 3  ;;  %v2087_v11 = vrot.slane %v1489_v22, 4 }
 0x234   : > { %v1357_v6 = vpop.f32.mrf.mxu2  ;;  %9221 = vst [vmem:[#allocation17_spill] sm:$0xff] %v7428_v25  ;;  %v2088_v45 = vrot.slane %v1489_v22, 5  ;;  %v2089_v28 = vrot.slane %v1489_v22, 6  ;;  %v2090_v57 = vrot.slane %v1489_v22, 7  ;;  %v2143_v39 = vperm.slane %v1489_v22, 0 }
 0x235   : > { %v7406_v37 = vpop.f32.mrf.mxu1  ;;  %v7412_v14 = vadd.f32 %v1357_v6, %v1322_v3  ;;  %v1969_v3 = vrot.slane %v7360_v16, 6  ;;  %v2144_v53 = vperm.slane %v2084_v32, 0  ;;  %v2145_v61 = vperm.slane %v2085_v56, 0 }
 0x236   : > { %9220 = vst [vmem:[#allocation16_spill] sm:$0xff] %v7406_v37  ;;  %v1465_v42 = vpop.f32.mrf.mxu0  ;;  %v2146_v6 = vperm.slane %v2086_v19, 0  ;;  %v2147_v50 = vperm.slane %v2087_v11, 0  ;;  %v2148_v38 = vperm.slane %v2088_v45, 0  ;;  %v2149_v31 = vperm.slane %v2089_v28, 0 }
 0x237   : > { %v2150_v12 = vperm.slane %v2090_v57, 0  ;;  %v7434_v27 = vsel %vm2247_vm5, %v7360_v16, %v2143_v39  ;;  %v7437_v46 = vsel %vm2247_vm5, %v1964_v44, %v2144_v53  ;;  %v7440_v24 = vsel %vm2247_vm5, %v1965_v23, %v2145_v61 }
 0x238   : > { %v7443_v22 = vsel %vm2247_vm5, %v1966_v26, %v2146_v6  ;;  %v7446_v32 = vsel %vm2247_vm5, %v1967_v30, %v2147_v50  ;;  %v7449_v56 = vsel %vm2247_vm5, %v1968_v9, %v2148_v38  ;;  %v7452_v19 = vsel %vm2247_vm5, %v1969_v3, %v2149_v31  ;;  %6030 = vmatmul.msk.bf16.gmra.mxu3 %vm948_vm3, %v7245_v36 }
 0x239   : > { %v7455_v16 = vsel %vm2247_vm5, %v1970_v52, %v2150_v12  ;;  %v1490_v44 = vmax.f32 %v1482_v34, 0.0  ;;  %v1974_v11 = vrot.slane %v7362_v29, 4  ;;  %v1975_v23 = vrot.slane %v7362_v29, 5  ;;  %6040 = vmatmul.msk.bf16.gmra.mxu0 %vm948_vm3, %v1860_v7 }
 0x23a   : > { %v1976_v26 = vrot.slane %v7362_v29, 6  ;;  %v1977_v45 = vrot.slane %v7362_v29, 7 }
 0x23b   : > { %v2091_v30 = vrot.slane %v1490_v44, 1  ;;  %v2092_v9 = vrot.slane %v1490_v44, 2  ;;  %v2093_v3 = vrot.slane %v1490_v44, 3  ;;  %v2094_v28 = vrot.slane %v1490_v44, 4  ;;  %v1395_v52 = vpop.f32.mrf.mxu3 }
 0x23c   : > { %v7430_v55 = vpop.f32.mrf.mxu2  ;;  %v2095_v34 = vrot.slane %v1490_v44, 5  ;;  %v2096_v57 = vrot.slane %v1490_v44, 6  ;;  %v2097_v39 = vrot.slane %v1490_v44, 7  ;;  %v2151_v53 = vperm.slane %v1490_v44, 0 }
 0x23d   : > { %9222 = vst [vmem:[#allocation18_spill] sm:$0xff] %v7430_v55  ;;  %v1515_v1 = vpop.f32.mrf.mxu1  ;;  %v2152_v6 = vperm.slane %v2091_v30, 0  ;;  %v2153_v50 = vperm.slane %v2092_v9, 0  ;;  %v2154_v38 = vperm.slane %v2093_v3, 0  ;;  %v2155_v31 = vperm.slane %v2094_v28, 0 }
 0x23e   : > { %v7465_v12 = vpop.f32.mrf.mxu0  ;;  %v2156_v36 = vperm.slane %v2095_v34, 0  ;;  %v2157_v7 = vperm.slane %v2096_v57, 0  ;;  %v2158_v18 = vperm.slane %v2097_v39, 0  ;;  %v7469_v55 = vsel %vm2247_vm5, %v7362_v29, %v2151_v53  ;;  %v3716_v53 = vld [vmem:[#allocation4 + $0x20] sm:$0xff] }
 0x23f   : > { %9223 = vst [vmem:[#allocation19_spill] sm:$0xff] %v7465_v12  ;;  %v7477_v44 = vsel %vm2247_vm5, %v1972_v59, %v2153_v50  ;;  %v7480_v30 = vsel %vm2247_vm5, %v1973_v5, %v2154_v38  ;;  %v7483_v9 = vsel %vm2247_vm5, %v1974_v11, %v2155_v31  ;;  %v1252_v59 = vadd.f32 %v7258_v48, %v7256_v13  ;;  %v3154_v50 = vld [vmem:[#allocation4 + $0x19] sm:$0xff]  ;;  %v3155_v38 = vld [vmem:[#allocation4 + $0x21] sm:$0xff] }
 0x240   : > { %6047 = vmatmul.msk.bf16.vlgmr.msra.gmra.mxu1 %vm948_vm3, %v3184_v49  ;;  %9224 = vst [vmem:[#allocation20_spill] sm:$0xff] %v7469_v55  ;;  %v7474_v49 = vsel %vm2247_vm5, %v1971_v4, %v2152_v6  ;;  %v7486_v3 = vsel %vm2247_vm5, %v1975_v23, %v2156_v36  ;;  %v7489_v29 = vsel %vm2247_vm5, %v1976_v26, %v2157_v7  ;;  %v3715_v23 = vld [vmem:[#allocation4 + $0x18] sm:$0xff] }
 0x241   : > { %9225 = vst [vmem:[#allocation21_spill] sm:$0xff] %v7474_v49  ;;  %v7492_v28 = vsel %vm2247_vm5, %v1977_v45, %v2158_v18  ;;  %v1406_v4 = vadd.f32 %v1395_v52, %v7412_v14  ;;  %v1260_v6 = vmax.f32 %v1252_v59, 0.0  ;;  %v3747_v45 = vpack.c.bf16 %v3716_v53, %v3715_v23 }
 0x242   : > { %9226 = vst [vmem:[#allocation22_spill] sm:$0xff] %v7477_v44  ;;  %v3185_v14 = vpack.c.bf16 %v3155_v38, %v3154_v50 }
 0x243   : > { %9227 = vst [vmem:[#allocation23_spill] sm:$0xff] %v7480_v30  ;;  %v1476_v5 = vadd.f32 %v1465_v42, %v1406_v4  ;;  %v7497_v57 = vpop.f32.mrf.mxu3  ;;  %v1986_v13 = vrot.slane %v1260_v6, 2  ;;  %v1987_v42 = vrot.slane %v1260_v6, 3  ;;  %v1988_v52 = vrot.slane %v1260_v6, 4 }
 0x244   : > { %v1550_v61 = vpop.f32.mrf.mxu2  ;;  %9228 = vst [vmem:[#allocation24_spill] sm:$0xff] %v7483_v9  ;;  %v1989_v36 = vrot.slane %v1260_v6, 5  ;;  %v1990_v7 = vrot.slane %v1260_v6, 6  ;;  %v1991_v4 = vrot.slane %v1260_v6, 7 }
 0x245   : > { %v7471_v37 = vpop.f32.mrf.mxu1  ;;  %9229 = vst [vmem:[#allocation25_spill] sm:$0xff] %v7486_v3  ;;  %v1551_v34 = vadd.f32 %v1550_v61, %v1515_v1  ;;  %v1484_v18 = vadd.f32 %v7258_v48, %v1476_v5  ;;  %v1985_v1 = vrot.slane %v1260_v6, 1 }
 0x246   : > { %9230 = vst [vmem:[#allocation26_spill] sm:$0xff] %v7489_v29  ;;  %v1683_v39 = vpop.f32.mrf.mxu0 }
 0x247   : > { %9231 = vst [vmem:[#allocation27_spill] sm:$0xff] %v7492_v28  ;;  %v1492_v61 = vmax.f32 %v1484_v18, 0.0 }
 0x248   : > { %9232 = vst [vmem:[#allocation28_spill] sm:$0xff] %v7497_v57 }
 0x249   : > { %6111 = vmatmul.msk.bf16.vlgmr.msra.gmra.mxu0 %vm948_vm3, %v3747_v45  ;;  %v2105_v57 = vrot.slane %v1492_v61, 1  ;;  %v2106_v58 = vrot.slane %v1492_v61, 2  ;;  %v2107_v5 = vrot.slane %v1492_v61, 3  ;;  %v2108_v23 = vrot.slane %v1492_v61, 4 }
 0x24a   : > { %v2109_v50 = vrot.slane %v1492_v61, 5  ;;  %v2110_v38 = vrot.slane %v1492_v61, 6  ;;  %v2111_v45 = vrot.slane %v1492_v61, 7  ;;  %v2167_v28 = vperm.slane %v1492_v61, 0 }
 0x24b   : > { %v1613_v31 = vpop.f32.mrf.mxu3  ;;  %v2168_v29 = vperm.slane %v2105_v57, 0  ;;  %v2169_v18 = vperm.slane %v2106_v58, 0  ;;  %v2170_v3 = vperm.slane %v2107_v5, 0  ;;  %v2171_v9 = vperm.slane %v2108_v23, 0 }
 0x24c   : > { %v7499_v11 = vpop.f32.mrf.mxu2  ;;  %v1633_v59 = vadd.f32 %v1613_v31, %v1551_v34  ;;  %v2172_v30 = vperm.slane %v2109_v50, 0  ;;  %v2173_v44 = vperm.slane %v2110_v38, 0  ;;  %v2174_v34 = vperm.slane %v2111_v45, 0 }
 0x24d   : > { %v1520_v26 = vpop.f32.mrf.mxu1  ;;  %v7509_v31 = vsel %vm2247_vm5, %v1260_v6, %v2167_v28  ;;  %v7512_v49 = vsel %vm2247_vm5, %v1985_v1, %v2168_v29  ;;  %v7515_v55 = vsel %vm2247_vm5, %v1986_v13, %v2169_v18  ;;  %v7518_v61 = vsel %vm2247_vm5, %v1987_v42, %v2170_v3 }
 0x24e   : > { %v7504_v53 = vpop.f32.mrf.mxu0  ;;  %9233 = vst [vmem:[#allocation29_spill] sm:$0xff] %v7509_v31  ;;  %v7521_v58 = vsel %vm2247_vm5, %v1988_v52, %v2171_v9  ;;  %v7524_v57 = vsel %vm2247_vm5, %v1989_v36, %v2172_v30  ;;  %v7527_v5 = vsel %vm2247_vm5, %v1990_v7, %v2173_v44  ;;  %v7530_v28 = vsel %vm2247_vm5, %v1991_v4, %v2174_v34 }
 0x24f   : > { %9234 = vst [vmem:[#allocation30_spill] sm:$0xff] %v7512_v49  ;;  %v1703_v29 = vadd.f32 %v1683_v39, %v1633_v59 }
 0x250   : > { %6048 = vmatmul.msk.bf16.gmra.mxu1 %vm948_vm3, %v3185_v14  ;;  %9235 = vst [vmem:[#allocation31_spill] sm:$0xff] %v7515_v55 }
 0x251   : > { %9236 = vst [vmem:[#allocation32_spill] sm:$0xff] %v7518_v61 }
 0x252   : > { %9237 = vst [vmem:[#allocation33_spill] sm:$0xff] %v7521_v58 }
 0x253   : > { %9238 = vst [vmem:[#allocation34_spill] sm:$0xff] %v7524_v57  ;;  %v7532_v1 = vpop.f32.mrf.mxu3 }
 0x254   : > { %v1555_v12 = vpop.f32.mrf.mxu2  ;;  %9239 = vst [vmem:[#allocation35_spill] sm:$0xff] %v7527_v5 }
 0x255   : > { %v7506_v14 = vpop.f32.mrf.mxu1  ;;  %9240 = vst [vmem:[#allocation36_spill] sm:$0xff] %v7530_v28  ;;  %v1556_v6 = vadd.f32 %v1555_v12, %v1520_v26 }
 0x256   : > { %v1688_v3 = vpop.f32.mrf.mxu0 }
 0x25b   : > { %v1618_v23 = vpop.f32.mrf.mxu3 }
 0x25c   : > { %v7534_v13 = vpop.f32.mrf.mxu2  ;;  %v1635_v9 = vadd.f32 %v1618_v23, %v1556_v6 }
 0x25d   : > { %v1525_v42 = vpop.f32.mrf.mxu1 }
 0x25e   : > { %v7536_v50 = vpop.f32.mrf.mxu0  ;;  %v7538_v30 = vadd.f32 %v1688_v3, %v1635_v9 }
 0x263   : > { %v7540_v36 = vpop.f32.mrf.mxu3 }
 0x264   : > { %v1560_v52 = vpop.f32.mrf.mxu2 }
 0x265   : > { %v1561_v44 = vadd.f32 %v1560_v52, %v1525_v42  ;;  %v7542_v7 = vpop.f32.mrf.mxu1 }
 0x266   : > { %9241 = vst [vmem:[#allocation37_spill] sm:$0xff] %v7542_v7  ;;  %v1693_v12 = vpop.f32.mrf.mxu0 }
 0x26b   : > { %v1623_v26 = vpop.f32.mrf.mxu3 }
 0x26c   : > { %v7544_v39 = vpop.f32.mrf.mxu2  ;;  %v1637_v59 = vadd.f32 %v1623_v26, %v1561_v44 }
 0x26d   : > { %9242 = vst [vmem:[#allocation38_spill] sm:$0xff] %v7544_v39  ;;  %v1530_v38 = vpop.f32.mrf.mxu1 }
 0x26e   : > { %v7546_v18 = vadd.f32 %v1693_v12, %v1637_v59  ;;  %v7548_v34 = vpop.f32.mrf.mxu0 }
 0x26f   : > { %9244 = vst [vmem:[#allocation40_spill] sm:$0xff] %v7548_v34 }
 0x270   : > { %9243 = vst [vmem:[#allocation39_spill] sm:$0xff] %v7546_v18 }
 0x273   : > { %v7550_v6 = vpop.f32.mrf.mxu3 }
 0x274   : > { %v1565_v4 = vpop.f32.mrf.mxu2  ;;  %9245 = vst [vmem:[#allocation41_spill] sm:$0xff] %v7550_v6 }
 0x275   : > { %v1566_v45 = vadd.f32 %v1565_v4, %v1530_v38  ;;  %v7554_v52 = vpop.f32.mrf.mxu1  ;;  %v1711_v4 = vadd.f32 %v7258_v48, %v1703_v29 }
 0x276   : > { %v1698_v3 = vpop.f32.mrf.mxu0  ;;  %9247 = vst [vmem:[#allocation43_spill] sm:$0xff] %v7554_v52 }
 0x277   : > { %v1719_v61 = vmax.f32 %v1711_v4, 0.0 }
 0x279   : > { %v2325_v8 = vrot.slane %v1719_v61, 6 }
 0x27b   : > { %v1628_v42 = vpop.f32.mrf.mxu3 }
 0x27c   : > { %v7552_v23 = vpop.f32.mrf.mxu2  ;;  %v1639_v9 = vadd.f32 %v1628_v42, %v1566_v45  ;;  %v2320_v42 = vrot.slane %v1719_v61, 1 }
 0x27d   : > { %9246 = vst [vmem:[#allocation42_spill] sm:$0xff] %v7552_v23  ;;  %v1748_v12 = vpop.f32.mrf.mxu1 }
 0x27e   : > { %v7556_v28 = vadd.f32 %v1698_v3, %v1639_v9  ;;  %v7560_v44 = vpop.f32.mrf.mxu0  ;;  %v2321_v3 = vrot.slane %v1719_v61, 2 }
 0x27f   : > { %9250 = vst [vmem:[#allocation46_spill] sm:$0xff] %v7560_v44  ;;  %v2324_v44 = vrot.slane %v1719_v61, 5 }
 0x280   : > { %9248 = vst [vmem:[#allocation44_spill] sm:$0xff] %v7556_v28  ;;  %v2323_v28 = vrot.slane %v1719_v61, 4 }
 0x283   : > { %v7558_v5 = vpop.f32.mrf.mxu3 }
 0x284   : > { %9249 = vst [vmem:[#allocation45_spill] sm:$0xff] %v7558_v5  ;;  %v1783_v26 = vpop.f32.mrf.mxu2  ;;  %v2322_v5 = vrot.slane %v1719_v61, 3 }
 0x285   : > { %v1784_v59 = vadd.f32 %v1783_v26, %v1748_v12  ;;  %v1750_v9 = vpop.f32.mrf.mxu1 }
 0x286   : > { %v1891_v58 = vpop.f32.mrf.mxu0 }
 0x28b   : > { %v1821_v38 = vpop.f32.mrf.mxu3 }
 0x28c   : > { %v1841_v57 = vadd.f32 %v1821_v38, %v1784_v59  ;;  %v1785_v23 = vpop.f32.mrf.mxu2 }
 0x28d   : > { %v1786_v49 = vadd.f32 %v1785_v23, %v1750_v9 }
 0x28e   : > { %v1911_v55 = vadd.f32 %v1891_v58, %v1841_v57 }
 0x290   : > { %v1919_v45 = vadd.f32 %v7258_v48, %v1911_v55 }
 0x292   : > { %v1927_v52 = vmax.f32 %v1919_v45, 0.0 }
 0x293   : > { %v1823_v12 = vpop.f32.mrf.mxu3 }
 0x294   : > { %v2440_v31 = vrot.slane %v1927_v52, 1  ;;  %v2441_v34 = vrot.slane %v1927_v52, 2  ;;  %v2442_v29 = vrot.slane %v1927_v52, 3  ;;  %v2443_v26 = vrot.slane %v1927_v52, 4 }
 0x295   : > { %v2444_v59 = vrot.slane %v1927_v52, 5  ;;  %v2445_v38 = vrot.slane %v1927_v52, 6  ;;  %v2446_v4 = vrot.slane %v1927_v52, 7  ;;  %v2496_v58 = vperm.slane %v1927_v52, 0 }
 0x296   : > { %v2497_v57 = vperm.slane %v2440_v31, 0  ;;  %v2498_v6 = vperm.slane %v2441_v34, 0  ;;  %v2499_v55 = vperm.slane %v2442_v29, 0  ;;  %v2500_v39 = vperm.slane %v2443_v26, 0  ;;  %v1893_v29 = vpop.f32.mrf.mxu0 }
 0x297   : > { %v2501_v7 = vperm.slane %v2444_v59, 0  ;;  %v2502_v18 = vperm.slane %v2445_v38, 0  ;;  %v2624_v45 = vsel %vm2247_vm5, %v1719_v61, %v2496_v58  ;;  %v1842_v0 = vadd.f32 %v1823_v12, %v1786_v49 }
 0x298   : > { %v2503_v25 = vperm.slane %v2446_v4, 0  ;;  %v2625_v23 = vsel %vm2247_vm5, %v2320_v42, %v2497_v57  ;;  %v2626_v9 = vsel %vm2247_vm5, %v2321_v3, %v2498_v6  ;;  %v2627_v10 = vsel %vm2247_vm5, %v2322_v5, %v2499_v55  ;;  %2887 = vst [vmem:[#allocation1] ss:$4 sm:$0xff] %v2624_v45 }
 0x299   : > { %v2628_v52 = vsel %vm2247_vm5, %v2323_v28, %v2500_v39  ;;  %2888 = vst [vmem:[#allocation1 + $0x1] ss:$4 sm:$0xff] %v2625_v23  ;;  %v2326_v31 = vrot.slane %v1719_v61, 7  ;;  %v2629_v34 = vsel %vm2247_vm5, %v2324_v44, %v2501_v7  ;;  %v1553_v49 = vadd.f32 %v7499_v11, %v7471_v37 }
 0x29a   : > { %2889 = vst [vmem:[#allocation1 + $0x2] ss:$4 sm:$0xff] %v2626_v9  ;;  %v2630_v26 = vsel %vm2247_vm5, %v2325_v8, %v2502_v18  ;;  %v1912_v42 = vadd.f32 %v1893_v29, %v1842_v0 }
 0x29b   : > { %2890 = vst [vmem:[#allocation1 + $0x3] ss:$4 sm:$0xff] %v2627_v10  ;;  %v2631_v6 = vsel %vm2247_vm5, %v2326_v31, %v2503_v25  ;;  %v1634_v5 = vadd.f32 %v7532_v1, %v1553_v49  ;;  %v1826_v18 = vpop.f32.mrf.mxu3 }
 0x29c   : > { %2891 = vst [vmem:[#allocation1 + $0x20] ss:$4 sm:$0xff] %v2628_v52  ;;  %v1920_v61 = vadd.f32 %v7258_v48, %v1912_v42 }
 0x29d   : > { %2892 = vst [vmem:[#allocation1 + $0x21] ss:$4 sm:$0xff] %v2629_v34  ;;  %v1704_v28 = vadd.f32 %v7504_v53, %v1634_v5 }
 0x29e   : > { %2893 = vst [vmem:[#allocation1 + $0x22] ss:$4 sm:$0xff] %v2630_v26  ;;  %v1928_v37 = vmax.f32 %v1920_v61, 0.0  ;;  %v1896_v26 = vpop.f32.mrf.mxu0 }
 0x29f   : > { %2894 = vst [vmem:[#allocation1 + $0x23] ss:$4 sm:$0xff] %v2631_v6  ;;  %v1712_v8 = vadd.f32 %v7258_v48, %v1704_v28 }
 0x2a0   : > { %v2447_v0 = vrot.slane %v1928_v37, 1  ;;  %v2448_v25 = vrot.slane %v1928_v37, 2  ;;  %v2504_v53 = vperm.slane %v1928_v37, 0  ;;  %v2452_v12 = vrot.slane %v1928_v37, 6 }
 0x2a1   : > { %v1720_v11 = vmax.f32 %v1712_v8, 0.0 }
 0x2a2   : > { %v2895_v7 = vld.sshfl [vmem:[#allocation1] sm:$0xff pattern:$0x73625140]  ;;  %v2505_v1 = vperm.slane %v2447_v0, 0  ;;  %v2506_v39 = vperm.slane %v2448_v25, 0  ;;  %v2510_v31 = vperm.slane %v2452_v12, 0 }
 0x2a3   : > { %2897 = vst [vmem:[#allocation1] ss:$4 sm:$0xff] %v7327_v33  ;;  %v1788_v33 = vpop.f32.mrf.mxu2  ;;  %v2632_v38 = vsel %vm2247_vm5, %v1720_v11, %v2504_v53  ;;  %v2329_v55 = vrot.slane %v1720_v11, 3  ;;  %v2330_v45 = vrot.slane %v1720_v11, 4  ;;  %v2331_v34 = vrot.slane %v1720_v11, 5 }
 0x2a4   : > { %2898 = vst [vmem:[#allocation1 + $0x1] ss:$4 sm:$0xff] %v7330_v15  ;;  %v2449_v15 = vrot.slane %v1928_v37, 3  ;;  %v2332_v42 = vrot.slane %v1720_v11, 6  ;;  %v2333_v61 = vrot.slane %v1720_v11, 7 }
 0x2a5   : > { %2899 = vst [vmem:[#allocation1 + $0x2] ss:$4 sm:$0xff] %v7333_v54  ;;  %v2450_v54 = vrot.slane %v1928_v37, 4 }
 0x2a6   : > { %v2896_v10 = vld.sshfl [vmem:[#allocation1 + $0x20] sm:$0xff pattern:$0x73625140]  ;;  %2900 = vst [vmem:[#allocation1 + $0x3] ss:$4 sm:$0xff] %v7336_v62  ;;  %v1753_v62 = vpop.f32.mrf.mxu1  ;;  %v2507_v59 = vperm.slane %v2449_v15, 0 }
 0x2a7   : > { %2901 = vst [vmem:[#allocation1 + $0x20] ss:$4 sm:$0xff] %v7341_v51  ;;  %v2451_v51 = vrot.slane %v1928_v37, 5  ;;  %v1789_v3 = vadd.f32 %v1788_v33, %v1753_v62  ;;  %v2508_v4 = vperm.slane %v2450_v54, 0  ;;  %v1713_v54 = vadd.f32 %v7258_v48, %v7538_v30 }
 0x2a8   : > { %2902 = vst [vmem:[#allocation1 + $0x21] ss:$4 sm:$0xff] %v7344_v63  ;;  %v2327_v63 = vrot.slane %v1720_v11, 1  ;;  %v2635_v49 = vsel %vm2247_vm5, %v2329_v55, %v2507_v59 }
 0x2a9   : > { %2903 = vst [vmem:[#allocation1 + $0x22] ss:$4 sm:$0xff] %v7347_v40  ;;  %v2328_v40 = vrot.slane %v1720_v11, 2  ;;  %v1843_v57 = vadd.f32 %v1826_v18, %v1789_v3  ;;  %v2509_v23 = vperm.slane %v2451_v51, 0  ;;  %v2636_v6 = vsel %vm2247_vm5, %v2330_v45, %v2508_v4  ;;  %v1828_v3 = vpop.f32.mrf.mxu3 }
 0x2aa   : > { %2904 = vst [vmem:[#allocation1 + $0x23] ss:$4 sm:$0xff] %v7350_v21  ;;  %v2453_v21 = vrot.slane %v1928_v37, 7  ;;  %v2633_v58 = vsel %vm2247_vm5, %v2327_v63, %v2505_v1  ;;  %v7613_v51 = vmax.f32 %v1713_v54, 0.0 }
 0x2ab   : > { %3072 = vst.msk [vmem:[#allocation4 + $0x31] sm:$0xff] %vm948_vm3, %v2895_v7  ;;  %v2634_v9 = vsel %vm2247_vm5, %v2328_v40, %v2506_v39  ;;  %v1913_v5 = vadd.f32 %v1896_v26, %v1843_v57  ;;  %v2637_v28 = vsel %vm2247_vm5, %v2331_v34, %v2509_v23  ;;  %v2638_v7 = vsel %vm2247_vm5, %v2332_v42, %v2510_v31 }
 0x2ac   : > { %3073 = vst.msk [vmem:[#allocation4 + $0x39] sm:$0xff] %vm948_vm3, %v2896_v10  ;;  %v2511_v29 = vperm.slane %v2453_v21, 0  ;;  %v2335_v63 = vrot.slane %v7613_v51, 2  ;;  %v2336_v4 = vrot.slane %v7613_v51, 3  ;;  %v2337_v31 = vrot.slane %v7613_v51, 4 }
 0x2ad   : > { %v2905_v44 = vld.sshfl [vmem:[#allocation1] sm:$0xff pattern:$0x73625140]  ;;  %v1921_v33 = vadd.f32 %v7258_v48, %v1913_v5  ;;  %v1790_v48 = vpop.f32.mrf.mxu2 }
 0x2ae   : > { %3074 = vst.msk [vmem:[#allocation4 + $0x49] sm:$0xff] %vm948_vm3, %v2905_v44  ;;  %v2639_v10 = vsel %vm2247_vm5, %v2333_v61, %v2511_v29 }
 0x2af   : > { %2907 = vst [vmem:[#allocation1] ss:$4 sm:$0xff] %v2632_v38  ;;  %v1929_v1 = vmax.f32 %v1921_v33, 0.0 }
 0x2b0   : > { %2908 = vst [vmem:[#allocation1 + $0x1] ss:$4 sm:$0xff] %v2633_v58 }
 0x2b1   : > { %v2906_v52 = vld.sshfl [vmem:[#allocation1 + $0x20] sm:$0xff pattern:$0x73625140]  ;;  %2909 = vst [vmem:[#allocation1 + $0x2] ss:$4 sm:$0xff] %v2634_v9  ;;  %v2454_v39 = vrot.slane %v1929_v1, 1 }
 0x2b2   : > { %3075 = vst.msk [vmem:[#allocation4 + $0x51] sm:$0xff] %vm948_vm3, %v2906_v52  ;;  %v3156_v37 = vld [vmem:[#allocation4 + $0x31] sm:$0xff]  ;;  %v2455_v18 = vrot.slane %v1929_v1, 2  ;;  %v2459_v21 = vrot.slane %v1929_v1, 6  ;;  %v2460_v58 = vrot.slane %v1929_v1, 7 }
 0x2b3   : > { %2910 = vst [vmem:[#allocation1 + $0x3] ss:$4 sm:$0xff] %v2635_v49  ;;  %v3157_v8 = vld [vmem:[#allocation4 + $0x39] sm:$0xff]  ;;  %v3717_v0 = vld [vmem:[#allocation4 + $0x30] sm:$0xff]  ;;  %v2513_v30 = vperm.slane %v2454_v39, 0 }
 0x2b4   : > { %2911 = vst [vmem:[#allocation1 + $0x20] ss:$4 sm:$0xff] %v2636_v6  ;;  %v3718_v25 = vld [vmem:[#allocation4 + $0x38] sm:$0xff]  ;;  %v7599_v15 = vpack.c.bf16 %v3157_v8, %v3156_v37  ;;  %v2514_v44 = vperm.slane %v2455_v18, 0  ;;  %v2518_v42 = vperm.slane %v2459_v21, 0  ;;  %v2338_v6 = vrot.slane %v7613_v51, 5 }
 0x2b5   : > { %2912 = vst [vmem:[#allocation1 + $0x21] ss:$4 sm:$0xff] %v2637_v28  ;;  %v7601_v53 = vpack.c.bf16 %v3718_v25, %v3717_v0  ;;  %v3719_v59 = vld [vmem:[#allocation4 + $0x48] sm:$0xff]  ;;  %v2519_v5 = vperm.slane %v2460_v58, 0  ;;  %v1898_v28 = vpop.f32.mrf.mxu0  ;;  %v2339_v37 = vrot.slane %v7613_v51, 6  ;;  %v2340_v0 = vrot.slane %v7613_v51, 7 }
 0x2b6   : > { %2913 = vst [vmem:[#allocation1 + $0x22] ss:$4 sm:$0xff] %v2638_v7  ;;  %6049 = vmatmul.msk.bf16.gmra.mxu1 %vm948_vm3, %v7599_v15  ;;  %v2642_v29 = vsel %vm2247_vm5, %v2335_v63, %v2514_v44  ;;  %v1558_v7 = vadd.f32 %v7534_v13, %v7506_v14  ;;  %v7650_v14 = vld [vmem:[#allocation7] ss:$0 sm:$0xff] }
 0x2b7   : > { %2914 = vst [vmem:[#allocation1 + $0x23] ss:$4 sm:$0xff] %v2639_v10  ;;  %6112 = vmatmul.msk.bf16.gmra.mxu0 %vm948_vm3, %v7601_v53  ;;  %v2647_v54 = vsel %vm2247_vm5, %v2340_v0, %v2519_v5 }
 0x2b8   : > { %v1636_v33 = vadd.f32 %v7540_v36, %v1558_v7 }
 0x2b9   : > { %v3159_v12 = vld [vmem:[#allocation4 + $0x51] sm:$0xff] }
 0x2ba   : > { %v2915_v11 = vld.sshfl [vmem:[#allocation1] sm:$0xff pattern:$0x73625140]  ;;  %v3720_v38 = vld [vmem:[#allocation4 + $0x50] sm:$0xff] }
 0x2bb   : > { %2917 = vst [vmem:[#allocation1] ss:$4 sm:$0xff] %v7374_v20  ;;  %v2456_v20 = vrot.slane %v1929_v1, 3  ;;  %v7632_v49 = vpack.c.bf16 %v3720_v38, %v3719_v59 }
 0x2bc   : > { %2918 = vst [vmem:[#allocation1 + $0x1] ss:$4 sm:$0xff] %v7379_v35  ;;  %v2512_v35 = vperm.slane %v1929_v1, 0 }
 0x2bd   : > { %2919 = vst [vmem:[#allocation1 + $0x2] ss:$4 sm:$0xff] %v7384_v60  ;;  %v2334_v60 = vrot.slane %v7613_v51, 1  ;;  %v2515_v57 = vperm.slane %v2456_v20, 0  ;;  %v1901_v5 = vpop.f32.mrf.mxu0 }
 0x2be   : > { %v2916_v62 = vld.sshfl [vmem:[#allocation1 + $0x20] sm:$0xff pattern:$0x73625140]  ;;  %2920 = vst [vmem:[#allocation1 + $0x3] ss:$4 sm:$0xff] %v7389_v43  ;;  %v2457_v43 = vrot.slane %v1929_v1, 4  ;;  %v2640_v55 = vsel %vm2247_vm5, %v7613_v51, %v2512_v35 }
 0x2bf   : > { %2921 = vst [vmem:[#allocation1 + $0x20] ss:$4 sm:$0xff] %v7392_v41  ;;  %v1755_v41 = vpop.f32.mrf.mxu1  ;;  %v2641_v23 = vsel %vm2247_vm5, %v2334_v60, %v2513_v30  ;;  %v2643_v61 = vsel %vm2247_vm5, %v2336_v4, %v2515_v57 }
 0x2c0   : > { %2922 = vst [vmem:[#allocation1 + $0x21] ss:$4 sm:$0xff] %v7397_v2  ;;  %v2458_v2 = vrot.slane %v1929_v1, 5  ;;  %v1791_v40 = vadd.f32 %v1790_v48, %v1755_v41  ;;  %v2516_v45 = vperm.slane %v2457_v43, 0 }
 0x2c1   : > { %2923 = vst [vmem:[#allocation1 + $0x22] ss:$4 sm:$0xff] %v7400_v17  ;;  %v3158_v17 = vld [vmem:[#allocation4 + $0x49] sm:$0xff] }
 0x2c2   : > { %2924 = vst [vmem:[#allocation1 + $0x23] ss:$4 sm:$0xff] %v7403_v47  ;;  %v1844_v9 = vadd.f32 %v1828_v3, %v1791_v40  ;;  %v7628_v52 = vpack.c.bf16 %v3159_v12, %v3158_v17  ;;  %v2517_v34 = vperm.slane %v2458_v2, 0  ;;  %v2644_v8 = vsel %vm2247_vm5, %v2337_v31, %v2516_v45  ;;  %v1831_v17 = vpop.f32.mrf.mxu3 }
 0x2c3   : > { %3076 = vst.msk [vmem:[#allocation4 + $0x61] sm:$0xff] %vm948_vm3, %v2915_v11  ;;  %v2646_v11 = vsel %vm2247_vm5, %v2339_v37, %v2518_v42 }
 0x2c4   : > { %3077 = vst.msk [vmem:[#allocation4 + $0x69] sm:$0xff] %vm948_vm3, %v2916_v62  ;;  %v1914_v10 = vadd.f32 %v1898_v28, %v1844_v9  ;;  %v2645_v25 = vsel %vm2247_vm5, %v2338_v6, %v2517_v34  ;;  %v1706_v62 = vadd.f32 %v7536_v50, %v1636_v33  ;;  %v6261_v33 = vld [vmem:[%s9211_s5 + $0x20] sm:$0xff] }
 0x2c5   : > { %v2925_v47 = vld.sshfl [vmem:[#allocation1] sm:$0xff pattern:$0x73625140]  ;;  %4053 = vmatpush.bf16.msrb.mxu1 %v6261_v33 }
 0x2c6   : > { %3078 = vst.msk [vmem:[#allocation4 + $0x79] sm:$0xff] %vm948_vm3, %v2925_v47  ;;  %6050 = vmatmul.msk.bf16.gmra.mxu1 %vm948_vm3, %v7628_v52  ;;  %v1922_v13 = vadd.f32 %v7650_v14, %v1914_v10  ;;  %v1714_v35 = vadd.f32 %v7650_v14, %v1706_v62 }
 0x2c7   : > { %2927 = vst [vmem:[#allocation1] ss:$4 sm:$0xff] %v2640_v55  ;;  %6113 = vmatmul.msk.bf16.gmra.mxu0 %vm948_vm3, %v7632_v49  ;;  %v1758_v44 = vpop.f32.mrf.mxu1 }
 0x2c8   : > { %2928 = vst [vmem:[#allocation1 + $0x1] ss:$4 sm:$0xff] %v2641_v23  ;;  %v1930_v36 = vmax.f32 %v1922_v13, 0.0  ;;  %v1722_v41 = vmax.f32 %v1714_v35, 0.0  ;;  %v9251_v13 = vld [vmem:[#allocation13_spill] sm:$0xff] }
 0x2c9   : > { %v2926_v26 = vld.sshfl [vmem:[#allocation1 + $0x20] sm:$0xff pattern:$0x73625140]  ;;  %2929 = vst [vmem:[#allocation1 + $0x2] ss:$4 sm:$0xff] %v2642_v29 }
 0x2ca   : > { %3079 = vst.msk [vmem:[#allocation4 + $0x81] sm:$0xff] %vm948_vm3, %v2926_v26  ;;  %v3160_v48 = vld [vmem:[#allocation4 + $0x61] sm:$0xff]  ;;  %v2520_v2 = vperm.slane %v1930_v36, 0  ;;  %v2465_v3 = vrot.slane %v1930_v36, 5  ;;  %v2341_v12 = vrot.slane %v1722_v41, 1  ;;  %v2342_v21 = vrot.slane %v1722_v41, 2 }
 0x2cb   : > { %2930 = vst [vmem:[#allocation1 + $0x3] ss:$4 sm:$0xff] %v2643_v61  ;;  %v3161_v20 = vld [vmem:[#allocation4 + $0x69] sm:$0xff]  ;;  %v3721_v60 = vld [vmem:[#allocation4 + $0x60] sm:$0xff]  ;;  %v2467_v59 = vrot.slane %v1930_v36, 7  ;;  %v2343_v45 = vrot.slane %v1722_v41, 3 }
 0x2cc   : > { %2931 = vst [vmem:[#allocation1 + $0x20] ss:$4 sm:$0xff] %v2644_v8  ;;  %v3722_v50 = vld [vmem:[#allocation4 + $0x68] sm:$0xff]  ;;  %v7664_v30 = vpack.c.bf16 %v3161_v20, %v3160_v48  ;;  %v2648_v4 = vsel %vm2247_vm5, %v1722_v41, %v2520_v2  ;;  %v2344_v23 = vrot.slane %v1722_v41, 4  ;;  %v2525_v9 = vperm.slane %v2465_v3, 0  ;;  %v9256_v2 = vld [vmem:[#allocation39_spill] sm:$0xff] }
 0x2cd   : > { %2932 = vst [vmem:[#allocation1 + $0x21] ss:$4 sm:$0xff] %v2645_v25  ;;  %v3162_v1 = vld [vmem:[#allocation4 + $0x79] sm:$0xff]  ;;  %v7667_v63 = vpack.c.bf16 %v3722_v50, %v3721_v60  ;;  %v2345_v26 = vrot.slane %v1722_v41, 5  ;;  %v2527_v42 = vperm.slane %v2467_v59, 0  ;;  %v2346_v28 = vrot.slane %v1722_v41, 6 }
 0x2ce   : > { %2933 = vst [vmem:[#allocation1 + $0x22] ss:$4 sm:$0xff] %v2646_v11  ;;  %v2347_v10 = vrot.slane %v1722_v41, 7  ;;  %v3941_v11 = vld [vmem:[#allocation4 + $0x19] sm:$0xff]  ;;  %v9253_v20 = vld [vmem:[#allocation17_spill] sm:$0xff]  ;;  %v9262_v59 = vld [vmem:[#allocation26_spill] sm:$0xff] }
 0x2cf   : > { %2934 = vst [vmem:[#allocation1 + $0x23] ss:$4 sm:$0xff] %v2647_v54  ;;  %v2653_v0 = vsel %vm2247_vm5, %v2345_v26, %v2525_v9  ;;  %v3942_v54 = vld [vmem:[#allocation4 + $0x21] sm:$0xff] }
 0x2d0   : > { %v2655_v48 = vsel %vm2247_vm5, %v2347_v10, %v2527_v42  ;;  %v3973_v50 = vpack.c.bf16 %v3942_v54, %v3941_v11 }
 0x2d1   : > { %v3163_v51 = vld [vmem:[#allocation4 + $0x81] sm:$0xff] }
 0x2d2   : > { %v2935_v39 = vld.sshfl [vmem:[#allocation1] sm:$0xff pattern:$0x73625140]  ;;  %v7654_v18 = vpack.c.bf16 %v3163_v51, %v3162_v1  ;;  %v9252_v1 = vld [vmem:[#allocation14_spill] sm:$0xff] }
 0x2d3   : > { %2937 = vst [vmem:[#allocation1] ss:$4 sm:$0xff] %v7434_v27  ;;  %v2461_v27 = vrot.slane %v1930_v36, 1  ;;  %v1355_v62 = vadd.f32 %v9252_v1, %v9251_v13 }
 0x2d4   : > { %2938 = vst [vmem:[#allocation1 + $0x1] ss:$4 sm:$0xff] %v7437_v46  ;;  %6052 = vmatmul.msk.bf16.vlgmr.msra.gmra.mxu2 %vm948_vm3, %v7654_v18  ;;  %v2462_v46 = vrot.slane %v1930_v36, 2 }
 0x2d5   : > { %2939 = vst [vmem:[#allocation1 + $0x2] ss:$4 sm:$0xff] %v7440_v24  ;;  %v1793_v24 = vpop.f32.mrf.mxu2  ;;  %v1405_v35 = vadd.f32 %v9253_v20, %v1355_v62 }
 0x2d6   : > { %v2936_v43 = vld.sshfl [vmem:[#allocation1 + $0x20] sm:$0xff pattern:$0x73625140]  ;;  %2940 = vst [vmem:[#allocation1 + $0x3] ss:$4 sm:$0xff] %v7443_v22  ;;  %6051 = vmatmul.msk.bf16.gmra.mxu1 %vm948_vm3, %v7664_v30  ;;  %v2463_v22 = vrot.slane %v1930_v36, 3  ;;  %v1794_v40 = vadd.f32 %v1793_v24, %v1758_v44 }
 0x2d7   : > { %2941 = vst [vmem:[#allocation1 + $0x20] ss:$4 sm:$0xff] %v7446_v32  ;;  %6114 = vmatmul.msk.bf16.gmra.mxu0 %vm948_vm3, %v7667_v63  ;;  %v2464_v32 = vrot.slane %v1930_v36, 4  ;;  %v9255_v24 = vld [vmem:[#allocation20_spill] sm:$0xff]  ;;  %v9258_v44 = vld [vmem:[#allocation22_spill] sm:$0xff] }
 0x2d8   : > { %2942 = vst [vmem:[#allocation1 + $0x21] ss:$4 sm:$0xff] %v7449_v56  ;;  %v2521_v56 = vperm.slane %v2461_v27, 0  ;;  %v2523_v38 = vperm.slane %v2463_v22, 0  ;;  %v1845_v55 = vadd.f32 %v1831_v17, %v1794_v40 }
 0x2d9   : > { %2943 = vst [vmem:[#allocation1 + $0x22] ss:$4 sm:$0xff] %v7452_v19  ;;  %v2522_v19 = vperm.slane %v2462_v46, 0  ;;  %v2524_v58 = vperm.slane %v2464_v32, 0  ;;  %v9254_v46 = vld [vmem:[#allocation15_spill] sm:$0xff]  ;;  %v1715_v32 = vadd.f32 %v7650_v14, %v9256_v2 }
 0x2da   : > { %2944 = vst [vmem:[#allocation1 + $0x23] ss:$4 sm:$0xff] %v7455_v16  ;;  %v2466_v16 = vrot.slane %v1930_v36, 6  ;;  %v2649_v57 = vsel %vm2247_vm5, %v2341_v12, %v2521_v56  ;;  %v2651_v6 = vsel %vm2247_vm5, %v2343_v45, %v2523_v38  ;;  %v1915_v37 = vadd.f32 %v1901_v5, %v1845_v55  ;;  %v3724_v36 = vld [vmem:[#allocation4 + $0x80] sm:$0xff] }
 0x2db   : > { %3080 = vst.msk [vmem:[#allocation4 + $0x91] sm:$0xff] %vm948_vm3, %v2935_v39  ;;  %v2650_v31 = vsel %vm2247_vm5, %v2342_v21, %v2522_v19  ;;  %v2652_v7 = vsel %vm2247_vm5, %v2344_v23, %v2524_v58  ;;  %v3723_v39 = vld [vmem:[#allocation4 + $0x78] sm:$0xff]  ;;  %v1475_v41 = vadd.f32 %v9254_v46, %v1405_v35  ;;  %v9257_v56 = vld [vmem:[#allocation21_spill] sm:$0xff]  ;;  %v7712_v40 = vmax.f32 %v1715_v32, 0.0  ;;  %v1903_v32 = vpop.f32.mrf.mxu0 }
 0x2dc   : > { %3081 = vst.msk [vmem:[#allocation4 + $0x99] sm:$0xff] %vm948_vm3, %v2936_v43  ;;  %v2526_v29 = vperm.slane %v2466_v16, 0  ;;  %v1923_v60 = vadd.f32 %v7650_v14, %v1915_v37  ;;  %v7698_v43 = vpack.c.bf16 %v3724_v36, %v3723_v39  ;;  %v9259_v19 = vld [vmem:[#allocation23_spill] sm:$0xff]  ;;  %v9260_v12 = vld [vmem:[#allocation24_spill] sm:$0xff]  ;;  %v9261_v16 = vld [vmem:[#allocation25_spill] sm:$0xff] }
 0x2dd   : > { %v2945_v47 = vld.sshfl [vmem:[#allocation1] sm:$0xff pattern:$0x73625140]  ;;  %v1483_v17 = vadd.f32 %v7650_v14, %v1475_v41  ;;  %v1795_v55 = vpop.f32.mrf.mxu2  ;;  %v2349_v10 = vrot.slane %v7712_v40, 2  ;;  %v2350_v54 = vrot.slane %v7712_v40, 3  ;;  %v2351_v36 = vrot.slane %v7712_v40, 4 }
 0x2de   : > { %3082 = vst.msk [vmem:[#allocation4 + $0xa9] sm:$0xff] %vm948_vm3, %v2945_v47  ;;  %v2654_v51 = vsel %vm2247_vm5, %v2346_v28, %v2526_v29  ;;  %v1931_v22 = vmax.f32 %v1923_v60, 0.0  ;;  %v9263_v58 = vld [vmem:[#allocation27_spill] sm:$0xff]  ;;  %v2348_v29 = vrot.slane %v7712_v40, 1 }
 0x2df   : > { %2947 = vst [vmem:[#allocation1] ss:$4 sm:$0xff] %v2648_v4  ;;  %v7717_v9 = vmax.f32 %v1483_v17, 0.0  ;;  %v6257_v39 = vld [vmem:[%s9211_s5] sm:$0xff] }
 0x2e0   : > { %2948 = vst [vmem:[#allocation1 + $0x1] ss:$4 sm:$0xff] %v2649_v57  ;;  %v2468_v47 = vrot.slane %v1931_v22, 1  ;;  %v2469_v21 = vrot.slane %v1931_v22, 2  ;;  %v1760_v57 = vpop.f32.mrf.mxu1  ;;  %v2470_v45 = vrot.slane %v1931_v22, 3  ;;  %v2528_v23 = vperm.slane %v1931_v22, 0  ;;  %3407 = vmatpush.bf16.msrb.mxu2 %v6257_v39 }
 0x2e1   : > { %v2946_v34 = vld.sshfl [vmem:[#allocation1 + $0x20] sm:$0xff pattern:$0x73625140]  ;;  %2949 = vst [vmem:[#allocation1 + $0x2] ss:$4 sm:$0xff] %v2650_v31  ;;  %v2471_v31 = vrot.slane %v1931_v22, 4  ;;  %v1796_v28 = vadd.f32 %v1795_v55, %v1760_v57 }
 0x2e2   : > { %3083 = vst.msk [vmem:[#allocation4 + $0xb1] sm:$0xff] %vm948_vm3, %v2946_v34  ;;  %v3164_v61 = vld [vmem:[#allocation4 + $0x91] sm:$0xff]  ;;  %v2529_v34 = vperm.slane %v2468_v47, 0  ;;  %v2472_v26 = vrot.slane %v1931_v22, 5  ;;  %v2530_v42 = vperm.slane %v2469_v21, 0  ;;  %v2531_v33 = vperm.slane %v2470_v45, 0 }
 0x2e3   : > { %2950 = vst [vmem:[#allocation1 + $0x3] ss:$4 sm:$0xff] %v2651_v6  ;;  %v3165_v8 = vld [vmem:[#allocation4 + $0x99] sm:$0xff]  ;;  %v1833_v6 = vpop.f32.mrf.mxu3  ;;  %v3725_v37 = vld [vmem:[#allocation4 + $0x90] sm:$0xff]  ;;  %v2656_v11 = vsel %vm2247_vm5, %v7712_v40, %v2528_v23  ;;  %v2532_v13 = vperm.slane %v2471_v31, 0  ;;  %v2098_v41 = vrot.slane %v7717_v9, 1 }
 0x2e4   : > { %2951 = vst [vmem:[#allocation1 + $0x20] ss:$4 sm:$0xff] %v2652_v7  ;;  %v7685_v25 = vpack.c.bf16 %v3165_v8, %v3164_v61  ;;  %v2473_v7 = vrot.slane %v1931_v22, 6  ;;  %v3726_v8 = vld [vmem:[#allocation4 + $0x98] sm:$0xff]  ;;  %v2657_v1 = vsel %vm2247_vm5, %v2348_v29, %v2529_v34  ;;  %v1846_v62 = vadd.f32 %v1833_v6, %v1796_v28 }
 0x2e5   : > { %2952 = vst [vmem:[#allocation1 + $0x21] ss:$4 sm:$0xff] %v2653_v0  ;;  %v3166_v38 = vld [vmem:[#allocation4 + $0xa9] sm:$0xff]  ;;  %v2474_v0 = vrot.slane %v1931_v22, 7  ;;  %v2658_v20 = vsel %vm2247_vm5, %v2349_v10, %v2530_v42  ;;  %v7740_v35 = vpack.c.bf16 %v3726_v8, %v3725_v37  ;;  %v9264_v60 = vld [vmem:[#allocation11_spill] sm:$0xff]  ;;  %v2659_v2 = vsel %vm2247_vm5, %v2350_v54, %v2531_v33 }
 0x2e6   : > { %2953 = vst [vmem:[#allocation1 + $0x22] ss:$4 sm:$0xff] %v2654_v51  ;;  %6053 = vmatmul.msk.bf16.gmra.mxu2 %vm948_vm3, %v7685_v25  ;;  %6133 = vmatmul.msk.bf16.vlgmr.msrb.gmra.mxu1 %vm948_vm3, %v3973_v50  ;;  %v6259_v51 = vld [vmem:[%s9211_s5 + $0x10] sm:$0xff]  ;;  %v1251_v50 = vadd.f32 %v7650_v14, %v9264_v60  ;;  %v2534_v46 = vperm.slane %v2473_v7, 0  ;;  %v2660_v17 = vsel %vm2247_vm5, %v2351_v36, %v2532_v13  ;;  %v2099_v47 = vrot.slane %v7717_v9, 2  ;;  %v9268_v7 = vld [vmem:[#allocation40_spill] sm:$0xff] }
 0x2e7   : > { %2954 = vst [vmem:[#allocation1 + $0x23] ss:$4 sm:$0xff] %v2655_v48  ;;  %6115 = vmatmul.msk.bf16.gmra.mxu0 %vm948_vm3, %v7698_v43  ;;  %v2533_v48 = vperm.slane %v2472_v26, 0  ;;  %3601 = vmatpush.bf16.msrb.mxu3 %v6259_v51  ;;  %v2535_v22 = vperm.slane %v2474_v0, 0  ;;  %v2101_v45 = vrot.slane %v7717_v9, 4  ;;  %v2159_v23 = vperm.slane %v7717_v9, 0 }
 0x2e8   : > { %v2160_v34 = vperm.slane %v2098_v41, 0  ;;  %v2103_v26 = vrot.slane %v7717_v9, 6  ;;  %v2161_v42 = vperm.slane %v2099_v47, 0 }
 0x2e9   : > { %v3167_v4 = vld [vmem:[#allocation4 + $0xb1] sm:$0xff]  ;;  %v2163_v33 = vperm.slane %v2101_v45, 0 }
 0x2ea   : > { %v2955_v27 = vld.sshfl [vmem:[#allocation1] sm:$0xff pattern:$0x73625140]  ;;  %v7722_v5 = vpack.c.bf16 %v3167_v4, %v3166_v38  ;;  %v1259_v38 = vmax.f32 %v1251_v50, 0.0  ;;  %v2100_v4 = vrot.slane %v7717_v9, 3  ;;  %v2165_v36 = vperm.slane %v2103_v26, 0 }
 0x2eb   : > { %2957 = vst [vmem:[#allocation1] ss:$4 sm:$0xff] %v9255_v24  ;;  %v2352_v24 = vrot.slane %v7712_v40, 5  ;;  %v3728_v41 = vld [vmem:[#allocation4 + $0xb0] sm:$0xff] }
 0x2ec   : > { %2958 = vst [vmem:[#allocation1 + $0x1] ss:$4 sm:$0xff] %v9257_v56  ;;  %v9265_v56 = vld [vmem:[#allocation37_spill] sm:$0xff]  ;;  %v1978_v6 = vrot.slane %v1259_v38, 1  ;;  %v2162_v28 = vperm.slane %v2100_v4, 0  ;;  %v1979_v0 = vrot.slane %v1259_v38, 2 }
 0x2ed   : > { %2959 = vst [vmem:[#allocation1 + $0x2] ss:$4 sm:$0xff] %v9258_v44  ;;  %v9266_v44 = vld [vmem:[#allocation38_spill] sm:$0xff]  ;;  %v2661_v21 = vsel %vm2247_vm5, %v2352_v24, %v2533_v48  ;;  %v1980_v13 = vrot.slane %v1259_v38, 3  ;;  %v1981_v39 = vrot.slane %v1259_v38, 4  ;;  %v1983_v24 = vrot.slane %v1259_v38, 6 }
 0x2ee   : > { %v2956_v3 = vld.sshfl [vmem:[#allocation1 + $0x20] sm:$0xff pattern:$0x73625140]  ;;  %2960 = vst [vmem:[#allocation1 + $0x3] ss:$4 sm:$0xff] %v9259_v19  ;;  %v2353_v19 = vrot.slane %v7712_v40, 6 }
 0x2ef   : > { %2961 = vst [vmem:[#allocation1 + $0x20] ss:$4 sm:$0xff] %v9260_v12  ;;  %v1916_v12 = vadd.f32 %v1903_v32, %v1846_v62  ;;  %v2289_v62 = vsel %vm2247_vm5, %v1978_v6, %v2160_v34  ;;  %v2291_v50 = vsel %vm2247_vm5, %v1980_v13, %v2162_v28  ;;  %v1836_v6 = vpop.f32.mrf.mxu3 }
 0x2f0   : > { %2962 = vst [vmem:[#allocation1 + $0x21] ss:$4 sm:$0xff] %v9261_v16  ;;  %v2354_v16 = vrot.slane %v7712_v40, 7  ;;  %v2662_v55 = vsel %vm2247_vm5, %v2353_v19, %v2534_v46  ;;  %v2102_v40 = vrot.slane %v7717_v9, 5  ;;  %v3727_v46 = vld [vmem:[#allocation4 + $0xa8] sm:$0xff]  ;;  %v2294_v19 = vsel %vm2247_vm5, %v1983_v24, %v2165_v36 }
 0x2f1   : > { %2963 = vst [vmem:[#allocation1 + $0x22] ss:$4 sm:$0xff] %v9262_v59  ;;  %v7759_v59 = vpop.f32.mrf.mxu1  ;;  %v1924_v29 = vadd.f32 %v7650_v14, %v1916_v12  ;;  %v7790_v12 = vpack.c.bf16 %v3728_v41, %v3727_v46 }
 0x2f2   : > { %2964 = vst [vmem:[#allocation1 + $0x23] ss:$4 sm:$0xff] %v9263_v58  ;;  %v9267_v58 = vld [vmem:[#allocation41_spill] sm:$0xff]  ;;  %v2663_v31 = vsel %vm2247_vm5, %v2354_v16, %v2535_v22  ;;  %v2292_v22 = vsel %vm2247_vm5, %v1981_v39, %v2163_v33 }
 0x2f3   : > { %3084 = vst.msk [vmem:[#allocation4 + $0xc1] sm:$0xff] %vm948_vm3, %v2955_v27  ;;  %v7774_v51 = vmax.f32 %v1924_v29, 0.0 }
 0x2f4   : > { %3085 = vst.msk [vmem:[#allocation4 + $0xc9] sm:$0xff] %vm948_vm3, %v2956_v3  ;;  %v1563_v3 = vadd.f32 %v9266_v44, %v9265_v56  ;;  %v1984_v56 = vrot.slane %v1259_v38, 7 }
 0x2f5   : > { %v2965_v61 = vld.sshfl [vmem:[#allocation1] sm:$0xff pattern:$0x73625140]  ;;  %v2478_v4 = vrot.slane %v7774_v51, 4  ;;  %v2480_v45 = vrot.slane %v7774_v51, 6  ;;  %v2481_v29 = vrot.slane %v7774_v51, 7 }
 0x2f6   : > { %3086 = vst.msk [vmem:[#allocation4 + $0xd9] sm:$0xff] %vm948_vm3, %v2965_v61  ;;  %6054 = vmatmul.msk.bf16.gmra.mxu2 %vm948_vm3, %v7722_v5  ;;  %6134 = vmatmul.msk.bf16.gmra.mxu1 %vm948_vm3, %v7599_v15  ;;  %v1638_v57 = vadd.f32 %v9267_v58, %v1563_v3  ;;  %v2104_v61 = vrot.slane %v7717_v9, 7  ;;  %v2290_v9 = vsel %vm2247_vm5, %v1979_v0, %v2161_v42  ;;  %v2475_v3 = vrot.slane %v7774_v51, 1 }
 0x2f7   : > { %2967 = vst [vmem:[#allocation1] ss:$4 sm:$0xff] %v2656_v11  ;;  %6116 = vmatmul.msk.bf16.gmra.mxu0 %vm948_vm3, %v7740_v35  ;;  %v2288_v11 = vsel %vm2247_vm5, %v1259_v38, %v2159_v23  ;;  %v2542_v0 = vperm.slane %v2480_v45, 0 }
 0x2f8   : > { %2968 = vst [vmem:[#allocation1 + $0x1] ss:$4 sm:$0xff] %v2657_v1  ;;  %v1708_v37 = vadd.f32 %v9268_v7, %v1638_v57  ;;  %v2164_v1 = vperm.slane %v2102_v40, 0  ;;  %v2166_v60 = vperm.slane %v2104_v61, 0  ;;  %v2537_v58 = vperm.slane %v2475_v3, 0  ;;  %v1798_v57 = vpop.f32.mrf.mxu2 }
 0x2f9   : > { %v2966_v27 = vld.sshfl [vmem:[#allocation1 + $0x20] sm:$0xff pattern:$0x73625140]  ;;  %2969 = vst [vmem:[#allocation1 + $0x2] ss:$4 sm:$0xff] %v2658_v20  ;;  %v1982_v20 = vrot.slane %v1259_v38, 5  ;;  %v7782_v32 = vpop.f32.mrf.mxu1  ;;  %v1799_v28 = vadd.f32 %v1798_v57, %v7759_v59 }
 0x2fa   : > { %3087 = vst.msk [vmem:[#allocation4 + $0xe1] sm:$0xff] %vm948_vm3, %v2966_v27  ;;  %v3168_v8 = vld [vmem:[#allocation4 + $0xc1] sm:$0xff]  ;;  %v1716_v27 = vadd.f32 %v7650_v14, %v1708_v37  ;;  %v2295_v47 = vsel %vm2247_vm5, %v1984_v56, %v2166_v60  ;;  %v2536_v38 = vperm.slane %v7774_v51, 0  ;;  %v2540_v7 = vperm.slane %v2478_v4, 0 }
 0x2fb   : > { %2970 = vst [vmem:[#allocation1 + $0x3] ss:$4 sm:$0xff] %v2659_v2  ;;  %v3169_v10 = vld [vmem:[#allocation4 + $0xc9] sm:$0xff]  ;;  %v2293_v44 = vsel %vm2247_vm5, %v1982_v20, %v2164_v1  ;;  %v1906_v1 = vpop.f32.mrf.mxu0  ;;  %v2543_v59 = vperm.slane %v2481_v29, 0  ;;  %v3729_v56 = vld [vmem:[#allocation4 + $0xc0] sm:$0xff] }
 0x2fc   : > { %2971 = vst [vmem:[#allocation1 + $0x20] ss:$4 sm:$0xff] %v2660_v17  ;;  %v7777_v48 = vpack.c.bf16 %v3169_v10, %v3168_v8  ;;  %v2476_v17 = vrot.slane %v7774_v51, 2  ;;  %v1724_v16 = vmax.f32 %v1716_v27, 0.0  ;;  %v9271_v57 = vld [vmem:[#allocation29_spill] sm:$0xff]  ;;  %v9275_v29 = vld [vmem:[#allocation44_spill] sm:$0xff] }
 0x2fd   : > { %2972 = vst [vmem:[#allocation1 + $0x21] ss:$4 sm:$0xff] %v2661_v21  ;;  %v2477_v21 = vrot.slane %v7774_v51, 3 }
 0x2fe   : > { %2973 = vst [vmem:[#allocation1 + $0x22] ss:$4 sm:$0xff] %v2662_v55  ;;  %v2479_v55 = vrot.slane %v7774_v51, 5  ;;  %v2538_v23 = vperm.slane %v2476_v17, 0  ;;  %v2356_v34 = vrot.slane %v1724_v16, 2  ;;  %v2664_v42 = vsel %vm2247_vm5, %v1724_v16, %v2536_v38  ;;  %v9270_v38 = vld [vmem:[#allocation18_spill] sm:$0xff] }
 0x2ff   : > { %2974 = vst [vmem:[#allocation1 + $0x23] ss:$4 sm:$0xff] %v2663_v31  ;;  %v2355_v31 = vrot.slane %v1724_v16, 1  ;;  %v2539_v26 = vperm.slane %v2477_v21, 0  ;;  %v2357_v61 = vrot.slane %v1724_v16, 3  ;;  %v2358_v8 = vrot.slane %v1724_v16, 4 }
 0x300   : > { %v2541_v10 = vperm.slane %v2479_v55, 0  ;;  %v2666_v33 = vsel %vm2247_vm5, %v2356_v34, %v2538_v23  ;;  %v2359_v39 = vrot.slane %v1724_v16, 5  ;;  %v2360_v20 = vrot.slane %v1724_v16, 6  ;;  %v9269_v21 = vld [vmem:[#allocation16_spill] sm:$0xff]  ;;  %v9274_v34 = vld [vmem:[#allocation31_spill] sm:$0xff] }
 0x301   : > { %v2665_v37 = vsel %vm2247_vm5, %v2355_v31, %v2537_v58  ;;  %v3171_v51 = vld [vmem:[#allocation4 + $0xe1] sm:$0xff]  ;;  %v2667_v36 = vsel %vm2247_vm5, %v2357_v61, %v2539_v26  ;;  %v2668_v60 = vsel %vm2247_vm5, %v2358_v8, %v2540_v7  ;;  %v2361_v27 = vrot.slane %v1724_v16, 7  ;;  %v9273_v31 = vld [vmem:[#allocation30_spill] sm:$0xff] }
 0x302   : > { %v2975_v54 = vld.sshfl [vmem:[#allocation1] sm:$0xff pattern:$0x73625140]  ;;  %v2669_v46 = vsel %vm2247_vm5, %v2359_v39, %v2541_v10  ;;  %v1360_v4 = vadd.f32 %v9270_v38, %v9269_v21  ;;  %v1717_v26 = vadd.f32 %v7650_v14, %v9275_v29 }
 0x303   : > { %2977 = vst [vmem:[#allocation1] ss:$4 sm:$0xff] %v2288_v11  ;;  %v7810_v11 = vpop.f32.mrf.mxu1  ;;  %v2671_v3 = vsel %vm2247_vm5, %v2361_v27, %v2543_v59  ;;  %v7837_v58 = vpop.f32.mrf.mxu0  ;;  %v9272_v55 = vld [vmem:[#allocation28_spill] sm:$0xff] }
 0x304   : > { %2978 = vst [vmem:[#allocation1 + $0x1] ss:$4 sm:$0xff] %v2289_v62  ;;  %v1847_v62 = vadd.f32 %v1836_v6, %v1799_v28  ;;  %v1407_v45 = vadd.f32 %v9272_v55, %v1360_v4  ;;  %v3103_v6 = vld [vmem:[#allocation4 + $0x8] sm:$0xff]  ;;  %v9276_v61 = vld [vmem:[#allocation32_spill] sm:$0xff]  ;;  %v9277_v28 = vld [vmem:[#allocation19_spill] sm:$0xff] }
 0x305   : > { %2979 = vst [vmem:[#allocation1 + $0x2] ss:$4 sm:$0xff] %v2290_v9 }
 0x306   : > { %v2976_v2 = vld.sshfl [vmem:[#allocation1 + $0x20] sm:$0xff pattern:$0x73625140]  ;;  %2980 = vst [vmem:[#allocation1 + $0x3] ss:$4 sm:$0xff] %v2291_v50  ;;  %6055 = vmatmul.msk.bf16.gmra.mxu2 %vm948_vm3, %v7777_v48  ;;  %6135 = vmatmul.msk.bf16.gmra.mxu1 %vm948_vm3, %v7628_v52  ;;  %v1477_v7 = vadd.f32 %v9277_v28, %v1407_v45 }
 0x307   : > { %2981 = vst [vmem:[#allocation1 + $0x20] ss:$4 sm:$0xff] %v2292_v22  ;;  %6117 = vmatmul.msk.bf16.gmra.mxu0 %vm948_vm3, %v7790_v12  ;;  %v2670_v22 = vsel %vm2247_vm5, %v2360_v20, %v2542_v0  ;;  %v9278_v0 = vld [vmem:[#allocation33_spill] sm:$0xff] }
 0x308   : > { %2982 = vst [vmem:[#allocation1 + $0x21] ss:$4 sm:$0xff] %v2293_v44  ;;  %v3730_v44 = vld [vmem:[#allocation4 + $0xc8] sm:$0xff]  ;;  %v1485_v20 = vadd.f32 %v7650_v14, %v1477_v7 }
 0x309   : > { %2983 = vst [vmem:[#allocation1 + $0x22] ss:$4 sm:$0xff] %v2294_v19  ;;  %v7826_v19 = vpack.c.bf16 %v3730_v44, %v3729_v56 }
 0x30a   : > { %2984 = vst [vmem:[#allocation1 + $0x23] ss:$4 sm:$0xff] %v2295_v47 }
 0x30b   : > { %3088 = vst.msk [vmem:[#allocation4 + $0xf1] sm:$0xff] %vm948_vm3, %v2975_v54  ;;  %v3170_v54 = vld [vmem:[#allocation4 + $0xd9] sm:$0xff]  ;;  %v7831_v47 = vpop.f32.mrf.mxu1  ;;  %v7867_v27 = vpop.f32.mrf.mxu0 }
 0x30c   : > { %3089 = vst.msk [vmem:[#allocation4 + $0xf9] sm:$0xff] %vm948_vm3, %v2976_v2  ;;  %v7818_v24 = vpack.c.bf16 %v3171_v51, %v3170_v54  ;;  %v1917_v2 = vadd.f32 %v1906_v1, %v1847_v62  ;;  %v9279_v54 = vld [vmem:[#allocation34_spill] sm:$0xff]  ;;  %v7855_v1 = vmax.f32 %v1717_v26, 0.0  ;;  %v9280_v62 = vld [vmem:[#allocation35_spill] sm:$0xff] }
 0x30d   : > { %v2985_v40 = vld.sshfl [vmem:[#allocation1] sm:$0xff pattern:$0x73625140]  ;;  %9282 = vst [vmem:[#allocation13_spill] sm:$0xff] %v7867_v27 }
 0x30e   : > { %3090 = vst.msk [vmem:[#allocation4 + $0x109] sm:$0xff] %vm948_vm3, %v2985_v40  ;;  %v1925_v17 = vadd.f32 %v7650_v14, %v1917_v2  ;;  %v1800_v2 = vpop.f32.mrf.mxu2  ;;  %v2363_v21 = vrot.slane %v7855_v1, 2 }
 0x30f   : > { %2987 = vst [vmem:[#allocation1] ss:$4 sm:$0xff] %v2664_v42  ;;  %v3102_v42 = vld [vmem:[#allocation4] sm:$0xff]  ;;  %v1801_v29 = vadd.f32 %v1800_v2, %v7782_v32 }
 0x310   : > { %2988 = vst [vmem:[#allocation1 + $0x1] ss:$4 sm:$0xff] %v2665_v37  ;;  %v7842_v23 = vmax.f32 %v1925_v17, 0.0 }
 0x311   : > { %v2986_v13 = vld.sshfl [vmem:[#allocation1 + $0x20] sm:$0xff pattern:$0x73625140]  ;;  %2989 = vst [vmem:[#allocation1 + $0x2] ss:$4 sm:$0xff] %v2666_v33 }
 0x312   : > { %3091 = vst.msk [vmem:[#allocation4 + $0x111] sm:$0xff] %vm948_vm3, %v2986_v13  ;;  %v3172_v9 = vld [vmem:[#allocation4 + $0xf1] sm:$0xff]  ;;  %v2482_v37 = vrot.slane %v7842_v23, 1  ;;  %v2483_v33 = vrot.slane %v7842_v23, 2  ;;  %v3134_v13 = vpack.c.bf16 %v3103_v6, %v3102_v42  ;;  %v2484_v51 = vrot.slane %v7842_v23, 3 }
 0x313   : > { %2990 = vst [vmem:[#allocation1 + $0x3] ss:$4 sm:$0xff] %v2667_v36  ;;  %v3173_v50 = vld [vmem:[#allocation4 + $0xf9] sm:$0xff]  ;;  %v2544_v39 = vperm.slane %v7842_v23, 0  ;;  %v7860_v59 = vpop.f32.mrf.mxu1  ;;  %v2486_v56 = vrot.slane %v7842_v23, 5  ;;  %v2487_v38 = vrot.slane %v7842_v23, 6 }
 0x314   : > { %2991 = vst [vmem:[#allocation1 + $0x20] ss:$4 sm:$0xff] %v2668_v60  ;;  %v7816_v41 = vpack.c.bf16 %v3173_v50, %v3172_v9  ;;  %v9281_v9 = vld [vmem:[#allocation36_spill] sm:$0xff]  ;;  %v2485_v60 = vrot.slane %v7842_v23, 4  ;;  %v2545_v50 = vperm.slane %v2482_v37, 0  ;;  %v2546_v44 = vperm.slane %v2483_v33, 0 }
 0x315   : > { %2992 = vst [vmem:[#allocation1 + $0x21] ss:$4 sm:$0xff] %v2669_v46  ;;  %v3174_v8 = vld [vmem:[#allocation4 + $0x109] sm:$0xff]  ;;  %v3731_v46 = vld [vmem:[#allocation4 + $0xd8] sm:$0xff]  ;;  %v2547_v55 = vperm.slane %v2484_v51, 0  ;;  %v2672_v45 = vsel %vm2247_vm5, %v7855_v1, %v2544_v39  ;;  %v2365_v6 = vrot.slane %v7855_v1, 4 }
 0x316   : > { %2993 = vst [vmem:[#allocation1 + $0x22] ss:$4 sm:$0xff] %v2670_v22  ;;  %6057 = vmatmul.msk.bf16.vlgmr.msra.gmra.mxu3 %vm948_vm3, %v7816_v41  ;;  %6056 = vmatmul.msk.bf16.gmra.mxu2 %vm948_vm3, %v7818_v24  ;;  %v3732_v22 = vld [vmem:[#allocation4 + $0xe0] sm:$0xff]  ;;  %v2548_v26 = vperm.slane %v2485_v60, 0  ;;  %v2674_v28 = vsel %vm2247_vm5, %v2363_v21, %v2546_v44  ;;  %v2550_v7 = vperm.slane %v2487_v38, 0  ;;  %v2367_v33 = vrot.slane %v7855_v1, 6 }
 0x317   : > { %2994 = vst [vmem:[#allocation1 + $0x23] ss:$4 sm:$0xff] %v2671_v3  ;;  %6136 = vmatmul.msk.bf16.gmra.mxu1 %vm948_vm3, %v7664_v30  ;;  %6118 = vmatmul.msk.bf16.gmra.mxu0 %vm948_vm3, %v7826_v19  ;;  %v9283_v3 = vld [vmem:[#allocation12_spill] sm:$0xff]  ;;  %v2368_v51 = vrot.slane %v7855_v1, 7  ;;  %v9284_v60 = vld [vmem:[#allocation43_spill] sm:$0xff]  ;;  %v9287_v21 = vld [vmem:[#allocation45_spill] sm:$0xff] }
 0x318   : > { %v1253_v17 = vadd.f32 %v7650_v14, %v9283_v3  ;;  %v3105_v3 = vld [vmem:[#allocation4 + $0x20] sm:$0xff] }
 0x319   : > { %v3175_v10 = vld [vmem:[#allocation4 + $0x111] sm:$0xff] }
 0x31a   : > { %v2995_v16 = vld.sshfl [vmem:[#allocation1] sm:$0xff pattern:$0x73625140]  ;;  %v7862_v36 = vpack.c.bf16 %v3175_v10, %v3174_v8  ;;  %v2366_v8 = vrot.slane %v7855_v1, 5 }
 0x31b   : > { %3092 = vst.msk [vmem:[#allocation4 + $0x121] sm:$0xff] %vm948_vm3, %v2995_v16  ;;  %v2362_v16 = vrot.slane %v7855_v1, 1 }
 0x31c   : > { %2997 = vst [vmem:[#allocation1] ss:$4 sm:$0xff] %v9271_v57  ;;  %v2488_v57 = vrot.slane %v7842_v23, 7  ;;  %v2364_v23 = vrot.slane %v7855_v1, 3  ;;  %v3104_v1 = vld [vmem:[#allocation4 + $0x18] sm:$0xff] }
 0x31d   : > { %2998 = vst [vmem:[#allocation1 + $0x1] ss:$4 sm:$0xff] %v9273_v31  ;;  %v1838_v31 = vpop.f32.mrf.mxu3  ;;  %v2673_v42 = vsel %vm2247_vm5, %v2362_v16, %v2545_v50  ;;  %v9285_v50 = vld [vmem:[#allocation42_spill] sm:$0xff] }
 0x31e   : > { %v2996_v40 = vld.sshfl [vmem:[#allocation1 + $0x20] sm:$0xff pattern:$0x73625140]  ;;  %2999 = vst [vmem:[#allocation1 + $0x2] ss:$4 sm:$0xff] %v9274_v34  ;;  %v7884_v34 = vmax.f32 %v1485_v20, 0.0  ;;  %v1848_v32 = vadd.f32 %v1838_v31, %v1801_v29 }
 0x31f   : > { %3093 = vst.msk [vmem:[#allocation4 + $0x129] sm:$0xff] %vm948_vm3, %v2996_v40  ;;  %v7882_v40 = vpack.c.bf16 %v3732_v22, %v3731_v46  ;;  %v2551_v10 = vperm.slane %v2488_v57, 0  ;;  %v1568_v46 = vadd.f32 %v9285_v50, %v9284_v60  ;;  %v2678_v22 = vsel %vm2247_vm5, %v2367_v33, %v2550_v7  ;;  %v3734_v33 = vld [vmem:[#allocation4 + $0xf8] sm:$0xff] }
 0x320   : > { %3000 = vst [vmem:[#allocation1 + $0x3] ss:$4 sm:$0xff] %v9276_v61  ;;  %v2549_v61 = vperm.slane %v2486_v56, 0  ;;  %v2113_v20 = vrot.slane %v7884_v34, 2  ;;  %v1918_v2 = vadd.f32 %v7837_v58, %v1848_v32  ;;  %v7912_v56 = vpop.f32.mrf.mxu0  ;;  %v2175_v16 = vperm.slane %v7884_v34, 0 }
 0x321   : > { %3001 = vst [vmem:[#allocation1 + $0x20] ss:$4 sm:$0xff] %v9278_v0  ;;  %v2675_v0 = vsel %vm2247_vm5, %v2364_v23, %v2547_v55  ;;  %v2679_v44 = vsel %vm2247_vm5, %v2368_v51, %v2551_v10  ;;  %v1640_v38 = vadd.f32 %v9287_v21, %v1568_v46  ;;  %v2115_v55 = vrot.slane %v7884_v34, 4 }
 0x322   : > { %3002 = vst [vmem:[#allocation1 + $0x21] ss:$4 sm:$0xff] %v9279_v54  ;;  %v2676_v54 = vsel %vm2247_vm5, %v2365_v6, %v2548_v26  ;;  %v2677_v39 = vsel %vm2247_vm5, %v2366_v8, %v2549_v61  ;;  %v2116_v31 = vrot.slane %v7884_v34, 5  ;;  %v2177_v29 = vperm.slane %v2113_v20, 0  ;;  %v9288_v8 = vld [vmem:[#allocation46_spill] sm:$0xff] }
 0x323   : > { %3003 = vst [vmem:[#allocation1 + $0x22] ss:$4 sm:$0xff] %v9280_v62  ;;  %v2112_v62 = vrot.slane %v7884_v34, 1  ;;  %v1926_v26 = vadd.f32 %v7650_v14, %v1918_v2  ;;  %v2117_v23 = vrot.slane %v7884_v34, 6  ;;  %v3135_v61 = vpack.c.bf16 %v3105_v3, %v3104_v1 }
 0x324   : > { %3004 = vst [vmem:[#allocation1 + $0x23] ss:$4 sm:$0xff] %v9281_v9  ;;  %v7905_v9 = vpop.f32.mrf.mxu1  ;;  %v2118_v7 = vrot.slane %v7884_v34, 7  ;;  %v1710_v10 = vadd.f32 %v9288_v8, %v1640_v38  ;;  %v2180_v20 = vperm.slane %v2116_v31, 0 }
 0x325   : > { %9286 = vst [vmem:[#allocation14_spill] sm:$0xff] %v7912_v56  ;;  %v2176_v58 = vperm.slane %v2112_v62, 0  ;;  %v2179_v62 = vperm.slane %v2115_v55, 0  ;;  %v1934_v50 = vmax.f32 %v1926_v26, 0.0 }
 0x326   : > { %6058 = vmatmul.msk.bf16.gmra.mxu3 %vm948_vm3, %v7862_v36  ;;  %6067 = vmatmul.msk.bf16.vlgmr.msrb.gmra.mxu2 %vm948_vm3, %v3134_v13  ;;  %v7900_v13 = vmax.f32 %v1253_v17, 0.0  ;;  %v2114_v17 = vrot.slane %v7884_v34, 3  ;;  %v3177_v57 = vld [vmem:[#allocation4 + $0x129] sm:$0xff]  ;;  %v2182_v3 = vperm.slane %v2118_v7, 0 }
 0x327   : > { %v3005_v4 = vld.sshfl [vmem:[#allocation1] sm:$0xff pattern:$0x73625140]  ;;  %6137 = vmatmul.msk.bf16.gmra.mxu1 %vm948_vm3, %v7654_v18  ;;  %6119 = vmatmul.msk.bf16.gmra.mxu0 %vm948_vm3, %v7882_v40  ;;  %v2489_v55 = vrot.slane %v1934_v50, 1  ;;  %v2552_v26 = vperm.slane %v1934_v50, 0  ;;  %v2494_v7 = vrot.slane %v1934_v50, 6 }
 0x328   : > { %3094 = vst.msk [vmem:[#allocation4 + $0x139] sm:$0xff] %vm948_vm3, %v3005_v4  ;;  %v3176_v4 = vld [vmem:[#allocation4 + $0x121] sm:$0xff]  ;;  %v2178_v32 = vperm.slane %v2114_v17, 0  ;;  %v1996_v1 = vrot.slane %v7900_v13, 5  ;;  %v1997_v21 = vrot.slane %v7900_v13, 6 }
 0x329   : > { %3007 = vst [vmem:[#allocation1] ss:$4 sm:$0xff] %v2672_v45  ;;  %v1992_v45 = vrot.slane %v7900_v13, 1  ;;  %v7924_v6 = vpack.c.bf16 %v3177_v57, %v3176_v4  ;;  %v1998_v4 = vrot.slane %v7900_v13, 7 }
 0x32a   : > { %3008 = vst [vmem:[#allocation1 + $0x1] ss:$4 sm:$0xff] %v2673_v42  ;;  %v1993_v42 = vrot.slane %v7900_v13, 2  ;;  %v2309_v57 = vsel %vm2247_vm5, %v1996_v1, %v2180_v20  ;;  %v2558_v1 = vperm.slane %v2494_v7, 0 }
 0x32b   : > { %v3006_v37 = vld.sshfl [vmem:[#allocation1 + $0x20] sm:$0xff pattern:$0x73625140]  ;;  %3009 = vst [vmem:[#allocation1 + $0x2] ss:$4 sm:$0xff] %v2674_v28  ;;  %v2305_v51 = vsel %vm2247_vm5, %v1992_v45, %v2176_v58  ;;  %v2490_v58 = vrot.slane %v1934_v50, 2  ;;  %v2311_v45 = vsel %vm2247_vm5, %v1998_v4, %v2182_v3 }
 0x32c   : > { %3095 = vst.msk [vmem:[#allocation4 + $0x141] sm:$0xff] %vm948_vm3, %v3006_v37  ;;  %v2304_v37 = vsel %vm2247_vm5, %v7900_v13, %v2175_v16  ;;  %v2306_v60 = vsel %vm2247_vm5, %v1993_v42, %v2177_v29  ;;  %v1718_v16 = vadd.f32 %v7650_v14, %v1710_v10  ;;  %v2491_v29 = vrot.slane %v1934_v50, 3 }
 0x32d   : > { %3010 = vst [vmem:[#allocation1 + $0x3] ss:$4 sm:$0xff] %v2675_v0  ;;  %v3733_v0 = vld [vmem:[#allocation4 + $0xf0] sm:$0xff] }
 0x32e   : > { %3011 = vst [vmem:[#allocation1 + $0x20] ss:$4 sm:$0xff] %v2676_v54  ;;  %v1994_v54 = vrot.slane %v7900_v13, 3  ;;  %v1726_v31 = vmax.f32 %v1718_v16, 0.0  ;;  %v3735_v16 = vld [vmem:[#allocation4 + $0x108] sm:$0xff] }
 0x32f   : > { %3012 = vst [vmem:[#allocation1 + $0x21] ss:$4 sm:$0xff] %v2677_v39  ;;  %v1995_v39 = vrot.slane %v7900_v13, 4  ;;  %v3178_v8 = vld [vmem:[#allocation4 + $0x139] sm:$0xff] }
 0x330   : > { %3013 = vst [vmem:[#allocation1 + $0x22] ss:$4 sm:$0xff] %v2678_v22  ;;  %v2181_v22 = vperm.slane %v2117_v23, 0  ;;  %v2307_v17 = vsel %vm2247_vm5, %v1994_v54, %v2178_v32  ;;  %v2492_v23 = vrot.slane %v1934_v50, 4  ;;  %v2554_v32 = vperm.slane %v2490_v58, 0 }
 0x331   : > { %3014 = vst [vmem:[#allocation1 + $0x23] ss:$4 sm:$0xff] %v2679_v44  ;;  %v7942_v44 = vpack.c.bf16 %v3734_v33, %v3733_v0  ;;  %v2308_v38 = vsel %vm2247_vm5, %v1995_v39, %v2179_v62  ;;  %v2370_v33 = vrot.slane %v1726_v31, 2  ;;  %v2495_v54 = vrot.slane %v1934_v50, 7 }
 0x332   : > { %v2310_v14 = vsel %vm2247_vm5, %v1997_v21, %v2181_v22  ;;  %v2555_v62 = vperm.slane %v2491_v29, 0  ;;  %v2371_v39 = vrot.slane %v1726_v31, 3  ;;  %v2372_v20 = vrot.slane %v1726_v31, 4  ;;  %v3736_v21 = vld [vmem:[#allocation4 + $0x110] sm:$0xff] }
 0x333   : > { %v7936_v34 = vpop.f32.mrf.mxu1  ;;  %v3179_v10 = vld [vmem:[#allocation4 + $0x141] sm:$0xff]  ;;  %v2682_v3 = vsel %vm2247_vm5, %v2370_v33, %v2554_v32  ;;  %v2559_v4 = vperm.slane %v2495_v54, 0  ;;  %v2374_v58 = vrot.slane %v1726_v31, 6 }
 0x334   : > { %v3015_v28 = vld.sshfl [vmem:[#allocation1] sm:$0xff pattern:$0x73625140]  ;;  %v7940_v46 = vpop.f32.mrf.mxu0  ;;  %v3737_v33 = vld [vmem:[#allocation4 + $0x120] sm:$0xff]  ;;  %v3738_v54 = vld [vmem:[#allocation4 + $0x128] sm:$0xff] }
 0x335   : > { %3096 = vst.msk [vmem:[#allocation4 + $0x151] sm:$0xff] %vm948_vm3, %v3015_v28  ;;  %v2493_v28 = vrot.slane %v1934_v50, 5 }
 0x336   : > { %6059 = vmatmul.msk.bf16.gmra.mxu3 %vm948_vm3, %v7924_v6  ;;  %6068 = vmatmul.msk.bf16.gmra.mxu2 %vm948_vm3, %v3135_v61  ;;  %3017 = vst [vmem:[#allocation1] ss:$4 sm:$0xff] %v2304_v37  ;;  %v2553_v61 = vperm.slane %v2489_v55, 0  ;;  %v2369_v37 = vrot.slane %v1726_v31, 1 }
 0x337   : > { %9289 = vst [vmem:[#allocation17_spill] sm:$0xff] %v7940_v46  ;;  %6138 = vmatmul.msk.bf16.gmra.mxu1 %vm948_vm3, %v7685_v25  ;;  %6120 = vmatmul.msk.bf16.gmra.mxu0 %vm948_vm3, %v7942_v44 }
 0x338   : > { %3018 = vst [vmem:[#allocation1 + $0x1] ss:$4 sm:$0xff] %v2305_v51  ;;  %v3016_v2 = vld.sshfl [vmem:[#allocation1 + $0x20] sm:$0xff pattern:$0x73625140]  ;;  %v2680_v51 = vsel %vm2247_vm5, %v1726_v31, %v2552_v26  ;;  %v2681_v22 = vsel %vm2247_vm5, %v2369_v37, %v2553_v61  ;;  %v2375_v26 = vrot.slane %v1726_v31, 7  ;;  %v7983_v61 = vpack.c.bf16 %v3736_v21, %v3735_v16 }
 0x339   : > { %3019 = vst [vmem:[#allocation1 + $0x2] ss:$4 sm:$0xff] %v2306_v60  ;;  %v2556_v60 = vperm.slane %v2492_v23, 0 }
 0x33a   : > { %3097 = vst.msk [vmem:[#allocation4 + $0x159] sm:$0xff] %vm948_vm3, %v3016_v2  ;;  %v2557_v2 = vperm.slane %v2493_v28, 0  ;;  %v2687_v28 = vsel %vm2247_vm5, %v2375_v26, %v2559_v4  ;;  %v3740_v4 = vld [vmem:[#allocation4 + $0x140] sm:$0xff] }
 0x33b   : > { %3020 = vst [vmem:[#allocation1 + $0x3] ss:$4 sm:$0xff] %v2307_v17  ;;  %v7958_v42 = vpop.f32.mrf.mxu1  ;;  %v7966_v17 = vpack.c.bf16 %v3179_v10, %v3178_v8 }
 0x33c   : > { %3021 = vst [vmem:[#allocation1 + $0x20] ss:$4 sm:$0xff] %v2308_v38  ;;  %v7960_v13 = vpop.f32.mrf.mxu0  ;;  %v2373_v38 = vrot.slane %v1726_v31, 5  ;;  %v3180_v37 = vld [vmem:[#allocation4 + $0x151] sm:$0xff] }
 0x33d   : > { %3022 = vst [vmem:[#allocation1 + $0x21] ss:$4 sm:$0xff] %v2309_v57  ;;  %v2683_v57 = vsel %vm2247_vm5, %v2371_v39, %v2555_v62  ;;  %v6264_v39 = vld [vmem:[%s9211_s5 + $0x38] sm:$0xff] }
 0x33e   : > { %3023 = vst [vmem:[#allocation1 + $0x22] ss:$4 sm:$0xff] %v2310_v14  ;;  %v6262_v14 = vld [vmem:[%s9211_s5 + $0x28] sm:$0xff]  ;;  %v2685_v23 = vsel %vm2247_vm5, %v2373_v38, %v2557_v2  ;;  %v8018_v2 = vpack.c.bf16 %v3738_v54, %v3737_v33  ;;  %4732 = vmatpush.bf16.msrb.mxu0 %v6264_v39  ;;  %v3739_v38 = vld [vmem:[#allocation4 + $0x138] sm:$0xff] }
 0x33f   : > { %3024 = vst [vmem:[#allocation1 + $0x23] ss:$4 sm:$0xff] %v2311_v45  ;;  %v2684_v45 = vsel %vm2247_vm5, %v2372_v20, %v2556_v60  ;;  %4279 = vmatpush.bf16.msra.mxu2 %v6262_v14  ;;  %v6265_v20 = vld [vmem:[%s9211_s5 + $0x40] sm:$0xff] }
 0x340   : > { %9290 = vst [vmem:[#allocation15_spill] sm:$0xff] %v7960_v13  ;;  %4958 = vmatpush.bf16.msra.mxu1 %v6265_v20  ;;  %v3491_v20 = vld [vmem:[#allocation4 + $0x1a] sm:$0xff] }
 0x341   : > { %v3181_v8 = vld [vmem:[#allocation4 + $0x159] sm:$0xff] }
 0x342   : > { %v3025_v0 = vld.sshfl [vmem:[#allocation1] sm:$0xff pattern:$0x73625140] }
 0x343   : > { %3098 = vst.msk [vmem:[#allocation4 + $0x169] sm:$0xff] %vm948_vm3, %v3025_v0  ;;  %v7973_v55 = vpop.f32.mrf.mxu1  ;;  %v7997_v0 = vpack.c.bf16 %v3181_v8, %v3180_v37  ;;  %v3741_v37 = vld [vmem:[#allocation4 + $0x150] sm:$0xff]  ;;  %v3742_v8 = vld [vmem:[#allocation4 + $0x158] sm:$0xff] }
 0x344   : > { %3027 = vst [vmem:[#allocation1] ss:$4 sm:$0xff] %v2680_v51  ;;  %v7980_v29 = vpop.f32.mrf.mxu0  ;;  %v6263_v51 = vld [vmem:[%s9211_s5 + $0x30] sm:$0xff]  ;;  %v8059_v33 = vpack.c.bf16 %v3742_v8, %v3741_v37 }
 0x345   : > { %3028 = vst [vmem:[#allocation1 + $0x1] ss:$4 sm:$0xff] %v2681_v22  ;;  %4506 = vmatpush.bf16.msra.mxu3 %v6263_v51 }
 0x346   : > { %v3026_v50 = vld.sshfl [vmem:[#allocation1 + $0x20] sm:$0xff pattern:$0x73625140]  ;;  %3029 = vst [vmem:[#allocation1 + $0x2] ss:$4 sm:$0xff] %v2682_v3  ;;  %6060 = vmatmul.msk.bf16.gmra.mxu3 %vm948_vm3, %v7966_v17  ;;  %6069 = vmatmul.msk.bf16.gmra.mxu2 %vm948_vm3, %v7601_v53  ;;  %v2686_v53 = vsel %vm2247_vm5, %v2374_v58, %v2558_v1  ;;  %v8040_v58 = vpack.c.bf16 %v3740_v4, %v3739_v38 }
 0x347   : > { %3099 = vst.msk [vmem:[#allocation4 + $0x171] sm:$0xff] %vm948_vm3, %v3026_v50  ;;  %6139 = vmatmul.msk.bf16.gmra.mxu1 %vm948_vm3, %v7722_v5  ;;  %6121 = vmatmul.msk.bf16.gmra.mxu0 %vm948_vm3, %v7983_v61 }
 0x348   : > { %9291 = vst [vmem:[#allocation20_spill] sm:$0xff] %v7980_v29 }
 0x349   : > { %3030 = vst [vmem:[#allocation1 + $0x3] ss:$4 sm:$0xff] %v2683_v57 }
 0x34a   : > { %3031 = vst [vmem:[#allocation1 + $0x20] ss:$4 sm:$0xff] %v2684_v45  ;;  %v3182_v16 = vld [vmem:[#allocation4 + $0x169] sm:$0xff] }
 0x34b   : > { %3032 = vst [vmem:[#allocation1 + $0x21] ss:$4 sm:$0xff] %v2685_v23  ;;  %v7991_v31 = vpop.f32.mrf.mxu1  ;;  %v3489_v23 = vld [vmem:[#allocation4 + $0x2] sm:$0xff] }
 0x34c   : > { %3033 = vst [vmem:[#allocation1 + $0x22] ss:$4 sm:$0xff] %v2686_v53  ;;  %v7993_v32 = vpop.f32.mrf.mxu0  ;;  %v3490_v53 = vld [vmem:[#allocation4 + $0xa] sm:$0xff] }
 0x34d   : > { %3034 = vst [vmem:[#allocation1 + $0x23] ss:$4 sm:$0xff] %v2687_v28  ;;  %v3743_v38 = vld [vmem:[#allocation4 + $0x168] sm:$0xff] }
 0x34e   : > { %9292 = vst [vmem:[#allocation39_spill] sm:$0xff] %v7993_v32  ;;  %v3183_v50 = vld [vmem:[#allocation4 + $0x171] sm:$0xff] }
 0x34f   : > { %v8030_v21 = vpack.c.bf16 %v3183_v50, %v3182_v16  ;;  %v3492_v16 = vld [vmem:[#allocation4 + $0x22] sm:$0xff]  ;;  %v3744_v4 = vld [vmem:[#allocation4 + $0x170] sm:$0xff] }
 0x350   : > { %v3035_v7 = vld.sshfl [vmem:[#allocation1] sm:$0xff pattern:$0x73625140] }
 0x351   : > { %3100 = vst.msk [vmem:[#allocation4 + $0x181] sm:$0xff] %vm948_vm3, %v3035_v7 }
 0x353   : > { %v8003_v62 = vpop.f32.mrf.mxu1 }
 0x354   : > { %v3036_v10 = vld.sshfl [vmem:[#allocation1 + $0x20] sm:$0xff pattern:$0x73625140]  ;;  %v8016_v22 = vpop.f32.mrf.mxu0 }
 0x355   : > { %3101 = vst.msk [vmem:[#allocation4 + $0x189] sm:$0xff] %vm948_vm3, %v3036_v10 }
 0x356   : > { %6061 = vmatmul.msk.bf16.gmra.mxu3 %vm948_vm3, %v7997_v0  ;;  %6070 = vmatmul.msk.bf16.gmra.mxu2 %vm948_vm3, %v7632_v49  ;;  %9293 = vst [vmem:[#allocation21_spill] sm:$0xff] %v8016_v22 }
 0x357   : > { %v8014_v60 = vpop.f32.mrf.mxu2  ;;  %6140 = vmatmul.msk.bf16.gmra.mxu1 %vm948_vm3, %v7777_v48  ;;  %6122 = vmatmul.msk.bf16.gmra.mxu0 %vm948_vm3, %v8018_v2 }
 0x35b   : > { %v8024_v49 = vpop.f32.mrf.mxu1 }
 0x35c   : > { %v8028_v3 = vpop.f32.mrf.mxu0  ;;  %v3972_v13 = vld [vmem:[#allocation4 + $0x189] sm:$0xff] }
 0x35d   : > { %9294 = vst [vmem:[#allocation22_spill] sm:$0xff] %v8028_v3  ;;  %v3495_v3 = vld [vmem:[#allocation4 + $0x4a] sm:$0xff] }
 0x35f   : > { %v8026_v1 = vpop.f32.mrf.mxu2 }
 0x363   : > { %v8036_v57 = vpop.f32.mrf.mxu1 }
 0x364   : > { %9295 = vst [vmem:[#allocation23_spill] sm:$0xff] %v8036_v57  ;;  %v8038_v14 = vpop.f32.mrf.mxu0 }
 0x365   : > { %9296 = vst [vmem:[#allocation24_spill] sm:$0xff] %v8038_v14 }
 0x366   : > { %6062 = vmatmul.msk.bf16.gmra.mxu3 %vm948_vm3, %v8030_v21  ;;  %6071 = vmatmul.msk.bf16.gmra.mxu2 %vm948_vm3, %v7667_v63  ;;  %v3521_v63 = vpack.c.bf16 %v3490_v53, %v3489_v23  ;;  %v8083_v53 = vpack.c.bf16 %v3744_v4, %v3743_v38  ;;  %v3745_v38 = vld [vmem:[#allocation4 + $0x180] sm:$0xff]  ;;  %v3746_v4 = vld [vmem:[#allocation4 + $0x188] sm:$0xff] }
 0x367   : > { %6141 = vmatmul.msk.bf16.gmra.mxu1 %vm948_vm3, %v7818_v24  ;;  %6123 = vmatmul.msk.bf16.gmra.mxu0 %vm948_vm3, %v8040_v58 }
 0x369   : > { %v8042_v45 = vpop.f32.mrf.mxu2 }
 0x36b   : > { %v8048_v26 = vpop.f32.mrf.mxu1 }
 0x36c   : > { %9297 = vst [vmem:[#allocation25_spill] sm:$0xff] %v8048_v26  ;;  %v8052_v7 = vpop.f32.mrf.mxu0  ;;  %v3506_v26 = vld [vmem:[#allocation4 + $0xca] sm:$0xff] }
 0x36d   : > { %9298 = vst [vmem:[#allocation26_spill] sm:$0xff] %v8052_v7 }
 0x371   : > { %v8050_v28 = vpop.f32.mrf.mxu2 }
 0x373   : > { %v8057_v10 = vpop.f32.mrf.mxu1 }
 0x374   : > { %9299 = vst [vmem:[#allocation27_spill] sm:$0xff] %v8057_v10  ;;  %v8067_v51 = vpop.f32.mrf.mxu0 }
 0x375   : > { %9300 = vst [vmem:[#allocation11_spill] sm:$0xff] %v8067_v51  ;;  %v3762_v51 = vpack.c.bf16 %v3746_v4, %v3745_v38 }
 0x376   : > { %6089 = vmatmul.msk.bf16.vlgmr.msrb.gmra.mxu3 %vm948_vm3, %v3521_v63  ;;  %6072 = vmatmul.msk.bf16.gmra.mxu2 %vm948_vm3, %v7698_v43  ;;  %v8073_v43 = vpack.c.bf16 %v3492_v16, %v3491_v20  ;;  %v3493_v20 = vld [vmem:[#allocation4 + $0x32] sm:$0xff]  ;;  %v3494_v16 = vld [vmem:[#allocation4 + $0x3a] sm:$0xff] }
 0x377   : > { %6142 = vmatmul.msk.bf16.gmra.mxu1 %vm948_vm3, %v7816_v41  ;;  %6124 = vmatmul.msk.bf16.gmra.mxu0 %vm948_vm3, %v8059_v33 }
 0x379   : > { %v8061_v54 = vpop.f32.mrf.mxu2 }
 0x37b   : > { %v8069_v39 = vpop.f32.mrf.mxu1 }
 0x37c   : > { %9301 = vst [vmem:[#allocation37_spill] sm:$0xff] %v8069_v39  ;;  %v8077_v23 = vpop.f32.mrf.mxu0  ;;  %v3971_v39 = vld [vmem:[#allocation4 + $0x181] sm:$0xff] }
 0x37d   : > { %9302 = vst [vmem:[#allocation38_spill] sm:$0xff] %v8077_v23 }
 0x381   : > { %v8071_v50 = vpop.f32.mrf.mxu2 }
 0x383   : > { %v8081_v41 = vpop.f32.mrf.mxu1 }
 0x384   : > { %9303 = vst [vmem:[#allocation41_spill] sm:$0xff] %v8081_v41  ;;  %v8093_v8 = vpop.f32.mrf.mxu0 }
 0x385   : > { %9305 = vst [vmem:[#allocation16_spill] sm:$0xff] %v8093_v8 }
 0x386   : > { %6090 = vmatmul.msk.bf16.gmra.mxu3 %vm948_vm3, %v8073_v43  ;;  %6073 = vmatmul.msk.bf16.gmra.mxu2 %vm948_vm3, %v7740_v35  ;;  %v8097_v35 = vpack.c.bf16 %v3494_v16, %v3493_v20 }
 0x387   : > { %6143 = vmatmul.msk.bf16.gmra.mxu1 %vm948_vm3, %v7862_v36  ;;  %6125 = vmatmul.msk.bf16.gmra.mxu0 %vm948_vm3, %v8083_v53 }
 0x389   : > { %v8085_v63 = vpop.f32.mrf.mxu2 }
 0x38b   : > { %v8091_v37 = vpop.f32.mrf.mxu1 }
 0x38c   : > { %9304 = vst [vmem:[#allocation40_spill] sm:$0xff] %v8091_v37  ;;  %v8111_v20 = vpop.f32.mrf.mxu0  ;;  %v3500_v37 = vld [vmem:[#allocation4 + $0x82] sm:$0xff] }
 0x38d   : > { %9307 = vst [vmem:[#allocation29_spill] sm:$0xff] %v8111_v20 }
 0x391   : > { %v8095_v23 = vpop.f32.mrf.mxu2 }
 0x394   : > { %v8103_v36 = vpop.f32.mrf.mxu1  ;;  %v8122_v4 = vpop.f32.mrf.mxu0 }
 0x395   : > { %9306 = vst [vmem:[#allocation18_spill] sm:$0xff] %v8103_v36 }
 0x396   : > { %6091 = vmatmul.msk.bf16.gmra.mxu3 %vm948_vm3, %v8097_v35  ;;  %6074 = vmatmul.msk.bf16.gmra.mxu2 %vm948_vm3, %v7790_v12  ;;  %v3496_v12 = vld [vmem:[#allocation4 + $0x52] sm:$0xff]  ;;  %9309 = vst [vmem:[#allocation30_spill] sm:$0xff] %v8122_v4 }
 0x397   : > { %6144 = vmatmul.msk.bf16.gmra.mxu1 %vm948_vm3, %v7924_v6  ;;  %6126 = vmatmul.msk.bf16.gmra.mxu0 %vm948_vm3, %v3762_v51  ;;  %v8120_v38 = vpack.c.bf16 %v3496_v12, %v3495_v3 }
 0x399   : > { %v8105_v7 = vpop.f32.mrf.mxu3  ;;  %v8107_v8 = vpop.f32.mrf.mxu2 }
 0x39c   : > { %v8114_v16 = vpop.f32.mrf.mxu1  ;;  %v8138_v3 = vpop.f32.mrf.mxu0 }
 0x39d   : > { %9308 = vst [vmem:[#allocation28_spill] sm:$0xff] %v8114_v16  ;;  %v3497_v16 = vld [vmem:[#allocation4 + $0x62] sm:$0xff] }
 0x39e   : > { %9311 = vst [vmem:[#allocation44_spill] sm:$0xff] %v8138_v3 }
 0x3a1   : > { %v8116_v14 = vpop.f32.mrf.mxu3  ;;  %v8118_v22 = vpop.f32.mrf.mxu2 }
 0x3a4   : > { %v8128_v6 = vpop.f32.mrf.mxu1 }
 0x3a5   : > { %9310 = vst [vmem:[#allocation31_spill] sm:$0xff] %v8128_v6 }
 0x3a6   : > { %6092 = vmatmul.msk.bf16.gmra.mxu3 %vm948_vm3, %v8120_v38  ;;  %6075 = vmatmul.msk.bf16.gmra.mxu2 %vm948_vm3, %v7826_v19  ;;  %v3498_v19 = vld [vmem:[#allocation4 + $0x6a] sm:$0xff] }
 0x3a7   : > { %6145 = vmatmul.msk.bf16.gmra.mxu1 %vm948_vm3, %v7966_v17  ;;  %6199 = vmatmul.msk.bf16.vlgmr.msrb.gmra.mxu0 %vm948_vm3, %v7599_v15  ;;  %v8146_v6 = vpack.c.bf16 %v3498_v19, %v3497_v16  ;;  %v8152_v17 = vpop.f32.mrf.mxu0  ;;  %v3499_v19 = vld [vmem:[#allocation4 + $0x7a] sm:$0xff] }
 0x3a8   : > { %9313 = vst [vmem:[#allocation19_spill] sm:$0xff] %v8152_v17  ;;  %v8170_v17 = vpack.c.bf16 %v3500_v37, %v3499_v19 }
 0x3a9   : > { %v8130_v51 = vpop.f32.mrf.mxu3  ;;  %v8132_v20 = vpop.f32.mrf.mxu2 }
 0x3ac   : > { %v8140_v12 = vpop.f32.mrf.mxu1 }
 0x3ad   : > { %9312 = vst [vmem:[#allocation32_spill] sm:$0xff] %v8140_v12 }
 0x3b1   : > { %v8142_v4 = vpop.f32.mrf.mxu3  ;;  %v8144_v36 = vpop.f32.mrf.mxu2 }
 0x3b4   : > { %v8160_v12 = vpop.f32.mrf.mxu1 }
 0x3b5   : > { %9314 = vst [vmem:[#allocation33_spill] sm:$0xff] %v8160_v12  ;;  %v3502_v12 = vld [vmem:[#allocation4 + $0x9a] sm:$0xff] }
 0x3b6   : > { %6093 = vmatmul.msk.bf16.gmra.mxu3 %vm948_vm3, %v8146_v6  ;;  %6076 = vmatmul.msk.bf16.gmra.mxu2 %vm948_vm3, %v7882_v40  ;;  %v8168_v40 = vpop.f32.mrf.mxu0 }
 0x3b7   : > { %6146 = vmatmul.msk.bf16.gmra.mxu1 %vm948_vm3, %v7997_v0  ;;  %6200 = vmatmul.msk.bf16.gmra.mxu0 %vm948_vm3, %v7628_v52  ;;  %9315 = vst [vmem:[#allocation34_spill] sm:$0xff] %v8168_v40 }
 0x3b9   : > { %v8154_v15 = vpop.f32.mrf.mxu3  ;;  %v8156_v3 = vpop.f32.mrf.mxu2 }
 0x3bc   : > { %v8172_v41 = vpop.f32.mrf.mxu1 }
 0x3bd   : > { %9316 = vst [vmem:[#allocation35_spill] sm:$0xff] %v8172_v41  ;;  %v3501_v41 = vld [vmem:[#allocation4 + $0x92] sm:$0xff] }
 0x3be   : > { %v8186_v37 = vpop.f32.mrf.mxu0 }
 0x3bf   : > { %9317 = vst [vmem:[#allocation36_spill] sm:$0xff] %v8186_v37 }
 0x3c1   : > { %v8164_v16 = vpop.f32.mrf.mxu3  ;;  %v8166_v32 = vpop.f32.mrf.mxu2 }
 0x3c4   : > { %v8188_v19 = vpop.f32.mrf.mxu1 }
 0x3c5   : > { %9318 = vst [vmem:[#allocation12_spill] sm:$0xff] %v8188_v19 }
 0x3c6   : > { %6094 = vmatmul.msk.bf16.gmra.mxu3 %vm948_vm3, %v8170_v17  ;;  %6077 = vmatmul.msk.bf16.gmra.mxu2 %vm948_vm3, %v7942_v44  ;;  %v8194_v44 = vpack.c.bf16 %v3502_v12, %v3501_v41 }
 0x3c7   : > { %6147 = vmatmul.msk.bf16.gmra.mxu1 %vm948_vm3, %v8030_v21  ;;  %6201 = vmatmul.msk.bf16.gmra.mxu0 %vm948_vm3, %v7664_v30  ;;  %v8198_v21 = vpop.f32.mrf.mxu0  ;;  %v8202_v30 = vpack.c.bf16 %v3972_v13, %v3971_v39 }
 0x3c8   : > { %9319 = vst [vmem:[#allocation43_spill] sm:$0xff] %v8198_v21  ;;  %v3503_v21 = vld [vmem:[#allocation4 + $0xaa] sm:$0xff] }
 0x3c9   : > { %v8178_v0 = vpop.f32.mrf.mxu3  ;;  %v8180_v52 = vpop.f32.mrf.mxu2 }
 0x3cc   : > { %v8204_v37 = vpop.f32.mrf.mxu1 }
 0x3cd   : > { %9320 = vst [vmem:[#allocation42_spill] sm:$0xff] %v8204_v37 }
 0x3cf   : > { %v8214_v41 = vpop.f32.mrf.mxu0 }
 0x3d0   : > { %9321 = vst [vmem:[#allocation45_spill] sm:$0xff] %v8214_v41 }
 0x3d1   : > { %v8190_v40 = vpop.f32.mrf.mxu3  ;;  %v8192_v29 = vpop.f32.mrf.mxu2 }
 0x3d4   : > { %v8220_v39 = vpop.f32.mrf.mxu1 }
 0x3d5   : > { %9323 = vst [vmem:[#allocation47_spill] sm:$0xff] %v8220_v39  ;;  %v3505_v39 = vld [vmem:[#allocation4 + $0xc2] sm:$0xff] }
 0x3d6   : > { %6095 = vmatmul.msk.bf16.gmra.mxu3 %vm948_vm3, %v8194_v44  ;;  %6078 = vmatmul.msk.bf16.gmra.mxu2 %vm948_vm3, %v7983_v61  ;;  %v3504_v61 = vld [vmem:[#allocation4 + $0xb2] sm:$0xff]  ;;  %v8246_v57 = vpack.c.bf16 %v3506_v26, %v3505_v39  ;;  %v3412_v39 = vadd.f32 %v8144_v36, %v7831_v47 }
 0x3d7   : > { %6148 = vmatmul.msk.bf16.gmra.mxu1 %vm948_vm3, %v8202_v30  ;;  %6202 = vmatmul.msk.bf16.gmra.mxu0 %vm948_vm3, %v7654_v18  ;;  %v8222_v37 = vpack.c.bf16 %v3504_v61, %v3503_v21  ;;  %v8234_v41 = vpop.f32.mrf.mxu0 }
 0x3d8   : > { %9325 = vst [vmem:[#allocation49_spill] sm:$0xff] %v8234_v41 }
 0x3d9   : > { %v8206_v19 = vpop.f32.mrf.mxu3  ;;  %v8208_v10 = vpop.f32.mrf.mxu2 }
 0x3dc   : > { %v8238_v21 = vpop.f32.mrf.mxu1 }
 0x3dd   : > { %9326 = vst [vmem:[#allocation50_spill] sm:$0xff] %v8238_v21 }
 0x3e1   : > { %v8216_v12 = vpop.f32.mrf.mxu3  ;;  %v8218_v13 = vpop.f32.mrf.mxu2 }
 0x3e2   : > { %9322 = vst [vmem:[#allocation46_spill] sm:$0xff] %v8216_v12 }
 0x3e4   : > { %v8250_v27 = vpop.f32.mrf.mxu1 }
 0x3e5   : > { %9329 = vst [vmem:[#allocation53_spill] sm:$0xff] %v8250_v27 }
 0x3e6   : > { %6096 = vmatmul.msk.bf16.gmra.mxu3 %vm948_vm3, %v8222_v37  ;;  %6079 = vmatmul.msk.bf16.gmra.mxu2 %vm948_vm3, %v8018_v2  ;;  %v8244_v2 = vpop.f32.mrf.mxu0 }
 0x3e7   : > { %6221 = vmatmul.msk.bf16.vlgmr.msra.gmra.mxu1 %vm948_vm3, %v8097_v35  ;;  %6203 = vmatmul.msk.bf16.gmra.mxu0 %vm948_vm3, %v7685_v25  ;;  %9328 = vst [vmem:[#allocation52_spill] sm:$0xff] %v8244_v2  ;;  %v3410_v25 = vadd.f32 %v8132_v20, %v7810_v11  ;;  %v3507_v11 = vld [vmem:[#allocation4 + $0xda] sm:$0xff]  ;;  %v3508_v20 = vld [vmem:[#allocation4 + $0xe2] sm:$0xff] }
 0x3e8   : > { %v8274_v12 = vpack.c.bf16 %v3508_v20, %v3507_v11 }
 0x3e9   : > { %v8228_v46 = vpop.f32.mrf.mxu3  ;;  %v8230_v18 = vpop.f32.mrf.mxu2 }
 0x3ea   : > { %9324 = vst [vmem:[#allocation48_spill] sm:$0xff] %v8228_v46 }
 0x3ee   : > { %v8264_v26 = vpop.f32.mrf.mxu0 }
 0x3ef   : > { %9330 = vst [vmem:[#allocation54_spill] sm:$0xff] %v8264_v26 }
 0x3f1   : > { %v8240_v61 = vpop.f32.mrf.mxu3  ;;  %v8242_v56 = vpop.f32.mrf.mxu2 }
 0x3f2   : > { %9327 = vst [vmem:[#allocation51_spill] sm:$0xff] %v8240_v61 }
 0x3f6   : > { %6097 = vmatmul.msk.bf16.gmra.mxu3 %vm948_vm3, %v8246_v57  ;;  %6080 = vmatmul.msk.bf16.gmra.mxu2 %vm948_vm3, %v8040_v58  ;;  %v8268_v58 = vpop.f32.mrf.mxu1  ;;  %v8282_v47 = vpop.f32.mrf.mxu0 }
 0x3f7   : > { %6222 = vmatmul.msk.bf16.gmra.mxu1 %vm948_vm3, %v8120_v38  ;;  %6204 = vmatmul.msk.bf16.gmra.mxu0 %vm948_vm3, %v7722_v5  ;;  %9331 = vst [vmem:[#allocation55_spill] sm:$0xff] %v8268_v58  ;;  %v3415_v5 = vadd.f32 %v8156_v3, %v7860_v59  ;;  %v3509_v59 = vld [vmem:[#allocation4 + $0xf2] sm:$0xff]  ;;  %v3510_v3 = vld [vmem:[#allocation4 + $0xfa] sm:$0xff] }
 0x3f8   : > { %9332 = vst [vmem:[#allocation56_spill] sm:$0xff] %v8282_v47  ;;  %v8302_v26 = vpack.c.bf16 %v3510_v3, %v3509_v59 }
 0x3f9   : > { %v3603_v41 = vpop.f32.mrf.mxu3  ;;  %v8256_v21 = vpop.f32.mrf.mxu2 }
 0x3fa   : > { %v8260_v2 = vadd.f32 %v3603_v41, %v3410_v25 }
 0x3fe   : > { %v8290_v25 = vpop.f32.mrf.mxu1  ;;  %v8298_v20 = vpop.f32.mrf.mxu0 }
 0x3ff   : > { %9333 = vst [vmem:[#allocation57_spill] sm:$0xff] %v8290_v25 }
 0x400   : > { %9334 = vst [vmem:[#allocation58_spill] sm:$0xff] %v8298_v20 }
 0x401   : > { %v3605_v27 = vpop.f32.mrf.mxu3  ;;  %v8270_v61 = vpop.f32.mrf.mxu2 }
 0x402   : > { %v8272_v46 = vadd.f32 %v3605_v27, %v3412_v39 }
 0x406   : > { %6098 = vmatmul.msk.bf16.gmra.mxu3 %vm948_vm3, %v8274_v12  ;;  %6081 = vmatmul.msk.bf16.gmra.mxu2 %vm948_vm3, %v8059_v33  ;;  %v3417_v33 = vadd.f32 %v8166_v32, %v7905_v9 }
 0x407   : > { %6223 = vmatmul.msk.bf16.gmra.mxu1 %vm948_vm3, %v8146_v6  ;;  %6205 = vmatmul.msk.bf16.gmra.mxu0 %vm948_vm3, %v7777_v48  ;;  %v3420_v48 = vadd.f32 %v8180_v52, %v7936_v34  ;;  %v3511_v34 = vld [vmem:[#allocation4 + $0x10a] sm:$0xff]  ;;  %v3512_v52 = vld [vmem:[#allocation4 + $0x112] sm:$0xff] }
 0x409   : > { %v3608_v36 = vpop.f32.mrf.mxu3  ;;  %v8284_v41 = vpop.f32.mrf.mxu2 }
 0x40a   : > { %v8288_v27 = vadd.f32 %v3608_v36, %v3415_v5  ;;  %v8304_v5 = vpop.f32.mrf.mxu1 }
 0x40b   : > { %9335 = vst [vmem:[#allocation59_spill] sm:$0xff] %v8304_v5  ;;  %v8330_v5 = vpack.c.bf16 %v3512_v52, %v3511_v34  ;;  %v3427_v52 = vadd.f32 %v8218_v13, %v7991_v31  ;;  %v3430_v31 = vadd.f32 %v8230_v18, %v8003_v62  ;;  %v3515_v62 = vld [vmem:[#allocation4 + $0x13a] sm:$0xff]  ;;  %v3516_v18 = vld [vmem:[#allocation4 + $0x142] sm:$0xff] }
 0x411   : > { %v3610_v39 = vpop.f32.mrf.mxu3  ;;  %v8296_v11 = vpop.f32.mrf.mxu2 }
 0x412   : > { %v8300_v47 = vadd.f32 %v3610_v39, %v3417_v33  ;;  %v8320_v33 = vpop.f32.mrf.mxu0  ;;  %v8322_v39 = vpop.f32.mrf.mxu1 }
 0x413   : > { %9336 = vst [vmem:[#allocation60_spill] sm:$0xff] %v8320_v33 }
 0x414   : > { %9337 = vst [vmem:[#allocation61_spill] sm:$0xff] %v8322_v39  ;;  %v8386_v39 = vpack.c.bf16 %v3516_v18, %v3515_v62  ;;  %v3437_v18 = vadd.f32 %v8270_v61, %v8026_v1  ;;  %v3440_v1 = vadd.f32 %v8284_v41, %v8042_v45  ;;  %v3519_v45 = vld [vmem:[#allocation4 + $0x16a] sm:$0xff]  ;;  %v3520_v41 = vld [vmem:[#allocation4 + $0x172] sm:$0xff] }
 0x416   : > { %6099 = vmatmul.msk.bf16.gmra.mxu3 %vm948_vm3, %v8302_v26  ;;  %6082 = vmatmul.msk.bf16.gmra.mxu2 %vm948_vm3, %v8083_v53  ;;  %v3422_v53 = vadd.f32 %v8192_v29, %v7958_v42 }
 0x417   : > { %6224 = vmatmul.msk.bf16.gmra.mxu1 %vm948_vm3, %v8170_v17  ;;  %6206 = vmatmul.msk.bf16.gmra.mxu0 %vm948_vm3, %v7818_v24  ;;  %v3425_v24 = vadd.f32 %v8208_v10, %v7973_v55  ;;  %v3513_v55 = vld [vmem:[#allocation4 + $0x122] sm:$0xff]  ;;  %v3514_v10 = vld [vmem:[#allocation4 + $0x12a] sm:$0xff] }
 0x419   : > { %v3613_v9 = vpop.f32.mrf.mxu3  ;;  %v8312_v32 = vpop.f32.mrf.mxu2 }
 0x41a   : > { %v8316_v36 = vadd.f32 %v3613_v9, %v3420_v48  ;;  %v4636_v48 = vld [vmem:[#allocation4 + $0xf1] sm:$0xff]  ;;  %v4637_v9 = vld [vmem:[#allocation4 + $0xf9] sm:$0xff]  ;;  %v8332_v25 = vpop.f32.mrf.mxu0  ;;  %v8340_v42 = vpop.f32.mrf.mxu1 }
 0x41b   : > { %9338 = vst [vmem:[#allocation62_spill] sm:$0xff] %v8332_v25  ;;  %v4660_v29 = vpack.c.bf16 %v4637_v9, %v4636_v48 }
 0x41c   : > { %9339 = vst [vmem:[#allocation63_spill] sm:$0xff] %v8340_v42  ;;  %v8359_v42 = vpack.c.bf16 %v3514_v10, %v3513_v55 }
 0x421   : > { %v3615_v59 = vpop.f32.mrf.mxu3  ;;  %v8326_v3 = vpop.f32.mrf.mxu2 }
 0x422   : > { %v8328_v20 = vadd.f32 %v3615_v59, %v3422_v53  ;;  %v8357_v9 = vpop.f32.mrf.mxu1 }
 0x423   : > { %9341 = vst [vmem:[#allocation65_spill] sm:$0xff] %v8357_v9 }
 0x426   : > { %6100 = vmatmul.msk.bf16.gmra.mxu3 %vm948_vm3, %v8330_v5  ;;  %6155 = vmatmul.msk.bf16.vlgmr.msra.gmra.mxu2 %vm948_vm3, %v8073_v43  ;;  %v8351_v43 = vpop.f32.mrf.mxu0 }
 0x427   : > { %6225 = vmatmul.msk.bf16.gmra.mxu1 %vm948_vm3, %v8194_v44  ;;  %6207 = vmatmul.msk.bf16.gmra.mxu0 %vm948_vm3, %v4660_v29  ;;  %9340 = vst [vmem:[#allocation64_spill] sm:$0xff] %v8351_v43 }
 0x429   : > { %v3618_v53 = vpop.f32.mrf.mxu3  ;;  %v8342_v59 = vpop.f32.mrf.mxu2 }
 0x42a   : > { %v8346_v34 = vadd.f32 %v3618_v53, %v3425_v24  ;;  %v4638_v24 = vld [vmem:[#allocation4 + $0x109] sm:$0xff]  ;;  %v4639_v53 = vld [vmem:[#allocation4 + $0x111] sm:$0xff]  ;;  %v8376_v55 = vpop.f32.mrf.mxu1 }
 0x42b   : > { %v4661_v13 = vpack.c.bf16 %v4639_v53, %v4638_v24  ;;  %9343 = vst [vmem:[#allocation67_spill] sm:$0xff] %v8376_v55  ;;  %v8440_v55 = vpack.c.bf16 %v3520_v41, %v3519_v45 }
 0x431   : > { %v3620_v25 = vpop.f32.mrf.mxu3  ;;  %v8353_v33 = vpop.f32.mrf.mxu2 }
 0x432   : > { %v8355_v48 = vadd.f32 %v3620_v25, %v3427_v52  ;;  %v8371_v25 = vpop.f32.mrf.mxu0 }
 0x433   : > { %9342 = vst [vmem:[#allocation66_spill] sm:$0xff] %v8371_v25  ;;  %v8388_v25 = vpop.f32.mrf.mxu1 }
 0x434   : > { %9345 = vst [vmem:[#allocation69_spill] sm:$0xff] %v8388_v25 }
 0x436   : > { %6101 = vmatmul.msk.bf16.gmra.mxu3 %vm948_vm3, %v8359_v42  ;;  %6156 = vmatmul.msk.bf16.gmra.mxu2 %vm948_vm3, %v8097_v35  ;;  %v3432_v35 = vadd.f32 %v8242_v56, %v8024_v49  ;;  %v3435_v56 = vadd.f32 %v8256_v21, %v8014_v60  ;;  %v3517_v60 = vld [vmem:[#allocation4 + $0x152] sm:$0xff]  ;;  %v3518_v21 = vld [vmem:[#allocation4 + $0x15a] sm:$0xff] }
 0x437   : > { %6226 = vmatmul.msk.bf16.gmra.mxu1 %vm948_vm3, %v8222_v37  ;;  %6208 = vmatmul.msk.bf16.gmra.mxu0 %vm948_vm3, %v4661_v13  ;;  %v8413_v25 = vpack.c.bf16 %v3518_v21, %v3517_v60 }
 0x439   : > { %v3623_v29 = vpop.f32.mrf.mxu3  ;;  %v8367_v43 = vpop.f32.mrf.mxu2 }
 0x43a   : > { %v8373_v52 = vadd.f32 %v3623_v29, %v3430_v31  ;;  %v8384_v9 = vpop.f32.mrf.mxu0  ;;  %v4640_v31 = vld [vmem:[#allocation4 + $0x121] sm:$0xff]  ;;  %v4641_v29 = vld [vmem:[#allocation4 + $0x129] sm:$0xff] }
 0x43b   : > { %9344 = vst [vmem:[#allocation68_spill] sm:$0xff] %v8384_v9  ;;  %v4662_v49 = vpack.c.bf16 %v4641_v29, %v4640_v31 }
 0x441   : > { %v3625_v10 = vpop.f32.mrf.mxu3  ;;  %v8380_v24 = vpop.f32.mrf.mxu2 }
 0x442   : > { %v8382_v53 = vadd.f32 %v3625_v10, %v3432_v35  ;;  %v8403_v62 = vpop.f32.mrf.mxu0 }
 0x443   : > { %9346 = vst [vmem:[#allocation70_spill] sm:$0xff] %v8403_v62 }
 0x446   : > { %6102 = vmatmul.msk.bf16.gmra.mxu3 %vm948_vm3, %v8386_v39  ;;  %6157 = vmatmul.msk.bf16.gmra.mxu2 %vm948_vm3, %v8120_v38  ;;  %v8407_v38 = vpop.f32.mrf.mxu1 }
 0x447   : > { %6227 = vmatmul.msk.bf16.gmra.mxu1 %vm948_vm3, %v8246_v57  ;;  %6209 = vmatmul.msk.bf16.gmra.mxu0 %vm948_vm3, %v4662_v49  ;;  %9347 = vst [vmem:[#allocation71_spill] sm:$0xff] %v8407_v38 }
 0x449   : > { %v3628_v13 = vpop.f32.mrf.mxu3  ;;  %v8396_v35 = vpop.f32.mrf.mxu2 }
 0x44a   : > { %v8400_v10 = vadd.f32 %v3628_v13, %v3435_v56  ;;  %v4642_v56 = vld [vmem:[#allocation4 + $0x139] sm:$0xff]  ;;  %v4643_v13 = vld [vmem:[#allocation4 + $0x141] sm:$0xff]  ;;  %v8421_v61 = vpop.f32.mrf.mxu0 }
 0x44b   : > { %v4663_v49 = vpack.c.bf16 %v4643_v13, %v4642_v56 }
 0x451   : > { %v3630_v9 = vpop.f32.mrf.mxu3  ;;  %v8409_v31 = vpop.f32.mrf.mxu2 }
 0x452   : > { %v8411_v29 = vadd.f32 %v3630_v9, %v3437_v18  ;;  %v8430_v18 = vpop.f32.mrf.mxu1  ;;  %v8436_v56 = vpop.f32.mrf.mxu0 }
 0x453   : > { %9348 = vst [vmem:[#allocation72_spill] sm:$0xff] %v8430_v18 }
 0x456   : > { %6103 = vmatmul.msk.bf16.gmra.mxu3 %vm948_vm3, %v8413_v25  ;;  %6158 = vmatmul.msk.bf16.gmra.mxu2 %vm948_vm3, %v8146_v6  ;;  %v3442_v6 = vadd.f32 %v8296_v11, %v8050_v28  ;;  %v3445_v28 = vadd.f32 %v8312_v32, %v8061_v54  ;;  %v4394_v54 = vld [vmem:[#allocation4 + $0x30] sm:$0xff]  ;;  %v4395_v32 = vld [vmem:[#allocation4 + $0x38] sm:$0xff] }
 0x457   : > { %6228 = vmatmul.msk.bf16.gmra.mxu1 %vm948_vm3, %v8274_v12  ;;  %6210 = vmatmul.msk.bf16.gmra.mxu0 %vm948_vm3, %v4663_v49  ;;  %v4645_v49 = vld [vmem:[#allocation4 + $0x159] sm:$0xff] }
 0x459   : > { %v3633_v62 = vpop.f32.mrf.mxu3  ;;  %v8423_v38 = vpop.f32.mrf.mxu2 }
 0x45a   : > { %v8427_v9 = vadd.f32 %v3633_v62, %v3440_v1  ;;  %v8442_v62 = vpop.f32.mrf.mxu1  ;;  %v4644_v1 = vld [vmem:[#allocation4 + $0x151] sm:$0xff] }
 0x45b   : > { %9350 = vst [vmem:[#allocation74_spill] sm:$0xff] %v8442_v62  ;;  %v4664_v11 = vpack.c.bf16 %v4645_v49, %v4644_v1  ;;  %v4426_v62 = vpack.c.bf16 %v4395_v32, %v4394_v54 }
 0x461   : > { %v3635_v60 = vpop.f32.mrf.mxu3  ;;  %v8434_v21 = vpop.f32.mrf.mxu2 }
 0x462   : > { %v8438_v13 = vadd.f32 %v3635_v60, %v3442_v6  ;;  %v8457_v60 = vpop.f32.mrf.mxu0  ;;  %v8459_v45 = vpop.f32.mrf.mxu1 }
 0x463   : > { %9351 = vst [vmem:[#allocation75_spill] sm:$0xff] %v8459_v45 }
 0x464   : > { %9349 = vst [vmem:[#allocation73_spill] sm:$0xff] %v8438_v13  ;;  %v4646_v13 = vld [vmem:[#allocation4 + $0x169] sm:$0xff] }
 0x466   : > { %6104 = vmatmul.msk.bf16.gmra.mxu3 %vm948_vm3, %v8440_v55  ;;  %6159 = vmatmul.msk.bf16.gmra.mxu2 %vm948_vm3, %v8170_v17  ;;  %v3447_v17 = vadd.f32 %v8326_v3, %v8071_v50  ;;  %v3450_v50 = vadd.f32 %v8342_v59, %v8085_v63  ;;  %v4396_v63 = vld [vmem:[#allocation4 + $0x48] sm:$0xff]  ;;  %v4397_v59 = vld [vmem:[#allocation4 + $0x50] sm:$0xff] }
 0x467   : > { %6229 = vmatmul.msk.bf16.gmra.mxu1 %vm948_vm3, %v8302_v26  ;;  %6211 = vmatmul.msk.bf16.gmra.mxu0 %vm948_vm3, %v4664_v11 }
 0x469   : > { %v3638_v18 = vpop.f32.mrf.mxu3  ;;  %v8450_v58 = vpop.f32.mrf.mxu2 }
 0x46a   : > { %v8454_v6 = vadd.f32 %v3638_v18, %v3445_v28  ;;  %v4647_v18 = vld [vmem:[#allocation4 + $0x171] sm:$0xff]  ;;  %v8467_v28 = vpop.f32.mrf.mxu0  ;;  %v8474_v11 = vpop.f32.mrf.mxu1 }
 0x46b   : > { %v4665_v3 = vpack.c.bf16 %v4647_v18, %v4646_v13  ;;  %9352 = vst [vmem:[#allocation76_spill] sm:$0xff] %v8474_v11  ;;  %v4427_v18 = vpack.c.bf16 %v4397_v59, %v4396_v63 }
 0x471   : > { %v3640_v41 = vpop.f32.mrf.mxu3  ;;  %v8463_v1 = vpop.f32.mrf.mxu2 }
 0x472   : > { %v8465_v49 = vadd.f32 %v3640_v41, %v3447_v17  ;;  %v8489_v32 = vpop.f32.mrf.mxu1 }
 0x473   : > { %9353 = vst [vmem:[#allocation77_spill] sm:$0xff] %v8489_v32  ;;  %v4874_v32 = vld [vmem:[#allocation4 + $0x182] sm:$0xff] }
 0x476   : > { %6177 = vmatmul.msk.bf16.vlgmr.msra.gmra.mxu3 %vm948_vm3, %v4426_v62  ;;  %6160 = vmatmul.msk.bf16.gmra.mxu2 %vm948_vm3, %v8194_v44  ;;  %v3452_v62 = vadd.f32 %v8353_v33, %v8095_v23  ;;  %v8485_v44 = vpop.f32.mrf.mxu0  ;;  %v3455_v23 = vadd.f32 %v8367_v43, %v8107_v8  ;;  %v4398_v8 = vld [vmem:[#allocation4 + $0x60] sm:$0xff]  ;;  %v4399_v43 = vld [vmem:[#allocation4 + $0x68] sm:$0xff] }
 0x477   : > { %6230 = vmatmul.msk.bf16.gmra.mxu1 %vm948_vm3, %v8330_v5  ;;  %6212 = vmatmul.msk.bf16.gmra.mxu0 %vm948_vm3, %v4665_v3  ;;  %v4428_v59 = vpack.c.bf16 %v4399_v43, %v4398_v8  ;;  %v4401_v8 = vld [vmem:[#allocation4 + $0x80] sm:$0xff] }
 0x479   : > { %v3643_v45 = vpop.f32.mrf.mxu3  ;;  %v8481_v41 = vpop.f32.mrf.mxu2 }
 0x47a   : > { %v8478_v17 = vadd.f32 %v3643_v45, %v3450_v50  ;;  %v8506_v3 = vpop.f32.mrf.mxu1 }
 0x47b   : > { %9354 = vst [vmem:[#allocation78_spill] sm:$0xff] %v8506_v3 }
 0x47e   : > { %v8500_v45 = vpop.f32.mrf.mxu0 }
 0x481   : > { %v3645_v54 = vpop.f32.mrf.mxu3  ;;  %v8491_v11 = vpop.f32.mrf.mxu2 }
 0x482   : > { %v8487_v13 = vadd.f32 %v3645_v54, %v3452_v62 }
 0x486   : > { %6178 = vmatmul.msk.bf16.gmra.mxu3 %vm948_vm3, %v4427_v18  ;;  %6161 = vmatmul.msk.bf16.gmra.mxu2 %vm948_vm3, %v8222_v37  ;;  %v3457_v37 = vadd.f32 %v8380_v24, %v8118_v22  ;;  %v8517_v18 = vpop.f32.mrf.mxu1  ;;  %v3462_v24 = vadd.f32 %v8409_v31, %v8116_v14 }
 0x487   : > { %6231 = vmatmul.msk.bf16.gmra.mxu1 %vm948_vm3, %v8359_v42  ;;  %6213 = vmatmul.msk.bf16.gmra.mxu0 %vm948_vm3, %v8202_v30  ;;  %v3460_v30 = vadd.f32 %v8396_v35, %v8105_v7  ;;  %v3465_v35 = vadd.f32 %v8423_v38, %v8130_v51  ;;  %v3470_v38 = vadd.f32 %v8450_v58, %v8154_v15  ;;  %v4875_v15 = vld [vmem:[#allocation4 + $0x18a] sm:$0xff] }
 0x488   : > { %v8570_v58 = vpack.c.bf16 %v4875_v15, %v4874_v32  ;;  %v4407_v32 = vld [vmem:[#allocation4 + $0xc8] sm:$0xff] }
 0x489   : > { %v3648_v33 = vpop.f32.mrf.mxu3  ;;  %v8508_v62 = vpop.f32.mrf.mxu2 }
 0x48a   : > { %v8502_v50 = vadd.f32 %v3648_v33, %v3455_v23 }
 0x491   : > { %v3650_v54 = vpop.f32.mrf.mxu3  ;;  %v8521_v33 = vpop.f32.mrf.mxu2 }
 0x492   : > { %v8512_v63 = vadd.f32 %v3650_v54, %v3457_v37  ;;  %v8529_v37 = vpop.f32.mrf.mxu1 }
 0x496   : > { %6179 = vmatmul.msk.bf16.gmra.mxu3 %vm948_vm3, %v4428_v59  ;;  %6162 = vmatmul.msk.bf16.gmra.mxu2 %vm948_vm3, %v8246_v57  ;;  %v4400_v57 = vld [vmem:[#allocation4 + $0x78] sm:$0xff] }
 0x497   : > { %6232 = vmatmul.msk.bf16.gmra.mxu1 %vm948_vm3, %v8386_v39  ;;  %v4429_v7 = vpack.c.bf16 %v4401_v8, %v4400_v57  ;;  %v4402_v57 = vld [vmem:[#allocation4 + $0x90] sm:$0xff]  ;;  %v4403_v8 = vld [vmem:[#allocation4 + $0x98] sm:$0xff] }
 0x499   : > { %v3653_v23 = vpop.f32.mrf.mxu3  ;;  %v8533_v59 = vpop.f32.mrf.mxu2 }
 0x49a   : > { %v8525_v22 = vadd.f32 %v3653_v23, %v3460_v30  ;;  %v8544_v31 = vpop.f32.mrf.mxu1 }
 0x4a1   : > { %v3655_v54 = vpop.f32.mrf.mxu3  ;;  %v3486_v23 = vpop.f32.mrf.mxu2 }
 0x4a2   : > { %v8531_v43 = vadd.f32 %v3655_v54, %v3462_v24  ;;  %v3467_v24 = vadd.f32 %v8434_v21, %v8142_v4  ;;  %v8550_v3 = vpop.f32.mrf.mxu1 }
 0x4a6   : > { %6180 = vmatmul.msk.bf16.gmra.mxu3 %vm948_vm3, %v4429_v7  ;;  %6163 = vmatmul.msk.bf16.gmra.mxu2 %vm948_vm3, %v8274_v12  ;;  %v4430_v12 = vpack.c.bf16 %v4403_v8, %v4402_v57  ;;  %v4405_v57 = vld [vmem:[#allocation4 + $0xb0] sm:$0xff] }
 0x4a7   : > { %6233 = vmatmul.msk.bf16.gmra.mxu1 %vm948_vm3, %v8413_v25 }
 0x4a9   : > { %v3658_v30 = vpop.f32.mrf.mxu3  ;;  %v4281_v51 = vpop.f32.mrf.mxu2 }
 0x4aa   : > { %v8542_v14 = vadd.f32 %v3658_v30, %v3465_v35  ;;  %v8561_v21 = vpop.f32.mrf.mxu1  ;;  %v3472_v30 = vadd.f32 %v8463_v1, %v8164_v16 }
 0x4b1   : > { %v3660_v54 = vpop.f32.mrf.mxu3  ;;  %v4283_v8 = vpop.f32.mrf.mxu2 }
 0x4b2   : > { %v8548_v7 = vadd.f32 %v3660_v54, %v3467_v24  ;;  %v4404_v54 = vld [vmem:[#allocation4 + $0xa8] sm:$0xff]  ;;  %v8574_v16 = vpop.f32.mrf.mxu1 }
 0x4b6   : > { %6181 = vmatmul.msk.bf16.gmra.mxu3 %vm948_vm3, %v4430_v12  ;;  %6164 = vmatmul.msk.bf16.gmra.mxu2 %vm948_vm3, %v8302_v26  ;;  %v4431_v12 = vpack.c.bf16 %v4405_v57, %v4404_v54 }
 0x4b7   : > { %6234 = vmatmul.msk.bf16.gmra.mxu1 %vm948_vm3, %v8440_v55 }
 0x4b9   : > { %v3663_v35 = vpop.f32.mrf.mxu3 }
 0x4ba   : > { %v8559_v4 = vadd.f32 %v3663_v35, %v3470_v38  ;;  %v3475_v38 = vadd.f32 %v8481_v41, %v8178_v0  ;;  %v3480_v41 = vadd.f32 %v8508_v62, %v8206_v19  ;;  %v9360_v19 = vld [vmem:[#allocation48_spill] sm:$0xff] }
 0x4c1   : > { %v3665_v24 = vpop.f32.mrf.mxu3 }
 0x4c2   : > { %v8565_v26 = vadd.f32 %v3665_v24, %v3472_v30  ;;  %v8580_v30 = vpop.f32.mrf.mxu2  ;;  %v3477_v24 = vadd.f32 %v8491_v11, %v8190_v40  ;;  %v9358_v11 = vld [vmem:[#allocation46_spill] sm:$0xff] }
 0x4c6   : > { %6182 = vmatmul.msk.bf16.gmra.mxu3 %vm948_vm3, %v4431_v12  ;;  %6165 = vmatmul.msk.bf16.gmra.mxu2 %vm948_vm3, %v8330_v5  ;;  %v4406_v5 = vld [vmem:[#allocation4 + $0xc0] sm:$0xff] }
 0x4c7   : > { %6235 = vmatmul.msk.bf16.gmra.mxu1 %vm948_vm3, %v8570_v58  ;;  %v4432_v12 = vpack.c.bf16 %v4407_v32, %v4406_v5  ;;  %v4409_v5 = vld [vmem:[#allocation4 + $0xe0] sm:$0xff] }
 0x4c9   : > { %v3668_v1 = vpop.f32.mrf.mxu3 }
 0x4ca   : > { %v8578_v35 = vadd.f32 %v3668_v1, %v3475_v38  ;;  %v8586_v0 = vpop.f32.mrf.mxu2  ;;  %v3482_v1 = vadd.f32 %v8521_v33, %v9358_v11  ;;  %v9362_v33 = vld [vmem:[#allocation51_spill] sm:$0xff] }
 0x4cb   : > { %v3487_v11 = vadd.f32 %v3486_v23, %v9362_v33 }
 0x4cc   : > { %9355 = vst [vmem:[#allocation79_spill] sm:$0xff] %v8578_v35 }
 0x4d1   : > { %v3670_v54 = vpop.f32.mrf.mxu3 }
 0x4d2   : > { %v8584_v57 = vadd.f32 %v3670_v54, %v3477_v24  ;;  %v8595_v40 = vpop.f32.mrf.mxu2  ;;  %v4408_v54 = vld [vmem:[#allocation4 + $0xd8] sm:$0xff] }
 0x4d4   : > { %9356 = vst [vmem:[#allocation80_spill] sm:$0xff] %v8584_v57  ;;  %v4410_v57 = vld [vmem:[#allocation4 + $0xf0] sm:$0xff] }
 0x4d6   : > { %6183 = vmatmul.msk.bf16.gmra.mxu3 %vm948_vm3, %v4432_v12  ;;  %6166 = vmatmul.msk.bf16.gmra.mxu2 %vm948_vm3, %v8359_v42  ;;  %v4433_v12 = vpack.c.bf16 %v4409_v5, %v4408_v54  ;;  %v3485_v42 = vadd.f32 %v8533_v59, %v9360_v19 }
 0x4d9   : > { %v3673_v15 = vpop.f32.mrf.mxu3 }
 0x4da   : > { %v8593_v38 = vadd.f32 %v3673_v15, %v3480_v41  ;;  %v8606_v41 = vpop.f32.mrf.mxu2 }
 0x4dc   : > { %9357 = vst [vmem:[#allocation81_spill] sm:$0xff] %v8593_v38 }
 0x4e1   : > { %v3675_v24 = vpop.f32.mrf.mxu3 }
 0x4e2   : > { %v8599_v32 = vadd.f32 %v3675_v24, %v3482_v1  ;;  %v4411_v1 = vld [vmem:[#allocation4 + $0xf8] sm:$0xff]  ;;  %v9363_v24 = vld [vmem:[#allocation13_spill] sm:$0xff] }
 0x4e3   : > { %v3909_v54 = vadd.f32 %v9363_v24, %v8260_v2  ;;  %v8625_v2 = vpop.f32.mrf.mxu1 }
 0x4e4   : > { %9359 = vst [vmem:[#allocation46_spill] sm:$0xff] %v8599_v32  ;;  %v9365_v32 = vld [vmem:[#allocation23_spill] sm:$0xff] }
 0x4e5   : > { %v4135_v59 = vadd.f32 %v9365_v32, %v3909_v54  ;;  %v4412_v54 = vld [vmem:[#allocation4 + $0x108] sm:$0xff] }
 0x4e6   : > { %6184 = vmatmul.msk.bf16.gmra.mxu3 %vm948_vm3, %v4433_v12  ;;  %6167 = vmatmul.msk.bf16.gmra.mxu2 %vm948_vm3, %v8386_v39  ;;  %v8615_v12 = vpop.f32.mrf.mxu2  ;;  %v4434_v39 = vpack.c.bf16 %v4411_v1, %v4410_v57  ;;  %v8631_v57 = vld [vmem:[%s9212_s6] ss:$0 sm:$0xff] }
 0x4e7   : > { %v4361_v19 = vadd.f32 %v4281_v51, %v4135_v59  ;;  %v9368_v59 = vld [vmem:[#allocation17_spill] sm:$0xff] }
 0x4e9   : > { %v3678_v62 = vpop.f32.mrf.mxu3 }
 0x4ea   : > { %v8608_v15 = vadd.f32 %v3678_v62, %v3485_v42  ;;  %v9366_v42 = vld [vmem:[#allocation14_spill] sm:$0xff] }
 0x4eb   : > { %v3910_v62 = vadd.f32 %v9366_v42, %v8272_v46 }
 0x4ec   : > { %9361 = vst [vmem:[#allocation48_spill] sm:$0xff] %v8608_v15  ;;  %v8623_v15 = vpop.f32.mrf.mxu0 }
 0x4ee   : > { %v8633_v32 = vpop.f32.mrf.mxu2 }
 0x4f1   : > { %v3680_v38 = vpop.f32.mrf.mxu3 }
 0x4f2   : > { %v8613_v5 = vadd.f32 %v3680_v38, %v3487_v11 }
 0x4f4   : > { %9364 = vst [vmem:[#allocation51_spill] sm:$0xff] %v8613_v5  ;;  %v8641_v35 = vpop.f32.mrf.mxu0 }
 0x4f6   : > { %6185 = vmatmul.msk.bf16.gmra.mxu3 %vm948_vm3, %v4434_v39  ;;  %6168 = vmatmul.msk.bf16.gmra.mxu2 %vm948_vm3, %v8413_v25  ;;  %v9367_v25 = vld [vmem:[#allocation25_spill] sm:$0xff]  ;;  %v4413_v39 = vld [vmem:[#allocation4 + $0x110] sm:$0xff] }
 0x4f7   : > { %v4136_v51 = vadd.f32 %v9367_v25, %v3910_v62  ;;  %v4435_v5 = vpack.c.bf16 %v4413_v39, %v4412_v54  ;;  %v8643_v62 = vpop.f32.mrf.mxu1 }
 0x4f9   : > { %v4508_v23 = vpop.f32.mrf.mxu3  ;;  %v4362_v1 = vadd.f32 %v4283_v8, %v4136_v51 }
 0x4fa   : > { %v4588_v33 = vadd.f32 %v4508_v23, %v4361_v19 }
 0x4fc   : > { %v4814_v38 = vadd.f32 %v8421_v61, %v4588_v33  ;;  %v3911_v61 = vadd.f32 %v9368_v59, %v8288_v27  ;;  %v8650_v27 = vpop.f32.mrf.mxu2  ;;  %v9371_v59 = vld [vmem:[#allocation37_spill] sm:$0xff] }
 0x4fe   : > { %v5040_v11 = vadd.f32 %v8517_v18, %v4814_v38  ;;  %v9369_v18 = vld [vmem:[#allocation27_spill] sm:$0xff] }
 0x4ff   : > { %v4137_v8 = vadd.f32 %v9369_v18, %v3911_v61  ;;  %v4414_v18 = vld [vmem:[#allocation4 + $0x120] sm:$0xff] }
 0x500   : > { %v5076_v46 = vadd.f32 %v8631_v57, %v5040_v11  ;;  %v9370_v11 = vld [vmem:[#allocation15_spill] sm:$0xff] }
 0x501   : > { %v4510_v24 = vpop.f32.mrf.mxu3  ;;  %v4363_v25 = vadd.f32 %v8580_v30, %v4137_v8  ;;  %v8661_v30 = vpop.f32.mrf.mxu1  ;;  %v9372_v8 = vld [vmem:[#allocation20_spill] sm:$0xff] }
 0x502   : > { %v5108_v19 = vsub.f32 0.0, %v5076_v46  ;;  %v4589_v23 = vadd.f32 %v4510_v24, %v4362_v1  ;;  %v3912_v1 = vadd.f32 %v9370_v11, %v8300_v47 }
 0x504   : > { %v5140_v42 = vmul.f32 1.442695, %v5108_v19  ;;  %v4815_v33 = vadd.f32 %v8436_v56, %v4589_v23  ;;  %v4138_v61 = vadd.f32 %v9371_v59, %v3912_v1  ;;  %v8659_v19 = vpop.f32.mrf.mxu0 }
 0x506   : > { %6302 = vpow2.f32 %v5140_v42  ;;  %v5041_v38 = vadd.f32 %v8529_v37, %v4815_v33  ;;  %6186 = vmatmul.msk.bf16.gmra.mxu3 %vm948_vm3, %v4435_v5  ;;  %6169 = vmatmul.msk.bf16.gmra.mxu2 %vm948_vm3, %v8440_v55  ;;  %v4364_v23 = vadd.f32 %v8586_v0, %v4138_v61  ;;  %v8665_v42 = vpop.f32.mrf.mxu2  ;;  %v9373_v0 = vld [vmem:[#allocation41_spill] sm:$0xff]  ;;  %v9374_v61 = vld [vmem:[#allocation39_spill] sm:$0xff] }
 0x508   : > { %v5077_v56 = vadd.f32 %v8631_v57, %v5041_v38  ;;  %v3913_v38 = vadd.f32 %v9372_v8, %v8316_v36 }
 0x509   : > { %v4513_v51 = vpop.f32.mrf.mxu3 }
 0x50a   : > { %v5109_v46 = vsub.f32 0.0, %v5077_v56  ;;  %v4590_v24 = vadd.f32 %v4513_v51, %v4363_v25 }
 0x50c   : > { %v6303_v54 = vpop.eup %6302  ;;  %v5142_v39 = vmul.f32 1.442695, %v5109_v46  ;;  %v4816_v37 = vadd.f32 %v8457_v60, %v4590_v24  ;;  %v4415_v60 = vld [vmem:[#allocation4 + $0x128] sm:$0xff] }
 0x50d   : > { %v5204_v5 = vadd.f32 1.0, %v6303_v54  ;;  %v4436_v1 = vpack.c.bf16 %v4415_v60, %v4414_v18  ;;  %v4139_v54 = vadd.f32 %v9373_v0, %v3913_v38  ;;  %v8685_v18 = vpop.f32.mrf.mxu1 }
 0x50e   : > { %6304 = vpow2.f32 %v5142_v39  ;;  %v5042_v55 = vadd.f32 %v8544_v31, %v4816_v37  ;;  %v8687_v38 = vpop.f32.mrf.mxu2 }
 0x50f   : > { %6306 = vrcp.f32 %v5204_v5  ;;  %v4365_v36 = vadd.f32 %v8595_v40, %v4139_v54  ;;  %vm5241_vm7 = vweird.f32 %v5204_v5 }
 0x510   : > { %v5078_v47 = vadd.f32 %v8631_v57, %v5042_v55  ;;  %v3914_v55 = vadd.f32 %v9374_v61, %v8328_v20  ;;  %v9376_v61 = vld [vmem:[#allocation21_spill] sm:$0xff] }
 0x511   : > { %v4515_v33 = vpop.f32.mrf.mxu3 }
 0x512   : > { %v5110_v25 = vsub.f32 0.0, %v5078_v47  ;;  %v4591_v56 = vadd.f32 %v4515_v33, %v4364_v23  ;;  %v8682_v23 = vpop.f32.mrf.mxu0  ;;  %v5245_v47 = vand.u32 2147483647, %v5204_v5  ;;  %v5247_v33 = vand.u32 2147483648, %v5204_v5 }
 0x514   : > { %v6305_v31 = vpop.eup %6304  ;;  %v5144_v51 = vmul.f32 1.442695, %v5110_v25  ;;  %v4817_v11 = vadd.f32 %v8467_v28, %v4591_v56  ;;  %vm5246_vm10 = vcmp.eq.f32.partialorder %v5245_v47, 8.507059e+37 }
 0x515   : > { %v6307_v46 = vpop.eup %6306  ;;  %v8670_v24 = vadd.f32 1.0, %v6305_v31 }
 0x516   : > { %v5237_v39 = vmul.f32 %v6307_v46, %v5204_v5  ;;  %6308 = vpow2.f32 %v5144_v51  ;;  %v5043_v37 = vadd.f32 %v8550_v3, %v4817_v11  ;;  %6187 = vmatmul.msk.bf16.gmra.mxu3 %vm948_vm3, %v4436_v1  ;;  %6170 = vmatmul.msk.bf16.gmra.mxu2 %vm948_vm3, %v8570_v58  ;;  %vm5242_vm6 = vweird.f32 %v6307_v46  ;;  %v9375_v51 = vld [vmem:[#allocation40_spill] sm:$0xff] }
 0x517   : > { %6310 = vrcp.f32 %v8670_v24  ;;  %v4140_v11 = vadd.f32 %v9375_v51, %v3914_v55  ;;  %vm5243_vm8 = vmor %vm5241_vm7, %vm5242_vm6  ;;  %v5248_v1 = vor.u32 1.1754944e-38, %v5247_v33  ;;  %v3915_v55 = vadd.f32 %v9376_v61, %v8346_v34  ;;  %v9377_v51 = vld [vmem:[#allocation18_spill] sm:$0xff] }
 0x518   : > { %v5238_v28 = vsub.f32 1.0, %v5237_v39  ;;  %v5079_v59 = vadd.f32 %v8631_v57, %v5043_v37  ;;  %v5262_v47 = vand.u32 2147483648, %v8670_v24  ;;  %vm5256_vm12 = vweird.f32 %v8670_v24 }
 0x519   : > { %v4518_v3 = vpop.f32.mrf.mxu3  ;;  %v4366_v39 = vadd.f32 %v8606_v41, %v4140_v11  ;;  %v4141_v11 = vadd.f32 %v9377_v51, %v3915_v55 }
 0x51a   : > { %v5239_v60 = vmul.f32 %v6307_v46, %v5238_v28  ;;  %v5111_v58 = vsub.f32 0.0, %v5079_v59  ;;  %v4592_v8 = vadd.f32 %v4518_v3, %v4365_v36  ;;  %v4416_v28 = vld [vmem:[#allocation4 + $0x138] sm:$0xff]  ;;  %v4417_v59 = vld [vmem:[#allocation4 + $0x140] sm:$0xff] }
 0x51c   : > { %v6309_v40 = vpop.eup %6308  ;;  %v5240_v25 = vadd.f32 %v6307_v46, %v5239_v60  ;;  %v5146_v56 = vmul.f32 1.442695, %v5111_v58  ;;  %v4818_v20 = vadd.f32 %v8485_v44, %v4592_v8  ;;  %v8709_v58 = vpop.f32.mrf.mxu0  ;;  %v4437_v8 = vpack.c.bf16 %v4417_v59, %v4416_v28  ;;  %v9378_v59 = vld [vmem:[#allocation22_spill] sm:$0xff] }
 0x51d   : > { %v6311_v31 = vpop.eup %6310  ;;  %v8696_v0 = vadd.f32 1.0, %v6309_v40 }
 0x51e   : > { %v5244_v54 = vsel %vm5243_vm8, %v6307_v46, %v5240_v25  ;;  %v5252_v5 = vmul.f32 %v6311_v31, %v8670_v24  ;;  %6312 = vpow2.f32 %v5146_v56  ;;  %v5044_v36 = vadd.f32 %v8561_v21, %v4818_v20  ;;  %v8711_v21 = vpop.f32.mrf.mxu1 }
 0x51f   : > { %v5249_v44 = vsel %vm5246_vm10, %v5248_v1, %v5244_v54  ;;  %6314 = vrcp.f32 %v8696_v0  ;;  %v5260_v46 = vand.u32 2147483647, %v8670_v24  ;;  %vm5257_vm11 = vweird.f32 %v6311_v31 }
 0x520   : > { %5717 = vst.msk [vmem:[%s8693_s30] sm:$0xff] %vm5716_vm9, %v5249_v44  ;;  %v5253_v37 = vsub.f32 1.0, %v5252_v5  ;;  %v5080_v60 = vadd.f32 %v8631_v57, %v5044_v36  ;;  %vm5258_vm13 = vmor %vm5256_vm12, %vm5257_vm11  ;;  %v5263_v1 = vor.u32 1.1754944e-38, %v5262_v47  ;;  %v8718_v5 = vpop.f32.mrf.mxu2  ;;  %v5275_v61 = vand.u32 2147483647, %v8696_v0 }
 0x521   : > { %v4520_v33 = vpop.f32.mrf.mxu3  ;;  %vm5261_vm14 = vcmp.eq.f32.partialorder %v5260_v46, 8.507059e+37  ;;  %v5277_v55 = vand.u32 2147483648, %v8696_v0  ;;  %vm5271_vm0 = vweird.f32 %v8696_v0 }
 0x522   : > { %v5254_v3 = vmul.f32 %v6311_v31, %v5253_v37  ;;  %v4593_v41 = vadd.f32 %v4520_v33, %v4366_v39  ;;  %v5112_v34 = vsub.f32 0.0, %v5080_v60  ;;  %vm5276_vm2 = vcmp.eq.f32.partialorder %v5275_v61, 8.507059e+37 }
 0x524   : > { %v6313_v40 = vpop.eup %6312  ;;  %v5255_v25 = vadd.f32 %v6311_v31, %v5254_v3  ;;  %v4819_v56 = vadd.f32 %v8500_v45, %v4593_v41  ;;  %v5148_v37 = vmul.f32 1.442695, %v5112_v34  ;;  %v4367_v45 = vadd.f32 %v8615_v12, %v4141_v11 }
 0x525   : > { %v6315_v20 = vpop.eup %6314  ;;  %v8716_v54 = vadd.f32 1.0, %v6313_v40 }
 0x526   : > { %v5259_v44 = vsel %vm5258_vm13, %v6311_v31, %v5255_v25  ;;  %v5267_v39 = vmul.f32 %v6315_v20, %v8696_v0  ;;  %6188 = vmatmul.msk.bf16.gmra.mxu3 %vm948_vm3, %v4437_v8  ;;  %v5045_v28 = vadd.f32 %v8574_v16, %v4819_v56  ;;  %v3916_v31 = vadd.f32 %v9378_v59, %v8355_v48  ;;  %v8734_v8 = vpop.f32.mrf.mxu0  ;;  %v9379_v48 = vld [vmem:[#allocation28_spill] sm:$0xff]  ;;  %v8737_v56 = vpop.f32.mrf.mxu1 }
 0x527   : > { %v5264_v24 = vsel %vm5261_vm14, %v5263_v1, %v5259_v44  ;;  %6316 = vrcp.f32 %v8716_v54  ;;  %vm5272_vm15 = vweird.f32 %v6315_v20  ;;  %v5278_v25 = vor.u32 1.1754944e-38, %v5277_v55 }
 0x528   : > { %5718 = vst.msk [vmem:[%s8693_s30 + $0x8] sm:$0xff] %vm5716_vm9, %v5264_v24  ;;  %v5268_v36 = vsub.f32 1.0, %v5267_v39  ;;  %6318 = vpow2.f32 %v5148_v37  ;;  %v5081_v33 = vadd.f32 %v8631_v57, %v5045_v28  ;;  %v4142_v40 = vadd.f32 %v9379_v48, %v3916_v31  ;;  %vm5273_vm1 = vmor %vm5271_vm0, %vm5272_vm15 }
 0x529   : > { %v4523_v46 = vpop.f32.mrf.mxu3  ;;  %v5290_v59 = vand.u32 2147483647, %v8716_v54  ;;  %v5292_v31 = vand.u32 2147483648, %v8716_v54  ;;  %vm5286_vm5 = vweird.f32 %v8716_v54 }
 0x52a   : > { %v5269_v47 = vmul.f32 %v6315_v20, %v5268_v36  ;;  %v4594_v3 = vadd.f32 %v4523_v46, %v4367_v45  ;;  %v5113_v60 = vsub.f32 0.0, %v5081_v33  ;;  %v4368_v37 = vadd.f32 %v8633_v32, %v4142_v40  ;;  %v4418_v45 = vld [vmem:[#allocation4 + $0x150] sm:$0xff]  ;;  %v4419_v36 = vld [vmem:[#allocation4 + $0x158] sm:$0xff] }
 0x52b   : > { %v4438_v46 = vpack.c.bf16 %v4419_v36, %v4418_v45  ;;  %vm5291_vm7 = vcmp.eq.f32.partialorder %v5290_v59, 8.507059e+37 }
 0x52c   : > { %v5270_v12 = vadd.f32 %v6315_v20, %v5269_v47  ;;  %v4820_v41 = vadd.f32 %v8623_v15, %v4594_v3  ;;  %v5150_v1 = vmul.f32 1.442695, %v5113_v60  ;;  %v8742_v15 = vpop.f32.mrf.mxu2  ;;  %v5293_v60 = vor.u32 1.1754944e-38, %v5292_v31 }
 0x52d   : > { %v6317_v16 = vpop.eup %6316 }
 0x52e   : > { %v6319_v34 = vpop.eup %6318  ;;  %v5274_v51 = vsel %vm5273_vm1, %v6315_v20, %v5270_v12  ;;  %v5282_v11 = vmul.f32 %v6317_v16, %v8716_v54  ;;  %v5046_v39 = vadd.f32 %v8625_v2, %v4820_v41  ;;  %6320 = vpow2.f32 %v5150_v1  ;;  %v9380_v20 = vld [vmem:[#allocation24_spill] sm:$0xff] }
 0x52f   : > { %v5279_v0 = vsel %vm5276_vm2, %v5278_v25, %v5274_v51  ;;  %v8740_v44 = vadd.f32 1.0, %v6319_v34  ;;  %v3917_v28 = vadd.f32 %v9380_v20, %v8373_v52  ;;  %vm5287_vm4 = vweird.f32 %v6317_v16  ;;  %v9381_v52 = vld [vmem:[#allocation31_spill] sm:$0xff]  ;;  %v8759_v51 = vpop.f32.mrf.mxu0 }
 0x530   : > { %5719 = vst.msk [vmem:[%s8693_s30 + $0x10] sm:$0xff] %vm5716_vm9, %v5279_v0  ;;  %v5283_v24 = vsub.f32 1.0, %v5282_v11  ;;  %v5082_v2 = vadd.f32 %v8631_v57, %v5046_v39  ;;  %vm5288_vm6 = vmor %vm5286_vm5, %vm5287_vm4 }
 0x531   : > { %6322 = vrcp.f32 %v8740_v44  ;;  %v4525_v61 = vpop.f32.mrf.mxu3  ;;  %v4143_v12 = vadd.f32 %v9381_v52, %v3917_v28  ;;  %v5307_v28 = vand.u32 2147483648, %v8740_v44  ;;  %vm5301_vm10 = vweird.f32 %v8740_v44 }
 0x532   : > { %v5284_v55 = vmul.f32 %v6317_v16, %v5283_v24  ;;  %v4595_v32 = vadd.f32 %v4525_v61, %v4368_v37  ;;  %v5114_v33 = vsub.f32 0.0, %v5082_v2 }
 0x533   : > { %v4369_v1 = vadd.f32 %v8650_v27, %v4143_v12  ;;  %v5305_v27 = vand.u32 2147483647, %v8740_v44 }
 0x534   : > { %v5285_v47 = vadd.f32 %v6317_v16, %v5284_v55  ;;  %v4821_v3 = vadd.f32 %v8641_v35, %v4595_v32  ;;  %v6321_v41 = vpop.eup %6320  ;;  %v5152_v40 = vmul.f32 1.442695, %v5114_v33  ;;  %v8763_v35 = vpop.f32.mrf.mxu1  ;;  %v9383_v55 = vld [vmem:[#allocation32_spill] sm:$0xff] }
 0x535   : > { %v8761_v11 = vadd.f32 1.0, %v6321_v41  ;;  %v8773_v37 = vpop.f32.mrf.mxu2  ;;  %vm5306_vm12 = vcmp.eq.f32.partialorder %v5305_v27, 8.507059e+37  ;;  %v4420_v41 = vld [vmem:[#allocation4 + $0x168] sm:$0xff] }
 0x536   : > { %v5289_v48 = vsel %vm5288_vm6, %v6317_v16, %v5285_v47  ;;  %v5047_v25 = vadd.f32 %v8643_v62, %v4821_v3  ;;  %6189 = vmatmul.msk.bf16.gmra.mxu3 %vm948_vm3, %v4438_v46  ;;  %6324 = vpow2.f32 %v5152_v40  ;;  %v9382_v62 = vld [vmem:[#allocation26_spill] sm:$0xff]  ;;  %v5308_v3 = vor.u32 1.1754944e-38, %v5307_v28  ;;  %v9385_v27 = vld [vmem:[#allocation33_spill] sm:$0xff] }
 0x537   : > { %v6323_v34 = vpop.eup %6322  ;;  %v5294_v54 = vsel %vm5291_vm7, %v5293_v60, %v5289_v48  ;;  %v3918_v39 = vadd.f32 %v9382_v62, %v8382_v53  ;;  %6326 = vrcp.f32 %v8761_v11  ;;  %v4421_v48 = vld [vmem:[#allocation4 + $0x170] sm:$0xff]  ;;  %v5322_v62 = vand.u32 2147483648, %v8761_v11 }
 0x538   : > { %5720 = vst.msk [vmem:[%s8693_s30 + $0x18] sm:$0xff] %vm5716_vm9, %v5294_v54  ;;  %v5297_v16 = vmul.f32 %v6323_v34, %v8740_v44  ;;  %v5083_v0 = vadd.f32 %v8631_v57, %v5047_v25  ;;  %vm5302_vm8 = vweird.f32 %v6323_v34  ;;  %v9384_v44 = vld [vmem:[#allocation11_spill] sm:$0xff]  ;;  %vm5316_vm14 = vweird.f32 %v8761_v11 }
 0x539   : > { %v4528_v24 = vpop.f32.mrf.mxu3  ;;  %v4144_v2 = vadd.f32 %v9383_v55, %v3918_v39  ;;  %vm5303_vm11 = vmor %vm5301_vm10, %vm5302_vm8  ;;  %v3919_v40 = vadd.f32 %v9384_v44, %v8400_v10  ;;  %v4439_v10 = vpack.c.bf16 %v4421_v48, %v4420_v41 }
 0x53a   : > { %v5298_v45 = vsub.f32 1.0, %v5297_v16  ;;  %v5115_v36 = vsub.f32 0.0, %v5083_v0  ;;  %v4596_v20 = vadd.f32 %v4528_v24, %v4369_v1  ;;  %v5320_v0 = vand.u32 2147483647, %v8761_v11 }
 0x53b   : > { %v4370_v33 = vadd.f32 %v8665_v42, %v4144_v2  ;;  %v4145_v28 = vadd.f32 %v9385_v27, %v3919_v40  ;;  %v4422_v27 = vld [vmem:[#allocation4 + $0x180] sm:$0xff] }
 0x53c   : > { %v5299_v59 = vmul.f32 %v6323_v34, %v5298_v45  ;;  %v5154_v31 = vmul.f32 1.442695, %v5115_v36  ;;  %v4822_v61 = vadd.f32 %v8659_v19, %v4596_v20  ;;  %v6325_v53 = vpop.eup %6324  ;;  %v8791_v54 = vpop.f32.mrf.mxu1  ;;  %vm5321_vm0 = vcmp.eq.f32.partialorder %v5320_v0, 8.507059e+37 }
 0x53d   : > { %v6327_v47 = vpop.eup %6326  ;;  %v8782_v52 = vadd.f32 1.0, %v6325_v53  ;;  %v8797_v39 = vpop.f32.mrf.mxu2  ;;  %v4371_v2 = vadd.f32 %v8687_v38, %v4145_v28  ;;  %v5323_v53 = vor.u32 1.1754944e-38, %v5322_v62  ;;  %v4423_v28 = vld [vmem:[#allocation4 + $0x188] sm:$0xff] }
 0x53e   : > { %v5300_v32 = vadd.f32 %v6323_v34, %v5299_v59  ;;  %6328 = vpow2.f32 %v5154_v31  ;;  %v5048_v46 = vadd.f32 %v8661_v30, %v4822_v61  ;;  %v5312_v19 = vmul.f32 %v6327_v47, %v8761_v11  ;;  %v8788_v30 = vpop.f32.mrf.mxu0  ;;  %v9386_v11 = vld [vmem:[#allocation38_spill] sm:$0xff] }
 0x53f   : > { %6330 = vrcp.f32 %v8782_v52  ;;  %vm5317_vm13 = vweird.f32 %v6327_v47  ;;  %v5335_v41 = vand.u32 2147483647, %v8782_v52  ;;  %vm5331_vm2 = vweird.f32 %v8782_v52 }
 0x540   : > { %v5304_v12 = vsel %vm5303_vm11, %v6323_v34, %v5300_v32  ;;  %v5084_v60 = vadd.f32 %v8631_v57, %v5048_v46  ;;  %v5313_v34 = vsub.f32 1.0, %v5312_v19  ;;  %vm5318_vm15 = vmor %vm5316_vm14, %vm5317_vm13 }
 0x541   : > { %v5309_v25 = vsel %vm5306_vm12, %v5308_v3, %v5304_v12  ;;  %v4530_v42 = vpop.f32.mrf.mxu3  ;;  %vm5336_vm5 = vcmp.eq.f32.partialorder %v5335_v41, 8.507059e+37 }
 0x542   : > { %5721 = vst.msk [vmem:[%s8693_s30 + $0x20] sm:$0xff] %vm5716_vm9, %v5309_v25  ;;  %v5116_v1 = vsub.f32 0.0, %v5084_v60  ;;  %v4597_v16 = vadd.f32 %v4530_v42, %v4370_v33  ;;  %v5314_v45 = vmul.f32 %v6327_v47, %v5313_v34  ;;  %v3920_v33 = vadd.f32 %v9386_v11, %v8411_v29  ;;  %v9387_v34 = vld [vmem:[#allocation35_spill] sm:$0xff] }
 0x544   : > { %v6329_v24 = vpop.eup %6328  ;;  %v5156_v36 = vmul.f32 1.442695, %v5116_v1  ;;  %v4823_v20 = vadd.f32 %v8682_v23, %v4597_v16  ;;  %v5315_v31 = vadd.f32 %v6327_v47, %v5314_v45  ;;  %v8818_v44 = vpop.f32.mrf.mxu1  ;;  %v4146_v1 = vadd.f32 %v9387_v34, %v3920_v33 }
 0x545   : > { %v8801_v59 = vadd.f32 1.0, %v6329_v24  ;;  %v6331_v55 = vpop.eup %6330  ;;  %v8822_v16 = vpop.f32.mrf.mxu2 }
 0x546   : > { %6332 = vpow2.f32 %v5156_v36  ;;  %v5049_v61 = vadd.f32 %v8685_v18, %v4823_v20  ;;  %6190 = vmatmul.msk.bf16.gmra.mxu3 %vm948_vm3, %v4439_v10  ;;  %v5319_v23 = vsel %vm5318_vm15, %v6327_v47, %v5315_v31  ;;  %v5327_v32 = vmul.f32 %v6331_v55, %v8782_v52  ;;  %v8814_v60 = vpop.f32.mrf.mxu0  ;;  %v9388_v31 = vld [vmem:[#allocation16_spill] sm:$0xff] }
 0x547   : > { %6334 = vrcp.f32 %v8801_v59  ;;  %v5324_v3 = vsel %vm5321_vm0, %v5323_v53, %v5319_v23  ;;  %v5337_v47 = vand.u32 2147483648, %v8782_v52  ;;  %vm5332_vm1 = vweird.f32 %v6331_v55 }
 0x548   : > { %v5085_v46 = vadd.f32 %v8631_v57, %v5049_v61  ;;  %5722 = vst.msk [vmem:[%s8693_s30 + $0x28] sm:$0xff] %vm5716_vm9, %v5324_v3  ;;  %v5328_v12 = vsub.f32 1.0, %v5327_v32  ;;  %v4372_v24 = vadd.f32 %v8718_v5, %v4146_v1  ;;  %vm5333_vm4 = vmor %vm5331_vm2, %vm5332_vm1  ;;  %v3921_v52 = vadd.f32 %v9388_v31, %v8427_v9 }
 0x549   : > { %v4533_v18 = vpop.f32.mrf.mxu3  ;;  %v5338_v45 = vor.u32 1.1754944e-38, %v5337_v47  ;;  %v5352_v53 = vand.u32 2147483648, %v8801_v59  ;;  %vm5346_vm7 = vweird.f32 %v8801_v59 }
 0x54a   : > { %v5117_v19 = vsub.f32 0.0, %v5085_v46  ;;  %v4598_v38 = vadd.f32 %v4533_v18, %v4371_v2  ;;  %v5329_v40 = vmul.f32 %v6331_v55, %v5328_v12  ;;  %v5350_v2 = vand.u32 2147483647, %v8801_v59  ;;  %v9389_v12 = vld [vmem:[#allocation12_spill] sm:$0xff] }
 0x54b   : > { %v4440_v46 = vpack.c.bf16 %v4423_v28, %v4422_v27 }
 0x54c   : > { %v6333_v48 = vpop.eup %6332  ;;  %v5158_v25 = vmul.f32 1.442695, %v5117_v19  ;;  %v4824_v29 = vadd.f32 %v8709_v58, %v4598_v38  ;;  %v5330_v62 = vadd.f32 %v6331_v55, %v5329_v40  ;;  %v4147_v19 = vadd.f32 %v9389_v12, %v3921_v52  ;;  %v8845_v47 = vpop.f32.mrf.mxu1  ;;  %v4651_v52 = vld [vmem:[#allocation4 + $0x1a1] sm:$0xff] }
 0x54d   : > { %v6335_v42 = vpop.eup %6334  ;;  %v8824_v0 = vadd.f32 1.0, %v6333_v48  ;;  %v5353_v38 = vor.u32 1.1754944e-38, %v5352_v53  ;;  %vm5351_vm10 = vcmp.eq.f32.partialorder %v5350_v2, 8.507059e+37  ;;  %v9392_v2 = vld [vmem:[#allocation42_spill] sm:$0xff] }
 0x54e   : > { %v5342_v10 = vmul.f32 %v6335_v42, %v8801_v59  ;;  %6336 = vpow2.f32 %v5158_v25  ;;  %v5334_v58 = vsel %vm5333_vm4, %v6331_v55, %v5330_v62  ;;  %v5050_v20 = vadd.f32 %v8711_v21, %v4824_v29  ;;  %v8840_v18 = vpop.f32.mrf.mxu0  ;;  %v8849_v25 = vpop.f32.mrf.mxu2  ;;  %v9391_v62 = vld [vmem:[#allocation29_spill] sm:$0xff] }
 0x54f   : > { %6338 = vrcp.f32 %v8824_v0  ;;  %v5339_v61 = vsel %vm5336_vm5, %v5338_v45, %v5334_v58  ;;  %vm5347_vm6 = vweird.f32 %v6335_v42  ;;  %v4373_v29 = vadd.f32 %v8742_v15, %v4147_v19  ;;  %v4650_v15 = vld [vmem:[#allocation4 + $0x199] sm:$0xff] }
 0x550   : > { %v5343_v36 = vsub.f32 1.0, %v5342_v10  ;;  %5723 = vst.msk [vmem:[%s8693_s30 + $0x30] sm:$0xff] %vm5716_vm9, %v5339_v61  ;;  %v5086_v55 = vadd.f32 %v8631_v57, %v5050_v20  ;;  %vm5348_vm8 = vmor %vm5346_vm7, %vm5347_vm6  ;;  %v5367_v45 = vand.u32 2147483648, %v8824_v0  ;;  %vm5361_vm12 = vweird.f32 %v8824_v0 }
 0x551   : > { %v4535_v5 = vpop.f32.mrf.mxu3 }
 0x552   : > { %v5344_v23 = vmul.f32 %v6335_v42, %v5343_v36  ;;  %v4599_v32 = vadd.f32 %v4535_v5, %v4372_v24  ;;  %v5118_v33 = vsub.f32 0.0, %v5086_v55  ;;  %v5365_v24 = vand.u32 2147483647, %v8824_v0  ;;  %v4876_v55 = vld [vmem:[#allocation4 + $0x19a] sm:$0xff] }
 0x553   : > { %v5368_v5 = vor.u32 1.1754944e-38, %v5367_v45 }
 0x554   : > { %v6337_v21 = vpop.eup %6336  ;;  %v5345_v11 = vadd.f32 %v6335_v42, %v5344_v23  ;;  %v4825_v9 = vadd.f32 %v8734_v8, %v4599_v32  ;;  %v5160_v59 = vmul.f32 1.442695, %v5118_v33  ;;  %v4667_v23 = vpack.c.bf16 %v4651_v52, %v4650_v15  ;;  %v4877_v32 = vld [vmem:[#allocation4 + $0x1a2] sm:$0xff] }
 0x555   : > { %v6339_v3 = vpop.eup %6338  ;;  %v8843_v41 = vadd.f32 1.0, %v6337_v21  ;;  %vm5366_vm14 = vcmp.eq.f32.partialorder %v5365_v24, 8.507059e+37 }
 0x556   : > { %v5349_v48 = vsel %vm5348_vm8, %v6335_v42, %v5345_v11  ;;  %v5357_v40 = vmul.f32 %v6339_v3, %v8824_v0  ;;  %6191 = vmatmul.msk.bf16.gmra.mxu3 %vm948_vm3, %v4440_v46  ;;  %v5051_v1 = vadd.f32 %v8737_v56, %v4825_v9  ;;  %v9390_v42 = vld [vmem:[#allocation73_spill] sm:$0xff]  ;;  %vm5362_vm11 = vweird.f32 %v6339_v3  ;;  %v4424_v0 = vld [vmem:[#allocation4 + $0x198] sm:$0xff]  ;;  %v8865_v12 = vpop.f32.mrf.mxu0  ;;  %6214 = vmatmul.msk.bf16.gmra.mxu0 %vm948_vm3, %v4667_v23 }
 0x557   : > { %v5354_v8 = vsel %vm5351_vm10, %v5353_v38, %v5349_v48  ;;  %6340 = vrcp.f32 %v8843_v41  ;;  %v3922_v10 = vadd.f32 %v9391_v62, %v9390_v42  ;;  %vm5363_vm13 = vmor %vm5361_vm12, %vm5362_vm11  ;;  %v4425_v9 = vld [vmem:[#allocation4 + $0x1a0] sm:$0xff]  ;;  %v4893_v48 = vpack.c.bf16 %v4877_v32, %v4876_v55  ;;  %v8880_v42 = vpop.f32.mrf.mxu2 }
 0x558   : > { %5724 = vst.msk [vmem:[%s8693_s30 + $0x38] sm:$0xff] %vm5716_vm9, %v5354_v8  ;;  %v5358_v34 = vsub.f32 1.0, %v5357_v40  ;;  %6342 = vpow2.f32 %v5160_v59  ;;  %v5087_v20 = vadd.f32 %v8631_v57, %v5051_v1  ;;  %v9393_v40 = vld [vmem:[#allocation30_spill] sm:$0xff]  ;;  %v5382_v1 = vand.u32 2147483648, %v8843_v41 }
 0x559   : > { %v4538_v58 = vpop.f32.mrf.mxu3  ;;  %v4148_v53 = vadd.f32 %v9392_v2, %v3922_v10  ;;  %v3923_v59 = vadd.f32 %v9393_v40, %v8454_v6  ;;  %v4441_v62 = vpack.c.bf16 %v4425_v9, %v4424_v0  ;;  %6236 = vmatmul.msk.bf16.gmra.mxu1 %vm948_vm3, %v4893_v48  ;;  %vm5376_vm0 = vweird.f32 %v8843_v41 }
 0x55a   : > { %v5359_v36 = vmul.f32 %v6339_v3, %v5358_v34  ;;  %v4600_v27 = vadd.f32 %v4538_v58, %v4373_v29  ;;  %v5119_v31 = vsub.f32 0.0, %v5087_v20  ;;  %v5380_v34 = vand.u32 2147483647, %v8843_v41 }
 0x55b   : > { %v4374_v8 = vadd.f32 %v8773_v37, %v4148_v53 }
 0x55c   : > { %v5360_v28 = vadd.f32 %v6339_v3, %v5359_v36  ;;  %v4826_v56 = vadd.f32 %v8759_v51, %v4600_v27  ;;  %v5162_v33 = vmul.f32 1.442695, %v5119_v31  ;;  %v9394_v36 = vld [vmem:[#allocation47_spill] sm:$0xff]  ;;  %v5383_v27 = vor.u32 1.1754944e-38, %v5382_v1 }
 0x55d   : > { %v6341_v61 = vpop.eup %6340  ;;  %v4149_v20 = vadd.f32 %v9394_v36, %v3923_v59  ;;  %vm5381_vm2 = vcmp.eq.f32.partialorder %v5380_v34, 8.507059e+37 }
 0x55e   : > { %v6343_v46 = vpop.eup %6342  ;;  %v5364_v21 = vsel %vm5363_vm13, %v6339_v3, %v5360_v28  ;;  %v5372_v11 = vmul.f32 %v6341_v61, %v8843_v41  ;;  %v5052_v38 = vadd.f32 %v8763_v35, %v4826_v56  ;;  %v8873_v3 = vpop.f32.mrf.mxu1  ;;  %6344 = vpow2.f32 %v5162_v33 }
 0x55f   : > { %v5369_v51 = vsel %vm5366_vm14, %v5368_v5, %v5364_v21  ;;  %v8867_v19 = vadd.f32 1.0, %v6343_v46  ;;  %vm5377_vm15 = vweird.f32 %v6341_v61  ;;  %v4375_v41 = vadd.f32 %v8797_v39, %v4149_v20  ;;  %v8899_v55 = vpop.f32.mrf.mxu0  ;;  %v8906_v0 = vpop.f32.mrf.mxu2 }
 0x560   : > { %5725 = vst.msk [vmem:[%s8693_s30 + $0x40] sm:$0xff] %vm5716_vm9, %v5369_v51  ;;  %v5373_v29 = vsub.f32 1.0, %v5372_v11  ;;  %v5088_v37 = vadd.f32 %v8631_v57, %v5052_v38  ;;  %vm5378_vm1 = vmor %vm5376_vm0, %vm5377_vm15  ;;  %v9396_v38 = vld [vmem:[#allocation50_spill] sm:$0xff] }
 0x561   : > { %6346 = vrcp.f32 %v8867_v19  ;;  %v4540_v35 = vpop.f32.mrf.mxu3  ;;  %v5395_v11 = vand.u32 2147483647, %v8867_v19  ;;  %v5397_v33 = vand.u32 2147483648, %v8867_v19  ;;  %vm5391_vm4 = vweird.f32 %v8867_v19 }
 0x562   : > { %v5374_v6 = vmul.f32 %v6341_v61, %v5373_v29  ;;  %v4601_v10 = vadd.f32 %v4540_v35, %v4374_v8  ;;  %v5120_v45 = vsub.f32 0.0, %v5088_v37  ;;  %v9397_v37 = vld [vmem:[#allocation19_spill] sm:$0xff] }
 0x563   : > { %v5398_v1 = vor.u32 1.1754944e-38, %v5397_v33  ;;  %vm5396_vm6 = vcmp.eq.f32.partialorder %v5395_v11, 8.507059e+37 }
 0x564   : > { %v5375_v24 = vadd.f32 %v6341_v61, %v5374_v6  ;;  %v4827_v58 = vadd.f32 %v8788_v30, %v4601_v10  ;;  %v6345_v15 = vpop.eup %6344  ;;  %v5164_v31 = vmul.f32 1.442695, %v5120_v45 }
 0x565   : > { %v8890_v53 = vadd.f32 1.0, %v6345_v15 }
 0x566   : > { %v5379_v28 = vsel %vm5378_vm1, %v6341_v61, %v5375_v24  ;;  %v5053_v56 = vadd.f32 %v8791_v54, %v4827_v58  ;;  %6192 = vmatmul.msk.bf16.gmra.mxu3 %vm948_vm3, %v4441_v62  ;;  %6348 = vpow2.f32 %v5164_v31  ;;  %v9395_v61 = vld [vmem:[#allocation44_spill] sm:$0xff]  ;;  %v8902_v32 = vpop.f32.mrf.mxu1 }
 0x567   : > { %v6347_v52 = vpop.eup %6346  ;;  %v5384_v2 = vsel %vm5381_vm2, %v5383_v27, %v5379_v28  ;;  %v3924_v23 = vadd.f32 %v9395_v61, %v8465_v49  ;;  %6350 = vrcp.f32 %v8890_v53  ;;  %v8922_v58 = vpop.f32.mrf.mxu0  ;;  %v5410_v36 = vand.u32 2147483647, %v8890_v53 }
 0x568   : > { %5726 = vst.msk [vmem:[%s8693_s30 + $0x48] sm:$0xff] %vm5716_vm9, %v5384_v2  ;;  %v5387_v30 = vmul.f32 %v6347_v52, %v8867_v19  ;;  %v5089_v5 = vadd.f32 %v8631_v57, %v5053_v56  ;;  %vm5392_vm3 = vweird.f32 %v6347_v52  ;;  %v3925_v19 = vadd.f32 %v9397_v37, %v8478_v17  ;;  %v9398_v56 = vld [vmem:[#allocation53_spill] sm:$0xff]  ;;  %v8930_v2 = vpop.f32.mrf.mxu2 }
 0x569   : > { %v4543_v54 = vpop.f32.mrf.mxu3  ;;  %v4150_v48 = vadd.f32 %v9396_v38, %v3924_v23  ;;  %vm5393_vm5 = vmor %vm5391_vm4, %vm5392_vm3  ;;  %v5412_v20 = vand.u32 2147483648, %v8890_v53  ;;  %vm5406_vm8 = vweird.f32 %v8890_v53  ;;  %vm5411_vm11 = vcmp.eq.f32.partialorder %v5410_v36, 8.507059e+37 }
 0x56a   : > { %v5388_v46 = vsub.f32 1.0, %v5387_v30  ;;  %v5121_v21 = vsub.f32 0.0, %v5089_v5  ;;  %v4602_v39 = vadd.f32 %v4543_v54, %v4375_v41 }
 0x56b   : > { %v4376_v34 = vadd.f32 %v8822_v16, %v4150_v48  ;;  %v5413_v54 = vor.u32 1.1754944e-38, %v5412_v20 }
 0x56c   : > { %v5389_v9 = vmul.f32 %v6347_v52, %v5388_v46  ;;  %v5166_v51 = vmul.f32 1.442695, %v5121_v21  ;;  %v4828_v49 = vadd.f32 %v8814_v60, %v4602_v39  ;;  %v6349_v40 = vpop.eup %6348  ;;  %v9399_v39 = vld [vmem:[#allocation34_spill] sm:$0xff] }
 0x56d   : > { %v6351_v29 = vpop.eup %6350  ;;  %v8913_v35 = vadd.f32 1.0, %v6349_v40  ;;  %v3926_v11 = vadd.f32 %v9399_v39, %v8487_v13  ;;  %v9400_v13 = vld [vmem:[#allocation55_spill] sm:$0xff] }
 0x56e   : > { %v5390_v59 = vadd.f32 %v6347_v52, %v5389_v9  ;;  %6352 = vpow2.f32 %v5166_v51  ;;  %v5054_v8 = vadd.f32 %v8818_v44, %v4828_v49  ;;  %v5402_v60 = vmul.f32 %v6351_v29, %v8890_v53  ;;  %v8926_v15 = vpop.f32.mrf.mxu1 }
 0x56f   : > { %6354 = vrcp.f32 %v8913_v35  ;;  %vm5407_vm7 = vweird.f32 %v6351_v29  ;;  %v5425_v51 = vand.u32 2147483647, %v8913_v35  ;;  %v5427_v49 = vand.u32 2147483648, %v8913_v35 }
 0x570   : > { %v5394_v62 = vsel %vm5393_vm5, %v6347_v52, %v5390_v59  ;;  %v5090_v6 = vadd.f32 %v8631_v57, %v5054_v8  ;;  %v5403_v16 = vsub.f32 1.0, %v5402_v60  ;;  %v4151_v52 = vadd.f32 %v9398_v56, %v3925_v19  ;;  %vm5408_vm10 = vmor %vm5406_vm8, %vm5407_vm7  ;;  %v8957_v19 = vpop.f32.mrf.mxu2 }
 0x571   : > { %v5399_v10 = vsel %vm5396_vm6, %v5398_v1, %v5394_v62  ;;  %v4545_v44 = vpop.f32.mrf.mxu3  ;;  %vm5421_vm13 = vweird.f32 %v8913_v35  ;;  %vm5426_vm15 = vcmp.eq.f32.partialorder %v5425_v51, 8.507059e+37 }
 0x572   : > { %5727 = vst.msk [vmem:[%s8693_s30 + $0x50] sm:$0xff] %vm5716_vm9, %v5399_v10  ;;  %v5122_v24 = vsub.f32 0.0, %v5090_v6  ;;  %v4603_v45 = vadd.f32 %v4545_v44, %v4376_v34  ;;  %v5404_v28 = vmul.f32 %v6351_v29, %v5403_v16  ;;  %v4377_v23 = vadd.f32 %v8849_v25, %v4151_v52 }
 0x573   : > { %v4152_v34 = vadd.f32 %v9400_v13, %v3926_v11 }
 0x574   : > { %v6353_v27 = vpop.eup %6352  ;;  %v5168_v17 = vmul.f32 1.442695, %v5122_v24  ;;  %v4829_v31 = vadd.f32 %v8840_v18, %v4603_v45  ;;  %v5405_v30 = vadd.f32 %v6351_v29, %v5404_v28  ;;  %v9401_v24 = vld [vmem:[#allocation36_spill] sm:$0xff] }
 0x575   : > { %v8932_v41 = vadd.f32 1.0, %v6353_v27  ;;  %v6355_v61 = vpop.eup %6354  ;;  %v4378_v37 = vadd.f32 %v8880_v42, %v4152_v34 }
 0x576   : > { %6356 = vpow2.f32 %v5168_v17  ;;  %v5055_v5 = vadd.f32 %v8845_v47, %v4829_v31  ;;  %v5409_v18 = vsel %vm5408_vm10, %v6351_v29, %v5405_v30  ;;  %v5417_v46 = vmul.f32 %v6355_v61, %v8913_v35  ;;  %v8947_v29 = vpop.f32.mrf.mxu0  ;;  %v8952_v62 = vpop.f32.mrf.mxu1  ;;  %v9402_v30 = vld [vmem:[#allocation57_spill] sm:$0xff] }
 0x577   : > { %6358 = vrcp.f32 %v8932_v41  ;;  %v5414_v53 = vsel %vm5411_vm11, %v5413_v54, %v5409_v18  ;;  %vm5422_vm12 = vweird.f32 %v6355_v61  ;;  %v3927_v35 = vadd.f32 %v9401_v24, %v8502_v50  ;;  %v9405_v24 = vld [vmem:[#allocation45_spill] sm:$0xff] }
 0x578   : > { %v5091_v21 = vadd.f32 %v8631_v57, %v5055_v5  ;;  %5728 = vst.msk [vmem:[%s8693_s30 + $0x58] sm:$0xff] %vm5716_vm9, %v5414_v53  ;;  %v5418_v47 = vsub.f32 1.0, %v5417_v46  ;;  %vm5423_vm14 = vmor %vm5421_vm13, %vm5422_vm12  ;;  %v5440_v36 = vand.u32 2147483647, %v8932_v41  ;;  %v5442_v20 = vand.u32 2147483648, %v8932_v41  ;;  %v9403_v53 = vld [vmem:[#allocation43_spill] sm:$0xff] }
 0x579   : > { %v4548_v33 = vpop.f32.mrf.mxu3  ;;  %vm5436_vm1 = vweird.f32 %v8932_v41  ;;  %v4153_v5 = vadd.f32 %v9402_v30, %v3927_v35  ;;  %v3929_v35 = vadd.f32 %v9405_v24, %v8525_v22 }
 0x57a   : > { %v5123_v9 = vsub.f32 0.0, %v5091_v21  ;;  %v4604_v25 = vadd.f32 %v4548_v33, %v4377_v23  ;;  %v5419_v48 = vmul.f32 %v6355_v61, %v5418_v47  ;;  %vm5441_vm3 = vcmp.eq.f32.partialorder %v5440_v36, 8.507059e+37  ;;  %v8985_v47 = vpop.f32.mrf.mxu2 }
 0x57b   : > { %v3928_v33 = vadd.f32 %v9403_v53, %v8512_v63 }
 0x57c   : > { %v6357_v38 = vpop.eup %6356  ;;  %v5170_v40 = vmul.f32 1.442695, %v5123_v9  ;;  %v4830_v59 = vadd.f32 %v8865_v12, %v4604_v25  ;;  %v5420_v60 = vadd.f32 %v6355_v61, %v5419_v48  ;;  %v5428_v12 = vor.u32 1.1754944e-38, %v5427_v49 }
 0x57d   : > { %v6359_v8 = vpop.eup %6358  ;;  %v8950_v1 = vadd.f32 1.0, %v6357_v38 }
 0x57e   : > { %v5432_v6 = vmul.f32 %v6359_v8, %v8932_v41  ;;  %6360 = vpow2.f32 %v5170_v40  ;;  %v5424_v10 = vsel %vm5423_vm14, %v6355_v61, %v5420_v60  ;;  %v5056_v16 = vadd.f32 %v8873_v3, %v4830_v59  ;;  %v8974_v46 = vpop.f32.mrf.mxu0  ;;  %v8977_v41 = vpop.f32.mrf.mxu1 }
 0x57f   : > { %6362 = vrcp.f32 %v8950_v1  ;;  %v5429_v45 = vsel %vm5426_vm15, %v5428_v12, %v5424_v10  ;;  %vm5437_vm0 = vweird.f32 %v6359_v8  ;;  %v5443_v61 = vor.u32 1.1754944e-38, %v5442_v20 }
 0x580   : > { %v5433_v44 = vsub.f32 1.0, %v5432_v6  ;;  %5729 = vst.msk [vmem:[%s8693_s30 + $0x60] sm:$0xff] %vm5716_vm9, %v5429_v45  ;;  %v5092_v28 = vadd.f32 %v8631_v57, %v5056_v16  ;;  %vm5438_vm2 = vmor %vm5436_vm1, %vm5437_vm0  ;;  %v5455_v9 = vand.u32 2147483647, %v8950_v1  ;;  %v5457_v25 = vand.u32 2147483648, %v8950_v1 }
 0x581   : > { %v4550_v42 = vpop.f32.mrf.mxu3  ;;  %vm5451_vm5 = vweird.f32 %v8950_v1 }
 0x582   : > { %v5434_v27 = vmul.f32 %v6359_v8, %v5433_v44  ;;  %v4605_v17 = vadd.f32 %v4550_v42, %v4378_v37  ;;  %v5124_v3 = vsub.f32 0.0, %v5092_v28  ;;  %v5458_v34 = vor.u32 1.1754944e-38, %v5457_v25 }
 0x583   : > { %vm5456_vm7 = vcmp.eq.f32.partialorder %v5455_v9, 8.507059e+37 }
 0x584   : > { %v6361_v31 = vpop.eup %6360  ;;  %v5435_v56 = vadd.f32 %v6359_v8, %v5434_v27  ;;  %v4831_v50 = vadd.f32 %v8899_v55, %v4605_v17  ;;  %v5172_v18 = vmul.f32 1.442695, %v5124_v3  ;;  %v4379_v55 = vadd.f32 %v8906_v0, %v4153_v5  ;;  %v8992_v0 = vld [vmem:[%s9212_s6] ss:$0 sm:$0xff]  ;;  %v9015_v17 = vpop.f32.mrf.mxu2  ;;  %v9406_v3 = vld [vmem:[#allocation61_spill] sm:$0xff] }
 0x585   : > { %v6363_v52 = vpop.eup %6362  ;;  %v8971_v23 = vadd.f32 1.0, %v6361_v31 }
 0x586   : > { %v5439_v54 = vsel %vm5438_vm2, %v6359_v8, %v5435_v56  ;;  %v5447_v57 = vmul.f32 %v6363_v52, %v8950_v1  ;;  %v5057_v11 = vadd.f32 %v8902_v32, %v4831_v50  ;;  %vm5452_vm4 = vweird.f32 %v6363_v52  ;;  %v9404_v8 = vld [vmem:[#allocation59_spill] sm:$0xff]  ;;  %v9007_v45 = vpop.f32.mrf.mxu0  ;;  %v9012_v27 = vpop.f32.mrf.mxu1 }
 0x587   : > { %v5444_v21 = vsel %vm5441_vm3, %v5443_v61, %v5439_v54  ;;  %6364 = vrcp.f32 %v8971_v23  ;;  %v4154_v13 = vadd.f32 %v9404_v8, %v3928_v33  ;;  %vm5453_vm6 = vmor %vm5451_vm5, %vm5452_vm4  ;;  %v5470_v36 = vand.u32 2147483647, %v8971_v23 }
 0x588   : > { %5730 = vst.msk [vmem:[%s8693_s30 + $0x68] sm:$0xff] %vm5716_vm9, %v5444_v21  ;;  %v5448_v39 = vsub.f32 1.0, %v5447_v57  ;;  %6366 = vpow2.f32 %v5172_v18  ;;  %v5093_v38 = vadd.f32 %v8992_v0, %v5057_v11  ;;  %v5472_v20 = vand.u32 2147483648, %v8971_v23 }
 0x589   : > { %v4553_v51 = vpop.f32.mrf.mxu3  ;;  %v4380_v16 = vadd.f32 %v8930_v2, %v4154_v13  ;;  %vm5466_vm10 = vweird.f32 %v8971_v23  ;;  %v4155_v50 = vadd.f32 %v9406_v3, %v3929_v35  ;;  %vm5471_vm12 = vcmp.eq.f32.partialorder %v5470_v36, 8.507059e+37 }
 0x58a   : > { %v5449_v49 = vmul.f32 %v6363_v52, %v5448_v39  ;;  %v4606_v32 = vadd.f32 %v4553_v51, %v4379_v55  ;;  %v5125_v63 = vsub.f32 0.0, %v5093_v38  ;;  %v9407_v39 = vld [vmem:[#allocation49_spill] sm:$0xff] }
 0x58b   : > { %v4381_v55 = vadd.f32 %v8957_v19, %v4155_v50  ;;  %v3930_v11 = vadd.f32 %v9407_v39, %v8531_v43  ;;  %v9408_v43 = vld [vmem:[#allocation63_spill] sm:$0xff] }
 0x58c   : > { %v5450_v48 = vadd.f32 %v6363_v52, %v5449_v49  ;;  %v4832_v40 = vadd.f32 %v8922_v58, %v4606_v32  ;;  %v5174_v12 = vmul.f32 1.442695, %v5125_v63 }
 0x58d   : > { %v6365_v59 = vpop.eup %6364  ;;  %v4156_v63 = vadd.f32 %v9408_v43, %v3930_v11 }
 0x58e   : > { %v6367_v60 = vpop.eup %6366  ;;  %v5454_v6 = vsel %vm5453_vm6, %v6363_v52, %v5450_v48  ;;  %v5462_v37 = vmul.f32 %v6365_v59, %v8971_v23  ;;  %v5058_v1 = vadd.f32 %v8926_v15, %v4832_v40  ;;  %6368 = vpow2.f32 %v5174_v12  ;;  %v9031_v25 = vpop.f32.mrf.mxu0 }
 0x58f   : > { %v5459_v10 = vsel %vm5456_vm7, %v5458_v34, %v5454_v6  ;;  %v8999_v44 = vadd.f32 1.0, %v6367_v60  ;;  %vm5467_vm8 = vweird.f32 %v6365_v59  ;;  %v5473_v52 = vor.u32 1.1754944e-38, %v5472_v20  ;;  %v9035_v49 = vpop.f32.mrf.mxu1  ;;  %v9039_v40 = vpop.f32.mrf.mxu2 }
 0x590   : > { %5731 = vst.msk [vmem:[%s8693_s30 + $0x70] sm:$0xff] %vm5716_vm9, %v5459_v10  ;;  %v5463_v58 = vsub.f32 1.0, %v5462_v37  ;;  %v5094_v2 = vadd.f32 %v8992_v0, %v5058_v1  ;;  %vm5468_vm11 = vmor %vm5466_vm10, %vm5467_vm8  ;;  %v4382_v60 = vadd.f32 %v8985_v47, %v4156_v63  ;;  %v9409_v1 = vld [vmem:[#allocation52_spill] sm:$0xff] }
 0x591   : > { %6370 = vrcp.f32 %v8999_v44  ;;  %v4555_v42 = vpop.f32.mrf.mxu3  ;;  %v5485_v19 = vand.u32 2147483647, %v8999_v44  ;;  %v5487_v51 = vand.u32 2147483648, %v8999_v44  ;;  %vm5481_vm14 = vweird.f32 %v8999_v44 }
 0x592   : > { %v5464_v15 = vmul.f32 %v6365_v59, %v5463_v58  ;;  %v4607_v28 = vadd.f32 %v4555_v42, %v4380_v16  ;;  %v5126_v22 = vsub.f32 0.0, %v5094_v2 }
 0x593   : > { %v5488_v6 = vor.u32 1.1754944e-38, %v5487_v51  ;;  %vm5486_vm0 = vcmp.eq.f32.partialorder %v5485_v19, 8.507059e+37  ;;  %v9412_v51 = vld [vmem:[#allocation67_spill] sm:$0xff] }
 0x594   : > { %v5465_v31 = vadd.f32 %v6365_v59, %v5464_v15  ;;  %v4833_v56 = vadd.f32 %v8947_v29, %v4607_v28  ;;  %v6369_v30 = vpop.eup %6368  ;;  %v5176_v61 = vmul.f32 1.442695, %v5126_v22  ;;  %v9410_v28 = vld [vmem:[#allocation65_spill] sm:$0xff] }
 0x595   : > { %v9021_v21 = vadd.f32 1.0, %v6369_v30 }
 0x596   : > { %v5469_v5 = vsel %vm5468_vm11, %v6365_v59, %v5465_v31  ;;  %v5059_v54 = vadd.f32 %v8952_v62, %v4833_v56  ;;  %6372 = vpow2.f32 %v5176_v61 }
 0x597   : > { %v6371_v57 = vpop.eup %6370  ;;  %v5474_v18 = vsel %vm5471_vm12, %v5473_v52, %v5469_v5  ;;  %6374 = vrcp.f32 %v9021_v21  ;;  %v5500_v35 = vand.u32 2147483647, %v9021_v21  ;;  %v5502_v36 = vand.u32 2147483648, %v9021_v21  ;;  %v9061_v56 = vpop.f32.mrf.mxu1 }
 0x598   : > { %5732 = vst.msk [vmem:[%s8693_s30 + $0x78] sm:$0xff] %vm5716_vm9, %v5474_v18  ;;  %v5477_v29 = vmul.f32 %v6371_v57, %v8999_v44  ;;  %v5095_v23 = vadd.f32 %v8992_v0, %v5059_v54  ;;  %vm5482_vm13 = vweird.f32 %v6371_v57  ;;  %v3931_v44 = vadd.f32 %v9409_v1, %v8542_v14  ;;  %v9056_v14 = vpop.f32.mrf.mxu0  ;;  %v9066_v5 = vpop.f32.mrf.mxu2  ;;  %v9411_v18 = vld [vmem:[#allocation54_spill] sm:$0xff] }
 0x599   : > { %v4558_v53 = vpop.f32.mrf.mxu3  ;;  %vm5483_vm15 = vmor %vm5481_vm14, %vm5482_vm13  ;;  %vm5496_vm2 = vweird.f32 %v9021_v21  ;;  %vm5501_vm4 = vcmp.eq.f32.partialorder %v5500_v35, 8.507059e+37 }
 0x59a   : > { %v5478_v62 = vsub.f32 1.0, %v5477_v29  ;;  %v5127_v33 = vsub.f32 0.0, %v5095_v23  ;;  %v4608_v9 = vadd.f32 %v4558_v53, %v4381_v55  ;;  %v4157_v31 = vadd.f32 %v9410_v28, %v3931_v44 }
 0x59c   : > { %v5479_v38 = vmul.f32 %v6371_v57, %v5478_v62  ;;  %v5178_v32 = vmul.f32 1.442695, %v5127_v33  ;;  %v4834_v48 = vadd.f32 %v8974_v46, %v4608_v9  ;;  %v6373_v59 = vpop.eup %6372  ;;  %v4383_v30 = vadd.f32 %v9015_v17, %v4157_v31 }
 0x59d   : > { %v6375_v34 = vpop.eup %6374  ;;  %v9044_v37 = vadd.f32 1.0, %v6373_v59 }
 0x59e   : > { %v5480_v8 = vadd.f32 %v6371_v57, %v5479_v38  ;;  %6376 = vpow2.f32 %v5178_v32  ;;  %v5060_v13 = vadd.f32 %v8977_v41, %v4834_v48  ;;  %v5492_v12 = vmul.f32 %v6375_v34, %v9021_v21 }
 0x59f   : > { %6378 = vrcp.f32 %v9044_v37  ;;  %vm5497_vm1 = vweird.f32 %v6375_v34  ;;  %v3932_v21 = vadd.f32 %v9411_v18, %v8548_v7  ;;  %v5515_v39 = vand.u32 2147483647, %v9044_v37 }
 0x5a0   : > { %v5484_v46 = vsel %vm5483_vm15, %v6371_v57, %v5480_v8  ;;  %v5096_v10 = vadd.f32 %v8992_v0, %v5060_v13  ;;  %v5493_v47 = vsub.f32 1.0, %v5492_v12  ;;  %vm5498_vm3 = vmor %vm5496_vm2, %vm5497_vm1  ;;  %v5517_v11 = vand.u32 2147483648, %v9044_v37  ;;  %v4794_v43 = vpop.f32.mrf.mxu0 }
 0x5a1   : > { %v5489_v16 = vsel %vm5486_vm0, %v5488_v6, %v5484_v46  ;;  %v4560_v41 = vpop.f32.mrf.mxu3  ;;  %v4158_v7 = vadd.f32 %v9412_v51, %v3932_v21  ;;  %vm5511_vm6 = vweird.f32 %v9044_v37  ;;  %vm5516_vm8 = vcmp.eq.f32.partialorder %v5515_v39, 8.507059e+37 }
 0x5a2   : > { %5733 = vst.msk [vmem:[%s8693_s30 + $0x80] sm:$0xff] %vm5716_vm9, %v5489_v16  ;;  %v5128_v58 = vsub.f32 0.0, %v5096_v10  ;;  %v4609_v24 = vadd.f32 %v4560_v41, %v4382_v60  ;;  %v5494_v42 = vmul.f32 %v6375_v34, %v5493_v47  ;;  %v5518_v59 = vor.u32 1.1754944e-38, %v5517_v11  ;;  %v9413_v60 = vld [vmem:[#allocation56_spill] sm:$0xff] }
 0x5a3   : > { %v4384_v63 = vadd.f32 %v9039_v40, %v4158_v7  ;;  %v3933_v6 = vadd.f32 %v9413_v60, %v8559_v4 }
 0x5a4   : > { %v6377_v20 = vpop.eup %6376  ;;  %v5180_v15 = vmul.f32 1.442695, %v5128_v58  ;;  %v4835_v2 = vadd.f32 %v9007_v45, %v4609_v24  ;;  %v5495_v3 = vadd.f32 %v6375_v34, %v5494_v42  ;;  %v5503_v45 = vor.u32 1.1754944e-38, %v5502_v36  ;;  %v9414_v24 = vld [vmem:[#allocation69_spill] sm:$0xff] }
 0x5a5   : > { %v9059_v22 = vadd.f32 1.0, %v6377_v20  ;;  %v6379_v52 = vpop.eup %6378  ;;  %v4159_v35 = vadd.f32 %v9414_v24, %v3933_v6 }
 0x5a6   : > { %6380 = vpow2.f32 %v5180_v15  ;;  %v5061_v50 = vadd.f32 %v9012_v27, %v4835_v2  ;;  %v5499_v61 = vsel %vm5498_vm3, %v6375_v34, %v5495_v3  ;;  %v5507_v54 = vmul.f32 %v6379_v52, %v9044_v37  ;;  %v4343_v37 = vpop.f32.mrf.mxu2  ;;  %v9415_v3 = vld [vmem:[#allocation58_spill] sm:$0xff] }
 0x5a7   : > { %6382 = vrcp.f32 %v9059_v22  ;;  %v5504_v55 = vsel %vm5501_vm4, %v5503_v45, %v5499_v61  ;;  %vm5512_vm5 = vweird.f32 %v6379_v52  ;;  %v5530_v12 = vand.u32 2147483647, %v9059_v22 }
 0x5a8   : > { %v5097_v57 = vadd.f32 %v8992_v0, %v5061_v50  ;;  %5734 = vst.msk [vmem:[%s8693_s30 + $0x88] sm:$0xff] %vm5716_vm9, %v5504_v55  ;;  %v5508_v17 = vsub.f32 1.0, %v5507_v54  ;;  %vm5513_vm7 = vmor %vm5511_vm6, %vm5512_vm5  ;;  %v5532_v40 = vand.u32 2147483648, %v9059_v22  ;;  %vm5526_vm11 = vweird.f32 %v9059_v22 }
 0x5a9   : > { %v4563_v27 = vpop.f32.mrf.mxu3  ;;  %vm5531_vm13 = vcmp.eq.f32.partialorder %v5530_v12, 8.507059e+37  ;;  %v4385_v31 = vadd.f32 %v9066_v5, %v4159_v35  ;;  %v3934_v50 = vadd.f32 %v9415_v3, %v8565_v26  ;;  %v9419_v12 = vld [vmem:[#allocation72_spill] sm:$0xff] }
 0x5aa   : > { %v5129_v29 = vsub.f32 0.0, %v5097_v57  ;;  %v4610_v23 = vadd.f32 %v4563_v27, %v4383_v30  ;;  %v5509_v62 = vmul.f32 %v6379_v52, %v5508_v17  ;;  %v5533_v36 = vor.u32 1.1754944e-38, %v5532_v40  ;;  %v9416_v17 = vld [vmem:[#allocation71_spill] sm:$0xff] }
 0x5ac   : > { %v6381_v53 = vpop.eup %6380  ;;  %v5182_v33 = vmul.f32 1.442695, %v5129_v29  ;;  %v4836_v9 = vadd.f32 %v9031_v25, %v4610_v23  ;;  %v5510_v32 = vadd.f32 %v6379_v52, %v5509_v62  ;;  %v9085_v25 = vpop.f32.mrf.mxu1  ;;  %v4160_v29 = vadd.f32 %v9416_v17, %v3934_v50 }
 0x5ad   : > { %v6383_v19 = vpop.eup %6382  ;;  %v9079_v38 = vadd.f32 1.0, %v6381_v53 }
 0x5ae   : > { %v5522_v48 = vmul.f32 %v6383_v19, %v9059_v22  ;;  %6384 = vpow2.f32 %v5182_v33  ;;  %v5514_v8 = vsel %vm5513_vm7, %v6379_v52, %v5510_v32  ;;  %v5062_v34 = vadd.f32 %v9035_v49, %v4836_v9  ;;  %v4796_v52 = vpop.f32.mrf.mxu0  ;;  %v4346_v21 = vpop.f32.mrf.mxu2  ;;  %v9418_v32 = vld [vmem:[#allocation60_spill] sm:$0xff] }
 0x5af   : > { %6386 = vrcp.f32 %v9079_v38  ;;  %v5519_v46 = vsel %vm5516_vm8, %v5518_v59, %v5514_v8  ;;  %vm5527_vm10 = vweird.f32 %v6383_v19  ;;  %v5545_v30 = vand.u32 2147483647, %v9079_v38 }
 0x5b0   : > { %v5523_v13 = vsub.f32 1.0, %v5522_v48  ;;  %5735 = vst.msk [vmem:[%s8693_s30 + $0x90] sm:$0xff] %vm5716_vm9, %v5519_v46  ;;  %v5098_v44 = vadd.f32 %v8992_v0, %v5062_v34  ;;  %vm5528_vm12 = vmor %vm5526_vm11, %vm5527_vm10  ;;  %v5547_v45 = vand.u32 2147483648, %v9079_v38  ;;  %vm5541_vm15 = vweird.f32 %v9079_v38 }
 0x5b1   : > { %v4565_v10 = vpop.f32.mrf.mxu3  ;;  %vm5546_vm1 = vcmp.eq.f32.partialorder %v5545_v30, 8.507059e+37  ;;  %v4386_v51 = vadd.f32 %v4343_v37, %v4160_v29 }
 0x5b2   : > { %v5524_v1 = vmul.f32 %v6383_v19, %v5523_v13  ;;  %v4611_v16 = vadd.f32 %v4565_v10, %v4384_v63  ;;  %v5130_v4 = vsub.f32 0.0, %v5098_v44  ;;  %v5548_v23 = vor.u32 1.1754944e-38, %v5547_v45 }
 0x5b4   : > { %v6385_v41 = vpop.eup %6384  ;;  %v5525_v47 = vadd.f32 %v6383_v19, %v5524_v1  ;;  %v4837_v49 = vadd.f32 %v9056_v14, %v4611_v16  ;;  %v5184_v2 = vmul.f32 1.442695, %v5130_v4  ;;  %v5022_v54 = vpop.f32.mrf.mxu1 }
 0x5b5   : > { %v6387_v58 = vpop.eup %6386  ;;  %v9098_v20 = vadd.f32 1.0, %v6385_v41 }
 0x5b6   : > { %v5529_v42 = vsel %vm5528_vm12, %v6383_v19, %v5525_v47  ;;  %v5537_v15 = vmul.f32 %v6387_v58, %v9079_v38  ;;  %v5063_v22 = vadd.f32 %v9061_v56, %v4837_v49  ;;  %vm5542_vm14 = vweird.f32 %v6387_v58  ;;  %v9417_v38 = vld [vmem:[#allocation79_spill] sm:$0xff]  ;;  %v4799_v34 = vpop.f32.mrf.mxu0  ;;  %v4348_v10 = vpop.f32.mrf.mxu2 }
 0x5b7   : > { %v5534_v28 = vsel %vm5531_vm13, %v5533_v36, %v5529_v42  ;;  %6388 = vrcp.f32 %v9098_v20  ;;  %vm5543_vm0 = vmor %vm5541_vm15, %vm5542_vm14  ;;  %v3935_v48 = vadd.f32 %v9418_v32, %v9417_v38  ;;  %v5562_v63 = vand.u32 2147483648, %v9098_v20  ;;  %v9421_v42 = vld [vmem:[#allocation62_spill] sm:$0xff] }
 0x5b8   : > { %5736 = vst.msk [vmem:[%s8693_s30 + $0x98] sm:$0xff] %vm5716_vm9, %v5534_v28  ;;  %v5538_v14 = vsub.f32 1.0, %v5537_v15  ;;  %6390 = vpow2.f32 %v5184_v2  ;;  %v5099_v5 = vadd.f32 %v8992_v0, %v5063_v22  ;;  %vm5556_vm3 = vweird.f32 %v9098_v20 }
 0x5b9   : > { %v4568_v61 = vpop.f32.mrf.mxu3  ;;  %v4161_v40 = vadd.f32 %v9419_v12, %v3935_v48  ;;  %v5563_v1 = vor.u32 1.1754944e-38, %v5562_v63 }
 0x5ba   : > { %v5539_v57 = vmul.f32 %v6387_v58, %v5538_v14  ;;  %v4612_v18 = vadd.f32 %v4568_v61, %v4385_v31  ;;  %v5131_v56 = vsub.f32 0.0, %v5099_v5  ;;  %v9422_v61 = vld [vmem:[#allocation74_spill] sm:$0xff] }
 0x5bb   : > { %v4387_v24 = vadd.f32 %v4346_v21, %v4161_v40 }
 0x5bc   : > { %v5540_v55 = vadd.f32 %v6387_v58, %v5539_v57  ;;  %v4838_v27 = vadd.f32 %v4794_v43, %v4612_v18  ;;  %v5186_v62 = vmul.f32 1.442695, %v5131_v56  ;;  %v5560_v43 = vand.u32 2147483647, %v9098_v20  ;;  %v5025_v60 = vpop.f32.mrf.mxu1 }
 0x5bd   : > { %v6389_v26 = vpop.eup %6388 }
 0x5be   : > { %v6391_v39 = vpop.eup %6390  ;;  %v5544_v11 = vsel %vm5543_vm0, %v6387_v58, %v5540_v55  ;;  %v5552_v53 = vmul.f32 %v6389_v26, %v9098_v20  ;;  %v5064_v19 = vadd.f32 %v9085_v25, %v4838_v27  ;;  %6392 = vpow2.f32 %v5186_v62  ;;  %v9420_v20 = vld [vmem:[#allocation80_spill] sm:$0xff]  ;;  %v4801_v45 = vpop.f32.mrf.mxu0 }
 0x5bf   : > { %v5549_v33 = vsel %vm5546_vm1, %v5548_v23, %v5544_v11  ;;  %v9114_v9 = vadd.f32 1.0, %v6391_v39  ;;  %vm5557_vm2 = vweird.f32 %v6389_v26  ;;  %vm5561_vm5 = vcmp.eq.f32.partialorder %v5560_v43, 8.507059e+37  ;;  %v4351_v27 = vpop.f32.mrf.mxu2  ;;  %v9423_v11 = vld [vmem:[#allocation81_spill] sm:$0xff] }
 0x5c0   : > { %5737 = vst.msk [vmem:[%s8693_s30 + $0xa0] sm:$0xff] %vm5716_vm9, %v5549_v33  ;;  %v5553_v7 = vsub.f32 1.0, %v5552_v53  ;;  %v5100_v13 = vadd.f32 %v8992_v0, %v5064_v19  ;;  %vm5558_vm4 = vmor %vm5556_vm3, %vm5557_vm2  ;;  %v3936_v15 = vadd.f32 %v9421_v42, %v9420_v20  ;;  %v9424_v53 = vld [vmem:[#allocation64_spill] sm:$0xff] }
 0x5c1   : > { %6394 = vrcp.f32 %v9114_v9  ;;  %v4570_v59 = vpop.f32.mrf.mxu3  ;;  %v5575_v22 = vand.u32 2147483647, %v9114_v9  ;;  %v5577_v3 = vand.u32 2147483648, %v9114_v9  ;;  %vm5571_vm7 = vweird.f32 %v9114_v9 }
 0x5c2   : > { %v5554_v8 = vmul.f32 %v6389_v26, %v5553_v7  ;;  %v4613_v25 = vadd.f32 %v4570_v59, %v4386_v51  ;;  %v5132_v37 = vsub.f32 0.0, %v5100_v13  ;;  %v3937_v62 = vadd.f32 %v9424_v53, %v9423_v11 }
 0x5c3   : > { %vm5576_vm10 = vcmp.eq.f32.partialorder %v5575_v22, 8.507059e+37  ;;  %v9428_v22 = vld [vmem:[#allocation76_spill] sm:$0xff] }
 0x5c4   : > { %v5555_v6 = vadd.f32 %v6389_v26, %v5554_v8  ;;  %v4839_v46 = vadd.f32 %v4796_v52, %v4613_v25  ;;  %v6393_v44 = vpop.eup %6392  ;;  %v5188_v41 = vmul.f32 1.442695, %v5132_v37  ;;  %v5027_v5 = vpop.f32.mrf.mxu1  ;;  %v9425_v8 = vld [vmem:[#allocation75_spill] sm:$0xff] }
 0x5c5   : > { %v9127_v58 = vadd.f32 1.0, %v6393_v44  ;;  %v4163_v13 = vadd.f32 %v9425_v8, %v3937_v62 }
 0x5c6   : > { %v5559_v16 = vsel %vm5558_vm4, %v6389_v26, %v5555_v6  ;;  %v5065_v47 = vadd.f32 %v5022_v54, %v4839_v46  ;;  %6396 = vpow2.f32 %v5188_v41  ;;  %v4162_v54 = vadd.f32 %v9422_v61, %v3936_v15  ;;  %v4804_v37 = vpop.f32.mrf.mxu0  ;;  %v9427_v41 = vld [vmem:[#allocation66_spill] sm:$0xff] }
 0x5c7   : > { %v6395_v4 = vpop.eup %6394  ;;  %v5564_v49 = vsel %vm5561_vm5, %v5563_v1, %v5559_v16  ;;  %6398 = vrcp.f32 %v9127_v58  ;;  %v5578_v26 = vor.u32 1.1754944e-38, %v5577_v3  ;;  %v5590_v38 = vand.u32 2147483647, %v9127_v58  ;;  %v9426_v16 = vld [vmem:[#allocation46_spill] sm:$0xff] }
 0x5c8   : > { %5738 = vst.msk [vmem:[%s8693_s30 + $0xa8] sm:$0xff] %vm5716_vm9, %v5564_v49  ;;  %v5567_v35 = vmul.f32 %v6395_v4, %v9114_v9  ;;  %v5101_v36 = vadd.f32 %v8992_v0, %v5065_v47  ;;  %vm5572_vm6 = vweird.f32 %v6395_v4  ;;  %v4388_v56 = vadd.f32 %v4348_v10, %v4162_v54 }
 0x5c9   : > { %v4573_v2 = vpop.f32.mrf.mxu3  ;;  %vm5573_vm8 = vmor %vm5571_vm7, %vm5572_vm6  ;;  %v5592_v32 = vand.u32 2147483648, %v9127_v58  ;;  %vm5586_vm12 = vweird.f32 %v9127_v58  ;;  %v4389_v46 = vadd.f32 %v4351_v27, %v4163_v13  ;;  %vm5591_vm14 = vcmp.eq.f32.partialorder %v5590_v38, 8.507059e+37  ;;  %v9431_v38 = vld [vmem:[#allocation77_spill] sm:$0xff] }
 0x5ca   : > { %v5568_v28 = vsub.f32 1.0, %v5567_v35  ;;  %v5133_v31 = vsub.f32 0.0, %v5101_v36  ;;  %v4614_v14 = vadd.f32 %v4573_v2, %v4387_v24  ;;  %v3938_v47 = vadd.f32 %v9427_v41, %v9426_v16 }
 0x5cb   : > { %v5593_v12 = vor.u32 1.1754944e-38, %v5592_v32 }
 0x5cc   : > { %v5569_v50 = vmul.f32 %v6395_v4, %v5568_v28  ;;  %v5190_v52 = vmul.f32 1.442695, %v5133_v31  ;;  %v4840_v30 = vadd.f32 %v4799_v34, %v4614_v14  ;;  %v6397_v57 = vpop.eup %6396  ;;  %v5030_v40 = vpop.f32.mrf.mxu1  ;;  %v4164_v3 = vadd.f32 %v9428_v22, %v3938_v47 }
 0x5cd   : > { %v6399_v55 = vpop.eup %6398  ;;  %v9140_v17 = vadd.f32 1.0, %v6397_v57 }
 0x5ce   : > { %v5570_v18 = vadd.f32 %v6395_v4, %v5569_v50  ;;  %6400 = vpow2.f32 %v5190_v52  ;;  %v5066_v21 = vadd.f32 %v5025_v60, %v4840_v30  ;;  %v5582_v23 = vmul.f32 %v6399_v55, %v9127_v58 }
 0x5cf   : > { %6402 = vrcp.f32 %v9140_v17  ;;  %vm5587_vm11 = vweird.f32 %v6399_v55  ;;  %v5605_v20 = vand.u32 2147483647, %v9140_v17  ;;  %v5607_v42 = vand.u32 2147483648, %v9140_v17 }
 0x5d0   : > { %v5574_v29 = vsel %vm5573_vm8, %v6395_v4, %v5570_v18  ;;  %v5102_v39 = vadd.f32 %v8992_v0, %v5066_v21  ;;  %v5583_v19 = vsub.f32 1.0, %v5582_v23  ;;  %vm5588_vm13 = vmor %vm5586_vm12, %vm5587_vm11  ;;  %v4353_v4 = vpop.f32.mrf.mxu2  ;;  %vm5601_vm0 = vweird.f32 %v9140_v17  ;;  %v9429_v18 = vld [vmem:[#allocation48_spill] sm:$0xff] }
 0x5d1   : > { %v5579_v33 = vsel %vm5576_vm10, %v5578_v26, %v5574_v29  ;;  %v4575_v9 = vpop.f32.mrf.mxu3  ;;  %v5608_v61 = vor.u32 1.1754944e-38, %v5607_v42  ;;  %vm5606_vm2 = vcmp.eq.f32.partialorder %v5605_v20, 8.507059e+37  ;;  %v9430_v21 = vld [vmem:[#allocation68_spill] sm:$0xff] }
 0x5d2   : > { %5739 = vst.msk [vmem:[%s8693_s30 + $0xb0] sm:$0xff] %vm5716_vm9, %v5579_v33  ;;  %v5134_v51 = vsub.f32 0.0, %v5102_v39  ;;  %v4615_v7 = vadd.f32 %v4575_v9, %v4388_v56  ;;  %v5584_v43 = vmul.f32 %v6399_v55, %v5583_v19  ;;  %v4806_v56 = vpop.f32.mrf.mxu0 }
 0x5d4   : > { %v6401_v48 = vpop.eup %6400  ;;  %v5192_v63 = vmul.f32 1.442695, %v5134_v51  ;;  %v4841_v59 = vadd.f32 %v4801_v45, %v4615_v7  ;;  %v5585_v34 = vadd.f32 %v6399_v55, %v5584_v43  ;;  %v4390_v45 = vadd.f32 %v4353_v4, %v4164_v3  ;;  %v5032_v53 = vpop.f32.mrf.mxu1 }
 0x5d5   : > { %v9152_v25 = vadd.f32 1.0, %v6401_v48  ;;  %v6403_v6 = vpop.eup %6402 }
 0x5d6   : > { %6404 = vpow2.f32 %v5192_v63  ;;  %v5067_v60 = vadd.f32 %v5027_v5, %v4841_v59  ;;  %v5589_v10 = vsel %vm5588_vm13, %v6399_v55, %v5585_v34  ;;  %v5597_v1 = vmul.f32 %v6403_v6, %v9140_v17 }
 0x5d7   : > { %6406 = vrcp.f32 %v9152_v25  ;;  %v5594_v49 = vsel %vm5591_vm14, %v5593_v12, %v5589_v10  ;;  %vm5602_vm15 = vweird.f32 %v6403_v6  ;;  %v3939_v55 = vadd.f32 %v9430_v21, %v9429_v18 }
 0x5d8   : > { %v5103_v44 = vadd.f32 %v8992_v0, %v5067_v60  ;;  %5740 = vst.msk [vmem:[%s8693_s30 + $0xb8] sm:$0xff] %vm5716_vm9, %v5594_v49  ;;  %v5598_v24 = vsub.f32 1.0, %v5597_v1  ;;  %vm5603_vm1 = vmor %vm5601_vm0, %vm5602_vm15  ;;  %v5620_v26 = vand.u32 2147483647, %v9152_v25  ;;  %v5622_v17 = vand.u32 2147483648, %v9152_v25  ;;  %v4356_v62 = vpop.f32.mrf.mxu2 }
 0x5d9   : > { %v4578_v58 = vpop.f32.mrf.mxu3  ;;  %vm5616_vm4 = vweird.f32 %v9152_v25  ;;  %v4165_v32 = vadd.f32 %v9431_v38, %v3939_v55 }
 0x5da   : > { %v5135_v35 = vsub.f32 0.0, %v5103_v44  ;;  %v4616_v36 = vadd.f32 %v4578_v58, %v4389_v46  ;;  %v5599_v2 = vmul.f32 %v6403_v6, %v5598_v24  ;;  %v5623_v48 = vor.u32 1.1754944e-38, %v5622_v17  ;;  %v4809_v10 = vpop.f32.mrf.mxu0 }
 0x5db   : > { %vm5621_vm6 = vcmp.eq.f32.partialorder %v5620_v26, 8.507059e+37  ;;  %v4391_v34 = vadd.f32 %v4356_v62, %v4165_v32 }
 0x5dc   : > { %v6405_v15 = vpop.eup %6404  ;;  %v5194_v28 = vmul.f32 1.442695, %v5135_v35  ;;  %v4842_v31 = vadd.f32 %v4804_v37, %v4616_v36  ;;  %v5600_v52 = vadd.f32 %v6403_v6, %v5599_v2  ;;  %v9433_v37 = vld [vmem:[#allocation70_spill] sm:$0xff]  ;;  %v5035_v47 = vpop.f32.mrf.mxu1 }
 0x5dd   : > { %v6407_v14 = vpop.eup %6406  ;;  %v9165_v50 = vadd.f32 1.0, %v6405_v15  ;;  %v9434_v35 = vld [vmem:[#allocation78_spill] sm:$0xff] }
 0x5de   : > { %v5612_v30 = vmul.f32 %v6407_v14, %v9152_v25  ;;  %6408 = vpow2.f32 %v5194_v28  ;;  %v5604_v54 = vsel %vm5603_vm1, %v6403_v6, %v5600_v52  ;;  %v5068_v5 = vadd.f32 %v5030_v40, %v4842_v31  ;;  %v9432_v6 = vld [vmem:[#allocation51_spill] sm:$0xff] }
 0x5df   : > { %6410 = vrcp.f32 %v9165_v50  ;;  %v5609_v27 = vsel %vm5606_vm2, %v5608_v61, %v5604_v54  ;;  %vm5617_vm3 = vweird.f32 %v6407_v14  ;;  %v3940_v46 = vadd.f32 %v9433_v37, %v9432_v6 }
 0x5e0   : > { %v5613_v57 = vsub.f32 1.0, %v5612_v30  ;;  %5741 = vst.msk [vmem:[%s8693_s30 + $0xc0] sm:$0xff] %vm5716_vm9, %v5609_v27  ;;  %v5104_v39 = vadd.f32 %v8992_v0, %v5068_v5  ;;  %vm5618_vm5 = vmor %vm5616_vm4, %vm5617_vm3  ;;  %v5635_v12 = vand.u32 2147483647, %v9165_v50  ;;  %v5637_v40 = vand.u32 2147483648, %v9165_v50  ;;  %v4358_v20 = vpop.f32.mrf.mxu2 }
 0x5e1   : > { %v4580_v29 = vpop.f32.mrf.mxu3  ;;  %vm5631_vm8 = vweird.f32 %v9165_v50  ;;  %v4166_v36 = vadd.f32 %v9434_v35, %v3940_v46 }
 0x5e2   : > { %v5614_v23 = vmul.f32 %v6407_v14, %v5613_v57  ;;  %v4617_v11 = vadd.f32 %v4580_v29, %v4390_v45  ;;  %v5136_v19 = vsub.f32 0.0, %v5104_v39  ;;  %v5638_v42 = vor.u32 1.1754944e-38, %v5637_v40  ;;  %v4811_v18 = vpop.f32.mrf.mxu0 }
 0x5e3   : > { %vm5636_vm11 = vcmp.eq.f32.partialorder %v5635_v12, 8.507059e+37  ;;  %v4392_v52 = vadd.f32 %v4358_v20, %v4166_v36 }
 0x5e4   : > { %v6409_v33 = vpop.eup %6408  ;;  %v5615_v9 = vadd.f32 %v6407_v14, %v5614_v23  ;;  %v4843_v51 = vadd.f32 %v4806_v56, %v4617_v11  ;;  %v5196_v8 = vmul.f32 1.442695, %v5136_v19  ;;  %v5037_v26 = vpop.f32.mrf.mxu1 }
 0x5e5   : > { %v6411_v7 = vpop.eup %6410  ;;  %v5231_v43 = vadd.f32 1.0, %v6409_v33 }
 0x5e6   : > { %v5619_v63 = vsel %vm5618_vm5, %v6407_v14, %v5615_v9  ;;  %v5627_v59 = vmul.f32 %v6411_v7, %v9165_v50  ;;  %v5069_v25 = vadd.f32 %v5032_v53, %v4843_v51  ;;  %vm5632_vm7 = vweird.f32 %v6411_v7 }
 0x5e7   : > { %v5624_v13 = vsel %vm5621_vm6, %v5623_v48, %v5619_v63  ;;  %6412 = vrcp.f32 %v5231_v43  ;;  %vm5633_vm10 = vmor %vm5631_vm8, %vm5632_vm7  ;;  %v5650_v30 = vand.u32 2147483647, %v5231_v43  ;;  %v5652_v45 = vand.u32 2147483648, %v5231_v43 }
 0x5e8   : > { %5742 = vst.msk [vmem:[%s8693_s30 + $0xc8] sm:$0xff] %vm5716_vm9, %v5624_v13  ;;  %v5628_v60 = vsub.f32 1.0, %v5627_v59  ;;  %6414 = vpow2.f32 %v5196_v8  ;;  %v5105_v16 = vadd.f32 %v8992_v0, %v5069_v25  ;;  %vm5646_vm13 = vweird.f32 %v5231_v43 }
 0x5e9   : > { %v4583_v1 = vpop.f32.mrf.mxu3  ;;  %v5653_v27 = vor.u32 1.1754944e-38, %v5652_v45  ;;  %vm5651_vm15 = vcmp.eq.f32.partialorder %v5650_v30, 8.507059e+37 }
 0x5ea   : > { %v5629_v44 = vmul.f32 %v6411_v7, %v5628_v60  ;;  %v4618_v41 = vadd.f32 %v4583_v1, %v4391_v34  ;;  %v5137_v49 = vsub.f32 0.0, %v5105_v16 }
 0x5ec   : > { %v5630_v4 = vadd.f32 %v6411_v7, %v5629_v44  ;;  %v4844_v58 = vadd.f32 %v4809_v10, %v4618_v41  ;;  %v5198_v31 = vmul.f32 1.442695, %v5137_v49 }
 0x5ed   : > { %v6413_v24 = vpop.eup %6412 }
 0x5ee   : > { %v6415_v15 = vpop.eup %6414  ;;  %v5634_v2 = vsel %vm5633_vm10, %v6411_v7, %v5630_v4  ;;  %v5642_v28 = vmul.f32 %v6413_v24, %v5231_v43  ;;  %v5070_v3 = vadd.f32 %v5035_v47, %v4844_v58  ;;  %6416 = vpow2.f32 %v5198_v31 }
 0x5ef   : > { %v5639_v14 = vsel %vm5636_vm11, %v5638_v42, %v5634_v2  ;;  %v5232_v22 = vadd.f32 1.0, %v6415_v15  ;;  %vm5647_vm12 = vweird.f32 %v6413_v24 }
 0x5f0   : > { %5743 = vst.msk [vmem:[%s8693_s30 + $0xd0] sm:$0xff] %vm5716_vm9, %v5639_v14  ;;  %v5643_v50 = vsub.f32 1.0, %v5642_v28  ;;  %v5106_v57 = vadd.f32 %v8992_v0, %v5070_v3  ;;  %vm5648_vm14 = vmor %vm5646_vm13, %vm5647_vm12 }
 0x5f1   : > { %6418 = vrcp.f32 %v5232_v22  ;;  %v4585_v61 = vpop.f32.mrf.mxu3  ;;  %v5667_v7 = vand.u32 2147483648, %v5232_v22  ;;  %v5665_v32 = vand.u32 2147483647, %v5232_v22  ;;  %vm5661_vm1 = vweird.f32 %v5232_v22 }
 0x5f2   : > { %v5644_v54 = vmul.f32 %v6413_v24, %v5643_v50  ;;  %v4619_v5 = vadd.f32 %v4585_v61, %v4392_v52  ;;  %v5138_v55 = vsub.f32 0.0, %v5106_v57 }
 0x5f3   : > { %v5668_v8 = vor.u32 1.1754944e-38, %v5667_v7  ;;  %vm5666_vm3 = vcmp.eq.f32.partialorder %v5665_v32, 8.507059e+37 }
 0x5f4   : > { %v5645_v21 = vadd.f32 %v6413_v24, %v5644_v54  ;;  %v4845_v56 = vadd.f32 %v4811_v18, %v4619_v5  ;;  %v6417_v17 = vpop.eup %6416  ;;  %v5200_v23 = vmul.f32 1.442695, %v5138_v55 }
 0x5f5   : > { %v5233_v62 = vadd.f32 1.0, %v6417_v17 }
 0x5f6   : > { %v5649_v29 = vsel %vm5648_vm14, %v6413_v24, %v5645_v21  ;;  %v5071_v39 = vadd.f32 %v5037_v26, %v4845_v56  ;;  %6420 = vpow2.f32 %v5200_v23 }
 0x5f7   : > { %v6419_v11 = vpop.eup %6418  ;;  %v5654_v53 = vsel %vm5651_vm15, %v5653_v27, %v5649_v29  ;;  %6422 = vrcp.f32 %v5233_v62  ;;  %v5682_v6 = vand.u32 2147483648, %v5233_v62  ;;  %v5680_v12 = vand.u32 2147483647, %v5233_v62 }
 0x5f8   : > { %5744 = vst.msk [vmem:[%s8693_s30 + $0xd8] sm:$0xff] %vm5716_vm9, %v5654_v53  ;;  %v5657_v33 = vmul.f32 %v6419_v11, %v5232_v22  ;;  %v5107_v9 = vadd.f32 %v8992_v0, %v5071_v39  ;;  %vm5662_vm0 = vweird.f32 %v6419_v11  ;;  %vm5676_vm5 = vweird.f32 %v5233_v62 }
 0x5f9   : > { %vm5663_vm2 = vmor %vm5661_vm1, %vm5662_vm0  ;;  %v5683_v44 = vor.u32 1.1754944e-38, %v5682_v6  ;;  %vm5681_vm7 = vcmp.eq.f32.partialorder %v5680_v12, 8.507059e+37 }
 0x5fa   : > { %v5658_v19 = vsub.f32 1.0, %v5657_v33  ;;  %v5139_v51 = vsub.f32 0.0, %v5107_v9 }
 0x5fc   : > { %v5659_v38 = vmul.f32 %v6419_v11, %v5658_v19  ;;  %v5202_v48 = vmul.f32 1.442695, %v5139_v51  ;;  %v6421_v43 = vpop.eup %6420 }
 0x5fd   : > { %v6423_v59 = vpop.eup %6422  ;;  %v5234_v13 = vadd.f32 1.0, %v6421_v43 }
 0x5fe   : > { %v5660_v63 = vadd.f32 %v6419_v11, %v5659_v38  ;;  %6424 = vpow2.f32 %v5202_v48  ;;  %v5672_v0 = vmul.f32 %v6423_v59, %v5233_v62  ;;  %vm5677_vm4 = vweird.f32 %v6423_v59 }
 0x5ff   : > { %6426 = vrcp.f32 %v5234_v13  ;;  %vm5678_vm6 = vmor %vm5676_vm5, %vm5677_vm4  ;;  %v5697_v49 = vand.u32 2147483648, %v5234_v13  ;;  %v5695_v24 = vand.u32 2147483647, %v5234_v13  ;;  %vm5691_vm10 = vweird.f32 %v5234_v13 }
 0x600   : > { %v5664_v34 = vsel %vm5663_vm2, %v6419_v11, %v5660_v63  ;;  %v5673_v25 = vsub.f32 1.0, %v5672_v0 }
 0x601   : > { %v5669_v60 = vsel %vm5666_vm3, %v5668_v8, %v5664_v34  ;;  %v5698_v42 = vor.u32 1.1754944e-38, %v5697_v49  ;;  %vm5696_vm12 = vcmp.eq.f32.partialorder %v5695_v24, 8.507059e+37 }
 0x602   : > { %5745 = vst.msk [vmem:[%s8693_s30 + $0xe0] sm:$0xff] %vm5716_vm9, %v5669_v60  ;;  %v5674_v46 = vmul.f32 %v6423_v59, %v5673_v25 }
 0x604   : > { %v6425_v37 = vpop.eup %6424  ;;  %v5675_v10 = vadd.f32 %v6423_v59, %v5674_v46 }
 0x605   : > { %v5235_v40 = vadd.f32 1.0, %v6425_v37  ;;  %v6427_v1 = vpop.eup %6426 }
 0x606   : > { %v5679_v16 = vsel %vm5678_vm6, %v6423_v59, %v5675_v10  ;;  %v5687_v41 = vmul.f32 %v6427_v1, %v5234_v13  ;;  %vm5692_vm8 = vweird.f32 %v6427_v1 }
 0x607   : > { %6428 = vrcp.f32 %v5235_v40  ;;  %v5684_v47 = vsel %vm5681_vm7, %v5683_v44, %v5679_v16  ;;  %vm5693_vm11 = vmor %vm5691_vm10, %vm5692_vm8  ;;  %v5712_v31 = vand.u32 2147483648, %v5235_v40  ;;  %v5710_v22 = vand.u32 2147483647, %v5235_v40 }
 0x608   : > { %5746 = vst.msk [vmem:[%s8693_s30 + $0xe8] sm:$0xff] %vm5716_vm9, %v5684_v47  ;;  %v5688_v4 = vsub.f32 1.0, %v5687_v41  ;;  %vm5706_vm14 = vweird.f32 %v5235_v40 }
 0x609   : > { %v5713_v52 = vor.u32 1.1754944e-38, %v5712_v31  ;;  %vm5711_vm0 = vcmp.eq.f32.partialorder %v5710_v22, 8.507059e+37 }
 0x60a   : > { %v5689_v58 = vmul.f32 %v6427_v1, %v5688_v4 }
 0x60c   : > { %v5690_v36 = vadd.f32 %v6427_v1, %v5689_v58 }
 0x60d   : > { %v6429_v35 = vpop.eup %6428 }
 0x60e   : > { %v5702_v20 = vmul.f32 %v6429_v35, %v5235_v40  ;;  %v5694_v15 = vsel %vm5693_vm11, %v6427_v1, %v5690_v36  ;;  %vm5707_vm13 = vweird.f32 %v6429_v35 }
 0x60f   : > { %v5699_v28 = vsel %vm5696_vm12, %v5698_v42, %v5694_v15  ;;  %vm5708_vm15 = vmor %vm5706_vm14, %vm5707_vm13 }
 0x610   : > { %v5703_v2 = vsub.f32 1.0, %v5702_v20  ;;  %5747 = vst.msk [vmem:[%s8693_s30 + $0xf0] sm:$0xff] %vm5716_vm9, %v5699_v28 }
 0x612   : > { %v5704_v14 = vmul.f32 %v6429_v35, %v5703_v2 }
 0x614   : > { %v5705_v3 = vadd.f32 %v6429_v35, %v5704_v14 }
 0x616   : > { %v5709_v50 = vsel %vm5708_vm15, %v6429_v35, %v5705_v3 }
 0x617   : > { %v5714_v30 = vsel %vm5711_vm0, %v5713_v52, %v5709_v50 }
 0x618   : > { %5748 = vst.msk [vmem:[%s8693_s30 + $0xf8] sm:$0xff] %vm5716_vm9, %v5714_v30 }
 0x619 PF: > { %s19_s24 = sadd.s32 1, %s6506_s24  }
 0x61a   : > { %p16_p7 = scmp.ge.s32.totalorder %s19_s24, 4  }
 0x61c   :  { %18 = sbr.rel (!%p16_p7) target bundleno = 2 (0x2), region = 131 }
 0x621   :  { %5770 = vsyncpa [#allocation6], 1 }
 0x622   :  { %5772 = vsyncpa [#allocation6 + $0x1], 1 }
 0x623   :  { %5773 = vsyncpa [#allocation8], 1 }

</bundles_post_ra>
